<compile_context>
chip_gen: v7x
topology: tpu7x:2x2x1
jax: 0.10.0
libtpu: 0.0.40
codegen_flags: <defaults>
</compile_context>

<pallas_src>
import functools

import numpy as np
import jax
import jax.numpy as jnp
from jax.experimental import pallas as pl
from jax.experimental.pallas import tpu as pltpu

# ----------------------------------------------------------------------------
# Architecture configuration (mirrors models/ann_vgg.py)
# ----------------------------------------------------------------------------
cfg_classifier = {
    'dl-vgg9': ['atrous1024', 'output'],
}
cfg_features = {
    'dl-vgg9': [64, 64, 'avg2', 128, 128, 'avg2', 256, 'atrous256', 'atrous256'],
}

LANE = 128
ACT_DTYPE = jnp.bfloat16
VMEM_LIMIT = 32 * 1024 * 1024


def _round_up(v, m):
    return ((v + m - 1) // m) * m


def _cpad(c):
    return max(LANE, _round_up(c, LANE))


# ----------------------------------------------------------------------------
# Model plan / parameter init (dl-vgg9, bn=False, leaky=False, bias-free)
# ----------------------------------------------------------------------------
def build_plan(architecture, input_dim, num_cls, kernel_size):
    # ('conv', cin, cout, k, pad, stride, dilation, relu) / ('pool', k, stride, pad)
    pad = (kernel_size - 1) // 2
    plan = []
    in_ch = input_dim
    for x in cfg_features[architecture]:
        if isinstance(x, str) and x.startswith('avg'):
            plan.append(('pool', kernel_size, int(x[3:]), pad))
        elif isinstance(x, str) and x.startswith('atrous'):
            out_ch = int(x[6:])
            plan.append(('conv', in_ch, out_ch, kernel_size,
                         kernel_size - 1, 1, 2, True))
            in_ch = out_ch
        elif isinstance(x, int):
            plan.append(('conv', in_ch, x, kernel_size, pad, 1, 1, True))
            in_ch = x
        # TODO(synk): 'max'/'score' entries (fcn-* configs) are not used by dl-vgg9.
    for x in cfg_classifier[architecture]:
        if x.startswith('atrous'):
            out_ch = int(x[6:])
            plan.append(('conv', in_ch, out_ch, kernel_size, 12, 1, 12, True))
            in_ch = out_ch
        elif x == 'output':
            # Final 1x1 conv: applied WITHOUT ReLU (matches forward()).
            plan.append(('conv', in_ch, num_cls, 1, 0, 1, 1, False))
            in_ch = num_cls
    return plan


def init_params(plan, key):
    # Xavier-uniform with gain=2, bias-free (matches _init_layers / bias_flag=False).
    params = []
    conv_specs = [op for op in plan if op[0] == 'conv']
    keys = jax.random.split(key, len(conv_specs))
    for op, k in zip(conv_specs, keys):
        _, cin, cout, ks, *_ = op
        fan_in = cin * ks * ks
        fan_out = cout * ks * ks
        bound = 2.0 * (6.0 / (fan_in + fan_out)) ** 0.5
        w = jax.random.uniform(k, (cout, cin, ks, ks), jnp.float32, -bound, bound)
        params.append(w)
    return params


# ----------------------------------------------------------------------------
# Host-side constant matrices (pooling / bilinear upsample) and weight packing
# ----------------------------------------------------------------------------
def _pool1d(n_in, ksize=3, stride=2, pad=1):
    n_out = (n_in + 2 * pad - ksize) // stride + 1
    m = np.zeros((n_out, n_in), np.float32)
    for o in range(n_out):
        for k in range(ksize):
            j = o * stride - pad + k
            if 0 <= j < n_in:
                m[o, j] = 1.0
    return m


def _interp1d(n_out, n_in):
    # 1-D bilinear interpolation matrix, align_corners=True semantics.
    m = np.zeros((n_out, n_in), np.float32)
    if n_out == 1 or n_in == 1:
        m[:, 0] = 1.0
        return m
    scale = (n_in - 1) / (n_out - 1)
    for o in range(n_out):
        pos = o * scale
        i0 = min(int(np.floor(pos)), n_in - 2)
        frac = pos - i0
        m[o, i0] += 1.0 - frac
        m[o, i0 + 1] += frac
    return m


def _pack_conv3x3(w, cin_pad, cout_pad):
    # (cout, cin, 3, 3) -> (9*cin_pad, cout_pad); K order = (kh, kw, cin).
    cout, cin = w.shape[0], w.shape[1]
    wt = jnp.transpose(w, (2, 3, 1, 0))
    wt = jnp.pad(wt, ((0, 0), (0, 0), (0, cin_pad - cin), (0, cout_pad - cout)))
    return wt.reshape(9 * cin_pad, cout_pad).astype(ACT_DTYPE)


def _pack_conv1(w, k_pad, cout_pad):
    # First conv (tiny cin): (cout, cin, 3, 3) -> (k_pad, cout_pad); K = (kh, kw, cin).
    cout, cin = w.shape[0], w.shape[1]
    wt = jnp.transpose(w, (2, 3, 1, 0)).reshape(9 * cin, cout)
    return jnp.pad(wt, ((0, k_pad - 9 * cin), (0, cout_pad - cout))).astype(ACT_DTYPE)


def _pack_center_1x1(w, cout_pad):
    # Centre tap only: (cout, cin, k, k) -> (cin, cout_pad).
    k = w.shape[2]
    wc = jnp.transpose(w[:, :, k // 2, k // 2])
    return jnp.pad(wc, ((0, 0), (0, cout_pad - w.shape[0]))).astype(ACT_DTYPE)


def pack_params(params, img_size):
    H, W = img_size
    assert H % 4 == 0 and W % 4 == 0
    # Centre-tap pruning of the dilation-12 layer is exact only while the
    # off-centre taps never reach real (unpadded) data (bias-free, zero pad).
    assert H // 4 <= 12 and W // 4 <= 12
    assert len(params) == 9
    (w_c1, w_c2, w_c3, w_c4, w_c5, w_a1, w_a2, w_fc, w_out) = params
    k1 = _round_up(9 * w_c1.shape[1], 8)                     # 27 -> 32
    return {
        'w1': _pack_conv1(w_c1, k1, _cpad(w_c1.shape[0])),
        'w2': _pack_conv3x3(w_c2, _cpad(w_c2.shape[1]), _cpad(w_c2.shape[0])),
        'w3': _pack_conv3x3(w_c3, _cpad(w_c3.shape[1]), _cpad(w_c3.shape[0])),
        'w4': _pack_conv3x3(w_c4, _cpad(w_c4.shape[1]), _cpad(w_c4.shape[0])),
        'w5': _pack_conv3x3(w_c5, _cpad(w_c5.shape[1]), _cpad(w_c5.shape[0])),
        'w6': _pack_conv3x3(w_a1, _cpad(w_a1.shape[1]), _cpad(w_a1.shape[0])),
        'w7': _pack_conv3x3(w_a2, _cpad(w_a2.shape[1]), _cpad(w_a2.shape[0])),
        'w8': _pack_center_1x1(w_fc, _cpad(w_fc.shape[0])),
        'w9': _pack_center_1x1(w_out, _cpad(w_out.shape[0])),
        'pool_a': jnp.asarray(np.kron(_pool1d(H), _pool1d(W)) / 9.0),
        'pool_b': jnp.asarray(np.kron(_pool1d(H // 2), _pool1d(W // 2)) / 9.0),
        'up': jnp.asarray(np.kron(_interp1d(H, H // 4), _interp1d(W, W // 4))),
    }


# ----------------------------------------------------------------------------
# Fused forward pass (one pallas_call)
# ----------------------------------------------------------------------------
def ann_vgg_forward(packed, x_nchw, img_size, num_cls):
    N = x_nchw.shape[0]
    H, W = img_size
    H2, W2 = H // 2, W // 2
    H4, W4 = H // 4, W // 4

    w1, w2, w3, w4, w5 = (packed['w1'], packed['w2'], packed['w3'],
                          packed['w4'], packed['w5'])
    w6, w7, w8, w9 = packed['w6'], packed['w7'], packed['w8'], packed['w9']
    pool_a, pool_b, up = packed['pool_a'], packed['pool_b'], packed['up']

    k1 = w1.shape[0]
    c2 = w2.shape[0] // 9          # conv2 cin (padded)  == conv1 cout (padded)
    c3 = w3.shape[0] // 9          # conv3/4 cin (padded)
    c5 = w5.shape[0] // 9          # conv5 cin (padded)
    c6 = w6.shape[0] // 9          # atrous cin (padded)
    cout_f = w9.shape[1]           # final (padded) channel count
    assert w4.shape[0] // 9 == c3 and w7.shape[0] // 9 == c6
    assert w8.shape[0] == w7.shape[1] and w9.shape[0] == w8.shape[1]

    # Host-side im2col for the first conv only (Cin=3): 9 taps * 3 ch = 27 -> k1.
    x = jnp.transpose(x_nchw, (0, 2, 3, 1))                   # NCHW -> NHWC
    cin0 = x.shape[-1]
    xp = jnp.pad(x, ((0, 0), (1, 1), (1, 1), (0, 0)))
    cols = jnp.concatenate([xp[:, kh:kh + H, kw:kw + W, :]
                            for kh in range(3) for kw in range(3)], axis=-1)
    cols = jnp.pad(cols, ((0, 0), (0, 0), (0, 0), (0, k1 - 9 * cin0)))
    col1 = cols.reshape(N, H * W, k1).astype(ACT_DTYPE)

    def kernel(col1_ref, w1_ref, w2_ref, w3_ref, w4_ref, w5_ref, w6_ref, w7_ref,
               w8_ref, w9_ref, pa_ref, pb_ref, up_ref, o_ref,
               cv_a, cv_b, cv_c, cv_d):
        f32 = jnp.float32
        # Zero the padded canvases; interiors are overwritten per use, borders
        # must stay exactly zero (== the conv's zero padding).
        cv_a[...] = jnp.zeros_like(cv_a)
        cv_b[...] = jnp.zeros_like(cv_b)
        cv_c[...] = jnp.zeros_like(cv_c)
        cv_d[...] = jnp.zeros_like(cv_d)

        def conv3x3(canvas, h_flat, hh, ww, w_ref, dil):
            # h_flat: (hh*ww, C) f32 activation; canvas: (hh+2*dil, ww+2*dil, C)
            # (pad == dil for every 3x3 conv in this config).  One im2col concat
            # (K = 9*C, lane-aligned pieces) and ONE matmul per layer.
            c = canvas.shape[-1]
            canvas[dil:dil + hh, dil:dil + ww, :] = h_flat.reshape(hh, ww, c)
            cols_ = jnp.concatenate(
                [canvas[kh * dil:kh * dil + hh,
                        kw * dil:kw * dil + ww, :].reshape(hh * ww, c)
                 for kh in range(3) for kw in range(3)],
                axis=-1).astype(w_ref.dtype)                       # (P, 9C) bf16
            acc = jnp.dot(cols_, w_ref[...], preferred_element_type=f32)
            return jnp.maximum(acc, 0.0)                           # ReLU epilogue (f32)

        # conv1 (3->64): one matmul on the host-built 27-wide im2col.
        h = jnp.dot(col1_ref[...], w1_ref[...], preferred_element_type=f32)
        h = jnp.maximum(h, 0.0)                                    # (H*W, 128)
        h = conv3x3(cv_a, h, H, W, w2_ref, 1)                      # conv2
        h = jnp.dot(pa_ref[...], h, preferred_element_type=f32)    # avg-pool -> H/2
        h = conv3x3(cv_b, h, H2, W2, w3_ref, 1)                    # conv3
        h = conv3x3(cv_b, h, H2, W2, w4_ref, 1)                    # conv4
        h = jnp.dot(pb_ref[...], h, preferred_element_type=f32)    # avg-pool -> H/4
        h = conv3x3(cv_c, h, H4, W4, w5_ref, 1)                    # conv5
        h = conv3x3(cv_d, h, H4, W4, w6_ref, 2)                    # atrous256 a
        h = conv3x3(cv_d, h, H4, W4, w7_ref, 2)                    # atrous256 b
        # atrous1024 (pad=12, dil=12): only the centre tap reaches real data at
        # these sizes (bias-free, zero padding) -> a single 1x1 matmul.
        h = jnp.dot(h.astype(w8_ref.dtype), w8_ref[...], preferred_element_type=f32)
        h = jnp.maximum(h, 0.0)                                    # (H4*W4, 1024)
        # output 1x1 conv (NO ReLU, matches forward()).
        h = jnp.dot(h.astype(w9_ref.dtype), w9_ref[...], preferred_element_type=f32)
        # bilinear upsample (align_corners=True) as one kron(Ah, Aw) matmul.
        o_ref[...] = jnp.dot(up_ref[...], h, preferred_element_type=f32)

    const = lambda n: (0, 0)
    out = pl.pallas_call(
        kernel,
        out_shape=jax.ShapeDtypeStruct((N, H * W, cout_f), jnp.float32),
        grid=(N,),
        in_specs=[
            pl.BlockSpec((None, H * W, k1), lambda n: (n, 0, 0)),
            pl.BlockSpec(w1.shape, const),
            pl.BlockSpec(w2.shape, const),
            pl.BlockSpec(w3.shape, const),
            pl.BlockSpec(w4.shape, const),
            pl.BlockSpec(w5.shape, const),
            pl.BlockSpec(w6.shape, const),
            pl.BlockSpec(w7.shape, const),
            pl.BlockSpec(w8.shape, const),
            pl.BlockSpec(w9.shape, const),
            pl.BlockSpec(pool_a.shape, const),
            pl.BlockSpec(pool_b.shape, const),
            pl.BlockSpec(up.shape, const),
        ],
        out_specs=pl.BlockSpec((None, H * W, cout_f), lambda n: (n, 0, 0)),
        scratch_shapes=[
            pltpu.VMEM((H + 2, W + 2, c2), jnp.float32),        # conv2 canvas
            pltpu.VMEM((H2 + 2, W2 + 2, c3), jnp.float32),      # conv3/4 canvas
            pltpu.VMEM((H4 + 2, W4 + 2, c5), jnp.float32),      # conv5 canvas
            pltpu.VMEM((H4 + 4, W4 + 4, c6), jnp.float32),      # atrous canvas
        ],
        compiler_params=pltpu.CompilerParams(
            dimension_semantics=("parallel",),
            vmem_limit_bytes=VMEM_LIMIT,
        ),
    )(col1, w1, w2, w3, w4, w5, w6, w7, w8, w9, pool_a, pool_b, up)

    out = out.reshape(N, H, W, cout_f)[..., :num_cls]          # drop channel padding
    return jnp.transpose(out, (0, 3, 1, 2))                    # NHWC -> NCHW


# ----------------------------------------------------------------------------
if __name__ == "__main__":
    # Config (small, consistent with the module): dl-vgg9, bn=False, leaky=False.
    architecture = 'dl-vgg9'
    dataset = {'input_dim': 3, 'num_cls': 8}
    img_size = (16, 16)
    kernel_size = 3
    batch = 2

    plan = build_plan(architecture, dataset['input_dim'],
                      dataset['num_cls'], kernel_size)

    root = jax.random.PRNGKey(0)
    k_params, k_x = jax.random.split(root)
    params = init_params(plan, k_params)
    packed = pack_params(params, img_size)        # packed once, outside jit

    x = jax.random.normal(k_x, (batch, dataset['input_dim'],
                                img_size[0], img_size[1]), jnp.float32)

    fwd = jax.jit(functools.partial(ann_vgg_forward, img_size=img_size,
                                    num_cls=dataset['num_cls']))
    out = fwd(packed, x)
    out = jax.block_until_ready(out)

    assert out.shape == (batch, dataset['num_cls'], img_size[0], img_size[1]), out.shape
    assert bool(jnp.all(jnp.isfinite(out)))
    print("KERNEL_OK")
</pallas_src>

<mosaic_0001>
module attributes {stable_mosaic.version = 11 : i64} {
  func.func @kernel(%arg0: i32, %arg1: memref<1x256x32xbf16, #tpu.memory_space<vmem>>, %arg2: memref<32x128xbf16, #tpu.memory_space<vmem>>, %arg3: memref<1152x128xbf16, #tpu.memory_space<vmem>>, %arg4: memref<1152x128xbf16, #tpu.memory_space<vmem>>, %arg5: memref<1152x128xbf16, #tpu.memory_space<vmem>>, %arg6: memref<1152x256xbf16, #tpu.memory_space<vmem>>, %arg7: memref<2304x256xbf16, #tpu.memory_space<vmem>>, %arg8: memref<2304x256xbf16, #tpu.memory_space<vmem>>, %arg9: memref<256x1024xbf16, #tpu.memory_space<vmem>>, %arg10: memref<1024x128xbf16, #tpu.memory_space<vmem>>, %arg11: memref<64x256xf32, #tpu.memory_space<vmem>>, %arg12: memref<16x64xf32, #tpu.memory_space<vmem>>, %arg13: memref<256x16xf32, #tpu.memory_space<vmem>>, %arg14: memref<1x256x128xf32, #tpu.memory_space<vmem>>, %arg15: memref<18x18x128xf32, #tpu.memory_space<vmem>>, %arg16: memref<10x10x128xf32, #tpu.memory_space<vmem>>, %arg17: memref<6x6x128xf32, #tpu.memory_space<vmem>>, %arg18: memref<8x8x256xf32, #tpu.memory_space<vmem>>) attributes {dimension_semantics = [#tpu.dimension_semantics<parallel>], iteration_bounds = array<i64: 2>, scalar_prefetch = 0 : i64, scratch_operands = 4 : i64, tpu.core_type = #tpu.core_type<tc>, window_params = [{transform_indices = @transform_0, window_bounds = array<i64: 1, 256, 32>}, {pipeline_mode = #tpu.pipeline_mode<synchronous>, transform_indices = @transform_1, window_bounds = array<i64: 32, 128>}, {pipeline_mode = #tpu.pipeline_mode<synchronous>, transform_indices = @transform_2, window_bounds = array<i64: 1152, 128>}, {pipeline_mode = #tpu.pipeline_mode<synchronous>, transform_indices = @transform_3, window_bounds = array<i64: 1152, 128>}, {pipeline_mode = #tpu.pipeline_mode<synchronous>, transform_indices = @transform_4, window_bounds = array<i64: 1152, 128>}, {pipeline_mode = #tpu.pipeline_mode<synchronous>, transform_indices = @transform_5, window_bounds = array<i64: 1152, 256>}, {pipeline_mode = #tpu.pipeline_mode<synchronous>, transform_indices = @transform_6, window_bounds = array<i64: 2304, 256>}, {pipeline_mode = #tpu.pipeline_mode<synchronous>, transform_indices = @transform_7, window_bounds = array<i64: 2304, 256>}, {pipeline_mode = #tpu.pipeline_mode<synchronous>, transform_indices = @transform_8, window_bounds = array<i64: 256, 1024>}, {pipeline_mode = #tpu.pipeline_mode<synchronous>, transform_indices = @transform_9, window_bounds = array<i64: 1024, 128>}, {pipeline_mode = #tpu.pipeline_mode<synchronous>, transform_indices = @transform_10, window_bounds = array<i64: 64, 256>}, {pipeline_mode = #tpu.pipeline_mode<synchronous>, transform_indices = @transform_11, window_bounds = array<i64: 16, 64>}, {pipeline_mode = #tpu.pipeline_mode<synchronous>, transform_indices = @transform_12, window_bounds = array<i64: 256, 16>}, {transform_indices = @transform_13, window_bounds = array<i64: 1, 256, 128>}]} {
    %cst = arith.constant 0.000000e+00 : f32
    %0 = vector.broadcast %cst : f32 to vector<18x18x128xf32>
    %c0 = arith.constant 0 : index
    %c0_0 = arith.constant 0 : index
    %c0_1 = arith.constant 0 : index
    %1 = vector.load %arg15[%c0, %c0_0, %c0_1] : memref<18x18x128xf32, #tpu.memory_space<vmem>>, vector<18x18x128xf32>
    tpu.vector_store %arg15[%c0, %c0_0, %c0_1], %0 {strides = array<i32>} : memref<18x18x128xf32, #tpu.memory_space<vmem>>, vector<18x18x128xf32>,
    %cst_2 = arith.constant 0.000000e+00 : f32
    %2 = vector.broadcast %cst_2 : f32 to vector<10x10x128xf32>
    %c0_3 = arith.constant 0 : index
    %c0_4 = arith.constant 0 : index
    %c0_5 = arith.constant 0 : index
    %3 = vector.load %arg16[%c0_3, %c0_4, %c0_5] : memref<10x10x128xf32, #tpu.memory_space<vmem>>, vector<10x10x128xf32>
    tpu.vector_store %arg16[%c0_3, %c0_4, %c0_5], %2 {strides = array<i32>} : memref<10x10x128xf32, #tpu.memory_space<vmem>>, vector<10x10x128xf32>,
    %cst_6 = arith.constant 0.000000e+00 : f32
    %4 = vector.broadcast %cst_6 : f32 to vector<6x6x128xf32>
    %c0_7 = arith.constant 0 : index
    %c0_8 = arith.constant 0 : index
    %c0_9 = arith.constant 0 : index
    %5 = vector.load %arg17[%c0_7, %c0_8, %c0_9] : memref<6x6x128xf32, #tpu.memory_space<vmem>>, vector<6x6x128xf32>
    tpu.vector_store %arg17[%c0_7, %c0_8, %c0_9], %4 {strides = array<i32>} : memref<6x6x128xf32, #tpu.memory_space<vmem>>, vector<6x6x128xf32>,
    %cst_10 = arith.constant 0.000000e+00 : f32
    %6 = vector.broadcast %cst_10 : f32 to vector<8x8x256xf32>
    %c0_11 = arith.constant 0 : index
    %c0_12 = arith.constant 0 : index
    %c0_13 = arith.constant 0 : index
    %7 = vector.load %arg18[%c0_11, %c0_12, %c0_13] : memref<8x8x256xf32, #tpu.memory_space<vmem>>, vector<8x8x256xf32>
    tpu.vector_store %arg18[%c0_11, %c0_12, %c0_13], %6 {strides = array<i32>} : memref<8x8x256xf32, #tpu.memory_space<vmem>>, vector<8x8x256xf32>,
    %c0_14 = arith.constant 0 : index
    %c0_15 = arith.constant 0 : index
    %c0_16 = arith.constant 0 : index
    %8 = vector.load %arg1[%c0_14, %c0_15, %c0_16] : memref<1x256x32xbf16, #tpu.memory_space<vmem>>, vector<1x256x32xbf16>
    %9 = vector.shape_cast %8 : vector<1x256x32xbf16> to vector<256x32xbf16>
    %c0_17 = arith.constant 0 : index
    %c0_18 = arith.constant 0 : index
    %10 = vector.load %arg2[%c0_17, %c0_18] : memref<32x128xbf16, #tpu.memory_space<vmem>>, vector<32x128xbf16>
    %cst_19 = arith.constant dense<0.000000e+00> : vector<256x128xf32>
    %11 = tpu.matmul %9, %10, %cst_19 {dimension_numbers = #tpu.dot_dimension_numbers<[1], [0], [0], [1], [0, 0, 1, 1], [], []>} : vector<256x32xbf16>, vector<32x128xbf16>, vector<256x128xf32> -> vector<256x128xf32>
    %cst_20 = arith.constant 0.000000e+00 : f32
    %12 = vector.broadcast %cst_20 : f32 to vector<256x128xf32>
    %13 = arith.maximumf %11, %12 : vector<256x128xf32>
    %14 = vector.shape_cast %13 : vector<256x128xf32> to vector<16x16x128xf32>
    %c1 = arith.constant 1 : index
    %c1_21 = arith.constant 1 : index
    %c0_22 = arith.constant 0 : index
    %15 = vector.load %arg15[%c1, %c1_21, %c0_22] : memref<18x18x128xf32, #tpu.memory_space<vmem>>, vector<16x16x128xf32>
    tpu.vector_store %arg15[%c1, %c1_21, %c0_22], %14 {strides = array<i32>} : memref<18x18x128xf32, #tpu.memory_space<vmem>>, vector<16x16x128xf32>,
    %c0_23 = arith.constant 0 : index
    %c0_24 = arith.constant 0 : index
    %c0_25 = arith.constant 0 : index
    %16 = vector.load %arg15[%c0_23, %c0_24, %c0_25] : memref<18x18x128xf32, #tpu.memory_space<vmem>>, vector<16x16x128xf32>
    %17 = vector.shape_cast %16 : vector<16x16x128xf32> to vector<256x128xf32>
    %c0_26 = arith.constant 0 : index
    %c1_27 = arith.constant 1 : index
    %c0_28 = arith.constant 0 : index
    %18 = vector.load %arg15[%c0_26, %c1_27, %c0_28] : memref<18x18x128xf32, #tpu.memory_space<vmem>>, vector<16x16x128xf32>
    %19 = vector.shape_cast %18 : vector<16x16x128xf32> to vector<256x128xf32>
    %c0_29 = arith.constant 0 : index
    %c2 = arith.constant 2 : index
    %c0_30 = arith.constant 0 : index
    %20 = vector.load %arg15[%c0_29, %c2, %c0_30] : memref<18x18x128xf32, #tpu.memory_space<vmem>>, vector<16x16x128xf32>
    %21 = vector.shape_cast %20 : vector<16x16x128xf32> to vector<256x128xf32>
    %c1_31 = arith.constant 1 : index
    %c0_32 = arith.constant 0 : index
    %c0_33 = arith.constant 0 : index
    %22 = vector.load %arg15[%c1_31, %c0_32, %c0_33] : memref<18x18x128xf32, #tpu.memory_space<vmem>>, vector<16x16x128xf32>
    %23 = vector.shape_cast %22 : vector<16x16x128xf32> to vector<256x128xf32>
    %c1_34 = arith.constant 1 : index
    %c1_35 = arith.constant 1 : index
    %c0_36 = arith.constant 0 : index
    %24 = vector.load %arg15[%c1_34, %c1_35, %c0_36] : memref<18x18x128xf32, #tpu.memory_space<vmem>>, vector<16x16x128xf32>
    %25 = vector.shape_cast %24 : vector<16x16x128xf32> to vector<256x128xf32>
    %c1_37 = arith.constant 1 : index
    %c2_38 = arith.constant 2 : index
    %c0_39 = arith.constant 0 : index
    %26 = vector.load %arg15[%c1_37, %c2_38, %c0_39] : memref<18x18x128xf32, #tpu.memory_space<vmem>>, vector<16x16x128xf32>
    %27 = vector.shape_cast %26 : vector<16x16x128xf32> to vector<256x128xf32>
    %c2_40 = arith.constant 2 : index
    %c0_41 = arith.constant 0 : index
    %c0_42 = arith.constant 0 : index
    %28 = vector.load %arg15[%c2_40, %c0_41, %c0_42] : memref<18x18x128xf32, #tpu.memory_space<vmem>>, vector<16x16x128xf32>
    %29 = vector.shape_cast %28 : vector<16x16x128xf32> to vector<256x128xf32>
    %c2_43 = arith.constant 2 : index
    %c1_44 = arith.constant 1 : index
    %c0_45 = arith.constant 0 : index
    %30 = vector.load %arg15[%c2_43, %c1_44, %c0_45] : memref<18x18x128xf32, #tpu.memory_space<vmem>>, vector<16x16x128xf32>
    %31 = vector.shape_cast %30 : vector<16x16x128xf32> to vector<256x128xf32>
    %c2_46 = arith.constant 2 : index
    %c2_47 = arith.constant 2 : index
    %c0_48 = arith.constant 0 : index
    %32 = vector.load %arg15[%c2_46, %c2_47, %c0_48] : memref<18x18x128xf32, #tpu.memory_space<vmem>>, vector<16x16x128xf32>
    %33 = vector.shape_cast %32 : vector<16x16x128xf32> to vector<256x128xf32>
    %34 = tpu.concatenate %17, %19, %21, %23, %25, %27, %29, %31, %33 in 1 : vector<256x128xf32>, vector<256x128xf32>, vector<256x128xf32>, vector<256x128xf32>, vector<256x128xf32>, vector<256x128xf32>, vector<256x128xf32>, vector<256x128xf32>, vector<256x128xf32> -> vector<256x1152xf32>
    %35 = arith.truncf %34 : vector<256x1152xf32> to vector<256x1152xbf16>
    %c0_49 = arith.constant 0 : index
    %c0_50 = arith.constant 0 : index
    %36 = vector.load %arg3[%c0_49, %c0_50] : memref<1152x128xbf16, #tpu.memory_space<vmem>>, vector<1152x128xbf16>
    %cst_51 = arith.constant dense<0.000000e+00> : vector<256x128xf32>
    %37 = tpu.matmul %35, %36, %cst_51 {dimension_numbers = #tpu.dot_dimension_numbers<[1], [0], [0], [1], [0, 0, 1, 1], [], []>} : vector<256x1152xbf16>, vector<1152x128xbf16>, vector<256x128xf32> -> vector<256x128xf32>
    %cst_52 = arith.constant 0.000000e+00 : f32
    %38 = vector.broadcast %cst_52 : f32 to vector<256x128xf32>
    %39 = arith.maximumf %37, %38 : vector<256x128xf32>
    %c0_53 = arith.constant 0 : index
    %c0_54 = arith.constant 0 : index
    %40 = vector.load %arg11[%c0_53, %c0_54] : memref<64x256xf32, #tpu.memory_space<vmem>>, vector<64x256xf32>
    %cst_55 = arith.constant dense<0.000000e+00> : vector<64x128xf32>
    %41 = tpu.matmul %40, %39, %cst_55 {dimension_numbers = #tpu.dot_dimension_numbers<[1], [0], [0], [1], [0, 0, 1, 1], [], []>} : vector<64x256xf32>, vector<256x128xf32>, vector<64x128xf32> -> vector<64x128xf32>
    %42 = vector.shape_cast %41 : vector<64x128xf32> to vector<8x8x128xf32>
    %c1_56 = arith.constant 1 : index
    %c1_57 = arith.constant 1 : index
    %c0_58 = arith.constant 0 : index
    %43 = vector.load %arg16[%c1_56, %c1_57, %c0_58] : memref<10x10x128xf32, #tpu.memory_space<vmem>>, vector<8x8x128xf32>
    tpu.vector_store %arg16[%c1_56, %c1_57, %c0_58], %42 {strides = array<i32>} : memref<10x10x128xf32, #tpu.memory_space<vmem>>, vector<8x8x128xf32>,
    %c0_59 = arith.constant 0 : index
    %c0_60 = arith.constant 0 : index
    %c0_61 = arith.constant 0 : index
    %44 = vector.load %arg16[%c0_59, %c0_60, %c0_61] : memref<10x10x128xf32, #tpu.memory_space<vmem>>, vector<8x8x128xf32>
    %45 = vector.shape_cast %44 : vector<8x8x128xf32> to vector<64x128xf32>
    %c0_62 = arith.constant 0 : index
    %c1_63 = arith.constant 1 : index
    %c0_64 = arith.constant 0 : index
    %46 = vector.load %arg16[%c0_62, %c1_63, %c0_64] : memref<10x10x128xf32, #tpu.memory_space<vmem>>, vector<8x8x128xf32>
    %47 = vector.shape_cast %46 : vector<8x8x128xf32> to vector<64x128xf32>
    %c0_65 = arith.constant 0 : index
    %c2_66 = arith.constant 2 : index
    %c0_67 = arith.constant 0 : index
    %48 = vector.load %arg16[%c0_65, %c2_66, %c0_67] : memref<10x10x128xf32, #tpu.memory_space<vmem>>, vector<8x8x128xf32>
    %49 = vector.shape_cast %48 : vector<8x8x128xf32> to vector<64x128xf32>
    %c1_68 = arith.constant 1 : index
    %c0_69 = arith.constant 0 : index
    %c0_70 = arith.constant 0 : index
    %50 = vector.load %arg16[%c1_68, %c0_69, %c0_70] : memref<10x10x128xf32, #tpu.memory_space<vmem>>, vector<8x8x128xf32>
    %51 = vector.shape_cast %50 : vector<8x8x128xf32> to vector<64x128xf32>
    %c1_71 = arith.constant 1 : index
    %c1_72 = arith.constant 1 : index
    %c0_73 = arith.constant 0 : index
    %52 = vector.load %arg16[%c1_71, %c1_72, %c0_73] : memref<10x10x128xf32, #tpu.memory_space<vmem>>, vector<8x8x128xf32>
    %53 = vector.shape_cast %52 : vector<8x8x128xf32> to vector<64x128xf32>
    %c1_74 = arith.constant 1 : index
    %c2_75 = arith.constant 2 : index
    %c0_76 = arith.constant 0 : index
    %54 = vector.load %arg16[%c1_74, %c2_75, %c0_76] : memref<10x10x128xf32, #tpu.memory_space<vmem>>, vector<8x8x128xf32>
    %55 = vector.shape_cast %54 : vector<8x8x128xf32> to vector<64x128xf32>
    %c2_77 = arith.constant 2 : index
    %c0_78 = arith.constant 0 : index
    %c0_79 = arith.constant 0 : index
    %56 = vector.load %arg16[%c2_77, %c0_78, %c0_79] : memref<10x10x128xf32, #tpu.memory_space<vmem>>, vector<8x8x128xf32>
    %57 = vector.shape_cast %56 : vector<8x8x128xf32> to vector<64x128xf32>
    %c2_80 = arith.constant 2 : index
    %c1_81 = arith.constant 1 : index
    %c0_82 = arith.constant 0 : index
    %58 = vector.load %arg16[%c2_80, %c1_81, %c0_82] : memref<10x10x128xf32, #tpu.memory_space<vmem>>, vector<8x8x128xf32>
    %59 = vector.shape_cast %58 : vector<8x8x128xf32> to vector<64x128xf32>
    %c2_83 = arith.constant 2 : index
    %c2_84 = arith.constant 2 : index
    %c0_85 = arith.constant 0 : index
    %60 = vector.load %arg16[%c2_83, %c2_84, %c0_85] : memref<10x10x128xf32, #tpu.memory_space<vmem>>, vector<8x8x128xf32>
    %61 = vector.shape_cast %60 : vector<8x8x128xf32> to vector<64x128xf32>
    %62 = tpu.concatenate %45, %47, %49, %51, %53, %55, %57, %59, %61 in 1 : vector<64x128xf32>, vector<64x128xf32>, vector<64x128xf32>, vector<64x128xf32>, vector<64x128xf32>, vector<64x128xf32>, vector<64x128xf32>, vector<64x128xf32>, vector<64x128xf32> -> vector<64x1152xf32>
    %63 = arith.truncf %62 : vector<64x1152xf32> to vector<64x1152xbf16>
    %c0_86 = arith.constant 0 : index
    %c0_87 = arith.constant 0 : index
    %64 = vector.load %arg4[%c0_86, %c0_87] : memref<1152x128xbf16, #tpu.memory_space<vmem>>, vector<1152x128xbf16>
    %cst_88 = arith.constant dense<0.000000e+00> : vector<64x128xf32>
    %65 = tpu.matmul %63, %64, %cst_88 {dimension_numbers = #tpu.dot_dimension_numbers<[1], [0], [0], [1], [0, 0, 1, 1], [], []>} : vector<64x1152xbf16>, vector<1152x128xbf16>, vector<64x128xf32> -> vector<64x128xf32>
    %cst_89 = arith.constant 0.000000e+00 : f32
    %66 = vector.broadcast %cst_89 : f32 to vector<64x128xf32>
    %67 = arith.maximumf %65, %66 : vector<64x128xf32>
    %68 = vector.shape_cast %67 : vector<64x128xf32> to vector<8x8x128xf32>
    %c1_90 = arith.constant 1 : index
    %c1_91 = arith.constant 1 : index
    %c0_92 = arith.constant 0 : index
    %69 = vector.load %arg16[%c1_90, %c1_91, %c0_92] : memref<10x10x128xf32, #tpu.memory_space<vmem>>, vector<8x8x128xf32>
    tpu.vector_store %arg16[%c1_90, %c1_91, %c0_92], %68 {strides = array<i32>} : memref<10x10x128xf32, #tpu.memory_space<vmem>>, vector<8x8x128xf32>,
    %c0_93 = arith.constant 0 : index
    %c0_94 = arith.constant 0 : index
    %c0_95 = arith.constant 0 : index
    %70 = vector.load %arg16[%c0_93, %c0_94, %c0_95] : memref<10x10x128xf32, #tpu.memory_space<vmem>>, vector<8x8x128xf32>
    %71 = vector.shape_cast %70 : vector<8x8x128xf32> to vector<64x128xf32>
    %c0_96 = arith.constant 0 : index
    %c1_97 = arith.constant 1 : index
    %c0_98 = arith.constant 0 : index
    %72 = vector.load %arg16[%c0_96, %c1_97, %c0_98] : memref<10x10x128xf32, #tpu.memory_space<vmem>>, vector<8x8x128xf32>
    %73 = vector.shape_cast %72 : vector<8x8x128xf32> to vector<64x128xf32>
    %c0_99 = arith.constant 0 : index
    %c2_100 = arith.constant 2 : index
    %c0_101 = arith.constant 0 : index
    %74 = vector.load %arg16[%c0_99, %c2_100, %c0_101] : memref<10x10x128xf32, #tpu.memory_space<vmem>>, vector<8x8x128xf32>
    %75 = vector.shape_cast %74 : vector<8x8x128xf32> to vector<64x128xf32>
    %c1_102 = arith.constant 1 : index
    %c0_103 = arith.constant 0 : index
    %c0_104 = arith.constant 0 : index
    %76 = vector.load %arg16[%c1_102, %c0_103, %c0_104] : memref<10x10x128xf32, #tpu.memory_space<vmem>>, vector<8x8x128xf32>
    %77 = vector.shape_cast %76 : vector<8x8x128xf32> to vector<64x128xf32>
    %c1_105 = arith.constant 1 : index
    %c1_106 = arith.constant 1 : index
    %c0_107 = arith.constant 0 : index
    %78 = vector.load %arg16[%c1_105, %c1_106, %c0_107] : memref<10x10x128xf32, #tpu.memory_space<vmem>>, vector<8x8x128xf32>
    %79 = vector.shape_cast %78 : vector<8x8x128xf32> to vector<64x128xf32>
    %c1_108 = arith.constant 1 : index
    %c2_109 = arith.constant 2 : index
    %c0_110 = arith.constant 0 : index
    %80 = vector.load %arg16[%c1_108, %c2_109, %c0_110] : memref<10x10x128xf32, #tpu.memory_space<vmem>>, vector<8x8x128xf32>
    %81 = vector.shape_cast %80 : vector<8x8x128xf32> to vector<64x128xf32>
    %c2_111 = arith.constant 2 : index
    %c0_112 = arith.constant 0 : index
    %c0_113 = arith.constant 0 : index
    %82 = vector.load %arg16[%c2_111, %c0_112, %c0_113] : memref<10x10x128xf32, #tpu.memory_space<vmem>>, vector<8x8x128xf32>
    %83 = vector.shape_cast %82 : vector<8x8x128xf32> to vector<64x128xf32>
    %c2_114 = arith.constant 2 : index
    %c1_115 = arith.constant 1 : index
    %c0_116 = arith.constant 0 : index
    %84 = vector.load %arg16[%c2_114, %c1_115, %c0_116] : memref<10x10x128xf32, #tpu.memory_space<vmem>>, vector<8x8x128xf32>
    %85 = vector.shape_cast %84 : vector<8x8x128xf32> to vector<64x128xf32>
    %c2_117 = arith.constant 2 : index
    %c2_118 = arith.constant 2 : index
    %c0_119 = arith.constant 0 : index
    %86 = vector.load %arg16[%c2_117, %c2_118, %c0_119] : memref<10x10x128xf32, #tpu.memory_space<vmem>>, vector<8x8x128xf32>
    %87 = vector.shape_cast %86 : vector<8x8x128xf32> to vector<64x128xf32>
    %88 = tpu.concatenate %71, %73, %75, %77, %79, %81, %83, %85, %87 in 1 : vector<64x128xf32>, vector<64x128xf32>, vector<64x128xf32>, vector<64x128xf32>, vector<64x128xf32>, vector<64x128xf32>, vector<64x128xf32>, vector<64x128xf32>, vector<64x128xf32> -> vector<64x1152xf32>
    %89 = arith.truncf %88 : vector<64x1152xf32> to vector<64x1152xbf16>
    %c0_120 = arith.constant 0 : index
    %c0_121 = arith.constant 0 : index
    %90 = vector.load %arg5[%c0_120, %c0_121] : memref<1152x128xbf16, #tpu.memory_space<vmem>>, vector<1152x128xbf16>
    %cst_122 = arith.constant dense<0.000000e+00> : vector<64x128xf32>
    %91 = tpu.matmul %89, %90, %cst_122 {dimension_numbers = #tpu.dot_dimension_numbers<[1], [0], [0], [1], [0, 0, 1, 1], [], []>} : vector<64x1152xbf16>, vector<1152x128xbf16>, vector<64x128xf32> -> vector<64x128xf32>
    %cst_123 = arith.constant 0.000000e+00 : f32
    %92 = vector.broadcast %cst_123 : f32 to vector<64x128xf32>
    %93 = arith.maximumf %91, %92 : vector<64x128xf32>
    %c0_124 = arith.constant 0 : index
    %c0_125 = arith.constant 0 : index
    %94 = vector.load %arg12[%c0_124, %c0_125] : memref<16x64xf32, #tpu.memory_space<vmem>>, vector<16x64xf32>
    %cst_126 = arith.constant dense<0.000000e+00> : vector<16x128xf32>
    %95 = tpu.matmul %94, %93, %cst_126 {dimension_numbers = #tpu.dot_dimension_numbers<[1], [0], [0], [1], [0, 0, 1, 1], [], []>} : vector<16x64xf32>, vector<64x128xf32>, vector<16x128xf32> -> vector<16x128xf32>
    %96 = vector.shape_cast %95 : vector<16x128xf32> to vector<4x4x128xf32>
    %c1_127 = arith.constant 1 : index
    %c1_128 = arith.constant 1 : index
    %c0_129 = arith.constant 0 : index
    %97 = vector.load %arg17[%c1_127, %c1_128, %c0_129] : memref<6x6x128xf32, #tpu.memory_space<vmem>>, vector<4x4x128xf32>
    tpu.vector_store %arg17[%c1_127, %c1_128, %c0_129], %96 {strides = array<i32>} : memref<6x6x128xf32, #tpu.memory_space<vmem>>, vector<4x4x128xf32>,
    %c0_130 = arith.constant 0 : index
    %c0_131 = arith.constant 0 : index
    %c0_132 = arith.constant 0 : index
    %98 = vector.load %arg17[%c0_130, %c0_131, %c0_132] : memref<6x6x128xf32, #tpu.memory_space<vmem>>, vector<4x4x128xf32>
    %99 = vector.shape_cast %98 : vector<4x4x128xf32> to vector<16x128xf32>
    %c0_133 = arith.constant 0 : index
    %c1_134 = arith.constant 1 : index
    %c0_135 = arith.constant 0 : index
    %100 = vector.load %arg17[%c0_133, %c1_134, %c0_135] : memref<6x6x128xf32, #tpu.memory_space<vmem>>, vector<4x4x128xf32>
    %101 = vector.shape_cast %100 : vector<4x4x128xf32> to vector<16x128xf32>
    %c0_136 = arith.constant 0 : index
    %c2_137 = arith.constant 2 : index
    %c0_138 = arith.constant 0 : index
    %102 = vector.load %arg17[%c0_136, %c2_137, %c0_138] : memref<6x6x128xf32, #tpu.memory_space<vmem>>, vector<4x4x128xf32>
    %103 = vector.shape_cast %102 : vector<4x4x128xf32> to vector<16x128xf32>
    %c1_139 = arith.constant 1 : index
    %c0_140 = arith.constant 0 : index
    %c0_141 = arith.constant 0 : index
    %104 = vector.load %arg17[%c1_139, %c0_140, %c0_141] : memref<6x6x128xf32, #tpu.memory_space<vmem>>, vector<4x4x128xf32>
    %105 = vector.shape_cast %104 : vector<4x4x128xf32> to vector<16x128xf32>
    %c1_142 = arith.constant 1 : index
    %c1_143 = arith.constant 1 : index
    %c0_144 = arith.constant 0 : index
    %106 = vector.load %arg17[%c1_142, %c1_143, %c0_144] : memref<6x6x128xf32, #tpu.memory_space<vmem>>, vector<4x4x128xf32>
    %107 = vector.shape_cast %106 : vector<4x4x128xf32> to vector<16x128xf32>
    %c1_145 = arith.constant 1 : index
    %c2_146 = arith.constant 2 : index
    %c0_147 = arith.constant 0 : index
    %108 = vector.load %arg17[%c1_145, %c2_146, %c0_147] : memref<6x6x128xf32, #tpu.memory_space<vmem>>, vector<4x4x128xf32>
    %109 = vector.shape_cast %108 : vector<4x4x128xf32> to vector<16x128xf32>
    %c2_148 = arith.constant 2 : index
    %c0_149 = arith.constant 0 : index
    %c0_150 = arith.constant 0 : index
    %110 = vector.load %arg17[%c2_148, %c0_149, %c0_150] : memref<6x6x128xf32, #tpu.memory_space<vmem>>, vector<4x4x128xf32>
    %111 = vector.shape_cast %110 : vector<4x4x128xf32> to vector<16x128xf32>
    %c2_151 = arith.constant 2 : index
    %c1_152 = arith.constant 1 : index
    %c0_153 = arith.constant 0 : index
    %112 = vector.load %arg17[%c2_151, %c1_152, %c0_153] : memref<6x6x128xf32, #tpu.memory_space<vmem>>, vector<4x4x128xf32>
    %113 = vector.shape_cast %112 : vector<4x4x128xf32> to vector<16x128xf32>
    %c2_154 = arith.constant 2 : index
    %c2_155 = arith.constant 2 : index
    %c0_156 = arith.constant 0 : index
    %114 = vector.load %arg17[%c2_154, %c2_155, %c0_156] : memref<6x6x128xf32, #tpu.memory_space<vmem>>, vector<4x4x128xf32>
    %115 = vector.shape_cast %114 : vector<4x4x128xf32> to vector<16x128xf32>
    %116 = tpu.concatenate %99, %101, %103, %105, %107, %109, %111, %113, %115 in 1 : vector<16x128xf32>, vector<16x128xf32>, vector<16x128xf32>, vector<16x128xf32>, vector<16x128xf32>, vector<16x128xf32>, vector<16x128xf32>, vector<16x128xf32>, vector<16x128xf32> -> vector<16x1152xf32>
    %117 = arith.truncf %116 : vector<16x1152xf32> to vector<16x1152xbf16>
    %c0_157 = arith.constant 0 : index
    %c0_158 = arith.constant 0 : index
    %118 = vector.load %arg6[%c0_157, %c0_158] : memref<1152x256xbf16, #tpu.memory_space<vmem>>, vector<1152x256xbf16>
    %cst_159 = arith.constant dense<0.000000e+00> : vector<16x256xf32>
    %119 = tpu.matmul %117, %118, %cst_159 {dimension_numbers = #tpu.dot_dimension_numbers<[1], [0], [0], [1], [0, 0, 1, 1], [], []>} : vector<16x1152xbf16>, vector<1152x256xbf16>, vector<16x256xf32> -> vector<16x256xf32>
    %cst_160 = arith.constant 0.000000e+00 : f32
    %120 = vector.broadcast %cst_160 : f32 to vector<16x256xf32>
    %121 = arith.maximumf %119, %120 : vector<16x256xf32>
    %122 = vector.shape_cast %121 : vector<16x256xf32> to vector<4x4x256xf32>
    %c2_161 = arith.constant 2 : index
    %c2_162 = arith.constant 2 : index
    %c0_163 = arith.constant 0 : index
    %123 = vector.load %arg18[%c2_161, %c2_162, %c0_163] : memref<8x8x256xf32, #tpu.memory_space<vmem>>, vector<4x4x256xf32>
    tpu.vector_store %arg18[%c2_161, %c2_162, %c0_163], %122 {strides = array<i32>} : memref<8x8x256xf32, #tpu.memory_space<vmem>>, vector<4x4x256xf32>,
    %c0_164 = arith.constant 0 : index
    %c0_165 = arith.constant 0 : index
    %c0_166 = arith.constant 0 : index
    %124 = vector.load %arg18[%c0_164, %c0_165, %c0_166] : memref<8x8x256xf32, #tpu.memory_space<vmem>>, vector<4x4x256xf32>
    %125 = vector.shape_cast %124 : vector<4x4x256xf32> to vector<16x256xf32>
    %c0_167 = arith.constant 0 : index
    %c2_168 = arith.constant 2 : index
    %c0_169 = arith.constant 0 : index
    %126 = vector.load %arg18[%c0_167, %c2_168, %c0_169] : memref<8x8x256xf32, #tpu.memory_space<vmem>>, vector<4x4x256xf32>
    %127 = vector.shape_cast %126 : vector<4x4x256xf32> to vector<16x256xf32>
    %c0_170 = arith.constant 0 : index
    %c4 = arith.constant 4 : index
    %c0_171 = arith.constant 0 : index
    %128 = vector.load %arg18[%c0_170, %c4, %c0_171] : memref<8x8x256xf32, #tpu.memory_space<vmem>>, vector<4x4x256xf32>
    %129 = vector.shape_cast %128 : vector<4x4x256xf32> to vector<16x256xf32>
    %c2_172 = arith.constant 2 : index
    %c0_173 = arith.constant 0 : index
    %c0_174 = arith.constant 0 : index
    %130 = vector.load %arg18[%c2_172, %c0_173, %c0_174] : memref<8x8x256xf32, #tpu.memory_space<vmem>>, vector<4x4x256xf32>
    %131 = vector.shape_cast %130 : vector<4x4x256xf32> to vector<16x256xf32>
    %c2_175 = arith.constant 2 : index
    %c2_176 = arith.constant 2 : index
    %c0_177 = arith.constant 0 : index
    %132 = vector.load %arg18[%c2_175, %c2_176, %c0_177] : memref<8x8x256xf32, #tpu.memory_space<vmem>>, vector<4x4x256xf32>
    %133 = vector.shape_cast %132 : vector<4x4x256xf32> to vector<16x256xf32>
    %c2_178 = arith.constant 2 : index
    %c4_179 = arith.constant 4 : index
    %c0_180 = arith.constant 0 : index
    %134 = vector.load %arg18[%c2_178, %c4_179, %c0_180] : memref<8x8x256xf32, #tpu.memory_space<vmem>>, vector<4x4x256xf32>
    %135 = vector.shape_cast %134 : vector<4x4x256xf32> to vector<16x256xf32>
    %c4_181 = arith.constant 4 : index
    %c0_182 = arith.constant 0 : index
    %c0_183 = arith.constant 0 : index
    %136 = vector.load %arg18[%c4_181, %c0_182, %c0_183] : memref<8x8x256xf32, #tpu.memory_space<vmem>>, vector<4x4x256xf32>
    %137 = vector.shape_cast %136 : vector<4x4x256xf32> to vector<16x256xf32>
    %c4_184 = arith.constant 4 : index
    %c2_185 = arith.constant 2 : index
    %c0_186 = arith.constant 0 : index
    %138 = vector.load %arg18[%c4_184, %c2_185, %c0_186] : memref<8x8x256xf32, #tpu.memory_space<vmem>>, vector<4x4x256xf32>
    %139 = vector.shape_cast %138 : vector<4x4x256xf32> to vector<16x256xf32>
    %c4_187 = arith.constant 4 : index
    %c4_188 = arith.constant 4 : index
    %c0_189 = arith.constant 0 : index
    %140 = vector.load %arg18[%c4_187, %c4_188, %c0_189] : memref<8x8x256xf32, #tpu.memory_space<vmem>>, vector<4x4x256xf32>
    %141 = vector.shape_cast %140 : vector<4x4x256xf32> to vector<16x256xf32>
    %142 = tpu.concatenate %125, %127, %129, %131, %133, %135, %137, %139, %141 in 1 : vector<16x256xf32>, vector<16x256xf32>, vector<16x256xf32>, vector<16x256xf32>, vector<16x256xf32>, vector<16x256xf32>, vector<16x256xf32>, vector<16x256xf32>, vector<16x256xf32> -> vector<16x2304xf32>
    %143 = arith.truncf %142 : vector<16x2304xf32> to vector<16x2304xbf16>
    %c0_190 = arith.constant 0 : index
    %c0_191 = arith.constant 0 : index
    %144 = vector.load %arg7[%c0_190, %c0_191] : memref<2304x256xbf16, #tpu.memory_space<vmem>>, vector<2304x256xbf16>
    %cst_192 = arith.constant dense<0.000000e+00> : vector<16x256xf32>
    %145 = tpu.matmul %143, %144, %cst_192 {dimension_numbers = #tpu.dot_dimension_numbers<[1], [0], [0], [1], [0, 0, 1, 1], [], []>} : vector<16x2304xbf16>, vector<2304x256xbf16>, vector<16x256xf32> -> vector<16x256xf32>
    %cst_193 = arith.constant 0.000000e+00 : f32
    %146 = vector.broadcast %cst_193 : f32 to vector<16x256xf32>
    %147 = arith.maximumf %145, %146 : vector<16x256xf32>
    %148 = vector.shape_cast %147 : vector<16x256xf32> to vector<4x4x256xf32>
    %c2_194 = arith.constant 2 : index
    %c2_195 = arith.constant 2 : index
    %c0_196 = arith.constant 0 : index
    %149 = vector.load %arg18[%c2_194, %c2_195, %c0_196] : memref<8x8x256xf32, #tpu.memory_space<vmem>>, vector<4x4x256xf32>
    tpu.vector_store %arg18[%c2_194, %c2_195, %c0_196], %148 {strides = array<i32>} : memref<8x8x256xf32, #tpu.memory_space<vmem>>, vector<4x4x256xf32>,
    %c0_197 = arith.constant 0 : index
    %c0_198 = arith.constant 0 : index
    %c0_199 = arith.constant 0 : index
    %150 = vector.load %arg18[%c0_197, %c0_198, %c0_199] : memref<8x8x256xf32, #tpu.memory_space<vmem>>, vector<4x4x256xf32>
    %151 = vector.shape_cast %150 : vector<4x4x256xf32> to vector<16x256xf32>
    %c0_200 = arith.constant 0 : index
    %c2_201 = arith.constant 2 : index
    %c0_202 = arith.constant 0 : index
    %152 = vector.load %arg18[%c0_200, %c2_201, %c0_202] : memref<8x8x256xf32, #tpu.memory_space<vmem>>, vector<4x4x256xf32>
    %153 = vector.shape_cast %152 : vector<4x4x256xf32> to vector<16x256xf32>
    %c0_203 = arith.constant 0 : index
    %c4_204 = arith.constant 4 : index
    %c0_205 = arith.constant 0 : index
    %154 = vector.load %arg18[%c0_203, %c4_204, %c0_205] : memref<8x8x256xf32, #tpu.memory_space<vmem>>, vector<4x4x256xf32>
    %155 = vector.shape_cast %154 : vector<4x4x256xf32> to vector<16x256xf32>
    %c2_206 = arith.constant 2 : index
    %c0_207 = arith.constant 0 : index
    %c0_208 = arith.constant 0 : index
    %156 = vector.load %arg18[%c2_206, %c0_207, %c0_208] : memref<8x8x256xf32, #tpu.memory_space<vmem>>, vector<4x4x256xf32>
    %157 = vector.shape_cast %156 : vector<4x4x256xf32> to vector<16x256xf32>
    %c2_209 = arith.constant 2 : index
    %c2_210 = arith.constant 2 : index
    %c0_211 = arith.constant 0 : index
    %158 = vector.load %arg18[%c2_209, %c2_210, %c0_211] : memref<8x8x256xf32, #tpu.memory_space<vmem>>, vector<4x4x256xf32>
    %159 = vector.shape_cast %158 : vector<4x4x256xf32> to vector<16x256xf32>
    %c2_212 = arith.constant 2 : index
    %c4_213 = arith.constant 4 : index
    %c0_214 = arith.constant 0 : index
    %160 = vector.load %arg18[%c2_212, %c4_213, %c0_214] : memref<8x8x256xf32, #tpu.memory_space<vmem>>, vector<4x4x256xf32>
    %161 = vector.shape_cast %160 : vector<4x4x256xf32> to vector<16x256xf32>
    %c4_215 = arith.constant 4 : index
    %c0_216 = arith.constant 0 : index
    %c0_217 = arith.constant 0 : index
    %162 = vector.load %arg18[%c4_215, %c0_216, %c0_217] : memref<8x8x256xf32, #tpu.memory_space<vmem>>, vector<4x4x256xf32>
    %163 = vector.shape_cast %162 : vector<4x4x256xf32> to vector<16x256xf32>
    %c4_218 = arith.constant 4 : index
    %c2_219 = arith.constant 2 : index
    %c0_220 = arith.constant 0 : index
    %164 = vector.load %arg18[%c4_218, %c2_219, %c0_220] : memref<8x8x256xf32, #tpu.memory_space<vmem>>, vector<4x4x256xf32>
    %165 = vector.shape_cast %164 : vector<4x4x256xf32> to vector<16x256xf32>
    %c4_221 = arith.constant 4 : index
    %c4_222 = arith.constant 4 : index
    %c0_223 = arith.constant 0 : index
    %166 = vector.load %arg18[%c4_221, %c4_222, %c0_223] : memref<8x8x256xf32, #tpu.memory_space<vmem>>, vector<4x4x256xf32>
    %167 = vector.shape_cast %166 : vector<4x4x256xf32> to vector<16x256xf32>
    %168 = tpu.concatenate %151, %153, %155, %157, %159, %161, %163, %165, %167 in 1 : vector<16x256xf32>, vector<16x256xf32>, vector<16x256xf32>, vector<16x256xf32>, vector<16x256xf32>, vector<16x256xf32>, vector<16x256xf32>, vector<16x256xf32>, vector<16x256xf32> -> vector<16x2304xf32>
    %169 = arith.truncf %168 : vector<16x2304xf32> to vector<16x2304xbf16>
    %c0_224 = arith.constant 0 : index
    %c0_225 = arith.constant 0 : index
    %170 = vector.load %arg8[%c0_224, %c0_225] : memref<2304x256xbf16, #tpu.memory_space<vmem>>, vector<2304x256xbf16>
    %cst_226 = arith.constant dense<0.000000e+00> : vector<16x256xf32>
    %171 = tpu.matmul %169, %170, %cst_226 {dimension_numbers = #tpu.dot_dimension_numbers<[1], [0], [0], [1], [0, 0, 1, 1], [], []>} : vector<16x2304xbf16>, vector<2304x256xbf16>, vector<16x256xf32> -> vector<16x256xf32>
    %cst_227 = arith.constant 0.000000e+00 : f32
    %172 = vector.broadcast %cst_227 : f32 to vector<16x256xf32>
    %173 = arith.maximumf %171, %172 : vector<16x256xf32>
    %174 = arith.truncf %173 : vector<16x256xf32> to vector<16x256xbf16>
    %c0_228 = arith.constant 0 : index
    %c0_229 = arith.constant 0 : index
    %175 = vector.load %arg9[%c0_228, %c0_229] : memref<256x1024xbf16, #tpu.memory_space<vmem>>, vector<256x1024xbf16>
    %cst_230 = arith.constant dense<0.000000e+00> : vector<16x1024xf32>
    %176 = tpu.matmul %174, %175, %cst_230 {dimension_numbers = #tpu.dot_dimension_numbers<[1], [0], [0], [1], [0, 0, 1, 1], [], []>} : vector<16x256xbf16>, vector<256x1024xbf16>, vector<16x1024xf32> -> vector<16x1024xf32>
    %cst_231 = arith.constant 0.000000e+00 : f32
    %177 = vector.broadcast %cst_231 : f32 to vector<16x1024xf32>
    %178 = arith.maximumf %176, %177 : vector<16x1024xf32>
    %179 = arith.truncf %178 : vector<16x1024xf32> to vector<16x1024xbf16>
    %c0_232 = arith.constant 0 : index
    %c0_233 = arith.constant 0 : index
    %180 = vector.load %arg10[%c0_232, %c0_233] : memref<1024x128xbf16, #tpu.memory_space<vmem>>, vector<1024x128xbf16>
    %cst_234 = arith.constant dense<0.000000e+00> : vector<16x128xf32>
    %181 = tpu.matmul %179, %180, %cst_234 {dimension_numbers = #tpu.dot_dimension_numbers<[1], [0], [0], [1], [0, 0, 1, 1], [], []>} : vector<16x1024xbf16>, vector<1024x128xbf16>, vector<16x128xf32> -> vector<16x128xf32>
    %c0_235 = arith.constant 0 : index
    %c0_236 = arith.constant 0 : index
    %182 = vector.load %arg13[%c0_235, %c0_236] : memref<256x16xf32, #tpu.memory_space<vmem>>, vector<256x16xf32>
    %cst_237 = arith.constant dense<0.000000e+00> : vector<256x128xf32>
    %183 = tpu.matmul %182, %181, %cst_237 {dimension_numbers = #tpu.dot_dimension_numbers<[1], [0], [0], [1], [0, 0, 1, 1], [], []>} : vector<256x16xf32>, vector<16x128xf32>, vector<256x128xf32> -> vector<256x128xf32>
    %c0_238 = arith.constant 0 : index
    %c0_239 = arith.constant 0 : index
    %c0_240 = arith.constant 0 : index
    %184 = vector.load %arg14[%c0_238, %c0_239, %c0_240] : memref<1x256x128xf32, #tpu.memory_space<vmem>>, vector<1x256x128xf32>
    %185 = vector.shape_cast %184 : vector<1x256x128xf32> to vector<256x128xf32>
    %186 = vector.shape_cast %183 : vector<256x128xf32> to vector<1x256x128xf32>
    tpu.vector_store %arg14[%c0_238, %c0_239, %c0_240], %186 {strides = array<i32>} : memref<1x256x128xf32, #tpu.memory_space<vmem>>, vector<1x256x128xf32>,
    return
  }
  func.func @transform_0(%arg0: i32) -> (i32, i32, i32) {
    %c0_i32 = arith.constant 0 : i32
    %c0_i32_0 = arith.constant 0 : i32
    %c0_i32_1 = arith.constant 0 : i32
    return %arg0, %c0_i32, %c0_i32_0 : i32, i32, i32
  }
  func.func @transform_1(%arg0: i32) -> (i32, i32) {
    %c0_i32 = arith.constant 0 : i32
    %c0_i32_0 = arith.constant 0 : i32
    %c0_i32_1 = arith.constant 0 : i32
    return %c0_i32, %c0_i32_0 : i32, i32
  }
  func.func @transform_2(%arg0: i32) -> (i32, i32) {
    %c0_i32 = arith.constant 0 : i32
    %c0_i32_0 = arith.constant 0 : i32
    %c0_i32_1 = arith.constant 0 : i32
    return %c0_i32, %c0_i32_0 : i32, i32
  }
  func.func @transform_3(%arg0: i32) -> (i32, i32) {
    %c0_i32 = arith.constant 0 : i32
    %c0_i32_0 = arith.constant 0 : i32
    %c0_i32_1 = arith.constant 0 : i32
    return %c0_i32, %c0_i32_0 : i32, i32
  }
  func.func @transform_4(%arg0: i32) -> (i32, i32) {
    %c0_i32 = arith.constant 0 : i32
    %c0_i32_0 = arith.constant 0 : i32
    %c0_i32_1 = arith.constant 0 : i32
    return %c0_i32, %c0_i32_0 : i32, i32
  }
  func.func @transform_5(%arg0: i32) -> (i32, i32) {
    %c0_i32 = arith.constant 0 : i32
    %c0_i32_0 = arith.constant 0 : i32
    %c0_i32_1 = arith.constant 0 : i32
    return %c0_i32, %c0_i32_0 : i32, i32
  }
  func.func @transform_6(%arg0: i32) -> (i32, i32) {
    %c0_i32 = arith.constant 0 : i32
    %c0_i32_0 = arith.constant 0 : i32
    %c0_i32_1 = arith.constant 0 : i32
    return %c0_i32, %c0_i32_0 : i32, i32
  }
  func.func @transform_7(%arg0: i32) -> (i32, i32) {
    %c0_i32 = arith.constant 0 : i32
    %c0_i32_0 = arith.constant 0 : i32
    %c0_i32_1 = arith.constant 0 : i32
    return %c0_i32, %c0_i32_0 : i32, i32
  }
  func.func @transform_8(%arg0: i32) -> (i32, i32) {
    %c0_i32 = arith.constant 0 : i32
    %c0_i32_0 = arith.constant 0 : i32
    %c0_i32_1 = arith.constant 0 : i32
    return %c0_i32, %c0_i32_0 : i32, i32
  }
  func.func @transform_9(%arg0: i32) -> (i32, i32) {
    %c0_i32 = arith.constant 0 : i32
    %c0_i32_0 = arith.constant 0 : i32
    %c0_i32_1 = arith.constant 0 : i32
    return %c0_i32, %c0_i32_0 : i32, i32
  }
  func.func @transform_10(%arg0: i32) -> (i32, i32) {
    %c0_i32 = arith.constant 0 : i32
    %c0_i32_0 = arith.constant 0 : i32
    %c0_i32_1 = arith.constant 0 : i32
    return %c0_i32, %c0_i32_0 : i32, i32
  }
  func.func @transform_11(%arg0: i32) -> (i32, i32) {
    %c0_i32 = arith.constant 0 : i32
    %c0_i32_0 = arith.constant 0 : i32
    %c0_i32_1 = arith.constant 0 : i32
    return %c0_i32, %c0_i32_0 : i32, i32
  }
  func.func @transform_12(%arg0: i32) -> (i32, i32) {
    %c0_i32 = arith.constant 0 : i32
    %c0_i32_0 = arith.constant 0 : i32
    %c0_i32_1 = arith.constant 0 : i32
    return %c0_i32, %c0_i32_0 : i32, i32
  }
  func.func @transform_13(%arg0: i32) -> (i32, i32, i32) {
    %c0_i32 = arith.constant 0 : i32
    %c0_i32_0 = arith.constant 0 : i32
    %c0_i32_1 = arith.constant 0 : i32
    return %arg0, %c0_i32, %c0_i32_0 : i32, i32, i32
  }
}

</mosaic_0001>

<bundles_post_ra>
// kernel: ann_vgg_forward.1
= control target key start
LH: loop header
LB: loop body
LE: loop exit
PB: predicated region body
PF: predicated region fallthrough
CT: control target
= control target key end

     0   :  { %s20318_s0 = inlined_call_operand.vmem [shape: bf16[2,256,32], index: 0, kind: input, shape index: {}]   ;;  %s20319_s1 = inlined_call_operand.vmem [shape: bf16[32,128], index: 1, kind: input, shape index: {}]   ;;  %s20320_s2 = inlined_call_operand.hbm [shape: bf16[1152,128], index: 2, kind: input, shape index: {}]   ;;  %s20321_s3 = inlined_call_operand.hbm [shape: bf16[1152,128], index: 3, kind: input, shape index: {}]   ;;  %s20322_s4 = inlined_call_operand.hbm [shape: bf16[1152,128], index: 4, kind: input, shape index: {}]   ;;  %s20323_s5 = inlined_call_operand.hbm [shape: bf16[1152,256], index: 5, kind: input, shape index: {}]   ;;  %s20324_s6 = inlined_call_operand.vmem [shape: bf16[2304,256], index: 6, kind: input, shape index: {}]   ;;  %s20325_s7 = inlined_call_operand.hbm [shape: bf16[2304,256], index: 7, kind: input, shape index: {}]   ;;  %s20326_s8 = inlined_call_operand.hbm [shape: bf16[256,1024], index: 8, kind: input, shape index: {}]   ;;  %s20327_s9 = inlined_call_operand.hbm [shape: bf16[1024,128], index: 9, kind: input, shape index: {}]   ;;  %s20328_s10 = inlined_call_operand.vmem [shape: f32[64,256], index: 10, kind: input, shape index: {}]   ;;  %s20329_s11 = inlined_call_operand.vmem [shape: f32[16,64], index: 11, kind: input, shape index: {}]   ;;  %s20330_s12 = inlined_call_operand.vmem [shape: f32[256,16], index: 12, kind: input, shape index: {}]   ;;  %s20331_s13 = inlined_call_operand.vmem [shape: f32[2,256,128], index: 13, kind: output, shape index: {}]  }
   0x1   :  { %20341 = sst [smem:[#allocation22_spill]] %s20320_s2 }
   0x2   :  { %20342 = sst [smem:[#allocation23_spill]] %s20331_s13 }
   0x3   :  { %18 = vsyncpa [#allocation7], 0 }
   0x4   :  { %19 = vsyncpa [#allocation9], 0 }
   0x5   :  { %20 = vsyncpa [#allocation12], 0 }
   0x6   :  { %21 = vsyncpa [#allocation15], 0  ;;  %s18064_s25 = smov 0  }
   0x7 LB: > { %20343 = sst [smem:[#allocation21_spill]] %s17976_s25  ;;  %s18070_s26 = sadd.s32 4294967295, %s17976_s25   ;;  %s17976_s25 = sphi %s18064_s25, %s27_s25  }
   0x8   : > { %p13487_p0 = scmp.ge.s32.totalorder %s17976_s25, 1  ;;  %p336_p1 = scmp.lt.s32.totalorder %s17976_s25, 3 }
   0x9   : > { %p20335_p2 = scmp.eq.s32.totalorder %s18070_s26, 0  ;;  %s17978_s28 = smov [#allocation8]  }
   0xa   : > { %p18075_p3 = pnand %p13487_p0, %p336_p1  ;;  %s364_s29 = sshll.u32 %s17978_s28, 4  ;;  %s18079_s29 = int_to_ptr.vmem [resolvable:$true] %s364_s29 }
   0xb   : > { %s17979_s30 = smov [#allocation11]   ;;  %s17980_s16 = smov [#allocation14]  }
   0xc   : > { %s20344_s27 = scalar_select %p18075_p3, 1, 0 }
   0xd   : > { %p16179_p4 = pneg %p18075_p3  ;;  %s390_s14 = sshll.u32 %s17979_s30, 4  ;;  %s18083_s14 = int_to_ptr.vmem [resolvable:$true] %s390_s14 }
   0xe   : > { %s18091_s17 = sshll.u32 %s17980_s16, 4  ;;  %s17758_s20 = scalar_lea.hbm %s20321_s3, 9216  ;;  %s420_s17 = int_to_ptr.vmem [resolvable:$true] %s18091_s17 }
   0xf   : > { %p18087_p5 = pnand %p20335_p2, %p16179_p4  ;;  %p17759_p6 = scmp.ne.s32.totalorder %s20321_s3, %s17758_s20 }
  0x10   : > { %p17765_p10 = scmp.lt.u32.totalorder %s17758_s20, %s20321_s3 }
  0x11   : > { %p18101_p7 = pneg %p18087_p5 }
  0x13   : > { %p17761_p8 = pnand %p18101_p7, %p17759_p6 }
  0x15   : > { %p17762_p9 = pneg %p17761_p8 }
  0x17   : > { %p17767_p11 = pnand %p17765_p10, %p17762_p9 }
  0x19   : > { %17770 = shalt.err (!%p17767_p11)
}
  0x1a   : > { %s17771_s30 = scalar_lea.vmem %s18079_s29, 9216  ;;  %p17779_p1 = scmp.lt.s32.totalorder %s18079_s29, %s18079_s29 }
  0x1b   : > { %p17772_p12 = scmp.ne.s32.totalorder %s18079_s29, %s17771_s30  ;;  %p17780_p4 = scmp.lt.s32.totalorder %s17771_s30, %s17771_s30 }
  0x1d   : > { %p17774_p13 = pnand %p17772_p12, %p18101_p7  ;;  %p17781_p6 = por %p17780_p4, %p17779_p1 }
  0x1f   : > { %p17775_p0 = pneg %p17774_p13 }
  0x21   : > { %p17782_p8 = pnand %p17781_p6, %p17775_p0 }
  0x23   : > { %17785 = shalt.err (!%p17782_p8)
}
  0x24   : > { %s20333_s16 = smov 64   ;;  %s20339_s18 = smov 4  }
  0x25   : > { %16185 = dma.hbm_to_vmem [thread:$0]  (!%p18087_p5), %s20321_s3, 9216, %s18079_s29, [#allocation9], %s20333_s16, %s20333_s16, %s20339_s18  }
  0x26   : > { %s17786_s24 = scalar_lea.hbm %s20323_s5, 18432 }
  0x27   : > { %p17787_p9 = scmp.ne.s32.totalorder %s20323_s5, %s17786_s24  ;;  %p17793_p12 = scmp.lt.u32.totalorder %s17786_s24, %s20323_s5 }
  0x29   : > { %p17789_p10 = pnand %p17787_p9, %p18101_p7 }
  0x2b   : > { %p17790_p11 = pneg %p17789_p10 }
  0x2d   : > { %p17795_p13 = pnand %p17793_p12, %p17790_p11 }
  0x2f   : > { %17798 = shalt.err (!%p17795_p13)
}
  0x30   : > { %s17799_s29 = scalar_lea.vmem %s18083_s14, 18432  ;;  %p17807_p6 = scmp.lt.s32.totalorder %s18083_s14, %s18083_s14 }
  0x31   : > { %p17800_p0 = scmp.ne.s32.totalorder %s18083_s14, %s17799_s29  ;;  %p17808_p8 = scmp.lt.s32.totalorder %s17799_s29, %s17799_s29 }
  0x33   : > { %p17802_p1 = pnand %p17800_p0, %p18101_p7  ;;  %p17809_p9 = por %p17808_p8, %p17807_p6 }
  0x35   : > { %p17803_p4 = pneg %p17802_p1 }
  0x37   : > { %p17810_p10 = pnand %p17809_p9, %p17803_p4 }
  0x39   : > { %17813 = shalt.err (!%p17810_p10)
}
  0x3a   : > { %s20337_s19 = smov 128   ;;  %s20338_s13 = smov 8  }
  0x3b   : > { %16191 = dma.hbm_to_vmem [thread:$0]  (!%p18087_p5), %s20323_s5, 18432, %s18083_s14, [#allocation12], %s20337_s19, %s20337_s19, %s20338_s13  }
  0x3c   : > { %s17814_s24 = scalar_lea.hbm %s20326_s8, 16384 }
  0x3d   : > { %p17815_p11 = scmp.ne.s32.totalorder %s20326_s8, %s17814_s24  ;;  %p17821_p0 = scmp.lt.u32.totalorder %s17814_s24, %s20326_s8 }
  0x3f   : > { %p17817_p12 = pnand %p17815_p11, %p18101_p7 }
  0x41   : > { %p17818_p13 = pneg %p17817_p12 }
  0x43   : > { %p17823_p1 = pnand %p17821_p0, %p17818_p13 }
  0x45   : > { %17826 = shalt.err (!%p17823_p1)
}
  0x46   : > { %s17827_s25 = scalar_lea.vmem %s420_s17, 16384  ;;  %p17835_p9 = scmp.lt.s32.totalorder %s420_s17, %s420_s17 }
  0x47   : > { %p17828_p4 = scmp.ne.s32.totalorder %s420_s17, %s17827_s25  ;;  %p17836_p10 = scmp.lt.s32.totalorder %s17827_s25, %s17827_s25 }
  0x49   : > { %p17830_p6 = pnand %p17828_p4, %p18101_p7  ;;  %p17837_p2 = por %p17836_p10, %p17835_p9 }
  0x4b   : > { %p17831_p8 = pneg %p17830_p6 }
  0x4d   : > { %p17838_p3 = pnand %p17837_p2, %p17831_p8 }
  0x4f   : > { %17841 = shalt.err (!%p17838_p3)
}
  0x50   : > { %s17985_s14 = smov 512   ;;  %s17986_s20 = smov 32  }
  0x51   : > { %16197 = dma.hbm_to_vmem [thread:$0]  (!%p18087_p5), %s20326_s8, 16384, %s420_s17, [#allocation15], %s17985_s14, %s17985_s14, %s17986_s20  }
  0x52   : > { %s17987_s22 = smov [#allocation6]   ;;  %s17988_s28 = smov [#allocation10]  }
  0x53   : > { %s351_s24 = sshll.u32 %s17987_s22, 4  ;;  %s377_s30 = sshll.u32 %s17988_s28, 4  ;;  %s352_s24 = int_to_ptr.vmem [resolvable:$true] %s351_s24  ;;  %s18170_s30 = int_to_ptr.vmem [resolvable:$true] %s377_s30 }
  0x54   : > { %s20347_s2 = sld [smem:[#allocation22_spill]] }
  0x5a   : > { %s17842_s19 = scalar_lea.hbm %s20347_s2, 9216 }
  0x5b   : > { %p17843_p2 = scmp.ne.s32.totalorder %s20347_s2, %s17842_s19  ;;  %p17849_p12 = scmp.lt.u32.totalorder %s17842_s19, %s20347_s2 }
  0x5d   : > { %p17845_p3 = pnand %p17843_p2, %p18101_p7 }
  0x5f   : > { %p17846_p11 = pneg %p17845_p3 }
  0x61   : > { %p17851_p13 = pnand %p17849_p12, %p17846_p11 }
  0x63   : > { %17854 = shalt.err (!%p17851_p13)
}
  0x64   : > { %s17855_s14 = scalar_lea.vmem %s352_s24, 9216  ;;  %p17863_p6 = scmp.lt.s32.totalorder %s352_s24, %s352_s24 }
  0x65   : > { %p17856_p0 = scmp.ne.s32.totalorder %s352_s24, %s17855_s14  ;;  %p17864_p8 = scmp.lt.s32.totalorder %s17855_s14, %s17855_s14 }
  0x67   : > { %p17858_p1 = pnand %p17856_p0, %p18101_p7  ;;  %p17865_p9 = por %p17864_p8, %p17863_p6 }
  0x69   : > { %p17859_p4 = pneg %p17858_p1 }
  0x6b   : > { %p17866_p10 = pnand %p17865_p9, %p17859_p4 }
  0x6d   : > { %17869 = shalt.err (!%p17866_p10)
}
  0x6e   : > { %s20348_s18 = smov 4   ;;  %s20349_s13 = smov 64  }
  0x6f   : > { %16182 = dma.hbm_to_vmem [thread:$0]  (!%p18087_p5), %s20347_s2, 9216, %s352_s24, [#allocation7], %s20349_s13, %s20349_s13, %s20348_s18  }
  0x70   : > { %s17870_s28 = scalar_lea.hbm %s20322_s4, 9216 }
  0x71   : > { %p17871_p2 = scmp.ne.s32.totalorder %s20322_s4, %s17870_s28  ;;  %p17877_p12 = scmp.lt.u32.totalorder %s17870_s28, %s20322_s4 }
  0x73   : > { %p17873_p3 = pnand %p17871_p2, %p18101_p7 }
  0x75   : > { %p17874_p11 = pneg %p17873_p3 }
  0x77   : > { %p17879_p13 = pnand %p17877_p12, %p17874_p11 }
  0x79   : > { %17882 = shalt.err (!%p17879_p13)
}
  0x7a   : > { %s17883_s24 = scalar_lea.vmem %s18170_s30, 9216  ;;  %p17891_p6 = scmp.lt.s32.totalorder %s18170_s30, %s18170_s30 }
  0x7b   : > { %p17884_p0 = scmp.ne.s32.totalorder %s18170_s30, %s17883_s24  ;;  %p17892_p8 = scmp.lt.s32.totalorder %s17883_s24, %s17883_s24 }
  0x7d   : > { %p17886_p1 = pnand %p17884_p0, %p18101_p7  ;;  %p17893_p9 = por %p17892_p8, %p17891_p6 }
  0x7f   : > { %p17887_p4 = pneg %p17886_p1 }
  0x81   : > { %p17894_p10 = pnand %p17893_p9, %p17887_p4 }
  0x83   : > { %17897 = shalt.err (!%p17894_p10)
}
  0x84   : > { %16188 = dma.hbm_to_vmem [thread:$0]  (!%p18087_p5), %s20322_s4, 9216, %s18170_s30, [#allocation9], %s20349_s13, %s20349_s13, %s20348_s18  }
  0x85   : > { %s17989_s19 = smov [#allocation13]   ;;  %s17990_s22 = smov [#allocation16]  }
  0x86   : > { %s406_s21 = sshll.u32 %s17989_s19, 4  ;;  %s432_s28 = sshll.u32 %s17990_s22, 4  ;;  %s407_s21 = int_to_ptr.vmem [resolvable:$true] %s406_s21  ;;  %s18219_s28 = int_to_ptr.vmem [resolvable:$true] %s432_s28 }
  0x87   : > { %s17898_s16 = scalar_lea.hbm %s20325_s7, 36864 }
  0x88   : > { %p17899_p2 = scmp.ne.s32.totalorder %s20325_s7, %s17898_s16  ;;  %p17905_p12 = scmp.lt.u32.totalorder %s17898_s16, %s20325_s7 }
  0x8a   : > { %p17901_p3 = pnand %p17899_p2, %p18101_p7 }
  0x8c   : > { %p17902_p11 = pneg %p17901_p3 }
  0x8e   : > { %p17907_p13 = pnand %p17905_p12, %p17902_p11 }
  0x90   : > { %17910 = shalt.err (!%p17907_p13)
}
  0x91   : > { %s17911_s20 = scalar_lea.vmem %s407_s21, 36864  ;;  %p17919_p6 = scmp.lt.s32.totalorder %s407_s21, %s407_s21 }
  0x92   : > { %p17912_p0 = scmp.ne.s32.totalorder %s407_s21, %s17911_s20  ;;  %p17920_p8 = scmp.lt.s32.totalorder %s17911_s20, %s17911_s20 }
  0x94   : > { %p17914_p1 = pnand %p17912_p0, %p18101_p7  ;;  %p17921_p9 = por %p17920_p8, %p17919_p6 }
  0x96   : > { %p17915_p4 = pneg %p17914_p1 }
  0x98   : > { %p17922_p10 = pnand %p17921_p9, %p17915_p4 }
  0x9a   : > { %17925 = shalt.err (!%p17922_p10)
}
  0x9b   : > { %s20350_s19 = smov 8   ;;  %s20351_s22 = smov 128  }
  0x9c   : > { %16194 = dma.hbm_to_vmem [thread:$0]  (!%p18087_p5), %s20325_s7, 36864, %s407_s21, [#allocation12], %s20351_s22, %s20351_s22, %s20350_s19  }
  0x9d   : > { %s17926_s24 = scalar_lea.hbm %s20327_s9, 8192 }
  0x9e   : > { %p17927_p2 = scmp.ne.s32.totalorder %s20327_s9, %s17926_s24  ;;  %p17933_p12 = scmp.lt.u32.totalorder %s17926_s24, %s20327_s9 }
  0xa0   : > { %p17929_p3 = pnand %p17927_p2, %p18101_p7 }
  0xa2   : > { %p17930_p11 = pneg %p17929_p3 }
  0xa4   : > { %p17935_p13 = pnand %p17933_p12, %p17930_p11 }
  0xa6   : > { %17938 = shalt.err (!%p17935_p13)
}
  0xa7   : > { %s17939_s21 = scalar_lea.vmem %s18219_s28, 8192  ;;  %p17947_p6 = scmp.lt.s32.totalorder %s18219_s28, %s18219_s28 }
  0xa8   : > { %p17940_p0 = scmp.ne.s32.totalorder %s18219_s28, %s17939_s21  ;;  %p17948_p8 = scmp.lt.s32.totalorder %s17939_s21, %s17939_s21 }
  0xaa   : > { %p17942_p1 = pnand %p17940_p0, %p18101_p7  ;;  %p17949_p9 = por %p17948_p8, %p17947_p6 }
  0xac   : > { %p17943_p4 = pneg %p17942_p1 }
  0xae   : > { %p17950_p10 = pnand %p17949_p9, %p17943_p4 }
  0xb0   : > { %17953 = shalt.err (!%p17950_p10)
}
  0xb1   : > { %16200 = dma.hbm_to_vmem [thread:$0]  (!%p18087_p5), %s20327_s9, 8192, %s18219_s28, [#allocation15], %s20349_s13, %s20349_s13, %s20348_s18  }
  0xb2   : > { %p20352_p2 = scmp.ne.s32.totalorder %s20344_s27, 0 }
  0xb3   : > { %p20353_p7 = scmp.eq.s32.totalorder (!%p20352_p2), %s18070_s26, 0 }
  0xb4   : > { %465 = sbr.rel (%p20352_p2) target bundleno = 4843 (0x12eb), region = 72 }
  0xbb   : > { %17959 = dma.done.wait (%p20353_p7), [#allocation7], 9216   ;;  %p20354_p3 = pmov %p20353_p7 }
  0xbd   : > { %17961 = vsyncadd (%p20354_p3), [#allocation7], 4294958080  ;;  %p20355_p11 = pmov %p20354_p3 }
  0xbe   : > { %p20356_p12 = pmov %p20354_p3 }
  0xbf   : > { %17963 = dma.done.wait (%p20355_p11), [#allocation9], 18432  }
  0xc0   : > { %17965 = vsyncadd (%p20356_p12), [#allocation9], 4294948864  ;;  %p20357_p13 = pmov %p20354_p3 }
  0xc1   : > { %p20358_p5 = pmov %p20354_p3 }
  0xc2   : > { %17967 = dma.done.wait (%p20357_p13), [#allocation12], 55296  }
  0xc3   : > { %17969 = vsyncadd (%p20358_p5), [#allocation12], 4294912000  ;;  %p20359_p0 = pmov %p20354_p3 }
  0xc5   : > { %17971 = dma.done.wait (%p20359_p0), [#allocation15], 24576   ;;  %p20360_p1 = pmov %p20359_p0 }
  0xc6   : > { %p533_p4 = scmp.lt.s32.totalorder %s18070_s26, 1  ;;  %v17991_v0 = vmov 0.0   ;;  %v16238_v1 = vld [vmem:[%s20319_s1] sm:$0xff]   ;;  %v16239_v2 = vld [vmem:[%s20319_s1 + $0x8] sm:$0xff]   ;;  %vm768_vm0 = vcmask 261120   ;;  %v16260_v20 = vld [vmem:[#allocation6 + $0x50] sm:$0xff]  }
  0xc7   : > { %17973 = vsyncadd (%p20360_p1), [#allocation15], 4294942720  ;;  %550 = vst [vmem:[#allocation2 + $0x30] sm:$0xff] %v17991_v0  ;;  %15810 = vmatprep.subr.bf16.mxu0 %v16238_v1  ;;  %16065 = vmatprep.subr.bf16.mxu1 %v16238_v1  ;;  %v16256_v13 = vld [vmem:[#allocation6 + $0x40] sm:$0xff]   ;;  %v16258_v16 = vld [vmem:[#allocation6 + $0x48] sm:$0xff]   ;;  %v17992_v50 = vmov 0.0|0.0  }
  0xc8   : > { %551 = vst [vmem:[#allocation2 + $0x38] sm:$0xff] %v17991_v0  ;;  %544 = vst [vmem:[#allocation2] sm:$0xff] %v17991_v0  ;;  %s20366_s26 = smov (!%p533_p4, %s18070_s26), 1  ;;  %15811 = vmatpush3.bf16.msra.mxu0 %v16238_v1  ;;  %16067 = vmatpush3.bf16.msra.mxu1 %v16238_v1  ;;  %v16257_v14 = vld [vmem:[#allocation6] sm:$0xff]   ;;  %v16259_v18 = vld [vmem:[#allocation6 + $0x8] sm:$0xff]   ;;  %vm5064_vm1 = vcmask 523264  }
  0xc9   : > { %545 = vst [vmem:[#allocation2 + $0x8] sm:$0xff] %v17991_v0  ;;  %546 = vst [vmem:[#allocation2 + $0x10] sm:$0x3] %v17991_v0  ;;  %s14786_s27 = sshll.u32 %s20366_s26, 7  ;;  %15812 = vmatprep.subr.bf16.mxu0 %v16239_v2  ;;  %16066 = vmatprep.subr.bf16.mxu1 %v16239_v2  ;;  %v16262_v22 = vld [vmem:[#allocation6 + $0xc0] sm:$0xff]   ;;  %v16261_v23 = vld [vmem:[#allocation6 + $0x10] sm:$0xff]  }
  0xca   : > { %547 = vst [vmem:[#allocation2 + $0x18] sm:$0xff] %v17991_v0  ;;  %548 = vst [vmem:[#allocation2 + $0x20] sm:$0xff] %v17991_v0  ;;  %s18392_s18 = scalar_lea.vmem %s20318_s0, %s14786_s27  ;;  %v16264_v24 = vld [vmem:[#allocation6 + $0x80] sm:$0xff]   ;;  %v16263_v25 = vld [vmem:[#allocation6 + $0x58] sm:$0xff]   ;;  %vm6439_vm2 = vcmask 1041408   ;;  %vm6440_vm3 = vcmask 1045508  }
  0xcb   : > { %549 = vst [vmem:[#allocation2 + $0x28] sm:$0x3] %v17991_v0  ;;  %552 = vst [vmem:[#allocation2 + $0x40] sm:$0x3] %v17991_v0  ;;  %v16240_v3 = vld [vmem:[%s18392_s18] sm:$0xff]   ;;  %v16241_v4 = vld [vmem:[%s18392_s18 + $0x8] sm:$0xff]  }
  0xcc   : > { %553 = vst [vmem:[#allocation2 + $0x48] sm:$0xff] %v17991_v0  ;;  %554 = vst [vmem:[#allocation2 + $0x50] sm:$0xff] %v17991_v0  ;;  %15814 = vmatprep.mubr.msk.bf16.mxu0 %vm768_vm0, %v16240_v3  ;;  %15813 = vmatpush3.bf16.msra.mxu0 %v16239_v2  ;;  %v16242_v5 = vld [vmem:[%s18392_s18 + $0x10] sm:$0xff]   ;;  %v16248_v6 = vld [vmem:[%s18392_s18 + $0x40] sm:$0xff]   ;;  %vm13007_vm5 = vcmask 130048   ;;  %s14787_s27 = sshll.u32 %s20366_s26, 8 }
  0xcd   : > { %555 = vst [vmem:[#allocation2 + $0x58] sm:$0x3] %v17991_v0  ;;  %556 = vst [vmem:[#allocation2 + $0x60] sm:$0xff] %v17991_v0  ;;  %16068 = vmatpush3.bf16.msra.mxu1 %v16239_v2  ;;  %v16249_v7 = vld [vmem:[%s18392_s18 + $0x48] sm:$0xff]   ;;  %15830 = vmatprep.mubr.msk.bf16.mxu1 %vm768_vm0, %v16248_v6  ;;  %v16250_v8 = vld [vmem:[%s18392_s18 + $0x50] sm:$0xff]  }
  0xce   : > { %557 = vst [vmem:[#allocation2 + $0x68] sm:$0xff] %v17991_v0  ;;  %558 = vst [vmem:[#allocation2 + $0x70] sm:$0x3] %v17991_v0  ;;  %v16243_v9 = vld [vmem:[%s18392_s18 + $0x18] sm:$0xff]   ;;  %v16244_v10 = vld [vmem:[%s18392_s18 + $0x20] sm:$0xff]   ;;  %14806 = vmatprep.subr.bf16.mxu1 %v16256_v13  ;;  %14918 = vmatprep.subr.bf16.mxu0 %v16262_v22 }
  0xcf   : > { %559 = vst [vmem:[#allocation2 + $0x78] sm:$0xff] %v17991_v0  ;;  %560 = vst [vmem:[#allocation2 + $0x80] sm:$0xff] %v17991_v0  ;;  %15815 = vmatmul.mubr.msk.bf16.vlgmr.msra.gmra.mrb[0].mxu0 %vm768_vm0, %v16241_v4  ;;  %v16251_v11 = vld [vmem:[%s18392_s18 + $0x58] sm:$0xff]   ;;  %v16252_v12 = vld [vmem:[%s18392_s18 + $0x60] sm:$0xff]  }
  0xd0   : > { %561 = vst [vmem:[#allocation2 + $0x88] sm:$0x3] %v17991_v0  ;;  %562 = vst [vmem:[#allocation2 + $0x90] sm:$0xff] %v17991_v0  ;;  %15818 = vmatprep.mubr.msk.bf16.mxu0 %vm768_vm0, %v16242_v5  ;;  %15831 = vmatmul.mubr.msk.bf16.vlgmr.msra.gmra.mrb[0].mxu1 %vm768_vm0, %v16249_v7  ;;  %v16245_v15 = vld [vmem:[%s18392_s18 + $0x28] sm:$0xff]   ;;  %v16246_v17 = vld [vmem:[%s18392_s18 + $0x30] sm:$0xff]  }
  0xd1   : > { %563 = vst [vmem:[#allocation2 + $0x98] sm:$0xff] %v17991_v0  ;;  %564 = vst [vmem:[#allocation2 + $0xa0] sm:$0x3] %v17991_v0  ;;  %15834 = vmatprep.mubr.msk.bf16.mxu1 %vm768_vm0, %v16250_v8  ;;  %14807 = vmatpush3.bf16.msra.mxu1 %v16257_v14  ;;  %v16253_v19 = vld [vmem:[%s18392_s18 + $0x68] sm:$0xff]   ;;  %v16254_v21 = vld [vmem:[%s18392_s18 + $0x70] sm:$0xff]  }
  0xd2   : > { %565 = vst [vmem:[#allocation2 + $0xa8] sm:$0xff] %v17991_v0  ;;  %566 = vst [vmem:[#allocation2 + $0xb0] sm:$0xff] %v17991_v0  ;;  %14808 = vmatprep.subr.bf16.mxu1 %v16258_v16  ;;  %v16247_v26 = vld [vmem:[%s18392_s18 + $0x38] sm:$0xff]   ;;  %v16266_v27 = vld [vmem:[#allocation6 + $0xc8] sm:$0xff]   ;;  %14919 = vmatpush3.bf16.msra.mxu0 %v16264_v24 }
  0xd3   : > { %567 = vst [vmem:[#allocation2 + $0xb8] sm:$0x3] %v17991_v0  ;;  %568 = vst [vmem:[#allocation2 + $0xc0] sm:$0xff] %v17991_v0  ;;  %v16265_v28 = vld [vmem:[#allocation6 + $0x18] sm:$0xff]   ;;  %v16268_v29 = vld [vmem:[#allocation6 + $0x88] sm:$0xff]   ;;  %14920 = vmatprep.subr.bf16.mxu0 %v16266_v27 }
  0xd4   : > { %569 = vst [vmem:[#allocation2 + $0xc8] sm:$0xff] %v17991_v0  ;;  %570 = vst [vmem:[#allocation2 + $0xd0] sm:$0x3] %v17991_v0  ;;  %v16255_v30 = vld [vmem:[%s18392_s18 + $0x78] sm:$0xff]   ;;  %v16267_v31 = vld [vmem:[#allocation6 + $0x60] sm:$0xff]   ;;  %s20363_s18 = sld [smem:[#allocation23_spill]] }
  0xd5   : > { %571 = vst [vmem:[#allocation2 + $0xd8] sm:$0xff] %v17991_v0  ;;  %572 = vst [vmem:[#allocation2 + $0xe0] sm:$0xff] %v17991_v0  ;;  %14809 = vmatpush3.bf16.msra.mxu1 %v16259_v18  ;;  %v16270_v32 = vld [vmem:[#allocation6 + $0xd0] sm:$0xff]   ;;  %v16269_v33 = vld [vmem:[#allocation6 + $0x20] sm:$0xff]  }
  0xd6   : > { %573 = vst [vmem:[#allocation2 + $0xe8] sm:$0x3] %v17991_v0  ;;  %574 = vst [vmem:[#allocation2 + $0xf0] sm:$0xff] %v17991_v0  ;;  %14810 = vmatprep.subr.bf16.mxu1 %v16260_v20  ;;  %14921 = vmatpush3.bf16.msra.mxu0 %v16268_v29  ;;  %v16272_v34 = vld [vmem:[#allocation6 + $0x90] sm:$0xff]   ;;  %v16271_v35 = vld [vmem:[#allocation6 + $0x68] sm:$0xff]  }
  0xd7   : > { %575 = vst [vmem:[#allocation2 + $0xf8] sm:$0xff] %v17991_v0  ;;  %576 = vst [vmem:[#allocation2 + $0x100] sm:$0x3] %v17991_v0  ;;  %15819 = vmatmul.mubr.msk.bf16.gmra.mrb[4].mxu0 %vm768_vm0, %v16243_v9  ;;  %14922 = vmatprep.subr.bf16.mxu0 %v16270_v32  ;;  %v16274_v36 = vld [vmem:[#allocation6 + $0xd8] sm:$0xff]   ;;  %v16273_v37 = vld [vmem:[#allocation6 + $0x28] sm:$0xff]  }
  0xd8   : > { %577 = vst [vmem:[#allocation2 + $0x108] sm:$0xff] %v17991_v0  ;;  %578 = vst [vmem:[#allocation2 + $0x110] sm:$0xff] %v17991_v0  ;;  %15822 = vmatprep.mubr.msk.bf16.mxu0 %vm768_vm0, %v16244_v10  ;;  %15835 = vmatmul.mubr.msk.bf16.gmra.mrb[4].mxu1 %vm768_vm0, %v16251_v11  ;;  %v16276_v38 = vld [vmem:[#allocation6 + $0x98] sm:$0xff]   ;;  %v16275_v39 = vld [vmem:[#allocation6 + $0x70] sm:$0xff]  }
  0xd9   : > { %579 = vst [vmem:[#allocation2 + $0x118] sm:$0x3] %v17991_v0  ;;  %580 = vst [vmem:[#allocation2 + $0x120] sm:$0xff] %v17991_v0  ;;  %15838 = vmatprep.mubr.msk.bf16.mxu1 %vm768_vm0, %v16252_v12  ;;  %14811 = vmatpush3.bf16.msra.mxu1 %v16261_v23  ;;  %v16277_v40 = vld [vmem:[#allocation6 + $0x30] sm:$0xff]   ;;  %v16278_v41 = vld [vmem:[#allocation6 + $0xe0] sm:$0xff]  }
  0xda   : > { %581 = vst [vmem:[#allocation2 + $0x128] sm:$0xff] %v17991_v0  ;;  %582 = vst [vmem:[#allocation2 + $0x130] sm:$0x3] %v17991_v0  ;;  %14812 = vmatprep.subr.bf16.mxu1 %v16263_v25  ;;  %14923 = vmatpush3.bf16.msra.mxu0 %v16272_v34  ;;  %v16279_v42 = vld [vmem:[#allocation6 + $0x78] sm:$0xff]   ;;  %v16280_v43 = vld [vmem:[#allocation6 + $0xa0] sm:$0xff]   ;;  %s20281_s13 = scalar_lea.vmem %s20363_s18, %s14787_s27 }
  0xdb   : > { %583 = vst [vmem:[#allocation2 + $0x138] sm:$0xff] %v17991_v0  ;;  %584 = vst [vmem:[#allocation2 + $0x140] sm:$0xff] %v17991_v0  ;;  %14924 = vmatprep.subr.bf16.mxu0 %v16274_v36  ;;  %v16281_v44 = vld [vmem:[#allocation6 + $0x38] sm:$0xff]   ;;  %v1075_v45 = vld [vmem:[#allocation2 + $0x1] sm:$0xff] }
  0xdc   : > { %585 = vst [vmem:[#allocation2 + $0x148] sm:$0x3] %v17991_v0  ;;  %586 = vst [vmem:[#allocation2 + $0x150] sm:$0xff] %v17991_v0  ;;  %v1076_v46 = vld [vmem:[#allocation2 + $0x9] sm:$0xff]  ;;  %v16286_v53 = vld [vmem:[#allocation6 + $0xf8] sm:$0xff]  }
  0xdd   : > { %587 = vst [vmem:[#allocation2 + $0x158] sm:$0xff] %v17991_v0  ;;  %588 = vst [vmem:[#allocation2 + $0x160] sm:$0x3] %v17991_v0  ;;  %14813 = vmatpush3.bf16.msra.mxu1 %v16265_v28  ;;  %v1333_v47 = vpack.c.bf16 %v1076_v46, %v1075_v45  ;;  %v16282_v48 = vld [vmem:[#allocation6 + $0xe8] sm:$0xff]   ;;  %v16284_v51 = vld [vmem:[#allocation6 + $0xf0] sm:$0xff]  }
  0xde   : > { %589 = vst [vmem:[#allocation2 + $0x168] sm:$0xff] %v17991_v0  ;;  %590 = vst [vmem:[#allocation2 + $0x170] sm:$0xff] %v17991_v0  ;;  %14814 = vmatprep.subr.bf16.mxu1 %v16267_v31  ;;  %14925 = vmatpush3.bf16.msra.mxu0 %v16276_v38  ;;  %v16283_v49 = vld [vmem:[#allocation6 + $0xa8] sm:$0xff]   ;;  %v16285_v52 = vld [vmem:[#allocation6 + $0xb0] sm:$0xff]  }
  0xdf   : > { %591 = vst [vmem:[#allocation2 + $0x178] sm:$0x3] %v17991_v0  ;;  %592 = vst [vmem:[#allocation2 + $0x180] sm:$0xff] %v17991_v0  ;;  %15823 = vmatmul.mubr.msk.bf16.gmra.mrb[8].mxu0 %vm768_vm0, %v16245_v15  ;;  %14926 = vmatprep.subr.bf16.mxu0 %v16278_v41  ;;  %v16287_v54 = vld [vmem:[#allocation6 + $0xb8] sm:$0xff]   ;;  %v16288_v55 = vld [vmem:[#allocation6 + $0x140] sm:$0xff]  }
  0xe0   : > { %593 = vst [vmem:[#allocation2 + $0x188] sm:$0xff] %v17991_v0  ;;  %594 = vst [vmem:[#allocation2 + $0x190] sm:$0x3] %v17991_v0  ;;  %15826 = vmatprep.mubr.msk.bf16.mxu0 %vm768_vm0, %v16246_v17  ;;  %15839 = vmatmul.mubr.msk.bf16.gmra.mrb[8].mxu1 %vm768_vm0, %v16253_v19  ;;  %v16289_v56 = vld [vmem:[#allocation6 + $0x100] sm:$0xff]   ;;  %v16290_v57 = vld [vmem:[#allocation6 + $0x148] sm:$0xff]  }
  0xe1   : > { %595 = vst [vmem:[#allocation2 + $0x198] sm:$0xff] %v17991_v0  ;;  %596 = vst [vmem:[#allocation2 + $0x1a0] sm:$0xff] %v17991_v0  ;;  %15842 = vmatprep.mubr.msk.bf16.mxu1 %vm768_vm0, %v16254_v21  ;;  %14815 = vmatpush3.bf16.msra.mxu1 %v16269_v33  ;;  %v16291_v58 = vld [vmem:[#allocation6 + $0x108] sm:$0xff]   ;;  %v16292_v59 = vld [vmem:[#allocation6 + $0x150] sm:$0xff]  }
  0xe2   : > { %597 = vst [vmem:[#allocation2 + $0x1a8] sm:$0x3] %v17991_v0  ;;  %598 = vst [vmem:[#allocation3] sm:$0xff] %v17991_v0  ;;  %14816 = vmatprep.subr.bf16.mxu1 %v16271_v35  ;;  %14927 = vmatpush3.bf16.msra.mxu0 %v16280_v43  ;;  %v16293_v60 = vld [vmem:[#allocation6 + $0x1c0] sm:$0xff]   ;;  %v16294_v61 = vld [vmem:[#allocation6 + $0x110] sm:$0xff]  }
  0xe3   : > { %599 = vst [vmem:[#allocation3 + $0x8] sm:$0x3] %v17991_v0  ;;  %600 = vst [vmem:[#allocation3 + $0x10] sm:$0xff] %v17991_v0  ;;  %14928 = vmatprep.subr.bf16.mxu0 %v16282_v48  ;;  %v16296_v62 = vld [vmem:[#allocation6 + $0x158] sm:$0xff]   ;;  %v16302_v1 = vld [vmem:[#allocation6 + $0x120] sm:$0xff]  }
  0xe4   : > { %601 = vst [vmem:[#allocation3 + $0x18] sm:$0x3] %v17991_v0  ;;  %602 = vst [vmem:[#allocation3 + $0x20] sm:$0xff] %v17991_v0  ;;  %v16298_v63 = vld [vmem:[#allocation6 + $0x118] sm:$0xff]   ;;  %v16304_v2 = vld [vmem:[#allocation6 + $0x168] sm:$0xff]  }
  0xe5   : > { %603 = vst [vmem:[#allocation3 + $0x28] sm:$0x3] %v17991_v0  ;;  %604 = vst [vmem:[#allocation3 + $0x30] sm:$0xff] %v17991_v0  ;;  %14817 = vmatpush3.bf16.msra.mxu1 %v16273_v37  ;;  %v16306_v3 = vld [vmem:[#allocation6 + $0x128] sm:$0xff]   ;;  %v16308_v4 = vld [vmem:[#allocation6 + $0x170] sm:$0xff]  }
  0xe6   : > { %605 = vst [vmem:[#allocation3 + $0x38] sm:$0x3] %v17991_v0  ;;  %606 = vst [vmem:[#allocation3 + $0x40] sm:$0xff] %v17991_v0  ;;  %14818 = vmatprep.subr.bf16.mxu1 %v16275_v39  ;;  %14929 = vmatpush3.bf16.msra.mxu0 %v16283_v49  ;;  %v16310_v5 = vld [vmem:[#allocation6 + $0x130] sm:$0xff]   ;;  %v16312_v11 = vld [vmem:[#allocation6 + $0x178] sm:$0xff]  }
  0xe7   : > { %607 = vst [vmem:[#allocation3 + $0x48] sm:$0x3] %v17991_v0  ;;  %608 = vst [vmem:[#allocation3 + $0x50] sm:$0xff] %v17991_v0  ;;  %15827 = vmatmul.mubr.msk.bf16.gmra.mrb[12].mxu0 %vm768_vm0, %v16247_v26  ;;  %14930 = vmatprep.subr.bf16.mxu0 %v16284_v51  ;;  %v16314_v12 = vld [vmem:[#allocation6 + $0x138] sm:$0xff]   ;;  %v1107_v33 = vld [vmem:[#allocation2 + $0x2] sm:$0xff] }
  0xe8   : > { %609 = vst [vmem:[#allocation3 + $0x58] sm:$0x3] %v17991_v0  ;;  %610 = vst [vmem:[#allocation3 + $0x60] sm:$0xff] %v17991_v0  ;;  %15843 = vmatmul.mubr.msk.bf16.gmra.mrb[12].mxu1 %vm768_vm0, %v16255_v30  ;;  %v1108_v34 = vld [vmem:[#allocation2 + $0xa] sm:$0xff] }
  0xe9   : > { %611 = vst [vmem:[#allocation3 + $0x68] sm:$0x3] %v17991_v0  ;;  %612 = vst [vmem:[#allocation3 + $0x70] sm:$0xff] %v17991_v0  ;;  %14819 = vmatpush3.bf16.msra.mxu1 %v16277_v40  ;;  %2084 = vmatprep.mubr.bf16.mxu1 %v1333_v47  ;;  %v1334_v43 = vpack.c.bf16 %v1108_v34, %v1107_v33  ;;  %v16307_v33 = vld [vmem:[#allocation6 + $0x198] sm:$0xff]  }
  0xea   : > { %613 = vst [vmem:[#allocation3 + $0x78] sm:$0x3] %v17991_v0  ;;  %614 = vst [vmem:[#allocation3 + $0x80] sm:$0xff] %v17991_v0  ;;  %14820 = vmatprep.subr.bf16.mxu1 %v16279_v42  ;;  %14931 = vmatpush3.bf16.msra.mxu0 %v16285_v52  ;;  %v16295_v52 = vld [vmem:[#allocation6 + $0x180] sm:$0xff]  }
  0xeb   : > { %615 = vst [vmem:[#allocation3 + $0x88] sm:$0x3] %v17991_v0  ;;  %616 = vst [vmem:[#allocation3 + $0x90] sm:$0xff] %v17991_v0  ;;  %14932 = vmatprep.subr.bf16.mxu0 %v16286_v53 }
  0xec   : > { %617 = vst [vmem:[#allocation3 + $0x98] sm:$0x3] %v17991_v0  ;;  %618 = vst [vmem:[#allocation4] sm:$0x3f] %v17991_v0 }
  0xed   : > { %619 = vst [vmem:[#allocation4 + $0x8] sm:$0x3f] %v17991_v0  ;;  %620 = vst [vmem:[#allocation4 + $0x10] sm:$0x3f] %v17991_v0  ;;  %14821 = vmatpush3.bf16.msra.mxu1 %v16281_v44 }
  0xee   : > { %621 = vst [vmem:[#allocation4 + $0x18] sm:$0x3f] %v17991_v0  ;;  %622 = vst [vmem:[#allocation4 + $0x20] sm:$0x3f] %v17991_v0  ;;  %14933 = vmatpush3.bf16.msra.mxu0 %v16287_v54  ;;  %15030 = vmatprep.subr.bf16.mxu1 %v16288_v55  ;;  %v16297_v55 = vld [vmem:[#allocation6 + $0x1c8] sm:$0xff]  }
  0xef   : > { %623 = vst [vmem:[#allocation4 + $0x28] sm:$0x3f] %v17991_v0  ;;  %624 = vst [vmem:[#allocation5] sm:$0xff] %v17991_v0  ;;  %15142 = vmatprep.subr.bf16.mxu0 %v16293_v60 }
  0xf0   : > { %625 = vst [vmem:[#allocation5 + $0x8] sm:$0xff] %v17991_v0  ;;  %626 = vst [vmem:[#allocation5 + $0x10] sm:$0xff] %v17991_v0  ;;  %2085 = vmatmul.mubr.bf16.vlgmr.msra.gmra.mrb[16].mxu1 %v17992_v50 }
  0xf1   : > { %627 = vst [vmem:[#allocation5 + $0x18] sm:$0xff] %v17991_v0  ;;  %628 = vst [vmem:[#allocation5 + $0x20] sm:$0xff] %v17991_v0  ;;  %15031 = vmatpush3.bf16.msra.mxu1 %v16289_v56 }
  0xf2   : > { %629 = vst [vmem:[#allocation5 + $0x28] sm:$0xff] %v17991_v0  ;;  %630 = vst [vmem:[#allocation5 + $0x30] sm:$0xff] %v17991_v0  ;;  %15032 = vmatprep.subr.bf16.mxu1 %v16290_v57 }
  0xf3   : > { %631 = vst [vmem:[#allocation5 + $0x38] sm:$0xff] %v17991_v0  ;;  %632 = vst [vmem:[#allocation5 + $0x40] sm:$0xff] %v17991_v0 }
  0xf4   : > { %633 = vst [vmem:[#allocation5 + $0x48] sm:$0xff] %v17991_v0  ;;  %634 = vst [vmem:[#allocation5 + $0x50] sm:$0xff] %v17991_v0 }
  0xf5   : > { %635 = vst [vmem:[#allocation5 + $0x58] sm:$0xff] %v17991_v0  ;;  %636 = vst [vmem:[#allocation5 + $0x60] sm:$0xff] %v17991_v0  ;;  %15033 = vmatpush3.bf16.msra.mxu1 %v16291_v58 }
  0xf6   : > { %637 = vst [vmem:[#allocation5 + $0x68] sm:$0xff] %v17991_v0  ;;  %638 = vst [vmem:[#allocation5 + $0x70] sm:$0xff] %v17991_v0  ;;  %15034 = vmatprep.subr.bf16.mxu1 %v16292_v59 }
  0xf7   : > { %639 = vst [vmem:[#allocation5 + $0x78] sm:$0xff] %v17991_v0  ;;  %v16300_v0 = vld [vmem:[#allocation6 + $0x160] sm:$0xff]   ;;  %vm19224_vm4 = vmor %vm6439_vm2, %vm6440_vm3 }
  0xf9   : > { %15035 = vmatpush3.bf16.msra.mxu1 %v16294_v61 }
  0xfa   : > { %15036 = vmatprep.subr.bf16.mxu1 %v16296_v62 }
  0xfd   : > { %15037 = vmatpush3.bf16.msra.mxu1 %v16298_v63 }
  0xfe   : > { %15038 = vmatprep.subr.bf16.mxu1 %v16300_v0  ;;  %v16299_v0 = vld [vmem:[#allocation6 + $0x188] sm:$0xff]  }
 0x101   : > { %15039 = vmatpush3.bf16.msra.mxu1 %v16302_v1 }
 0x102   : > { %15040 = vmatprep.subr.bf16.mxu1 %v16304_v2 }
 0x105   : > { %15041 = vmatpush3.bf16.msra.mxu1 %v16306_v3 }
 0x106   : > { %15042 = vmatprep.subr.bf16.mxu1 %v16308_v4 }
 0x109   : > { %15043 = vmatpush3.bf16.msra.mxu1 %v16310_v5  ;;  %v16301_v5 = vld [vmem:[#allocation6 + $0x1d0] sm:$0xff]  }
 0x10a   : > { %15044 = vmatprep.subr.bf16.mxu1 %v16312_v11 }
 0x10d   : > { %15045 = vmatpush3.bf16.msra.mxu1 %v16314_v12 }
 0x1a2   : > { %v15816_v6 = vpop.f32.mrb[0].mxu0 }
 0x1a3   : > { %v980_v7 = vmax.f32 %v15816_v6, 0.0  ;;  %v851_v8 = vpop.f32.mrb[1].mxu0  ;;  %v15832_v15 = vpop.f32.mrb[0].mxu1 }
 0x1a4   : > { %v978_v9 = vmax.f32 %v851_v8, 0.0  ;;  %v15817_v10 = vpop.f32.mrb[2].mxu0  ;;  %v996_v17 = vmax.f32 %v15832_v15, 0.0  ;;  %v915_v18 = vpop.f32.mrb[1].mxu1 }
 0x1a5   : > { %1013 = vst [vmem:[#allocation2 + $0x31] sm:$0xff] %v980_v7  ;;  %v981_v13 = vmax.f32 %v15817_v10, 0.0  ;;  %v854_v14 = vpop.f32.mrb[3].mxu0  ;;  %v994_v20 = vmax.f32 %v915_v18, 0.0  ;;  %v15833_v21 = vpop.f32.mrb[2].mxu1 }
 0x1a6   : > { %1011 = vst [vmem:[#allocation2 + $0x19] sm:$0xff] %v978_v9  ;;  %v979_v16 = vmax.f32 %v854_v14, 0.0  ;;  %1029 = vst [vmem:[#allocation2 + $0xf1] sm:$0xff] %v996_v17  ;;  %v997_v23 = vmax.f32 %v15833_v21, 0.0  ;;  %v918_v24 = vpop.f32.mrb[3].mxu1 }
 0x1a7   : > { %1014 = vst [vmem:[#allocation2 + $0x39] sm:$0xff] %v981_v13  ;;  %v1351_v19 = vpack.c.bf16 %v981_v13, %v980_v7  ;;  %1027 = vst [vmem:[#allocation2 + $0xd9] sm:$0xff] %v994_v20  ;;  %v995_v25 = vmax.f32 %v918_v24, 0.0 }
 0x1a8   : > { %1012 = vst [vmem:[#allocation2 + $0x21] sm:$0xff] %v979_v16  ;;  %v18432_v22 = vpack.c.bf16 %v979_v16, %v978_v9  ;;  %1030 = vst [vmem:[#allocation2 + $0xf9] sm:$0xff] %v997_v23  ;;  %v18435_v27 = vpack.c.bf16 %v997_v23, %v996_v17  ;;  %v16305_v23 = vld [vmem:[#allocation6 + $0x1d8] sm:$0xff]  }
 0x1a9   : > { %1028 = vst [vmem:[#allocation2 + $0xe1] sm:$0xff] %v995_v25  ;;  %v18437_v30 = vpack.c.bf16 %v995_v25, %v994_v20 }
 0x1aa   : > { %v15820_v26 = vpop.f32.mrb[4].mxu0  ;;  %2092 = vmatprep.mubr.bf16.mxu1 %v18432_v22 }
 0x1ab   : > { %v984_v28 = vmax.f32 %v15820_v26, 0.0  ;;  %v867_v29 = vpop.f32.mrb[5].mxu0  ;;  %v15836_v37 = vpop.f32.mrb[4].mxu1 }
 0x1ac   : > { %v982_v31 = vmax.f32 %v867_v29, 0.0  ;;  %v15821_v32 = vpop.f32.mrb[6].mxu0  ;;  %v1000_v39 = vmax.f32 %v15836_v37, 0.0  ;;  %v931_v40 = vpop.f32.mrb[5].mxu1  ;;  %v1141_v53 = vld [vmem:[#allocation2 + $0x30] sm:$0xff]  ;;  %v16309_v37 = vld [vmem:[#allocation6 + $0x1e0] sm:$0xff]  }
 0x1ad   : > { %1017 = vst [vmem:[#allocation2 + $0x61] sm:$0xff] %v984_v28  ;;  %v985_v35 = vmax.f32 %v15821_v32, 0.0  ;;  %v870_v36 = vpop.f32.mrb[7].mxu0  ;;  %v1139_v41 = vld [vmem:[#allocation2 + $0x18] sm:$0xff]  ;;  %v998_v46 = vmax.f32 %v931_v40, 0.0  ;;  %v15837_v47 = vpop.f32.mrb[6].mxu1 }
 0x1ae   : > { %1015 = vst [vmem:[#allocation2 + $0x49] sm:$0xff] %v982_v31  ;;  %v983_v38 = vmax.f32 %v870_v36, 0.0  ;;  %v1142_v44 = vld [vmem:[#allocation2 + $0x38] sm:$0xff]  ;;  %1033 = vst [vmem:[#allocation2 + $0x121] sm:$0xff] %v1000_v39  ;;  %v1001_v50 = vmax.f32 %v15837_v47, 0.0  ;;  %v934_v51 = vpop.f32.mrb[7].mxu1 }
 0x1af   : > { %1018 = vst [vmem:[#allocation2 + $0x69] sm:$0xff] %v985_v35  ;;  %v1140_v42 = vld [vmem:[#allocation2 + $0x20] sm:$0xff]  ;;  %v18439_v45 = vpack.c.bf16 %v985_v35, %v984_v28  ;;  %1031 = vst [vmem:[#allocation2 + $0x109] sm:$0xff] %v998_v46  ;;  %v999_v54 = vmax.f32 %v934_v51, 0.0  ;;  %v18443_v56 = vpack.c.bf16 %v1142_v44, %v1141_v53 }
 0x1b0   : > { %1016 = vst [vmem:[#allocation2 + $0x51] sm:$0xff] %v983_v38  ;;  %v1335_v48 = vpack.c.bf16 %v1140_v42, %v1139_v41  ;;  %v18441_v49 = vpack.c.bf16 %v983_v38, %v982_v31  ;;  %1034 = vst [vmem:[#allocation2 + $0x129] sm:$0xff] %v1001_v50  ;;  %v18445_v58 = vpack.c.bf16 %v1001_v50, %v1000_v39  ;;  %v1109_v6 = vld [vmem:[#allocation2 + $0x1a] sm:$0xff]  ;;  %v1110_v7 = vld [vmem:[#allocation2 + $0x22] sm:$0xff] }
 0x1b1   : > { %1032 = vst [vmem:[#allocation2 + $0x111] sm:$0xff] %v999_v54  ;;  %v18447_v61 = vpack.c.bf16 %v999_v54, %v998_v46  ;;  %v18456_v20 = vpack.c.bf16 %v1110_v7, %v1109_v6  ;;  %v1111_v38 = vld [vmem:[#allocation2 + $0x32] sm:$0xff]  ;;  %v1112_v39 = vld [vmem:[#allocation2 + $0x3a] sm:$0xff] }
 0x1b2   : > { %2245 = vmatprep.mubr.bf16.mxu0 %v1335_v48  ;;  %2093 = vmatmul.mubr.bf16.gmra.mrb[20].mxu1 %v1335_v48  ;;  %v15824_v57 = vpop.f32.mrb[8].mxu0  ;;  %v16311_v53 = vld [vmem:[#allocation6 + $0x1a0] sm:$0xff]   ;;  %v18470_v54 = vpack.c.bf16 %v1112_v39, %v1111_v38  ;;  %v16317_v6 = vld [vmem:[#allocation6 + $0x1b0] sm:$0xff]  }
 0x1b3   : > { %2246 = vmatmul.mubr.bf16.vlgmr.msra.gmra.mrb[16].mxu0 %v1334_v43  ;;  %2100 = vmatprep.mubr.bf16.mxu1 %v1351_v19  ;;  %v988_v59 = vmax.f32 %v15824_v57, 0.0  ;;  %v883_v60 = vpop.f32.mrb[9].mxu0  ;;  %v15840_v4 = vpop.f32.mrb[8].mxu1  ;;  %v16303_v19 = vld [vmem:[#allocation6 + $0x190] sm:$0xff]   ;;  %v16313_v57 = vld [vmem:[#allocation6 + $0x1e8] sm:$0xff]   ;;  %v1156_v38 = vld [vmem:[#allocation2 + $0xe0] sm:$0xff] }
 0x1b4   : > { %2253 = vmatprep.mubr.bf16.mxu0 %v18443_v56  ;;  %v986_v62 = vmax.f32 %v883_v60, 0.0  ;;  %v15825_v63 = vpop.f32.mrb[10].mxu0  ;;  %15143 = vmatpush3.bf16.msra.mxu0 %v16295_v52  ;;  %v1004_v9 = vmax.f32 %v15840_v4, 0.0  ;;  %v947_v10 = vpop.f32.mrb[9].mxu1  ;;  %v1145_v43 = vld [vmem:[#allocation2 + $0x60] sm:$0xff] }
 0x1b5   : > { %1021 = vst [vmem:[#allocation2 + $0x91] sm:$0xff] %v988_v59  ;;  %v1143_v1 = vld [vmem:[#allocation2 + $0x48] sm:$0xff]  ;;  %v989_v2 = vmax.f32 %v15825_v63, 0.0  ;;  %v886_v3 = vpop.f32.mrb[11].mxu0  ;;  %15144 = vmatprep.subr.bf16.mxu0 %v16297_v55  ;;  %v1002_v13 = vmax.f32 %v947_v10, 0.0  ;;  %v15841_v14 = vpop.f32.mrb[10].mxu1 }
 0x1b6   : > { %1019 = vst [vmem:[#allocation2 + $0x79] sm:$0xff] %v986_v62  ;;  %v987_v8 = vmax.f32 %v886_v3, 0.0  ;;  %1037 = vst [vmem:[#allocation2 + $0x151] sm:$0xff] %v1004_v9  ;;  %v1005_v17 = vmax.f32 %v15841_v14, 0.0  ;;  %v950_v18 = vpop.f32.mrb[11].mxu1  ;;  %v1146_v44 = vld [vmem:[#allocation2 + $0x68] sm:$0xff] }
 0x1b7   : > { %v1144_v11 = vld [vmem:[#allocation2 + $0x50] sm:$0xff]  ;;  %1022 = vst [vmem:[#allocation2 + $0x99] sm:$0xff] %v989_v2  ;;  %v18450_v12 = vpack.c.bf16 %v989_v2, %v988_v59  ;;  %1035 = vst [vmem:[#allocation2 + $0x139] sm:$0xff] %v1002_v13  ;;  %v1003_v21 = vmax.f32 %v950_v18, 0.0  ;;  %v18473_v59 = vpack.c.bf16 %v1146_v44, %v1145_v43  ;;  %v16315_v63 = vld [vmem:[#allocation6 + $0x1a8] sm:$0xff]  }
 0x1b8   : > { %v18452_v15 = vpack.c.bf16 %v1144_v11, %v1143_v1  ;;  %1020 = vst [vmem:[#allocation2 + $0x81] sm:$0xff] %v987_v8  ;;  %v18454_v16 = vpack.c.bf16 %v987_v8, %v986_v62  ;;  %15145 = vmatpush3.bf16.msra.mxu0 %v16299_v0  ;;  %1038 = vst [vmem:[#allocation2 + $0x159] sm:$0xff] %v1005_v17  ;;  %v18459_v25 = vpack.c.bf16 %v1005_v17, %v1004_v9  ;;  %v16316_v2 = vld [vmem:[#allocation6 + $0x1f0] sm:$0xff]   ;;  %v16318_v8 = vld [vmem:[#allocation6 + $0x1f8] sm:$0xff]  }
 0x1b9   : > { %15146 = vmatprep.subr.bf16.mxu0 %v16301_v5  ;;  %1036 = vst [vmem:[#allocation2 + $0x141] sm:$0xff] %v1003_v21  ;;  %v18463_v29 = vpack.c.bf16 %v1003_v21, %v1002_v13  ;;  %v1113_v3 = vld [vmem:[#allocation2 + $0x4a] sm:$0xff]  ;;  %v1114_v4 = vld [vmem:[#allocation2 + $0x52] sm:$0xff]  ;;  %v1115_v10 = vld [vmem:[#allocation2 + $0x62] sm:$0xff] }
 0x1ba   : > { %2101 = vmatmul.mubr.bf16.gmra.mrb[24].mxu1 %v18443_v56  ;;  %v15828_v24 = vpop.f32.mrb[12].mxu0  ;;  %v18484_v7 = vpack.c.bf16 %v1114_v4, %v1113_v3  ;;  %v16319_v9 = vld [vmem:[#allocation6 + $0x1b8] sm:$0xff]   ;;  %v1116_v11 = vld [vmem:[#allocation2 + $0x6a] sm:$0xff] }
 0x1bb   : > { %2254 = vmatmul.mubr.bf16.gmra.mrb[20].mxu0 %v18456_v20  ;;  %2108 = vmatprep.mubr.bf16.mxu1 %v18441_v49  ;;  %v992_v26 = vmax.f32 %v15828_v24, 0.0  ;;  %v899_v28 = vpop.f32.mrb[13].mxu0  ;;  %v15844_v36 = vpop.f32.mrb[12].mxu1  ;;  %v18490_v17 = vpack.c.bf16 %v1116_v11, %v1115_v10  ;;  %v1127_v4 = vld [vmem:[#allocation2 + $0xf2] sm:$0xff]  ;;  %v1161_v10 = vld [vmem:[#allocation2 + $0x120] sm:$0xff]  ;;  %v1162_v11 = vld [vmem:[#allocation2 + $0x128] sm:$0xff] }
 0x1bc   : > { %2261 = vmatprep.mubr.bf16.mxu0 %v18452_v15  ;;  %v990_v31 = vmax.f32 %v899_v28, 0.0  ;;  %v15829_v32 = vpop.f32.mrb[14].mxu0  ;;  %15147 = vmatpush3.bf16.msra.mxu0 %v16303_v19  ;;  %v1008_v41 = vmax.f32 %v15844_v36, 0.0  ;;  %v963_v42 = vpop.f32.mrb[13].mxu1  ;;  %v1149_v13 = vld [vmem:[#allocation2 + $0x90] sm:$0xff] }
 0x1bd   : > { %1025 = vst [vmem:[#allocation2 + $0xc1] sm:$0xff] %v992_v26  ;;  %v993_v34 = vmax.f32 %v15829_v32, 0.0  ;;  %v902_v35 = vpop.f32.mrb[15].mxu0  ;;  %15148 = vmatprep.subr.bf16.mxu0 %v16305_v23  ;;  %v1006_v47 = vmax.f32 %v963_v42, 0.0  ;;  %v15845_v48 = vpop.f32.mrb[14].mxu1  ;;  %v1147_v0 = vld [vmem:[#allocation2 + $0x78] sm:$0xff] }
 0x1be   : > { %1023 = vst [vmem:[#allocation2 + $0xa9] sm:$0xff] %v990_v31  ;;  %v991_v40 = vmax.f32 %v902_v35, 0.0  ;;  %1041 = vst [vmem:[#allocation2 + $0x181] sm:$0xff] %v1008_v41  ;;  %v1009_v51 = vmax.f32 %v15845_v48, 0.0  ;;  %v966_v52 = vpop.f32.mrb[15].mxu1  ;;  %v1150_v14 = vld [vmem:[#allocation2 + $0x98] sm:$0xff] }
 0x1bf   : > { %1026 = vst [vmem:[#allocation2 + $0xc9] sm:$0xff] %v993_v34  ;;  %v18466_v46 = vpack.c.bf16 %v993_v34, %v992_v26  ;;  %1039 = vst [vmem:[#allocation2 + $0x169] sm:$0xff] %v1006_v47  ;;  %v1007_v55 = vmax.f32 %v966_v52, 0.0  ;;  %v1148_v1 = vld [vmem:[#allocation2 + $0x80] sm:$0xff]  ;;  %v18493_v18 = vpack.c.bf16 %v1150_v14, %v1149_v13  ;;  %v1158_v48 = vld [vmem:[#allocation2 + $0xf8] sm:$0xff] }
 0x1c0   : > { %1024 = vst [vmem:[#allocation2 + $0xb1] sm:$0xff] %v991_v40  ;;  %v18468_v50 = vpack.c.bf16 %v991_v40, %v990_v31  ;;  %15149 = vmatpush3.bf16.msra.mxu0 %v16307_v33  ;;  %1042 = vst [vmem:[#allocation2 + $0x189] sm:$0xff] %v1009_v51  ;;  %v18475_v60 = vpack.c.bf16 %v1009_v51, %v1008_v41  ;;  %v18482_v5 = vpack.c.bf16 %v1148_v1, %v1147_v0  ;;  %v1117_v23 = vld [vmem:[#allocation2 + $0x7a] sm:$0xff]  ;;  %v1118_v24 = vld [vmem:[#allocation2 + $0x82] sm:$0xff] }
 0x1c1   : > { %15150 = vmatprep.subr.bf16.mxu0 %v16309_v37  ;;  %1040 = vst [vmem:[#allocation2 + $0x171] sm:$0xff] %v1007_v55  ;;  %v18479_v62 = vpack.c.bf16 %v1007_v55, %v1006_v47  ;;  %v18500_v28 = vpack.c.bf16 %v1118_v24, %v1117_v23  ;;  %v1119_v31 = vld [vmem:[#allocation2 + $0x92] sm:$0xff]  ;;  %v1120_v32 = vld [vmem:[#allocation2 + $0x9a] sm:$0xff] }
 0x1c2   : > { %2109 = vmatmul.mubr.bf16.gmra.mrb[28].mxu1 %v18452_v15  ;;  %v18506_v35 = vpack.c.bf16 %v1120_v32, %v1119_v31  ;;  %v1155_v37 = vld [vmem:[#allocation2 + $0xd8] sm:$0xff]  ;;  %v1157_v47 = vld [vmem:[#allocation2 + $0xf0] sm:$0xff]  ;;  %v1164_v24 = vld [vmem:[#allocation2 + $0x140] sm:$0xff] }
 0x1c3   : > { %2262 = vmatmul.mubr.bf16.gmra.mrb[24].mxu0 %v18470_v54  ;;  %2116 = vmatprep.mubr.bf16.mxu1 %v18439_v45  ;;  %v18514_v41 = vpack.c.bf16 %v1156_v38, %v1155_v37  ;;  %v18525_v52 = vpack.c.bf16 %v1158_v48, %v1157_v47  ;;  %v1160_v55 = vld [vmem:[#allocation2 + $0x110] sm:$0xff]  ;;  %v1163_v23 = vld [vmem:[#allocation2 + $0x138] sm:$0xff]  ;;  %v16320_v37 = vld [vmem:[#allocation6 + $0x200] sm:$0xff]  }
 0x1c4   : > { %2269 = vmatprep.mubr.bf16.mxu0 %v18473_v59  ;;  %15151 = vmatpush3.bf16.msra.mxu0 %v16311_v53  ;;  %v1153_v33 = vld [vmem:[#allocation2 + $0xc0] sm:$0xff]  ;;  %v1159_v53 = vld [vmem:[#allocation2 + $0x108] sm:$0xff]  ;;  %v1130_v32 = vld [vmem:[#allocation2 + $0x112] sm:$0xff] }
 0x1c5   : > { %15152 = vmatprep.subr.bf16.mxu0 %v16313_v57  ;;  %v1151_v19 = vld [vmem:[#allocation2 + $0xa8] sm:$0xff]  ;;  %v1125_v57 = vld [vmem:[#allocation2 + $0xda] sm:$0xff]  ;;  %v18530_v0 = vpack.c.bf16 %v1160_v55, %v1159_v53  ;;  %15846 = vmatprep.subr.bf16.mxu1 %v16320_v37 }
 0x1c6   : > { %v1154_v34 = vld [vmem:[#allocation2 + $0xc8] sm:$0xff]  ;;  %v1133_v55 = vld [vmem:[#allocation2 + $0x13a] sm:$0xff] }
 0x1c7   : > { %v1152_v21 = vld [vmem:[#allocation2 + $0xb0] sm:$0xff]  ;;  %v18509_v36 = vpack.c.bf16 %v1154_v34, %v1153_v33  ;;  %v1123_v43 = vld [vmem:[#allocation2 + $0xc2] sm:$0xff]  ;;  %v18550_v33 = vpack.c.bf16 %v1164_v24, %v1163_v23  ;;  %v1269_v24 = vld [vmem:[#allocation2 + $0x39] sm:$0xff] }
 0x1c8   : > { %15153 = vmatpush3.bf16.msra.mxu0 %v16315_v63  ;;  %v18498_v26 = vpack.c.bf16 %v1152_v21, %v1151_v19  ;;  %v1121_v39 = vld [vmem:[#allocation2 + $0xaa] sm:$0xff]  ;;  %v1122_v40 = vld [vmem:[#allocation2 + $0xb2] sm:$0xff]  ;;  %v1126_v63 = vld [vmem:[#allocation2 + $0xe2] sm:$0xff]  ;;  %v18545_v21 = vpack.c.bf16 %v1162_v11, %v1161_v10 }
 0x1c9   : > { %15154 = vmatprep.subr.bf16.mxu0 %v16316_v2  ;;  %v18516_v42 = vpack.c.bf16 %v1122_v40, %v1121_v39  ;;  %v1124_v44 = vld [vmem:[#allocation2 + $0xca] sm:$0xff]  ;;  %v18532_v1 = vpack.c.bf16 %v1126_v63, %v1125_v57  ;;  %v14822_v2 = vpop.f32.mrb[16].mxu1  ;;  %v1131_v38 = vld [vmem:[#allocation2 + $0x122] sm:$0xff]  ;;  %v1138_v23 = vld [vmem:[#allocation2 + $0x172] sm:$0xff] }
 0x1ca   : > { %2117 = vmatmul.mubr.bf16.gmra.mrb[32].mxu1 %v18473_v59  ;;  %v18522_v51 = vpack.c.bf16 %v1124_v44, %v1123_v43  ;;  %v14823_v3 = vpop.f32.mrb[17].mxu1  ;;  %v1129_v31 = vld [vmem:[#allocation2 + $0x10a] sm:$0xff]  ;;  %v1166_v43 = vld [vmem:[#allocation2 + $0x158] sm:$0xff]  ;;  %v1134_v57 = vld [vmem:[#allocation2 + $0x142] sm:$0xff] }
 0x1cb   : > { %2270 = vmatmul.mubr.bf16.gmra.mrb[28].mxu0 %v18484_v7  ;;  %2124 = vmatprep.mubr.bf16.mxu1 %v18454_v16  ;;  %v18552_v34 = vpack.c.bf16 %v1130_v32, %v1129_v31  ;;  %v1132_v39 = vld [vmem:[#allocation2 + $0x12a] sm:$0xff] }
 0x1cc   : > { %2277 = vmatprep.mubr.bf16.mxu0 %v18482_v5  ;;  %15155 = vmatpush3.bf16.msra.mxu0 %v16317_v6  ;;  %v1128_v6 = vld [vmem:[#allocation2 + $0xfa] sm:$0xff]  ;;  %v1165_v40 = vld [vmem:[#allocation2 + $0x150] sm:$0xff]  ;;  %v18558_v44 = vpack.c.bf16 %v1132_v39, %v1131_v38  ;;  %v1167_v48 = vld [vmem:[#allocation2 + $0x168] sm:$0xff] }
 0x1cd   : > { %15156 = vmatprep.subr.bf16.mxu0 %v16318_v8  ;;  %v18538_v8 = vadd.f32 %v14823_v3, %v14822_v2  ;;  %v18542_v19 = vpack.c.bf16 %v1128_v6, %v1127_v4  ;;  %v18561_v47 = vpack.c.bf16 %v1166_v43, %v1165_v40  ;;  %v1168_v53 = vld [vmem:[#allocation2 + $0x170] sm:$0xff]  ;;  %v18568_v2 = vpack.c.bf16 %v1134_v57, %v1133_v55  ;;  %v1136_v4 = vld [vmem:[#allocation2 + $0x15a] sm:$0xff]  ;;  %v16321_v32 = vld [vmem:[#allocation6 + $0x208] sm:$0xff]  }
 0x1ce   : > { %v18566_v63 = vpack.c.bf16 %v1168_v53, %v1167_v48  ;;  %v1135_v3 = vld [vmem:[#allocation2 + $0x152] sm:$0xff]  ;;  %v1169_v6 = vld [vmem:[#allocation2 + $0x180] sm:$0xff] }
 0x1cf   : > { %v18574_v10 = vpack.c.bf16 %v1136_v4, %v1135_v3  ;;  %v1268_v31 = vld [vmem:[#allocation2 + $0x31] sm:$0xff]  ;;  %v16324_v43 = vld [vmem:[#allocation6 + $0x220] sm:$0xff]  }
 0x1d0   : > { %15157 = vmatpush3.bf16.msra.mxu0 %v16319_v9  ;;  %v14825_v9 = vpop.f32.mrb[18].mxu1  ;;  %v1339_v39 = vpack.c.bf16 %v1269_v24, %v1268_v31  ;;  %v16322_v40 = vld [vmem:[#allocation6 + $0x210] sm:$0xff]   ;;  %v1301_v31 = vld [vmem:[#allocation2 + $0x3a] sm:$0xff] }
 0x1d1   : > { %v14826_v13 = vpop.f32.mrb[19].mxu1  ;;  %v1300_v24 = vld [vmem:[#allocation2 + $0x32] sm:$0xff] }
 0x1d2   : > { %2125 = vmatmul.mubr.bf16.gmra.mrb[36].mxu1 %v18482_v5  ;;  %v18540_v14 = vadd.f32 %v14826_v13, %v14825_v9  ;;  %v1170_v9 = vld [vmem:[#allocation2 + $0x188] sm:$0xff] }
 0x1d3   : > { %2278 = vmatmul.mubr.bf16.gmra.mrb[32].mxu0 %v18490_v17  ;;  %2132 = vmatprep.mubr.bf16.mxu1 %v18450_v12  ;;  %v18577_v11 = vpack.c.bf16 %v1170_v9, %v1169_v6  ;;  %v1137_v13 = vld [vmem:[#allocation2 + $0x16a] sm:$0xff] }
 0x1d4   : > { %2285 = vmatprep.mubr.bf16.mxu0 %v18493_v18  ;;  %v18582_v38 = vpack.c.bf16 %v1138_v23, %v1137_v13  ;;  %v1298_v13 = vld [vmem:[#allocation2 + $0x199] sm:$0xff]  ;;  %v1299_v23 = vld [vmem:[#allocation2 + $0x1a1] sm:$0xff] }
 0x1da   : > { %2133 = vmatmul.mubr.bf16.gmra.mrb[40].mxu1 %v18493_v18 }
 0x1db   : > { %2286 = vmatmul.mubr.bf16.gmra.mrb[36].mxu0 %v18500_v28  ;;  %2140 = vmatprep.mubr.bf16.mxu1 %v18468_v50 }
 0x1dc   : > { %2293 = vmatprep.mubr.bf16.mxu0 %v18498_v26 }
 0x1e2   : > { %2141 = vmatmul.mubr.bf16.gmra.mrb[44].mxu1 %v18498_v26 }
 0x1e3   : > { %2294 = vmatmul.mubr.bf16.gmra.mrb[40].mxu0 %v18506_v35  ;;  %2148 = vmatprep.mubr.bf16.mxu1 %v18466_v46 }
 0x1e4   : > { %2301 = vmatprep.mubr.bf16.mxu0 %v18509_v36 }
 0x1ea   : > { %2149 = vmatmul.mubr.bf16.gmra.mrb[48].mxu1 %v18509_v36 }
 0x1eb   : > { %2302 = vmatmul.mubr.bf16.gmra.mrb[44].mxu0 %v18516_v42  ;;  %2156 = vmatprep.mubr.bf16.mxu1 %v18437_v30 }
 0x1ec   : > { %2309 = vmatprep.mubr.bf16.mxu0 %v18514_v41 }
 0x1f2   : > { %2157 = vmatmul.mubr.bf16.gmra.mrb[52].mxu1 %v18514_v41 }
 0x1f3   : > { %2310 = vmatmul.mubr.bf16.gmra.mrb[48].mxu0 %v18522_v51  ;;  %2164 = vmatprep.mubr.bf16.mxu1 %v18435_v27 }
 0x1f4   : > { %2317 = vmatprep.mubr.bf16.mxu0 %v18525_v52 }
 0x1fa   : > { %2165 = vmatmul.mubr.bf16.gmra.mrb[56].mxu1 %v18525_v52 }
 0x1fb   : > { %2318 = vmatmul.mubr.bf16.gmra.mrb[52].mxu0 %v18532_v1  ;;  %2172 = vmatprep.mubr.bf16.mxu1 %v18447_v61 }
 0x1fc   : > { %2325 = vmatprep.mubr.bf16.mxu0 %v18530_v0 }
 0x202   : > { %2173 = vmatmul.mubr.bf16.gmra.mrb[60].mxu1 %v18530_v0 }
 0x203   : > { %2326 = vmatmul.mubr.bf16.gmra.mrb[56].mxu0 %v18542_v19  ;;  %2180 = vmatprep.mubr.bf16.mxu1 %v18445_v58 }
 0x204   : > { %2333 = vmatprep.mubr.bf16.mxu0 %v18545_v21 }
 0x20a   : > { %2181 = vmatmul.mubr.bf16.gmra.mrb[64].mxu1 %v18545_v21 }
 0x20b   : > { %2334 = vmatmul.mubr.bf16.gmra.mrb[60].mxu0 %v18552_v34  ;;  %2188 = vmatprep.mubr.bf16.mxu1 %v18463_v29 }
 0x20c   : > { %2341 = vmatprep.mubr.bf16.mxu0 %v18550_v33 }
 0x212   : > { %2189 = vmatmul.mubr.bf16.gmra.mrb[68].mxu1 %v18550_v33 }
 0x213   : > { %2342 = vmatmul.mubr.bf16.gmra.mrb[64].mxu0 %v18558_v44  ;;  %2196 = vmatprep.mubr.bf16.mxu1 %v18459_v25 }
 0x214   : > { %2349 = vmatprep.mubr.bf16.mxu0 %v18561_v47 }
 0x21a   : > { %2197 = vmatmul.mubr.bf16.gmra.mrb[72].mxu1 %v18561_v47 }
 0x21b   : > { %2350 = vmatmul.mubr.bf16.gmra.mrb[68].mxu0 %v18568_v2  ;;  %2204 = vmatprep.mubr.bf16.mxu1 %v18479_v62 }
 0x21c   : > { %2357 = vmatprep.mubr.bf16.mxu0 %v18566_v63 }
 0x222   : > { %2205 = vmatmul.mubr.bf16.gmra.mrb[76].mxu1 %v18566_v63 }
 0x223   : > { %2358 = vmatmul.mubr.bf16.gmra.mrb[72].mxu0 %v18574_v10  ;;  %2406 = vmatprep.mubr.bf16.mxu1 %v18456_v20  ;;  %v16323_v20 = vld [vmem:[#allocation6 + $0x218] sm:$0xff]  }
 0x224   : > { %2365 = vmatprep.mubr.bf16.mxu0 %v18577_v11 }
 0x22a   : > { %2407 = vmatmul.mubr.bf16.vlgmr.msra.gmra.mrb[80].mxu1 %v18432_v22  ;;  %v16325_v22 = vld [vmem:[#allocation6 + $0x228] sm:$0xff]  }
 0x22b   : > { %2366 = vmatmul.mubr.bf16.gmra.mrb[76].mxu0 %v18582_v38  ;;  %2414 = vmatprep.mubr.bf16.mxu1 %v18470_v54  ;;  %v1177_v54 = vld [vmem:[#allocation2 + $0x61] sm:$0xff] }
 0x22c   : > { %2567 = vmatprep.mubr.bf16.mxu0 %v1339_v39  ;;  %15847 = vmatpush3.bf16.msra.mxu1 %v16320_v37  ;;  %v16326_v37 = vld [vmem:[#allocation6 + $0x230] sm:$0xff]  }
 0x22d   : > { %15848 = vmatprep.subr.bf16.mxu1 %v16321_v32 }
 0x230   : > { %15849 = vmatpush3.bf16.msra.mxu1 %v16321_v32 }
 0x231   : > { %15850 = vmatprep.subr.bf16.mxu1 %v16322_v40 }
 0x232   : > { %2415 = vmatmul.mubr.bf16.gmra.mrb[84].mxu1 %v1339_v39 }
 0x233   : > { %2568 = vmatmul.mubr.bf16.vlgmr.msra.gmra.mrb[80].mxu0 %v18443_v56  ;;  %2422 = vmatprep.mubr.bf16.mxu1 %v18484_v7  ;;  %v16327_v56 = vld [vmem:[#allocation6 + $0x238] sm:$0xff]   ;;  %v17754_v7 = vld [vmem:[#allocation2 + $0x69] sm:$0xff] }
 0x234   : > { %2575 = vmatprep.mubr.bf16.mxu0 %v18441_v49  ;;  %15851 = vmatpush3.bf16.msra.mxu1 %v16322_v40  ;;  %v1363_v48 = vpack.c.bf16 %v17754_v7, %v1177_v54 }
 0x235   : > { %15852 = vmatprep.subr.bf16.mxu1 %v16323_v20 }
 0x238   : > { %15853 = vmatpush3.bf16.msra.mxu1 %v16323_v20 }
 0x239   : > { %15854 = vmatprep.subr.bf16.mxu1 %v16324_v43 }
 0x23a   : > { %2423 = vmatmul.mubr.bf16.gmra.mrb[88].mxu1 %v18441_v49 }
 0x23b   : > { %2576 = vmatmul.mubr.bf16.gmra.mrb[84].mxu0 %v18452_v15  ;;  %2430 = vmatprep.mubr.bf16.mxu1 %v18490_v17 }
 0x23c   : > { %2583 = vmatprep.mubr.bf16.mxu0 %v18439_v45  ;;  %15855 = vmatpush3.bf16.msra.mxu1 %v16324_v43 }
 0x23d   : > { %15856 = vmatprep.subr.bf16.mxu1 %v16325_v22 }
 0x240   : > { %15857 = vmatpush3.bf16.msra.mxu1 %v16325_v22 }
 0x241   : > { %15858 = vmatprep.subr.bf16.mxu1 %v16326_v37 }
 0x242   : > { %2431 = vmatmul.mubr.bf16.gmra.mrb[92].mxu1 %v1363_v48  ;;  %v1340_v48 = vpack.c.bf16 %v1301_v31, %v1300_v24 }
 0x243   : > { %2584 = vmatmul.mubr.bf16.gmra.mrb[88].mxu0 %v18473_v59  ;;  %2438 = vmatprep.mubr.bf16.mxu1 %v18500_v28 }
 0x244   : > { %2591 = vmatprep.mubr.bf16.mxu0 %v18454_v16  ;;  %15859 = vmatpush3.bf16.msra.mxu1 %v16326_v37 }
 0x245   : > { %15860 = vmatprep.subr.bf16.mxu1 %v16327_v56 }
 0x248   : > { %15861 = vmatpush3.bf16.msra.mxu1 %v16327_v56 }
 0x24a   : > { %2439 = vmatmul.mubr.bf16.gmra.mrb[96].mxu1 %v18454_v16 }
 0x24b   : > { %2592 = vmatmul.mubr.bf16.gmra.mrb[92].mxu0 %v18482_v5  ;;  %2446 = vmatprep.mubr.bf16.mxu1 %v18506_v35 }
 0x24c   : > { %2599 = vmatprep.mubr.bf16.mxu0 %v18450_v12 }
 0x252   : > { %2447 = vmatmul.mubr.bf16.gmra.mrb[100].mxu1 %v18450_v12 }
 0x253   : > { %2600 = vmatmul.mubr.bf16.gmra.mrb[96].mxu0 %v18493_v18  ;;  %2454 = vmatprep.mubr.bf16.mxu1 %v18516_v42 }
 0x254   : > { %2607 = vmatprep.mubr.bf16.mxu0 %v18468_v50 }
 0x25a   : > { %2455 = vmatmul.mubr.bf16.gmra.mrb[104].mxu1 %v18468_v50 }
 0x25b   : > { %2608 = vmatmul.mubr.bf16.gmra.mrb[100].mxu0 %v18498_v26  ;;  %2462 = vmatprep.mubr.bf16.mxu1 %v18522_v51 }
 0x25c   : > { %2615 = vmatprep.mubr.bf16.mxu0 %v18466_v46 }
 0x262   : > { %2463 = vmatmul.mubr.bf16.gmra.mrb[108].mxu1 %v18466_v46 }
 0x263   : > { %2616 = vmatmul.mubr.bf16.gmra.mrb[104].mxu0 %v18509_v36  ;;  %2470 = vmatprep.mubr.bf16.mxu1 %v18532_v1 }
 0x264   : > { %2623 = vmatprep.mubr.bf16.mxu0 %v18437_v30 }
 0x26a   : > { %2471 = vmatmul.mubr.bf16.gmra.mrb[112].mxu1 %v18437_v30 }
 0x26b   : > { %2624 = vmatmul.mubr.bf16.gmra.mrb[108].mxu0 %v18514_v41  ;;  %2478 = vmatprep.mubr.bf16.mxu1 %v18542_v19  ;;  %v1234_v19 = vld [vmem:[#allocation2 + $0x18a] sm:$0xff] }
 0x26c   : > { %2631 = vmatprep.mubr.bf16.mxu0 %v18435_v27 }
 0x272   : > { %2479 = vmatmul.mubr.bf16.gmra.mrb[116].mxu1 %v18435_v27 }
 0x273   : > { %2632 = vmatmul.mubr.bf16.gmra.mrb[112].mxu0 %v18525_v52  ;;  %2486 = vmatprep.mubr.bf16.mxu1 %v18552_v34 }
 0x274   : > { %2639 = vmatprep.mubr.bf16.mxu0 %v18447_v61 }
 0x27a   : > { %2487 = vmatmul.mubr.bf16.gmra.mrb[120].mxu1 %v18447_v61 }
 0x27b   : > { %2640 = vmatmul.mubr.bf16.gmra.mrb[116].mxu0 %v18530_v0  ;;  %2494 = vmatprep.mubr.bf16.mxu1 %v18558_v44 }
 0x27c   : > { %2647 = vmatprep.mubr.bf16.mxu0 %v18445_v58 }
 0x282   : > { %2495 = vmatmul.mubr.bf16.gmra.mrb[124].mxu1 %v18445_v58 }
 0x283   : > { %2648 = vmatmul.mubr.bf16.gmra.mrb[120].mxu0 %v18545_v21  ;;  %2502 = vmatprep.mubr.bf16.mxu1 %v18568_v2 }
 0x284   : > { %2655 = vmatprep.mubr.bf16.mxu0 %v18463_v29 }
 0x285   : > { %v14828_v27 = vpop.f32.mrb[20].mxu1 }
 0x286   : > { %v14934_v30 = vpop.f32.mrb[16].mxu0  ;;  %v14829_v45 = vpop.f32.mrb[21].mxu1 }
 0x287   : > { %v14830_v49 = vadd.f32 %v14829_v45, %v14828_v27  ;;  %v14935_v12 = vpop.f32.mrb[17].mxu0  ;;  %v14831_v61 = vpop.f32.mrb[22].mxu1  ;;  %v1302_v45 = vld [vmem:[#allocation2 + $0x4a] sm:$0xff] }
 0x288   : > { %v14936_v15 = vadd.f32 %v14935_v12, %v14934_v30  ;;  %v14937_v16 = vpop.f32.mrb[18].mxu0  ;;  %v14832_v46 = vpop.f32.mrb[23].mxu1  ;;  %v1304_v12 = vld [vmem:[#allocation2 + $0x62] sm:$0xff] }
 0x289   : > { %v14833_v50 = vadd.f32 %v14832_v46, %v14831_v61  ;;  %v14938_v59 = vpop.f32.mrb[19].mxu0 }
 0x28a   : > { %v14939_v5 = vadd.f32 %v14938_v59, %v14937_v16  ;;  %2503 = vmatmul.mubr.bf16.gmra.mrb[128].mxu1 %v18463_v29  ;;  %v18631_v58 = vadd.f32 %v14936_v15, %v18538_v8  ;;  %v1305_v16 = vld [vmem:[#allocation2 + $0x6a] sm:$0xff] }
 0x28b   : > { %2656 = vmatmul.mubr.bf16.gmra.mrb[124].mxu0 %v18550_v33  ;;  %2510 = vmatprep.mubr.bf16.mxu1 %v18574_v10 }
 0x28c   : > { %2663 = vmatprep.mubr.bf16.mxu0 %v18459_v25  ;;  %v18637_v17 = vadd.f32 %v14939_v5, %v18540_v14  ;;  %v1233_v14 = vld [vmem:[#allocation2 + $0x182] sm:$0xff] }
 0x28d   : > { %v14834_v18 = vpop.f32.mrb[24].mxu1 }
 0x28e   : > { %v14940_v26 = vpop.f32.mrb[20].mxu0  ;;  %v14835_v28 = vpop.f32.mrb[25].mxu1 }
 0x28f   : > { %v14836_v35 = vadd.f32 %v14835_v28, %v14834_v18  ;;  %v14941_v36 = vpop.f32.mrb[21].mxu0  ;;  %v14837_v41 = vpop.f32.mrb[26].mxu1 }
 0x290   : > { %v14942_v42 = vadd.f32 %v14941_v36, %v14940_v26  ;;  %v14943_v29 = vpop.f32.mrb[22].mxu0  ;;  %v14838_v51 = vpop.f32.mrb[27].mxu1  ;;  %v17755_v26 = vld [vmem:[#allocation2] sm:$0xff] }
 0x291   : > { %v14839_v52 = vadd.f32 %v14838_v51, %v14837_v41  ;;  %v14944_v0 = vpop.f32.mrb[23].mxu0 }
 0x292   : > { %v14945_v1 = vadd.f32 %v14944_v0, %v14943_v29  ;;  %2511 = vmatmul.mubr.bf16.gmra.mrb[132].mxu1 %v18459_v25  ;;  %v18640_v8 = vadd.f32 %v14942_v42, %v14830_v49  ;;  %v1303_v49 = vld [vmem:[#allocation2 + $0x52] sm:$0xff]  ;;  %v1358_v29 = vpack.c.bf16 %v1305_v16, %v1304_v12  ;;  %v1306_v0 = vld [vmem:[#allocation2 + $0x7a] sm:$0xff] }
 0x293   : > { %2664 = vmatmul.mubr.bf16.gmra.mrb[128].mxu0 %v18561_v47  ;;  %2518 = vmatprep.mubr.bf16.mxu1 %v18582_v38  ;;  %v18647_v47 = vpack.c.bf16 %v1234_v19, %v1233_v14  ;;  %v1308_v19 = vld [vmem:[#allocation2 + $0x92] sm:$0xff] }
 0x294   : > { %2671 = vmatprep.mubr.bf16.mxu0 %v18479_v62  ;;  %v18645_v21 = vadd.f32 %v14945_v1, %v14833_v50  ;;  %v1307_v1 = vld [vmem:[#allocation2 + $0x82] sm:$0xff] }
 0x295   : > { %v14840_v33 = vpop.f32.mrb[28].mxu1 }
 0x296   : > { %v14946_v34 = vpop.f32.mrb[24].mxu0  ;;  %v14841_v44 = vpop.f32.mrb[29].mxu1 }
 0x297   : > { %v14842_v53 = vadd.f32 %v14841_v44, %v14840_v33  ;;  %v14947_v55 = vpop.f32.mrb[25].mxu0  ;;  %v14843_v57 = vpop.f32.mrb[30].mxu1 }
 0x298   : > { %v14948_v2 = vadd.f32 %v14947_v55, %v14946_v34  ;;  %v14949_v25 = vpop.f32.mrb[26].mxu0  ;;  %v14844_v3 = vpop.f32.mrb[31].mxu1  ;;  %v1309_v34 = vld [vmem:[#allocation2 + $0x9a] sm:$0xff] }
 0x299   : > { %v14845_v4 = vadd.f32 %v14844_v3, %v14843_v57  ;;  %v14950_v6 = vpop.f32.mrb[27].mxu0 }
 0x29a   : > { %v14951_v9 = vadd.f32 %v14950_v6, %v14949_v25  ;;  %2519 = vmatmul.mubr.bf16.gmra.mrb[136].mxu1 %v18479_v62  ;;  %v18650_v10 = vadd.f32 %v14948_v2, %v14836_v35  ;;  %v1367_v6 = vpack.c.bf16 %v1307_v1, %v1306_v0 }
 0x29b   : > { %2672 = vmatmul.mubr.bf16.gmra.mrb[132].mxu0 %v18566_v63  ;;  %2526 = vmatprep.mubr.bf16.mxu1 %v18647_v47  ;;  %v1474_v63 = vpack.c.bf16 %v1299_v23, %v1298_v13  ;;  %v1376_v23 = vpack.c.bf16 %v1309_v34, %v1308_v19 }
 0x29c   : > { %2679 = vmatprep.mubr.bf16.mxu0 %v18475_v60  ;;  %v18655_v32 = vadd.f32 %v14951_v9, %v14839_v52 }
 0x29d   : > { %v14846_v38 = vpop.f32.mrb[32].mxu1 }
 0x29e   : > { %v14952_v39 = vpop.f32.mrb[28].mxu0  ;;  %v14847_v40 = vpop.f32.mrb[33].mxu1 }
 0x29f   : > { %v14848_v20 = vadd.f32 %v14847_v40, %v14846_v38  ;;  %v14953_v43 = vpop.f32.mrb[29].mxu0  ;;  %v14849_v62 = vpop.f32.mrb[34].mxu1  ;;  %v1310_v38 = vld [vmem:[#allocation2 + $0xaa] sm:$0xff] }
 0x2a0   : > { %v14954_v22 = vadd.f32 %v14953_v43, %v14952_v39  ;;  %v14955_v54 = vpop.f32.mrb[30].mxu0  ;;  %v14850_v37 = vpop.f32.mrb[35].mxu1  ;;  %v1311_v39 = vld [vmem:[#allocation2 + $0xb2] sm:$0xff] }
 0x2a1   : > { %v14851_v56 = vadd.f32 %v14850_v37, %v14849_v62  ;;  %v14956_v7 = vpop.f32.mrb[31].mxu0  ;;  %v1313_v62 = vld [vmem:[#allocation2 + $0xca] sm:$0xff] }
 0x2a2   : > { %v14957_v27 = vadd.f32 %v14956_v7, %v14955_v54  ;;  %2527 = vmatmul.mubr.bf16.gmra.mrb[140].mxu1 %v18475_v60  ;;  %v18658_v30 = vadd.f32 %v14954_v22, %v14842_v53  ;;  %v1473_v60 = vpack.c.bf16 %v17755_v26, %v17755_v26 }
 0x2a3   : > { %2680 = vmatmul.mubr.bf16.gmra.mrb[136].mxu0 %v18577_v11  ;;  %15862 = vmatprep.mubr.bf16.mxu1 %v1340_v48  ;;  %v1349_v11 = vpack.c.bf16 %v1303_v49, %v1302_v45  ;;  %v1385_v45 = vpack.c.bf16 %v1311_v39, %v1310_v38 }
 0x2a4   : > { %2687 = vmatprep.mubr.bf16.mxu0 %v1474_v63  ;;  %v18661_v61 = vadd.f32 %v14957_v27, %v14845_v4 }
 0x2a5   : > { %v14852_v15 = vpop.f32.mrb[36].mxu1 }
 0x2a6   : > { %v14958_v46 = vpop.f32.mrb[32].mxu0  ;;  %v14853_v50 = vpop.f32.mrb[37].mxu1 }
 0x2a7   : > { %v14854_v59 = vadd.f32 %v14853_v50, %v14852_v15  ;;  %v14959_v5 = vpop.f32.mrb[33].mxu0  ;;  %v14855_v18 = vpop.f32.mrb[38].mxu1  ;;  %v1314_v50 = vld [vmem:[#allocation2 + $0xda] sm:$0xff] }
 0x2a8   : > { %v14960_v28 = vadd.f32 %v14959_v5, %v14958_v46  ;;  %v14961_v35 = vpop.f32.mrb[34].mxu0  ;;  %v14856_v36 = vpop.f32.mrb[39].mxu1 }
 0x2a9   : > { %v14857_v41 = vadd.f32 %v14856_v36, %v14855_v18  ;;  %v14962_v42 = vpop.f32.mrb[35].mxu0  ;;  %v1316_v18 = vld [vmem:[#allocation2 + $0xf2] sm:$0xff] }
 0x2aa   : > { %v14963_v51 = vadd.f32 %v14962_v42, %v14961_v35  ;;  %15863 = vmatmul.mubr.bf16.vlgmr.msra.gmra.mrb[144].mxu1 %v1349_v11  ;;  %v18663_v52 = vadd.f32 %v14960_v28, %v14848_v20  ;;  %v1312_v20 = vld [vmem:[#allocation2 + $0xc2] sm:$0xff] }
 0x2ab   : > { %2688 = vmatmul.mubr.bf16.gmra.mrb[140].mxu0 %v1473_v60  ;;  %15866 = vmatprep.mubr.bf16.mxu1 %v1358_v29  ;;  %v1394_v15 = vpack.c.bf16 %v1313_v62, %v1312_v20  ;;  %v1317_v60 = vld [vmem:[#allocation2 + $0xfa] sm:$0xff] }
 0x2ac   : > { %v18665_v14 = vadd.f32 %v14963_v51, %v14851_v56 }
 0x2ad   : > { %v14858_v33 = vpop.f32.mrb[40].mxu1 }
 0x2ae   : > { %v14964_v44 = vpop.f32.mrb[36].mxu0  ;;  %v14859_v53 = vpop.f32.mrb[41].mxu1 }
 0x2af   : > { %v14860_v55 = vadd.f32 %v14859_v53, %v14858_v33  ;;  %v14965_v57 = vpop.f32.mrb[37].mxu0  ;;  %v14861_v2 = vpop.f32.mrb[42].mxu1  ;;  %v1412_v33 = vpack.c.bf16 %v1317_v60, %v1316_v18  ;;  %v1318_v53 = vld [vmem:[#allocation2 + $0x10a] sm:$0xff] }
 0x2b0   : > { %v14966_v25 = vadd.f32 %v14965_v57, %v14964_v44  ;;  %v14967_v3 = vpop.f32.mrb[38].mxu0  ;;  %v14862_v4 = vpop.f32.mrb[43].mxu1 }
 0x2b1   : > { %v14863_v9 = vadd.f32 %v14862_v4, %v14861_v2  ;;  %v14968_v13 = vpop.f32.mrb[39].mxu0  ;;  %v1320_v2 = vld [vmem:[#allocation2 + $0x122] sm:$0xff] }
 0x2b2   : > { %v18667_v24 = vadd.f32 %v14966_v25, %v14854_v59  ;;  %v14969_v31 = vadd.f32 %v14968_v13, %v14967_v3  ;;  %15867 = vmatmul.mubr.bf16.gmra.mrb[148].mxu1 %v1367_v6  ;;  %v1315_v59 = vld [vmem:[#allocation2 + $0xe2] sm:$0xff]  ;;  %v1321_v3 = vld [vmem:[#allocation2 + $0x12a] sm:$0xff] }
 0x2b3   : > { %15870 = vmatprep.mubr.bf16.mxu1 %v1376_v23  ;;  %v1403_v0 = vpack.c.bf16 %v1315_v59, %v1314_v50 }
 0x2b4   : > { %v18669_v40 = vadd.f32 %v14969_v31, %v14857_v41 }
 0x2b5   : > { %v14864_v43 = vpop.f32.mrb[44].mxu1 }
 0x2b6   : > { %v14970_v22 = vpop.f32.mrb[40].mxu0  ;;  %v14865_v54 = vpop.f32.mrb[45].mxu1 }
 0x2b7   : > { %v14866_v37 = vadd.f32 %v14865_v54, %v14864_v43  ;;  %v14971_v63 = vpop.f32.mrb[41].mxu0  ;;  %v14867_v56 = vpop.f32.mrb[46].mxu1 }
 0x2b8   : > { %v14972_v7 = vadd.f32 %v14971_v63, %v14970_v22  ;;  %v14973_v48 = vpop.f32.mrb[42].mxu0  ;;  %v14868_v27 = vpop.f32.mrb[47].mxu1  ;;  %v1430_v22 = vpack.c.bf16 %v1321_v3, %v1320_v2  ;;  %v1322_v63 = vld [vmem:[#allocation2 + $0x13a] sm:$0xff] }
 0x2b9   : > { %v14869_v49 = vadd.f32 %v14868_v27, %v14867_v56  ;;  %v14974_v12 = vpop.f32.mrb[43].mxu0  ;;  %v1323_v56 = vld [vmem:[#allocation2 + $0x142] sm:$0xff] }
 0x2ba   : > { %v18671_v16 = vadd.f32 %v14972_v7, %v14860_v55  ;;  %v14975_v46 = vadd.f32 %v14974_v12, %v14973_v48  ;;  %15871 = vmatmul.mubr.bf16.gmra.mrb[152].mxu1 %v1385_v45  ;;  %v1319_v55 = vld [vmem:[#allocation2 + $0x112] sm:$0xff]  ;;  %v1325_v45 = vld [vmem:[#allocation2 + $0x15a] sm:$0xff]  ;;  %v1439_v60 = vpack.c.bf16 %v1323_v56, %v1322_v63 }
 0x2bb   : > { %15874 = vmatprep.mubr.bf16.mxu1 %v1394_v15  ;;  %v1421_v20 = vpack.c.bf16 %v1319_v55, %v1318_v53  ;;  %v1324_v48 = vld [vmem:[#allocation2 + $0x152] sm:$0xff] }
 0x2bc   : > { %v18673_v5 = vadd.f32 %v14975_v46, %v14863_v9 }
 0x2bd   : > { %v14870_v26 = vpop.f32.mrb[48].mxu1 }
 0x2be   : > { %v14976_v28 = vpop.f32.mrb[44].mxu0  ;;  %v14871_v35 = vpop.f32.mrb[49].mxu1 }
 0x2bf   : > { %v14872_v36 = vadd.f32 %v14871_v35, %v14870_v26  ;;  %v14977_v11 = vpop.f32.mrb[45].mxu0  ;;  %v14873_v41 = vpop.f32.mrb[50].mxu1 }
 0x2c0   : > { %v14978_v42 = vadd.f32 %v14977_v11, %v14976_v28  ;;  %v14979_v29 = vpop.f32.mrb[46].mxu0  ;;  %v14874_v51 = vpop.f32.mrb[51].mxu1 }
 0x2c1   : > { %v14875_v1 = vadd.f32 %v14874_v51, %v14873_v41  ;;  %v14980_v19 = vpop.f32.mrb[47].mxu0 }
 0x2c2   : > { %v18675_v34 = vadd.f32 %v14978_v42, %v14866_v37  ;;  %v14981_v44 = vadd.f32 %v14980_v19, %v14979_v29  ;;  %15875 = vmatmul.mubr.bf16.gmra.mrb[156].mxu1 %v1403_v0  ;;  %v1326_v42 = vld [vmem:[#allocation2 + $0x16a] sm:$0xff]  ;;  %v1327_v0 = vld [vmem:[#allocation2 + $0x172] sm:$0xff] }
 0x2c3   : > { %15878 = vmatprep.mubr.bf16.mxu1 %v1412_v33  ;;  %v1457_v3 = vpack.c.bf16 %v1327_v0, %v1326_v42 }
 0x2c4   : > { %v18677_v57 = vadd.f32 %v14981_v44, %v14869_v49 }
 0x2c5   : > { %v14876_v25 = vpop.f32.mrb[52].mxu1 }
 0x2c6   : > { %v14982_v4 = vpop.f32.mrb[48].mxu0  ;;  %v14877_v6 = vpop.f32.mrb[53].mxu1 }
 0x2c7   : > { %v14878_v9 = vadd.f32 %v14877_v6, %v14876_v25  ;;  %v14983_v13 = vpop.f32.mrb[49].mxu0  ;;  %v14879_v23 = vpop.f32.mrb[54].mxu1 }
 0x2c8   : > { %v14984_v31 = vadd.f32 %v14983_v13, %v14982_v4  ;;  %v14985_v38 = vpop.f32.mrb[50].mxu0  ;;  %v14880_v39 = vpop.f32.mrb[55].mxu1 }
 0x2c9   : > { %v14881_v43 = vadd.f32 %v14880_v39, %v14879_v23  ;;  %v14986_v62 = vpop.f32.mrb[51].mxu0  ;;  %v1330_v23 = vld [vmem:[#allocation2 + $0x19a] sm:$0xff] }
 0x2ca   : > { %v18679_v54 = vadd.f32 %v14984_v31, %v14872_v36  ;;  %v14987_v37 = vadd.f32 %v14986_v62, %v14985_v38  ;;  %15879 = vmatmul.mubr.bf16.gmra.mrb[160].mxu1 %v1421_v20  ;;  %v1448_v36 = vpack.c.bf16 %v1325_v45, %v1324_v48  ;;  %v1331_v31 = vld [vmem:[#allocation2 + $0x1a2] sm:$0xff] }
 0x2cb   : > { %15882 = vmatprep.mubr.bf16.mxu1 %v1430_v22  ;;  %v1475_v62 = vpack.c.bf16 %v1331_v31, %v1330_v23 }
 0x2cc   : > { %v18681_v7 = vadd.f32 %v14987_v37, %v14875_v1 }
 0x2cd   : > { %v14882_v27 = vpop.f32.mrb[56].mxu1 }
 0x2ce   : > { %v14988_v49 = vpop.f32.mrb[52].mxu0  ;;  %v14883_v12 = vpop.f32.mrb[57].mxu1 }
 0x2cf   : > { %v14884_v15 = vadd.f32 %v14883_v12, %v14882_v27  ;;  %v14989_v46 = vpop.f32.mrb[53].mxu0  ;;  %v14885_v50 = vpop.f32.mrb[58].mxu1 }
 0x2d0   : > { %v14990_v59 = vadd.f32 %v14989_v46, %v14988_v49  ;;  %v14991_v18 = vpop.f32.mrb[54].mxu0  ;;  %v14886_v26 = vpop.f32.mrb[59].mxu1 }
 0x2d1   : > { %v14887_v28 = vadd.f32 %v14886_v26, %v14885_v50  ;;  %v14992_v35 = vpop.f32.mrb[55].mxu0 }
 0x2d2   : > { %v18683_v11 = vadd.f32 %v14990_v59, %v14878_v9  ;;  %v14993_v41 = vadd.f32 %v14992_v35, %v14991_v18  ;;  %15883 = vmatmul.mubr.bf16.gmra.mrb[164].mxu1 %v1439_v60 }
 0x2d3   : > { %15886 = vmatprep.mubr.bf16.mxu1 %v1448_v36 }
 0x2d4   : > { %v18685_v29 = vadd.f32 %v14993_v41, %v14881_v43 }
 0x2d5   : > { %v14888_v51 = vpop.f32.mrb[60].mxu1 }
 0x2d6   : > { %v14994_v1 = vpop.f32.mrb[56].mxu0  ;;  %v14889_v19 = vpop.f32.mrb[61].mxu1 }
 0x2d7   : > { %v14890_v33 = vadd.f32 %v14889_v19, %v14888_v51  ;;  %v14995_v44 = vpop.f32.mrb[57].mxu0  ;;  %v14891_v53 = vpop.f32.mrb[62].mxu1 }
 0x2d8   : > { %v14996_v55 = vadd.f32 %v14995_v44, %v14994_v1  ;;  %v14997_v2 = vpop.f32.mrb[58].mxu0  ;;  %v14892_v25 = vpop.f32.mrb[63].mxu1 }
 0x2d9   : > { %v14893_v4 = vadd.f32 %v14892_v25, %v14891_v53  ;;  %v14998_v6 = vpop.f32.mrb[59].mxu0 }
 0x2da   : > { %v18687_v9 = vadd.f32 %v14996_v55, %v14884_v15  ;;  %v14999_v13 = vadd.f32 %v14998_v6, %v14997_v2  ;;  %15887 = vmatmul.mubr.bf16.gmra.mrb[168].mxu1 %v1457_v3 }
 0x2db   : > { %15890 = vmatprep.mubr.bf16.mxu1 %v18647_v47 }
 0x2dc   : > { %v18690_v38 = vadd.f32 %v14999_v13, %v14887_v28 }
 0x2dd   : > { %v14894_v39 = vpop.f32.mrb[64].mxu1 }
 0x2de   : > { %v15000_v20 = vpop.f32.mrb[60].mxu0  ;;  %v14895_v43 = vpop.f32.mrb[65].mxu1 }
 0x2df   : > { %v14896_v22 = vadd.f32 %v14895_v43, %v14894_v39  ;;  %v15001_v37 = vpop.f32.mrb[61].mxu0  ;;  %v14897_v63 = vpop.f32.mrb[66].mxu1 }
 0x2e0   : > { %v15002_v56 = vadd.f32 %v15001_v37, %v15000_v20  ;;  %v15003_v48 = vpop.f32.mrb[62].mxu0  ;;  %v14898_v27 = vpop.f32.mrb[67].mxu1 }
 0x2e1   : > { %v14899_v45 = vadd.f32 %v14898_v27, %v14897_v63  ;;  %v15004_v49 = vpop.f32.mrb[63].mxu0 }
 0x2e2   : > { %v18692_v12 = vadd.f32 %v15002_v56, %v14890_v33  ;;  %v15005_v15 = vadd.f32 %v15004_v49, %v15003_v48  ;;  %15891 = vmatmul.mubr.bf16.gmra.mrb[172].mxu1 %v1475_v62 }
 0x2e4   : > { %v18694_v47 = vadd.f32 %v15005_v15, %v14893_v4 }
 0x2e5   : > { %v14900_v46 = vpop.f32.mrb[68].mxu1 }
 0x2e6   : > { %v15006_v50 = vpop.f32.mrb[64].mxu0  ;;  %v14901_v59 = vpop.f32.mrb[69].mxu1 }
 0x2e7   : > { %v14902_v18 = vadd.f32 %v14901_v59, %v14900_v46  ;;  %v15007_v26 = vpop.f32.mrb[65].mxu0  ;;  %v14903_v60 = vpop.f32.mrb[70].mxu1 }
 0x2e8   : > { %v15008_v28 = vadd.f32 %v15007_v26, %v15006_v50  ;;  %v15009_v35 = vpop.f32.mrb[66].mxu0  ;;  %v14904_v36 = vpop.f32.mrb[71].mxu1 }
 0x2e9   : > { %v14905_v41 = vadd.f32 %v14904_v36, %v14903_v60  ;;  %v15010_v42 = vpop.f32.mrb[67].mxu0 }
 0x2ea   : > { %v18696_v51 = vadd.f32 %v15008_v28, %v14896_v22  ;;  %v15011_v0 = vadd.f32 %v15010_v42, %v15009_v35 }
 0x2ec   : > { %v18698_v1 = vadd.f32 %v15011_v0, %v14899_v45 }
 0x2ed   : > { %v14906_v19 = vpop.f32.mrb[72].mxu1 }
 0x2ee   : > { %v15012_v33 = vpop.f32.mrb[68].mxu0  ;;  %v14907_v44 = vpop.f32.mrb[73].mxu1 }
 0x2ef   : > { %v14908_v53 = vadd.f32 %v14907_v44, %v14906_v19  ;;  %v15013_v55 = vpop.f32.mrb[69].mxu0  ;;  %v14909_v2 = vpop.f32.mrb[74].mxu1 }
 0x2f0   : > { %v15014_v25 = vadd.f32 %v15013_v55, %v15012_v33  ;;  %v15015_v3 = vpop.f32.mrb[70].mxu0  ;;  %v14910_v4 = vpop.f32.mrb[75].mxu1 }
 0x2f1   : > { %v14911_v6 = vadd.f32 %v14910_v4, %v14909_v2  ;;  %v15016_v13 = vpop.f32.mrb[71].mxu0 }
 0x2f2   : > { %v18700_v23 = vadd.f32 %v15014_v25, %v14902_v18  ;;  %v15017_v31 = vadd.f32 %v15016_v13, %v15015_v3 }
 0x2f4   : > { %v18702_v39 = vadd.f32 %v15017_v31, %v14905_v41 }
 0x2f5   : > { %v14912_v20 = vpop.f32.mrb[76].mxu1 }
 0x2f6   : > { %v15018_v43 = vpop.f32.mrb[72].mxu0  ;;  %v14913_v62 = vpop.f32.mrb[77].mxu1 }
 0x2f7   : > { %v14914_v22 = vadd.f32 %v14913_v62, %v14912_v20  ;;  %v15019_v37 = vpop.f32.mrb[73].mxu0  ;;  %v14915_v63 = vpop.f32.mrb[78].mxu1 }
 0x2f8   : > { %v15020_v56 = vadd.f32 %v15019_v37, %v15018_v43  ;;  %v15021_v48 = vpop.f32.mrb[74].mxu0  ;;  %v14916_v27 = vpop.f32.mrb[79].mxu1 }
 0x2f9   : > { %v14917_v45 = vadd.f32 %v14916_v27, %v14915_v63  ;;  %v15022_v49 = vpop.f32.mrb[75].mxu0 }
 0x2fa   : > { %v18704_v15 = vadd.f32 %v15020_v56, %v14908_v53  ;;  %v15023_v46 = vadd.f32 %v15022_v49, %v15021_v48 }
 0x2fc   : > { %v18706_v50 = vadd.f32 %v15023_v46, %v14911_v6 }
 0x2fd   : > { %v15046_v59 = vpop.f32.mrb[80].mxu1 }
 0x2fe   : > { %v15024_v18 = vpop.f32.mrb[76].mxu0  ;;  %v15047_v26 = vpop.f32.mrb[81].mxu1 }
 0x2ff   : > { %v15025_v60 = vpop.f32.mrb[77].mxu0  ;;  %v15048_v28 = vadd.f32 %v15047_v26, %v15046_v59  ;;  %v15049_v35 = vpop.f32.mrb[82].mxu1 }
 0x300   : > { %v15026_v36 = vadd.f32 %v15025_v60, %v15024_v18  ;;  %v15027_v41 = vpop.f32.mrb[78].mxu0  ;;  %v15050_v42 = vpop.f32.mrb[83].mxu1 }
 0x301   : > { %v2409_v0 = vadd.f32 %v15048_v28, %v18631_v58  ;;  %v15028_v19 = vpop.f32.mrb[79].mxu0  ;;  %v15051_v33 = vadd.f32 %v15050_v42, %v15049_v35 }
 0x302   : > { %v18709_v44 = vadd.f32 %v15026_v36, %v14914_v22  ;;  %v15029_v53 = vadd.f32 %v15028_v19, %v15027_v41 }
 0x303   : > { %v2412_v55 = vadd.f32 %v15051_v33, %v18637_v17 }
 0x304   : > { %v18712_v2 = vadd.f32 %v15029_v53, %v14917_v45 }
 0x305   : > { %v15052_v25 = vpop.f32.mrb[84].mxu1 }
 0x306   : > { %v15158_v3 = vpop.f32.mrb[80].mxu0  ;;  %v15053_v4 = vpop.f32.mrb[85].mxu1 }
 0x307   : > { %v15054_v6 = vadd.f32 %v15053_v4, %v15052_v25  ;;  %v15159_v13 = vpop.f32.mrb[81].mxu0  ;;  %v15055_v31 = vpop.f32.mrb[86].mxu1 }
 0x308   : > { %v15160_v20 = vadd.f32 %v15159_v13, %v15158_v3  ;;  %v15161_v43 = vpop.f32.mrb[82].mxu0  ;;  %v15056_v62 = vpop.f32.mrb[87].mxu1 }
 0x309   : > { %v2417_v58 = vadd.f32 %v15054_v6, %v18640_v8  ;;  %v15057_v37 = vadd.f32 %v15056_v62, %v15055_v31  ;;  %v15162_v63 = vpop.f32.mrb[83].mxu0 }
 0x30a   : > { %v15163_v22 = vadd.f32 %v15162_v63, %v15161_v43  ;;  %v18715_v56 = vadd.f32 %v15160_v20, %v2409_v0 }
 0x30b   : > { %v2420_v17 = vadd.f32 %v15057_v37, %v18645_v21 }
 0x30c   : > { %v18718_v48 = vadd.f32 %v15163_v22, %v2412_v55 }
 0x30d   : > { %v15058_v27 = vpop.f32.mrb[88].mxu1 }
 0x30e   : > { %v15164_v45 = vpop.f32.mrb[84].mxu0  ;;  %v15059_v49 = vpop.f32.mrb[89].mxu1 }
 0x30f   : > { %v15060_v46 = vadd.f32 %v15059_v49, %v15058_v27  ;;  %v15165_v59 = vpop.f32.mrb[85].mxu0  ;;  %v15061_v18 = vpop.f32.mrb[90].mxu1 }
 0x310   : > { %v15166_v26 = vadd.f32 %v15165_v59, %v15164_v45  ;;  %v15167_v60 = vpop.f32.mrb[86].mxu0  ;;  %v15062_v28 = vpop.f32.mrb[91].mxu1 }
 0x311   : > { %v2425_v8 = vadd.f32 %v15060_v46, %v18650_v10  ;;  %v15063_v35 = vadd.f32 %v15062_v28, %v15061_v18  ;;  %v15168_v36 = vpop.f32.mrb[87].mxu0 }
 0x312   : > { %v15169_v41 = vadd.f32 %v15168_v36, %v15167_v60  ;;  %v18721_v42 = vadd.f32 %v15166_v26, %v2417_v58 }
 0x313   : > { %v2428_v21 = vadd.f32 %v15063_v35, %v18655_v32 }
 0x314   : > { %v18724_v0 = vadd.f32 %v15169_v41, %v2420_v17 }
 0x315   : > { %v15064_v19 = vpop.f32.mrb[92].mxu1 }
 0x316   : > { %v15170_v33 = vpop.f32.mrb[88].mxu0  ;;  %v15065_v53 = vpop.f32.mrb[93].mxu1 }
 0x317   : > { %v15066_v55 = vadd.f32 %v15065_v53, %v15064_v19  ;;  %v15171_v25 = vpop.f32.mrb[89].mxu0  ;;  %v15067_v3 = vpop.f32.mrb[94].mxu1 }
 0x318   : > { %v15172_v4 = vadd.f32 %v15171_v25, %v15170_v33  ;;  %v15173_v6 = vpop.f32.mrb[90].mxu0  ;;  %v15068_v13 = vpop.f32.mrb[95].mxu1 }
 0x319   : > { %v2433_v10 = vadd.f32 %v15066_v55, %v18658_v30  ;;  %v15069_v31 = vadd.f32 %v15068_v13, %v15067_v3  ;;  %v15174_v20 = vpop.f32.mrb[91].mxu0 }
 0x31a   : > { %v15175_v43 = vadd.f32 %v15174_v20, %v15173_v6  ;;  %v18727_v62 = vadd.f32 %v15172_v4, %v2425_v8 }
 0x31b   : > { %v2436_v32 = vadd.f32 %v15069_v31, %v18661_v61 }
 0x31c   : > { %v18730_v58 = vadd.f32 %v15175_v43, %v2428_v21 }
 0x31d   : > { %v15070_v37 = vpop.f32.mrb[96].mxu1 }
 0x31e   : > { %v15176_v63 = vpop.f32.mrb[92].mxu0  ;;  %v15071_v22 = vpop.f32.mrb[97].mxu1 }
 0x31f   : > { %v15072_v17 = vadd.f32 %v15071_v22, %v15070_v37  ;;  %v15177_v27 = vpop.f32.mrb[93].mxu0  ;;  %v15073_v45 = vpop.f32.mrb[98].mxu1 }
 0x320   : > { %v15178_v49 = vadd.f32 %v15177_v27, %v15176_v63  ;;  %v15179_v46 = vpop.f32.mrb[94].mxu0  ;;  %v15074_v59 = vpop.f32.mrb[99].mxu1 }
 0x321   : > { %v2441_v30 = vadd.f32 %v15072_v17, %v18663_v52  ;;  %v15075_v18 = vadd.f32 %v15074_v59, %v15073_v45  ;;  %v15180_v26 = vpop.f32.mrb[95].mxu0 }
 0x322   : > { %v15181_v60 = vadd.f32 %v15180_v26, %v15179_v46  ;;  %v18733_v28 = vadd.f32 %v15178_v49, %v2433_v10 }
 0x323   : > { %v2444_v61 = vadd.f32 %v15075_v18, %v18665_v14 }
 0x324   : > { %v18736_v8 = vadd.f32 %v15181_v60, %v2436_v32 }
 0x325   : > { %v15076_v35 = vpop.f32.mrb[100].mxu1 }
 0x326   : > { %v15182_v36 = vpop.f32.mrb[96].mxu0  ;;  %v15077_v41 = vpop.f32.mrb[101].mxu1 }
 0x327   : > { %v15078_v21 = vadd.f32 %v15077_v41, %v15076_v35  ;;  %v15183_v19 = vpop.f32.mrb[97].mxu0  ;;  %v15079_v33 = vpop.f32.mrb[102].mxu1 }
 0x328   : > { %v15184_v53 = vadd.f32 %v15183_v19, %v15182_v36  ;;  %v15185_v55 = vpop.f32.mrb[98].mxu0  ;;  %v15080_v25 = vpop.f32.mrb[103].mxu1 }
 0x329   : > { %v2449_v52 = vadd.f32 %v15078_v21, %v18667_v24  ;;  %v15081_v3 = vadd.f32 %v15080_v25, %v15079_v33  ;;  %v15186_v4 = vpop.f32.mrb[99].mxu0 }
 0x32a   : > { %v15187_v6 = vadd.f32 %v15186_v4, %v15185_v55  ;;  %v18739_v13 = vadd.f32 %v15184_v53, %v2441_v30 }
 0x32b   : > { %v2452_v14 = vadd.f32 %v15081_v3, %v18669_v40 }
 0x32c   : > { %v18742_v10 = vadd.f32 %v15187_v6, %v2444_v61 }
 0x32d   : > { %v15082_v31 = vpop.f32.mrb[104].mxu1 }
 0x32e   : > { %v15188_v20 = vpop.f32.mrb[100].mxu0  ;;  %v15083_v43 = vpop.f32.mrb[105].mxu1 }
 0x32f   : > { %v15084_v32 = vadd.f32 %v15083_v43, %v15082_v31  ;;  %v15189_v37 = vpop.f32.mrb[101].mxu0  ;;  %v15085_v63 = vpop.f32.mrb[106].mxu1 }
 0x330   : > { %v15190_v22 = vadd.f32 %v15189_v37, %v15188_v20  ;;  %v15191_v17 = vpop.f32.mrb[102].mxu0  ;;  %v15086_v27 = vpop.f32.mrb[107].mxu1 }
 0x331   : > { %v2457_v24 = vadd.f32 %v15084_v32, %v18671_v16  ;;  %v15087_v45 = vadd.f32 %v15086_v27, %v15085_v63  ;;  %v15192_v49 = vpop.f32.mrb[103].mxu0 }
 0x332   : > { %v15193_v46 = vadd.f32 %v15192_v49, %v15191_v17  ;;  %v18745_v59 = vadd.f32 %v15190_v22, %v2449_v52 }
 0x333   : > { %v2460_v40 = vadd.f32 %v15087_v45, %v18673_v5  ;;  %v2890_v45 = vld [vmem:[%s20328_s10 + $0x8] sm:$0xff] }
 0x334   : > { %v18748_v30 = vadd.f32 %v15193_v46, %v2452_v14  ;;  %2969 = vmatprep.mubr.f32.mxu0 %v2890_v45 }
 0x335   : > { %v15088_v18 = vpop.f32.mrb[108].mxu1 }
 0x336   : > { %v15194_v26 = vpop.f32.mrb[104].mxu0  ;;  %v15089_v60 = vpop.f32.mrb[109].mxu1 }
 0x337   : > { %v15090_v61 = vadd.f32 %v15089_v60, %v15088_v18  ;;  %v15195_v35 = vpop.f32.mrb[105].mxu0  ;;  %v15091_v36 = vpop.f32.mrb[110].mxu1 }
 0x338   : > { %v15196_v41 = vadd.f32 %v15195_v35, %v15194_v26  ;;  %v15197_v21 = vpop.f32.mrb[106].mxu0  ;;  %v15092_v19 = vpop.f32.mrb[111].mxu1 }
 0x339   : > { %v2465_v16 = vadd.f32 %v15090_v61, %v18675_v34  ;;  %v15093_v33 = vadd.f32 %v15092_v19, %v15091_v36  ;;  %v15198_v53 = vpop.f32.mrb[107].mxu0 }
 0x33a   : > { %v15199_v55 = vadd.f32 %v15198_v53, %v15197_v21  ;;  %v18751_v25 = vadd.f32 %v15196_v41, %v2457_v24 }
 0x33b   : > { %v2468_v5 = vadd.f32 %v15093_v33, %v18677_v57 }
 0x33c   : > { %v18754_v52 = vadd.f32 %v15199_v55, %v2460_v40 }
 0x33d   : > { %v15094_v3 = vpop.f32.mrb[112].mxu1 }
 0x33e   : > { %v15200_v4 = vpop.f32.mrb[108].mxu0  ;;  %v15095_v6 = vpop.f32.mrb[113].mxu1 }
 0x33f   : > { %v15096_v14 = vadd.f32 %v15095_v6, %v15094_v3  ;;  %v15201_v31 = vpop.f32.mrb[109].mxu0  ;;  %v15097_v20 = vpop.f32.mrb[114].mxu1 }
 0x340   : > { %v15202_v43 = vadd.f32 %v15201_v31, %v15200_v4  ;;  %v15203_v32 = vpop.f32.mrb[110].mxu0  ;;  %v15098_v37 = vpop.f32.mrb[115].mxu1 }
 0x341   : > { %v2473_v34 = vadd.f32 %v15096_v14, %v18679_v54  ;;  %v15099_v63 = vadd.f32 %v15098_v37, %v15097_v20  ;;  %v15204_v22 = vpop.f32.mrb[111].mxu0 }
 0x342   : > { %v15205_v17 = vadd.f32 %v15204_v22, %v15203_v32  ;;  %v18757_v27 = vadd.f32 %v15202_v43, %v2465_v16 }
 0x343   : > { %v2476_v57 = vadd.f32 %v15099_v63, %v18681_v7 }
 0x344   : > { %v18760_v24 = vadd.f32 %v15205_v17, %v2468_v5 }
 0x345   : > { %v15100_v49 = vpop.f32.mrb[116].mxu1 }
 0x346   : > { %v15206_v46 = vpop.f32.mrb[112].mxu0  ;;  %v15101_v40 = vpop.f32.mrb[117].mxu1 }
 0x347   : > { %v15102_v18 = vadd.f32 %v15101_v40, %v15100_v49  ;;  %v15207_v26 = vpop.f32.mrb[113].mxu0  ;;  %v15103_v54 = vpop.f32.mrb[118].mxu1 }
 0x348   : > { %v15208_v60 = vadd.f32 %v15207_v26, %v15206_v46  ;;  %v15209_v61 = vpop.f32.mrb[114].mxu0  ;;  %v15104_v35 = vpop.f32.mrb[119].mxu1 }
 0x349   : > { %v2481_v36 = vadd.f32 %v15102_v18, %v18683_v11  ;;  %v15105_v41 = vadd.f32 %v15104_v35, %v15103_v54  ;;  %v15210_v7 = vpop.f32.mrb[115].mxu0 }
 0x34a   : > { %v15211_v21 = vadd.f32 %v15210_v7, %v15209_v61  ;;  %v18766_v19 = vadd.f32 %v15208_v60, %v2473_v34 }
 0x34b   : > { %v2484_v16 = vadd.f32 %v15105_v41, %v18685_v29 }
 0x34c   : > { %v18769_v33 = vadd.f32 %v15211_v21, %v2476_v57 }
 0x34d   : > { %v15106_v53 = vpop.f32.mrb[120].mxu1 }
 0x34e   : > { %v15212_v55 = vpop.f32.mrb[116].mxu0  ;;  %v15107_v5 = vpop.f32.mrb[121].mxu1 }
 0x34f   : > { %v15108_v3 = vadd.f32 %v15107_v5, %v15106_v53  ;;  %v15213_v4 = vpop.f32.mrb[117].mxu0  ;;  %v15109_v6 = vpop.f32.mrb[122].mxu1 }
 0x350   : > { %v15214_v14 = vadd.f32 %v15213_v4, %v15212_v55  ;;  %v15215_v31 = vpop.f32.mrb[118].mxu0  ;;  %v15110_v20 = vpop.f32.mrb[123].mxu1 }
 0x351   : > { %v2489_v11 = vadd.f32 %v15108_v3, %v18687_v9  ;;  %v15111_v43 = vadd.f32 %v15110_v20, %v15109_v6  ;;  %v15216_v32 = vpop.f32.mrb[119].mxu0 }
 0x352   : > { %v15217_v37 = vadd.f32 %v15216_v32, %v15215_v31  ;;  %v18772_v34 = vadd.f32 %v15214_v14, %v2481_v36  ;;  %v16330_v32 = vld [vmem:[#allocation8 + $0x48] sm:$0xff]  }
 0x353   : > { %v2492_v29 = vadd.f32 %v15111_v43, %v18690_v38  ;;  %v16329_v43 = vld [vmem:[#allocation8] sm:$0xff]  }
 0x354   : > { %v18775_v63 = vadd.f32 %v15217_v37, %v2484_v16 }
 0x355   : > { %v15112_v22 = vpop.f32.mrb[124].mxu1 }
 0x356   : > { %v15218_v17 = vpop.f32.mrb[120].mxu0  ;;  %v15113_v57 = vpop.f32.mrb[125].mxu1 }
 0x357   : > { %v15114_v45 = vadd.f32 %v15113_v57, %v15112_v22  ;;  %v15219_v49 = vpop.f32.mrb[121].mxu0  ;;  %v15115_v46 = vpop.f32.mrb[126].mxu1  ;;  %v16331_v57 = vld [vmem:[#allocation8 + $0x8] sm:$0xff]  }
 0x358   : > { %v15220_v40 = vadd.f32 %v15219_v49, %v15218_v17  ;;  %v15221_v18 = vpop.f32.mrb[122].mxu0  ;;  %v15116_v26 = vpop.f32.mrb[127].mxu1 }
 0x359   : > { %v2497_v9 = vadd.f32 %v15114_v45, %v18692_v12  ;;  %v15117_v54 = vadd.f32 %v15116_v26, %v15115_v46  ;;  %v15222_v60 = vpop.f32.mrb[123].mxu0  ;;  %v16332_v46 = vld [vmem:[#allocation8 + $0x50] sm:$0xff]  }
 0x35a   : > { %v15223_v61 = vadd.f32 %v15222_v60, %v15221_v18  ;;  %v18778_v35 = vadd.f32 %v15220_v40, %v2489_v11  ;;  %v16328_v11 = vld [vmem:[#allocation8 + $0x40] sm:$0xff]  }
 0x35b   : > { %v2500_v38 = vadd.f32 %v15117_v54, %v18694_v47  ;;  %15334 = vmatprep.subr.bf16.mxu1 %v16328_v11 }
 0x35c   : > { %v18781_v36 = vadd.f32 %v15223_v61, %v2492_v29  ;;  %15335 = vmatpush3.bf16.msra.mxu1 %v16329_v43 }
 0x35d   : > { %v15118_v41 = vpop.f32.mrb[128].mxu1  ;;  %15336 = vmatprep.subr.bf16.mxu1 %v16330_v32 }
 0x35e   : > { %v15224_v7 = vpop.f32.mrb[124].mxu0  ;;  %v15119_v21 = vpop.f32.mrb[129].mxu1 }
 0x35f   : > { %v15120_v16 = vadd.f32 %v15119_v21, %v15118_v41  ;;  %v15225_v53 = vpop.f32.mrb[125].mxu0  ;;  %v15121_v55 = vpop.f32.mrb[130].mxu1 }
 0x360   : > { %v15226_v5 = vadd.f32 %v15225_v53, %v15224_v7  ;;  %v15227_v3 = vpop.f32.mrb[126].mxu0  ;;  %v15122_v4 = vpop.f32.mrb[131].mxu1  ;;  %15337 = vmatpush3.bf16.msra.mxu1 %v16331_v57  ;;  %v16334_v7 = vld [vmem:[#allocation8 + $0x58] sm:$0xff]  }
 0x361   : > { %v2505_v12 = vadd.f32 %v15120_v16, %v18696_v51  ;;  %v15123_v6 = vadd.f32 %v15122_v4, %v15121_v55  ;;  %v15228_v14 = vpop.f32.mrb[127].mxu0  ;;  %15338 = vmatprep.subr.bf16.mxu1 %v16332_v46 }
 0x362   : > { %v15229_v31 = vadd.f32 %v15228_v14, %v15227_v3  ;;  %v18784_v20 = vadd.f32 %v15226_v5, %v2497_v9  ;;  %v16335_v5 = vld [vmem:[#allocation8 + $0x18] sm:$0xff]  }
 0x363   : > { %v2508_v47 = vadd.f32 %v15123_v6, %v18698_v1  ;;  %v16336_v6 = vld [vmem:[#allocation8 + $0x60] sm:$0xff]  }
 0x364   : > { %v18787_v37 = vadd.f32 %v15229_v31, %v2500_v38  ;;  %v16333_v38 = vld [vmem:[#allocation8 + $0x10] sm:$0xff]  }
 0x365   : > { %v15124_v29 = vpop.f32.mrb[132].mxu1  ;;  %15339 = vmatpush3.bf16.msra.mxu1 %v16333_v38 }
 0x366   : > { %v15230_v22 = vpop.f32.mrb[128].mxu0  ;;  %v15125_v17 = vpop.f32.mrb[133].mxu1  ;;  %15340 = vmatprep.subr.bf16.mxu1 %v16334_v7 }
 0x367   : > { %v15126_v45 = vadd.f32 %v15125_v17, %v15124_v29  ;;  %v15231_v51 = vpop.f32.mrb[129].mxu0  ;;  %v15127_v49 = vpop.f32.mrb[134].mxu1 }
 0x368   : > { %v15232_v40 = vadd.f32 %v15231_v51, %v15230_v22  ;;  %v15233_v18 = vpop.f32.mrb[130].mxu0  ;;  %v15128_v26 = vpop.f32.mrb[135].mxu1 }
 0x369   : > { %v2513_v1 = vadd.f32 %v15126_v45, %v18700_v23  ;;  %v15129_v9 = vadd.f32 %v15128_v26, %v15127_v49  ;;  %v15234_v54 = vpop.f32.mrb[131].mxu0  ;;  %15341 = vmatpush3.bf16.msra.mxu1 %v16335_v5 }
 0x36a   : > { %v15235_v60 = vadd.f32 %v15234_v54, %v15233_v18  ;;  %v18790_v61 = vadd.f32 %v15232_v40, %v2505_v12  ;;  %15342 = vmatprep.subr.bf16.mxu1 %v16336_v6 }
 0x36b   : > { %v2516_v41 = vadd.f32 %v15129_v9, %v18702_v39 }
 0x36c   : > { %v18793_v21 = vadd.f32 %v15235_v60, %v2508_v47 }
 0x36d   : > { %v15130_v16 = vpop.f32.mrb[136].mxu1 }
 0x36e   : > { %v15236_v53 = vpop.f32.mrb[132].mxu0  ;;  %v15131_v55 = vpop.f32.mrb[137].mxu1 }
 0x36f   : > { %v15132_v3 = vadd.f32 %v15131_v55, %v15130_v16  ;;  %v15237_v23 = vpop.f32.mrb[133].mxu0  ;;  %v15133_v4 = vpop.f32.mrb[138].mxu1 }
 0x370   : > { %v15238_v12 = vadd.f32 %v15237_v23, %v15236_v53  ;;  %v15239_v14 = vpop.f32.mrb[134].mxu0  ;;  %v15134_v31 = vpop.f32.mrb[139].mxu1 }
 0x371   : > { %v2521_v11 = vadd.f32 %v15132_v3, %v18704_v15  ;;  %v15135_v39 = vadd.f32 %v15134_v31, %v15133_v4  ;;  %v15240_v43 = vpop.f32.mrb[135].mxu0 }
 0x372   : > { %v15241_v32 = vadd.f32 %v15240_v43, %v15239_v14  ;;  %v18796_v47 = vadd.f32 %v15238_v12, %v2513_v1 }
 0x373   : > { %v2524_v29 = vadd.f32 %v15135_v39, %v18706_v50 }
 0x374   : > { %v18799_v22 = vadd.f32 %v15241_v32, %v2516_v41 }
 0x375   : > { %v15136_v17 = vpop.f32.mrb[140].mxu1 }
 0x376   : > { %v15242_v57 = vpop.f32.mrb[136].mxu0  ;;  %v15137_v45 = vpop.f32.mrb[141].mxu1 }
 0x377   : > { %v15138_v51 = vadd.f32 %v15137_v45, %v15136_v17  ;;  %v15243_v49 = vpop.f32.mrb[137].mxu0  ;;  %v15139_v46 = vpop.f32.mrb[142].mxu1 }
 0x378   : > { %v15244_v40 = vadd.f32 %v15243_v49, %v15242_v57  ;;  %v15245_v18 = vpop.f32.mrb[138].mxu0  ;;  %v15140_v15 = vpop.f32.mrb[143].mxu1 }
 0x379   : > { %v2529_v26 = vadd.f32 %v15138_v51, %v18709_v44  ;;  %v15141_v9 = vadd.f32 %v15140_v15, %v15139_v46  ;;  %v15246_v1 = vpop.f32.mrb[139].mxu0 }
 0x37a   : > { %v15247_v54 = vadd.f32 %v15246_v1, %v15245_v18  ;;  %v18802_v60 = vadd.f32 %v15244_v40, %v2521_v11 }
 0x37b   : > { %v2532_v50 = vadd.f32 %v15141_v9, %v18712_v2 }
 0x37c   : > { %v18805_v38 = vadd.f32 %v15247_v54, %v2524_v29 }
 0x37d   : > { %v15864_v41 = vpop.f32.mrb[144].mxu1 }
 0x37e   : > { %v15248_v7 = vpop.f32.mrb[140].mxu0  ;;  %v2739_v16 = vadd.f32 %v15864_v41, %v18721_v42  ;;  %v2730_v53 = vpop.f32.mrb[145].mxu1 }
 0x37f   : > { %v15249_v55 = vpop.f32.mrb[141].mxu0  ;;  %v2731_v5 = vadd.f32 %v2730_v53, %v18715_v56  ;;  %v15865_v3 = vpop.f32.mrb[146].mxu1 }
 0x380   : > { %v15250_v23 = vadd.f32 %v15249_v55, %v15248_v7  ;;  %v15251_v44 = vpop.f32.mrb[142].mxu0  ;;  %v2742_v4 = vadd.f32 %v15865_v3, %v18724_v0  ;;  %v2733_v6 = vpop.f32.mrb[147].mxu1  ;;  %v2859_v2 = vmax.f32 %v2739_v16, 0.0 }
 0x381   : > { %v15252_v12 = vpop.f32.mrb[143].mxu0  ;;  %v2734_v14 = vadd.f32 %v2733_v6, %v18718_v48  ;;  %v2857_v43 = vmax.f32 %v2731_v5, 0.0 }
 0x382   : > { %v2860_v31 = vmax.f32 %v2742_v4, 0.0  ;;  %v15253_v11 = vadd.f32 %v15252_v12, %v15251_v44  ;;  %v18811_v39 = vadd.f32 %v15250_v23, %v2529_v26 }
 0x383   : > { %v2858_v42 = vmax.f32 %v2734_v14, 0.0 }
 0x384   : > { %v18813_v32 = vpack.c.bf16 %v2860_v31, %v2859_v2  ;;  %v18815_v29 = vadd.f32 %v15253_v11, %v2532_v50 }
 0x385   : > { %v18817_v56 = vpack.c.bf16 %v2858_v42, %v2857_v43  ;;  %v15868_v17 = vpop.f32.mrb[148].mxu1 }
 0x386   : > { %v2755_v0 = vadd.f32 %v15868_v17, %v18733_v28  ;;  %v2746_v57 = vpop.f32.mrb[149].mxu1 }
 0x387   : > { %v2747_v45 = vadd.f32 %v2746_v57, %v18727_v62  ;;  %v15869_v48 = vpop.f32.mrb[150].mxu1 }
 0x388   : > { %v2758_v51 = vadd.f32 %v15869_v48, %v18736_v8  ;;  %v2749_v49 = vpop.f32.mrb[151].mxu1  ;;  %v2863_v40 = vmax.f32 %v2755_v0, 0.0 }
 0x389   : > { %v2750_v46 = vadd.f32 %v2749_v49, %v18730_v58  ;;  %v2861_v15 = vmax.f32 %v2747_v45, 0.0 }
 0x38a   : > { %v2864_v18 = vmax.f32 %v2758_v51, 0.0 }
 0x38b   : > { %v2862_v26 = vmax.f32 %v2750_v46, 0.0 }
 0x38c   : > { %v18823_v9 = vpack.c.bf16 %v2864_v18, %v2863_v40 }
 0x38d   : > { %v18825_v1 = vpack.c.bf16 %v2862_v26, %v2861_v15  ;;  %v15872_v54 = vpop.f32.mrb[152].mxu1 }
 0x38e   : > { %v2771_v28 = vadd.f32 %v15872_v54, %v18745_v59  ;;  %v2762_v50 = vpop.f32.mrb[153].mxu1 }
 0x38f   : > { %v2763_v62 = vadd.f32 %v2762_v50, %v18739_v13  ;;  %v15873_v41 = vpop.f32.mrb[154].mxu1 }
 0x390   : > { %v2774_v8 = vadd.f32 %v15873_v41, %v18748_v30  ;;  %v2765_v7 = vpop.f32.mrb[155].mxu1  ;;  %v2867_v16 = vmax.f32 %v2771_v28, 0.0 }
 0x391   : > { %v2766_v58 = vadd.f32 %v2765_v7, %v18742_v10  ;;  %v2865_v55 = vmax.f32 %v2763_v62, 0.0 }
 0x392   : > { %v2868_v53 = vmax.f32 %v2774_v8, 0.0 }
 0x393   : > { %v2866_v5 = vmax.f32 %v2766_v58, 0.0 }
 0x394   : > { %v18831_v3 = vpack.c.bf16 %v2868_v53, %v2867_v16 }
 0x395   : > { %v18833_v23 = vpack.c.bf16 %v2866_v5, %v2865_v55  ;;  %v15876_v44 = vpop.f32.mrb[156].mxu1 }
 0x396   : > { %v2787_v59 = vadd.f32 %v15876_v44, %v18757_v27  ;;  %v2778_v4 = vpop.f32.mrb[157].mxu1 }
 0x397   : > { %v2779_v13 = vadd.f32 %v2778_v4, %v18751_v25  ;;  %v15877_v6 = vpop.f32.mrb[158].mxu1 }
 0x398   : > { %v2790_v30 = vadd.f32 %v15877_v6, %v18760_v24  ;;  %v2781_v12 = vpop.f32.mrb[159].mxu1  ;;  %v2871_v14 = vmax.f32 %v2787_v59, 0.0 }
 0x399   : > { %v2782_v10 = vadd.f32 %v2781_v12, %v18754_v52  ;;  %v2869_v31 = vmax.f32 %v2779_v13, 0.0 }
 0x39a   : > { %v2872_v2 = vmax.f32 %v2790_v30, 0.0 }
 0x39b   : > { %v2870_v11 = vmax.f32 %v2782_v10, 0.0 }
 0x39c   : > { %v18839_v43 = vpack.c.bf16 %v2872_v2, %v2871_v14 }
 0x39d   : > { %v18841_v42 = vpack.c.bf16 %v2870_v11, %v2869_v31  ;;  %v15880_v17 = vpop.f32.mrb[160].mxu1  ;;  %v2896_v11 = vld [vmem:[%s20328_s10 + $0x38] sm:$0xff] }
 0x39e   : > { %v2803_v27 = vadd.f32 %v15880_v17, %v18772_v34  ;;  %v2794_v0 = vpop.f32.mrb[161].mxu1  ;;  %v2897_v17 = vld [vmem:[%s20328_s10 + $0x40] sm:$0xff] }
 0x39f   : > { %v2795_v25 = vadd.f32 %v2794_v0, %v18766_v19  ;;  %v15881_v57 = vpop.f32.mrb[162].mxu1  ;;  %v2899_v0 = vld [vmem:[%s20328_s10 + $0x50] sm:$0xff] }
 0x3a0   : > { %v2806_v24 = vadd.f32 %v15881_v57, %v18775_v63  ;;  %v2797_v45 = vpop.f32.mrb[163].mxu1  ;;  %v2875_v48 = vmax.f32 %v2803_v27, 0.0  ;;  %v2900_v27 = vld [vmem:[%s20328_s10 + $0x58] sm:$0xff]  ;;  %v2901_v57 = vld [vmem:[%s20328_s10 + $0x60] sm:$0xff] }
 0x3a1   : > { %v2798_v52 = vadd.f32 %v2797_v45, %v18769_v33  ;;  %v2873_v49 = vmax.f32 %v2795_v25, 0.0  ;;  %v2902_v25 = vld [vmem:[%s20328_s10 + $0x68] sm:$0xff]  ;;  %v2903_v45 = vld [vmem:[%s20328_s10 + $0x70] sm:$0xff] }
 0x3a2   : > { %v2876_v51 = vmax.f32 %v2806_v24, 0.0  ;;  %v2904_v24 = vld [vmem:[%s20328_s10 + $0x78] sm:$0xff] }
 0x3a3   : > { %v2874_v46 = vmax.f32 %v2798_v52, 0.0  ;;  %v16343_v52 = vld [vmem:[#allocation8 + $0xc0] sm:$0xff]  }
 0x3a4   : > { %v16017_v40 = vpack.c.bf16 %v2876_v51, %v2875_v48  ;;  %v16345_v48 = vld [vmem:[#allocation8 + $0x80] sm:$0xff]   ;;  %v16346_v51 = vld [vmem:[#allocation8 + $0xc8] sm:$0xff]  }
 0x3a5   : > { %v16013_v18 = vpack.c.bf16 %v2874_v46, %v2873_v49  ;;  %v15884_v15 = vpop.f32.mrb[164].mxu1  ;;  %v16348_v49 = vld [vmem:[#allocation8 + $0x88] sm:$0xff]   ;;  %v16350_v46 = vld [vmem:[#allocation8 + $0xd0] sm:$0xff]  }
 0x3a6   : > { %v2819_v26 = vadd.f32 %v15884_v15, %v18784_v20  ;;  %v2810_v54 = vpop.f32.mrb[165].mxu1  ;;  %v16354_v15 = vld [vmem:[#allocation8 + $0xd8] sm:$0xff]  }
 0x3a7   : > { %v2811_v34 = vadd.f32 %v2810_v54, %v18778_v35  ;;  %v15885_v28 = vpop.f32.mrb[166].mxu1  ;;  %16014 = vmatprep.subr.bf16.mxu0 %v16013_v18  ;;  %v16337_v18 = vld [vmem:[#allocation8 + $0x20] sm:$0xff]   ;;  %v16338_v54 = vld [vmem:[#allocation8 + $0x68] sm:$0xff]  }
 0x3a8   : > { %v2822_v19 = vadd.f32 %v15885_v28, %v18787_v37  ;;  %v2813_v63 = vpop.f32.mrb[167].mxu1  ;;  %16016 = vmatpush3.bf16.msra.mxu0 %v18817_v56  ;;  %v2879_v50 = vmax.f32 %v2819_v26, 0.0  ;;  %15343 = vmatpush3.bf16.msra.mxu1 %v16337_v18  ;;  %v16356_v26 = vld [vmem:[#allocation8 + $0x98] sm:$0xff]   ;;  %v16358_v28 = vld [vmem:[#allocation8 + $0xe0] sm:$0xff]  }
 0x3a9   : > { %v2814_v33 = vadd.f32 %v2813_v63, %v18781_v36  ;;  %16018 = vmatprep.subr.bf16.mxu0 %v16017_v40  ;;  %v2877_v41 = vmax.f32 %v2811_v34, 0.0  ;;  %v16352_v40 = vld [vmem:[#allocation8 + $0x90] sm:$0xff]   ;;  %v16339_v34 = vld [vmem:[#allocation8 + $0x28] sm:$0xff]   ;;  %15344 = vmatprep.subr.bf16.mxu1 %v16338_v54  ;;  %v16361_v18 = vld [vmem:[#allocation8 + $0x118] sm:$0xff]  }
 0x3aa   : > { %v2880_v62 = vmax.f32 %v2822_v19, 0.0  ;;  %v16360_v19 = vld [vmem:[#allocation8 + $0xa0] sm:$0xff]   ;;  %v16340_v63 = vld [vmem:[#allocation8 + $0x70] sm:$0xff]  }
 0x3ab   : > { %v2878_v8 = vmax.f32 %v2814_v33, 0.0  ;;  %v16341_v33 = vld [vmem:[#allocation8 + $0x30] sm:$0xff]   ;;  %v16363_v54 = vld [vmem:[#allocation8 + $0x160] sm:$0xff]  }
 0x3ac   : > { %v16025_v7 = vpack.c.bf16 %v2880_v62, %v2879_v50  ;;  %16020 = vmatpush3.bf16.msra.mxu0 %v18813_v32  ;;  %15345 = vmatpush3.bf16.msra.mxu1 %v16339_v34  ;;  %v16362_v50 = vld [vmem:[#allocation8 + $0xe8] sm:$0xff]  }
 0x3ad   : > { %v16021_v20 = vpack.c.bf16 %v2878_v8, %v2877_v41  ;;  %v15888_v58 = vpop.f32.mrb[168].mxu1  ;;  %15346 = vmatprep.subr.bf16.mxu1 %v16340_v63  ;;  %v16364_v62 = vld [vmem:[#allocation8 + $0xa8] sm:$0xff]   ;;  %v16342_v41 = vld [vmem:[#allocation8 + $0x78] sm:$0xff]  }
 0x3ae   : > { %v2835_v35 = vadd.f32 %v15888_v58, %v18796_v47  ;;  %v2826_v16 = vpop.f32.mrb[169].mxu1  ;;  %v16344_v8 = vld [vmem:[#allocation8 + $0x38] sm:$0xff]   ;;  %v16347_v58 = vld [vmem:[#allocation8 + $0x140] sm:$0xff]  }
 0x3af   : > { %v2827_v37 = vadd.f32 %v2826_v16, %v18790_v61  ;;  %v15889_v53 = vpop.f32.mrb[170].mxu1  ;;  %16022 = vmatprep.subr.bf16.mxu0 %v16021_v20  ;;  %v16368_v20 = vld [vmem:[#allocation8 + $0xb0] sm:$0xff]   ;;  %v16372_v16 = vld [vmem:[#allocation8 + $0xb8] sm:$0xff]  }
 0x3b0   : > { %v2838_v56 = vadd.f32 %v15889_v53, %v18799_v22  ;;  %v2829_v36 = vpop.f32.mrb[171].mxu1  ;;  %16024 = vmatpush3.bf16.msra.mxu0 %v18825_v1  ;;  %v2883_v5 = vmax.f32 %v2835_v35, 0.0  ;;  %15347 = vmatpush3.bf16.msra.mxu1 %v16341_v33  ;;  %v16370_v35 = vld [vmem:[#allocation8 + $0xf8] sm:$0xff]  }
 0x3b1   : > { %v2830_v55 = vadd.f32 %v2829_v36, %v18793_v21  ;;  %16026 = vmatprep.subr.bf16.mxu0 %v16025_v7  ;;  %v2881_v32 = vmax.f32 %v2827_v37, 0.0  ;;  %15348 = vmatprep.subr.bf16.mxu1 %v16342_v41  ;;  %v16366_v7 = vld [vmem:[#allocation8 + $0xf0] sm:$0xff]   ;;  %v16375_v37 = vld [vmem:[#allocation8 + $0x1c0] sm:$0xff]  }
 0x3b2   : > { %v2884_v44 = vmax.f32 %v2838_v56, 0.0  ;;  %v3027_v36 = vld [vmem:[#allocation3 + $0x1] sm:$0xff] }
 0x3b3   : > { %v2882_v59 = vmax.f32 %v2830_v55, 0.0 }
 0x3b4   : > { %v16033_v4 = vpack.c.bf16 %v2884_v44, %v2883_v5  ;;  %16028 = vmatpush3.bf16.msra.mxu0 %v18823_v9  ;;  %15349 = vmatpush3.bf16.msra.mxu1 %v16344_v8 }
 0x3b5   : > { %v16029_v47 = vpack.c.bf16 %v2882_v59, %v2881_v32  ;;  %v15892_v13 = vpop.f32.mrb[172].mxu1  ;;  %15414 = vmatprep.subr.bf16.mxu1 %v16347_v58  ;;  %v16367_v58 = vld [vmem:[#allocation8 + $0x168] sm:$0xff]  }
 0x3b6   : > { %v2851_v61 = vadd.f32 %v15892_v13, %v18811_v39  ;;  %v2842_v6 = vpop.f32.mrb[173].mxu1 }
 0x3b7   : > { %v2843_v22 = vadd.f32 %v2842_v6, %v18802_v60  ;;  %v15893_v30 = vpop.f32.mrb[174].mxu1  ;;  %16030 = vmatprep.subr.bf16.mxu0 %v16029_v47  ;;  %v2889_v60 = vld [vmem:[%s20328_s10] sm:$0xff] }
 0x3b8   : > { %v2854_v1 = vadd.f32 %v15893_v30, %v18815_v29  ;;  %v2845_v21 = vpop.f32.mrb[175].mxu1  ;;  %16032 = vmatpush3.bf16.msra.mxu0 %v18833_v23  ;;  %v2887_v10 = vmax.f32 %v2851_v61, 0.0  ;;  %v2891_v29 = vld [vmem:[%s20328_s10 + $0x10] sm:$0xff]  ;;  %v2893_v23 = vld [vmem:[%s20328_s10 + $0x20] sm:$0xff] }
 0x3b9   : > { %v2846_v12 = vadd.f32 %v2845_v21, %v18805_v38  ;;  %16034 = vmatprep.subr.bf16.mxu0 %v16033_v4  ;;  %v2885_v9 = vmax.f32 %v2843_v22, 0.0  ;;  %v2892_v38 = vld [vmem:[%s20328_s10 + $0x18] sm:$0xff]  ;;  %v16349_v22 = vld [vmem:[#allocation8 + $0x100] sm:$0xff]  }
 0x3ba   : > { %v2888_v14 = vmax.f32 %v2854_v1, 0.0  ;;  %v18924_v1 = vld [vmem:[#allocation2] sm:$0xff] }
 0x3bb   : > { %v2886_v2 = vmax.f32 %v2846_v12, 0.0  ;;  %v16351_v12 = vld [vmem:[#allocation8 + $0x148] sm:$0xff]  }
 0x3bc   : > { %v16041_v31 = vpack.c.bf16 %v2888_v14, %v2887_v10  ;;  %16036 = vmatpush3.bf16.msra.mxu0 %v18831_v3  ;;  %v2894_v3 = vld [vmem:[%s20328_s10 + $0x28] sm:$0xff] }
 0x3bd   : > { %v16037_v39 = vpack.c.bf16 %v2886_v2, %v2885_v9  ;;  %v18933_v2 = vld [vmem:[#allocation3 + $0x2] sm:$0xff] }
 0x3bf   : > { %16038 = vmatprep.subr.bf16.mxu0 %v16037_v39  ;;  %v16353_v39 = vld [vmem:[#allocation8 + $0x108] sm:$0xff]  }
 0x3c0   : > { %16040 = vmatpush3.bf16.msra.mxu0 %v18841_v42  ;;  %v2898_v42 = vld [vmem:[%s20328_s10 + $0x48] sm:$0xff] }
 0x3c1   : > { %16042 = vmatprep.subr.bf16.mxu0 %v16041_v31 }
 0x3c4   : > { %16044 = vmatpush3.bf16.msra.mxu0 %v18839_v43  ;;  %v2895_v43 = vld [vmem:[%s20328_s10 + $0x30] sm:$0xff] }
 0x3c5   : > { %15374 = vmatprep.subr.bf16.mxu0 %v16343_v52 }
 0x3c7   : > { %2970 = vmatmul.mubr.f32.vlgmr.msra.gmra.mrb[144].mxu0 %v2889_v60 }
 0x3c8   : > { %2974 = vmatprep.mubr.f32.mxu0 %v2892_v38  ;;  %15375 = vmatpush3.bf16.msra.mxu0 %v16345_v48  ;;  %v16380_v48 = vld [vmem:[#allocation8 + $0x188] sm:$0xff]  }
 0x3c9   : > { %15376 = vmatprep.subr.bf16.mxu0 %v16346_v51 }
 0x3cb   : > { %2975 = vmatmul.mubr.f32.gmra.mrb[146].mxu0 %v2891_v29  ;;  %v16355_v29 = vld [vmem:[#allocation8 + $0x150] sm:$0xff]  }
 0x3cc   : > { %2979 = vmatprep.mubr.f32.mxu0 %v2894_v3  ;;  %15377 = vmatpush3.bf16.msra.mxu0 %v16348_v49  ;;  %v16381_v49 = vld [vmem:[#allocation8 + $0x1d0] sm:$0xff]  }
 0x3cd   : > { %15378 = vmatprep.subr.bf16.mxu0 %v16350_v46 }
 0x3cf   : > { %2980 = vmatmul.mubr.f32.gmra.mrb[148].mxu0 %v2893_v23  ;;  %v16377_v23 = vld [vmem:[#allocation8 + $0x180] sm:$0xff]  }
 0x3d0   : > { %2984 = vmatprep.mubr.f32.mxu0 %v2896_v11  ;;  %15379 = vmatpush3.bf16.msra.mxu0 %v16352_v40 }
 0x3d1   : > { %15380 = vmatprep.subr.bf16.mxu0 %v16354_v15 }
 0x3d3   : > { %2985 = vmatmul.mubr.f32.gmra.mrb[150].mxu0 %v2895_v43 }
 0x3d4   : > { %2989 = vmatprep.mubr.f32.mxu0 %v2898_v42  ;;  %15381 = vmatpush3.bf16.msra.mxu0 %v16356_v26 }
 0x3d5   : > { %15382 = vmatprep.subr.bf16.mxu0 %v16358_v28 }
 0x3d7   : > { %2990 = vmatmul.mubr.f32.gmra.mrb[152].mxu0 %v2897_v17  ;;  %v16378_v17 = vld [vmem:[#allocation8 + $0x1c8] sm:$0xff]  }
 0x3d8   : > { %2994 = vmatprep.mubr.f32.mxu0 %v2900_v27  ;;  %15383 = vmatpush3.bf16.msra.mxu0 %v16360_v19  ;;  %v16383_v19 = vld [vmem:[#allocation8 + $0x190] sm:$0xff]  }
 0x3d9   : > { %15384 = vmatprep.subr.bf16.mxu0 %v16362_v50 }
 0x3db   : > { %2995 = vmatmul.mubr.f32.gmra.mrb[154].mxu0 %v2899_v0 }
 0x3dc   : > { %2999 = vmatprep.mubr.f32.mxu0 %v2902_v25  ;;  %15385 = vmatpush3.bf16.msra.mxu0 %v16364_v62  ;;  %v16357_v25 = vld [vmem:[#allocation8 + $0x110] sm:$0xff]   ;;  %v16384_v62 = vld [vmem:[#allocation8 + $0x1d8] sm:$0xff]  }
 0x3dd   : > { %15386 = vmatprep.subr.bf16.mxu0 %v16366_v7  ;;  %v16365_v7 = vld [vmem:[#allocation8 + $0x120] sm:$0xff]  }
 0x3df   : > { %3000 = vmatmul.mubr.f32.gmra.mrb[156].mxu0 %v2901_v57 }
 0x3e0   : > { %3004 = vmatprep.mubr.f32.mxu0 %v2904_v24  ;;  %15387 = vmatpush3.bf16.msra.mxu0 %v16368_v20 }
 0x3e1   : > { %15388 = vmatprep.subr.bf16.mxu0 %v16370_v35 }
 0x3e3   : > { %3005 = vmatmul.mubr.f32.gmra.mrb[158].mxu0 %v2903_v45  ;;  %v16359_v45 = vld [vmem:[#allocation8 + $0x158] sm:$0xff]  }
 0x3e4   : > { %15389 = vmatpush3.bf16.msra.mxu0 %v16372_v16 }
 0x3e5   : > { %15454 = vmatprep.subr.bf16.mxu0 %v16375_v37  ;;  %v16386_v37 = vld [vmem:[#allocation8 + $0x198] sm:$0xff]  }
 0x49a   : > { %v15310_v53 = vpop.f32.mrb[144].mxu0 }
 0x49b   : > { %v15311_v56 = vpop.f32.mrb[145].mxu0 }
 0x49c   : > { %v18912_v55 = vadd.f32 %v15311_v56, %v15310_v53  ;;  %v16387_v56 = vld [vmem:[#allocation8 + $0x1e0] sm:$0xff]  }
 0x49e   : > { %3011 = vst [vmem:[#allocation3 + $0x11] sm:$0xff] %v18912_v55  ;;  %v15313_v5 = vpop.f32.mrb[146].mxu0  ;;  %v3093_v44 = vpack.c.bf16 %v18912_v55, %v3027_v36 }
 0x49f   : > { %v15314_v32 = vpop.f32.mrb[147].mxu0 }
 0x4a0   : > { %v18916_v59 = vadd.f32 %v15314_v32, %v15313_v5  ;;  %3736 = vmatprep.mubr.bf16.mxu1 %v3093_v44  ;;  %v16369_v44 = vld [vmem:[#allocation8 + $0x128] sm:$0xff]  }
 0x4a2   : > { %3012 = vst [vmem:[#allocation3 + $0x21] sm:$0xff] %v18916_v59  ;;  %v15316_v4 = vpop.f32.mrb[148].mxu0  ;;  %v3096_v47 = vpack.c.bf16 %v18916_v59, %v18912_v55  ;;  %v16391_v55 = vld [vmem:[#allocation8 + $0x220] sm:$0xff]  }
 0x4a3   : > { %v15317_v13 = vpop.f32.mrb[149].mxu0 }
 0x4a4   : > { %v18921_v61 = vadd.f32 %v15317_v13, %v15316_v4  ;;  %v16371_v4 = vld [vmem:[#allocation8 + $0x170] sm:$0xff]  }
 0x4a5   : > { %v3020_v6 = vld [vmem:[#allocation3 + $0x10] sm:$0xff] }
 0x4a6   : > { %3013 = vst [vmem:[#allocation3 + $0x31] sm:$0xff] %v18921_v61  ;;  %v15319_v30 = vpop.f32.mrb[150].mxu0  ;;  %v3092_v21 = vpack.c.bf16 %v3020_v6, %v18924_v1  ;;  %v18929_v10 = vpack.c.bf16 %v18921_v61, %v18916_v59  ;;  %v18935_v31 = vld [vmem:[#allocation3 + $0x12] sm:$0xff] }
 0x4a7   : > { %v15320_v14 = vpop.f32.mrb[151].mxu0  ;;  %v3094_v42 = vpack.c.bf16 %v18935_v31, %v18933_v2 }
 0x4a8   : > { %v18931_v9 = vadd.f32 %v15320_v14, %v15319_v30  ;;  %3737 = vmatmul.mubr.bf16.vlgmr.msra.gmra.mrb[176].mxu1 %v3092_v21 }
 0x4a9   : > { %15415 = vmatpush3.bf16.msra.mxu1 %v16349_v22  ;;  %3744 = vmatprep.mubr.bf16.mxu1 %v18929_v10  ;;  %v3021_v60 = vld [vmem:[#allocation3 + $0x20] sm:$0xff]  ;;  %v16389_v22 = vld [vmem:[#allocation8 + $0x1a0] sm:$0xff]  }
 0x4aa   : > { %3014 = vst [vmem:[#allocation3 + $0x41] sm:$0xff] %v18931_v9  ;;  %v15322_v38 = vpop.f32.mrb[152].mxu0  ;;  %15416 = vmatprep.subr.bf16.mxu1 %v16351_v12  ;;  %v3095_v3 = vpack.c.bf16 %v3021_v60, %v3020_v6  ;;  %v3105_v11 = vpack.c.bf16 %v18931_v9, %v18921_v61  ;;  %v3060_v34 = vld [vmem:[#allocation3 + $0x22] sm:$0xff]  ;;  %v16390_v12 = vld [vmem:[#allocation8 + $0x1e8] sm:$0xff]  }
 0x4ab   : > { %v15323_v43 = vpop.f32.mrb[153].mxu0  ;;  %v3083_v61 = vld [vmem:[#allocation3 + $0x91] sm:$0xff] }
 0x4ac   : > { %v18943_v27 = vadd.f32 %v15323_v43, %v15322_v38  ;;  %3801 = vmatprep.mubr.bf16.mxu0 %v3095_v3  ;;  %v16374_v38 = vld [vmem:[#allocation8 + $0x178] sm:$0xff]   ;;  %v3097_v3 = vpack.c.bf16 %v3060_v34, %v18935_v31  ;;  %v16382_v31 = vld [vmem:[#allocation8 + $0x208] sm:$0xff]  }
 0x4ad   : > { %15417 = vmatpush3.bf16.msra.mxu1 %v16353_v39  ;;  %v3022_v0 = vld [vmem:[#allocation3 + $0x30] sm:$0xff]  ;;  %3802 = vmatmul.mubr.bf16.vlgmr.msra.gmra.mrb[160].mxu0 %v3094_v42  ;;  %v16373_v39 = vld [vmem:[#allocation8 + $0x130] sm:$0xff]   ;;  %v16376_v42 = vld [vmem:[#allocation8 + $0x138] sm:$0xff]  }
 0x4ae   : > { %3015 = vst [vmem:[#allocation3 + $0x51] sm:$0xff] %v18943_v27  ;;  %v15325_v57 = vpop.f32.mrb[154].mxu0  ;;  %v18946_v24 = vpack.c.bf16 %v3022_v0, %v3021_v60  ;;  %15418 = vmatprep.subr.bf16.mxu1 %v16355_v29  ;;  %v18950_v52 = vpack.c.bf16 %v18943_v27, %v18931_v9  ;;  %15455 = vmatpush3.bf16.msra.mxu0 %v16377_v23  ;;  %v18955_v40 = vld [vmem:[#allocation3 + $0x32] sm:$0xff]  ;;  %v16393_v23 = vld [vmem:[#allocation8 + $0x1f0] sm:$0xff]  }
 0x4af   : > { %v15326_v51 = vpop.f32.mrb[155].mxu0  ;;  %15456 = vmatprep.subr.bf16.mxu0 %v16378_v17  ;;  %v18962_v50 = vpack.c.bf16 %v18955_v40, %v3060_v34  ;;  %v16392_v29 = vld [vmem:[#allocation8 + $0x1a8] sm:$0xff]   ;;  %v16397_v9 = vld [vmem:[#allocation8 + $0x230] sm:$0xff]   ;;  %v16401_v34 = vld [vmem:[#allocation10] sm:$0xff]  }
 0x4b0   : > { %v18952_v46 = vadd.f32 %v15326_v51, %v15325_v57  ;;  %3745 = vmatmul.mubr.bf16.gmra.mrb[180].mxu1 %v18946_v24  ;;  %v16396_v51 = vld [vmem:[#allocation8 + $0x1f8] sm:$0xff]  }
 0x4b1   : > { %15419 = vmatpush3.bf16.msra.mxu1 %v16357_v25  ;;  %3752 = vmatprep.mubr.bf16.mxu1 %v18950_v52  ;;  %v3023_v15 = vld [vmem:[#allocation3 + $0x40] sm:$0xff] }
 0x4b2   : > { %3016 = vst [vmem:[#allocation3 + $0x61] sm:$0xff] %v18952_v46  ;;  %v15328_v26 = vpop.f32.mrb[156].mxu0  ;;  %15420 = vmatprep.subr.bf16.mxu1 %v16359_v45  ;;  %15457 = vmatpush3.bf16.msra.mxu0 %v16380_v48  ;;  %v3104_v28 = vpack.c.bf16 %v3023_v15, %v3022_v0  ;;  %v3114_v63 = vpack.c.bf16 %v18952_v46, %v18943_v27  ;;  %v3062_v13 = vld [vmem:[#allocation3 + $0x42] sm:$0xff]  ;;  %v16379_v0 = vld [vmem:[#allocation8 + $0x200] sm:$0xff]  }
 0x4b3   : > { %v15329_v33 = vpop.f32.mrb[157].mxu0  ;;  %15458 = vmatprep.subr.bf16.mxu0 %v16381_v49  ;;  %v16395_v45 = vld [vmem:[#allocation8 + $0x1b0] sm:$0xff]   ;;  %v16398_v49 = vld [vmem:[#allocation8 + $0x1b8] sm:$0xff]  }
 0x4b4   : > { %v18964_v41 = vadd.f32 %v15329_v33, %v15328_v26  ;;  %3809 = vmatprep.mubr.bf16.mxu0 %v3104_v28  ;;  %v16388_v26 = vld [vmem:[#allocation8 + $0x218] sm:$0xff]   ;;  %v16402_v28 = vld [vmem:[#allocation10 + $0xc0] sm:$0xff]   ;;  %v16405_v33 = vld [vmem:[#allocation10 + $0x8] sm:$0xff]  }
 0x4b5   : > { %15421 = vmatpush3.bf16.msra.mxu1 %v16361_v18  ;;  %v3024_v8 = vld [vmem:[#allocation3 + $0x50] sm:$0xff]  ;;  %3810 = vmatmul.mubr.bf16.gmra.mrb[164].mxu0 %v18962_v50  ;;  %v3106_v18 = vpack.c.bf16 %v3062_v13, %v18955_v40 }
 0x4b6   : > { %3017 = vst [vmem:[#allocation3 + $0x71] sm:$0xff] %v18964_v41  ;;  %v18968_v20 = vpack.c.bf16 %v3024_v8, %v3023_v15  ;;  %15422 = vmatprep.subr.bf16.mxu1 %v16363_v54  ;;  %v18972_v35 = vpack.c.bf16 %v18964_v41, %v18952_v46  ;;  %v15331_v16 = vpop.f32.mrb[158].mxu0  ;;  %15459 = vmatpush3.bf16.msra.mxu0 %v16383_v19  ;;  %v18977_v5 = vld [vmem:[#allocation3 + $0x52] sm:$0xff]  ;;  %v16385_v15 = vld [vmem:[#allocation8 + $0x210] sm:$0xff]  }
 0x4b7   : > { %v15332_v53 = vpop.f32.mrb[159].mxu0  ;;  %15460 = vmatprep.subr.bf16.mxu0 %v16384_v62  ;;  %v18984_v21 = vpack.c.bf16 %v18977_v5, %v3062_v13  ;;  %v16400_v54 = vld [vmem:[#allocation10 + $0x40] sm:$0xff]   ;;  %v16407_v62 = vld [vmem:[#allocation10 + $0x88] sm:$0xff]  }
 0x4b8   : > { %3753 = vmatmul.mubr.bf16.gmra.mrb[184].mxu1 %v18968_v20  ;;  %v18975_v36 = vadd.f32 %v15332_v53, %v15331_v16  ;;  %v16403_v19 = vld [vmem:[#allocation10 + $0x80] sm:$0xff]   ;;  %v16414_v16 = vld [vmem:[#allocation10 + $0xd8] sm:$0xff]   ;;  %v16423_v13 = vld [vmem:[#allocation10 + $0xa8] sm:$0xff]  }
 0x4b9   : > { %15423 = vmatpush3.bf16.msra.mxu1 %v16365_v7  ;;  %3760 = vmatprep.mubr.bf16.mxu1 %v18972_v35  ;;  %v3025_v32 = vld [vmem:[#allocation3 + $0x60] sm:$0xff]  ;;  %v16416_v53 = vld [vmem:[#allocation10 + $0x60] sm:$0xff]  }
 0x4ba   : > { %15424 = vmatprep.subr.bf16.mxu1 %v16367_v58  ;;  %3018 = vst [vmem:[#allocation3 + $0x81] sm:$0xff] %v18975_v36  ;;  %15461 = vmatpush3.bf16.msra.mxu0 %v16386_v37  ;;  %v3113_v6 = vpack.c.bf16 %v3025_v32, %v3024_v8  ;;  %v3123_v30 = vpack.c.bf16 %v18975_v36, %v18964_v41  ;;  %v3064_v25 = vld [vmem:[#allocation3 + $0x62] sm:$0xff] }
 0x4bb   : > { %15462 = vmatprep.subr.bf16.mxu0 %v16387_v56  ;;  %v3115_v40 = vpack.c.bf16 %v3064_v25, %v18977_v5  ;;  %v16408_v41 = vld [vmem:[#allocation10 + $0x50] sm:$0xff]   ;;  %v16412_v58 = vld [vmem:[#allocation10 + $0x58] sm:$0xff]   ;;  %v16417_v56 = vld [vmem:[#allocation10 + $0x20] sm:$0xff]  }
 0x4bc   : > { %3817 = vmatprep.mubr.bf16.mxu0 %v3113_v6  ;;  %v16409_v8 = vld [vmem:[#allocation10 + $0x10] sm:$0xff]   ;;  %v16415_v37 = vld [vmem:[#allocation10 + $0x98] sm:$0xff]   ;;  %v16419_v5 = vld [vmem:[#allocation10 + $0xa0] sm:$0xff]  }
 0x4bd   : > { %15425 = vmatpush3.bf16.msra.mxu1 %v16369_v44  ;;  %v3026_v14 = vld [vmem:[#allocation3 + $0x70] sm:$0xff]  ;;  %3818 = vmatmul.mubr.bf16.gmra.mrb[168].mxu0 %v18984_v21  ;;  %v16410_v7 = vld [vmem:[#allocation10 + $0xd0] sm:$0xff]   ;;  %v16420_v44 = vld [vmem:[#allocation10 + $0x68] sm:$0xff]  }
 0x4be   : > { %v18987_v60 = vpack.c.bf16 %v3026_v14, %v3025_v32  ;;  %15426 = vmatprep.subr.bf16.mxu1 %v16371_v4  ;;  %15463 = vmatpush3.bf16.msra.mxu0 %v16389_v22  ;;  %v3042_v43 = vld [vmem:[#allocation3 + $0x72] sm:$0xff]  ;;  %v16424_v6 = vld [vmem:[#allocation10 + $0x70] sm:$0xff]  }
 0x4bf   : > { %15464 = vmatprep.subr.bf16.mxu0 %v16390_v12  ;;  %v3121_v48 = vpack.c.bf16 %v3042_v43, %v3064_v25  ;;  %v16421_v32 = vld [vmem:[#allocation10 + $0x28] sm:$0xff]   ;;  %v16425_v22 = vld [vmem:[#allocation10 + $0x30] sm:$0xff]  }
 0x4c0   : > { %3761 = vmatmul.mubr.bf16.gmra.mrb[188].mxu1 %v18987_v60  ;;  %v16422_v4 = vld [vmem:[#allocation10 + $0xe8] sm:$0xff]   ;;  %v16427_v12 = vld [vmem:[#allocation10 + $0xb0] sm:$0xff]  }
 0x4c1   : > { %15427 = vmatpush3.bf16.msra.mxu1 %v16373_v39  ;;  %3866 = vmatprep.mubr.bf16.mxu1 %v3097_v3  ;;  %v3050_v17 = vld [vmem:[#allocation3 + $0x80] sm:$0xff]  ;;  %v16430_v39 = vld [vmem:[#allocation10 + $0xf8] sm:$0xff]  }
 0x4c2   : > { %15428 = vmatprep.subr.bf16.mxu1 %v16374_v38  ;;  %15465 = vmatpush3.bf16.msra.mxu0 %v16392_v29  ;;  %v3122_v57 = vpack.c.bf16 %v3050_v17, %v3026_v14  ;;  %v3066_v59 = vld [vmem:[#allocation3 + $0x82] sm:$0xff]  ;;  %v3125_v27 = vpack.c.bf16 %v18924_v1, %v3050_v17  ;;  %v16434_v29 = vld [vmem:[#allocation10 + $0x1c0] sm:$0xff]  }
 0x4c3   : > { %15466 = vmatprep.subr.bf16.mxu0 %v16393_v23  ;;  %v16429_v14 = vld [vmem:[#allocation10 + $0x38] sm:$0xff]  }
 0x4c4   : > { %3825 = vmatprep.mubr.bf16.mxu0 %v3122_v57  ;;  %v16431_v38 = vld [vmem:[#allocation10 + $0xb8] sm:$0xff]  }
 0x4c5   : > { %15429 = vmatpush3.bf16.msra.mxu1 %v16376_v42  ;;  %3826 = vmatmul.mubr.bf16.gmra.mrb[172].mxu0 %v3121_v48 }
 0x4c6   : > { %15894 = vmatprep.subr.bf16.mxu1 %v16379_v0  ;;  %15467 = vmatpush3.bf16.msra.mxu0 %v16395_v45 }
 0x4c7   : > { %15468 = vmatprep.subr.bf16.mxu0 %v16396_v51  ;;  %3931 = vmatprep.mubr.bf16.mxu0 %v18929_v10  ;;  %v3124_v10 = vpack.c.bf16 %v3066_v59, %v3042_v43 }
 0x4c8   : > { %3867 = vmatmul.mubr.bf16.vlgmr.msra.gmra.mrb[192].mxu1 %v3096_v47  ;;  %v16394_v47 = vld [vmem:[#allocation8 + $0x228] sm:$0xff]  }
 0x4c9   : > { %15895 = vmatpush3.bf16.msra.mxu1 %v16379_v0  ;;  %3874 = vmatprep.mubr.bf16.mxu1 %v3106_v18 }
 0x4ca   : > { %15896 = vmatprep.subr.bf16.mxu1 %v16382_v31  ;;  %15469 = vmatpush3.bf16.msra.mxu0 %v16398_v49 }
 0x4cb   : > { %15506 = vmatprep.subr.bf16.mxu0 %v16400_v54 }
 0x4cd   : > { %15897 = vmatpush3.bf16.msra.mxu1 %v16382_v31  ;;  %3932 = vmatmul.mubr.bf16.vlgmr.msra.gmra.mrb[176].mxu0 %v18946_v24  ;;  %v16399_v24 = vld [vmem:[#allocation8 + $0x238] sm:$0xff]  }
 0x4ce   : > { %15898 = vmatprep.subr.bf16.mxu1 %v16385_v15  ;;  %3939 = vmatprep.mubr.bf16.mxu0 %v18950_v52  ;;  %v3091_v52 = vld [vmem:[#allocation3 + $0x92] sm:$0xff] }
 0x4cf   : > { %v3127_v46 = vpack.c.bf16 %v3091_v52, %v3066_v59  ;;  %15507 = vmatpush3.bf16.msra.mxu0 %v16401_v34 }
 0x4d0   : > { %3875 = vmatmul.mubr.bf16.gmra.mrb[196].mxu1 %v3105_v11  ;;  %v3126_v11 = vpack.c.bf16 %v3083_v61, %v18975_v36  ;;  %v16418_v36 = vld [vmem:[#allocation10 + $0xe0] sm:$0xff]  }
 0x4d1   : > { %15899 = vmatpush3.bf16.msra.mxu1 %v16385_v15  ;;  %3882 = vmatprep.mubr.bf16.mxu1 %v3115_v40 }
 0x4d2   : > { %15900 = vmatprep.subr.bf16.mxu1 %v16388_v26 }
 0x4d5   : > { %15901 = vmatpush3.bf16.msra.mxu1 %v16388_v26  ;;  %3940 = vmatmul.mubr.bf16.gmra.mrb[180].mxu0 %v18968_v20  ;;  %v16411_v20 = vld [vmem:[#allocation10 + $0x90] sm:$0xff]  }
 0x4d6   : > { %15902 = vmatprep.subr.bf16.mxu1 %v16391_v55  ;;  %3947 = vmatprep.mubr.bf16.mxu0 %v18972_v35  ;;  %v16413_v35 = vld [vmem:[#allocation10 + $0x18] sm:$0xff]  }
 0x4d8   : > { %3883 = vmatmul.mubr.bf16.gmra.mrb[200].mxu1 %v3114_v63  ;;  %v16404_v63 = vld [vmem:[#allocation10 + $0x48] sm:$0xff]  }
 0x4d9   : > { %15903 = vmatpush3.bf16.msra.mxu1 %v16391_v55  ;;  %3890 = vmatprep.mubr.bf16.mxu1 %v3124_v10 }
 0x4da   : > { %15904 = vmatprep.subr.bf16.mxu1 %v16394_v47  ;;  %15508 = vmatprep.subr.bf16.mxu0 %v16404_v63 }
 0x4db   : > { %15509 = vmatpush3.bf16.msra.mxu0 %v16405_v33 }
 0x4dc   : > { %15510 = vmatprep.subr.bf16.mxu0 %v16408_v41 }
 0x4dd   : > { %15905 = vmatpush3.bf16.msra.mxu1 %v16394_v47  ;;  %3948 = vmatmul.mubr.bf16.gmra.mrb[184].mxu0 %v18987_v60  ;;  %v16432_v60 = vld [vmem:[#allocation10 + $0x140] sm:$0xff]  }
 0x4de   : > { %15906 = vmatprep.subr.bf16.mxu1 %v16397_v9  ;;  %3955 = vmatprep.mubr.bf16.mxu0 %v3126_v11 }
 0x4df   : > { %15511 = vmatpush3.bf16.msra.mxu0 %v16409_v8 }
 0x4e0   : > { %3891 = vmatmul.mubr.bf16.gmra.mrb[204].mxu1 %v3123_v30  ;;  %15512 = vmatprep.subr.bf16.mxu0 %v16412_v58  ;;  %v16426_v30 = vld [vmem:[#allocation10 + $0xf0] sm:$0xff]  }
 0x4e1   : > { %15907 = vmatpush3.bf16.msra.mxu1 %v16397_v9  ;;  %15910 = vmatprep.mubr.bf16.mxu1 %v18962_v50  ;;  %v16406_v50 = vld [vmem:[#allocation10 + $0xc8] sm:$0xff]  }
 0x4e2   : > { %15908 = vmatprep.subr.bf16.mxu1 %v16399_v24 }
 0x4e3   : > { %15513 = vmatpush3.bf16.msra.mxu0 %v16413_v35 }
 0x4e4   : > { %15514 = vmatprep.subr.bf16.mxu0 %v16416_v53 }
 0x4e5   : > { %15909 = vmatpush3.bf16.msra.mxu1 %v16399_v24  ;;  %3956 = vmatmul.mubr.bf16.gmra.mrb[188].mxu0 %v3125_v27 }
 0x4e6   : > { %15546 = vmatprep.subr.bf16.mxu1 %v16402_v28 }
 0x4e7   : > { %15515 = vmatpush3.bf16.msra.mxu0 %v16417_v56 }
 0x4e8   : > { %15911 = vmatmul.mubr.bf16.vlgmr.msra.gmra.mrb[208].mxu1 %v18984_v21  ;;  %15516 = vmatprep.subr.bf16.mxu0 %v16420_v44  ;;  %v16428_v21 = vld [vmem:[#allocation10 + $0x78] sm:$0xff]  }
 0x4e9   : > { %15914 = vmatprep.mubr.bf16.mxu1 %v3121_v48  ;;  %15547 = vmatpush3.bf16.msra.mxu1 %v16403_v19 }
 0x4ea   : > { %15548 = vmatprep.subr.bf16.mxu1 %v16406_v50 }
 0x4eb   : > { %15517 = vmatpush3.bf16.msra.mxu0 %v16421_v32 }
 0x4ec   : > { %15518 = vmatprep.subr.bf16.mxu0 %v16424_v6 }
 0x4ed   : > { %15549 = vmatpush3.bf16.msra.mxu1 %v16407_v62 }
 0x4ee   : > { %15550 = vmatprep.subr.bf16.mxu1 %v16410_v7 }
 0x4ef   : > { %15519 = vmatpush3.bf16.msra.mxu0 %v16425_v22 }
 0x4f0   : > { %15915 = vmatmul.mubr.bf16.gmra.mrb[212].mxu1 %v3127_v46  ;;  %15520 = vmatprep.subr.bf16.mxu0 %v16428_v21 }
 0x4f1   : > { %15551 = vmatpush3.bf16.msra.mxu1 %v16411_v20 }
 0x4f2   : > { %15552 = vmatprep.subr.bf16.mxu1 %v16414_v16 }
 0x4f3   : > { %15521 = vmatpush3.bf16.msra.mxu0 %v16429_v14 }
 0x4f4   : > { %15586 = vmatprep.subr.bf16.mxu0 %v16432_v60 }
 0x4f5   : > { %15553 = vmatpush3.bf16.msra.mxu1 %v16415_v37 }
 0x4f6   : > { %15554 = vmatprep.subr.bf16.mxu1 %v16418_v36 }
 0x4f9   : > { %15555 = vmatpush3.bf16.msra.mxu1 %v16419_v5 }
 0x4fa   : > { %15556 = vmatprep.subr.bf16.mxu1 %v16422_v4 }
 0x4fd   : > { %15557 = vmatpush3.bf16.msra.mxu1 %v16423_v13 }
 0x4fe   : > { %15558 = vmatprep.subr.bf16.mxu1 %v16426_v30 }
 0x501   : > { %15559 = vmatpush3.bf16.msra.mxu1 %v16427_v12 }
 0x502   : > { %15560 = vmatprep.subr.bf16.mxu1 %v16430_v39 }
 0x505   : > { %15561 = vmatpush3.bf16.msra.mxu1 %v16431_v38 }
 0x506   : > { %15626 = vmatprep.subr.bf16.mxu1 %v16434_v29 }
 0x57b   : > { %v15350_v3 = vpop.f32.mrb[176].mxu1 }
 0x57c   : > { %v15351_v23 = vpop.f32.mrb[177].mxu1 }
 0x57d   : > { %v15352_v43 = vadd.f32 %v15351_v23, %v15350_v3  ;;  %v15353_v42 = vpop.f32.mrb[178].mxu1 }
 0x57e   : > { %v15354_v17 = vpop.f32.mrb[179].mxu1 }
 0x57f   : > { %v15355_v0 = vadd.f32 %v15354_v17, %v15353_v42 }
 0x580   : > { %v15390_v25 = vpop.f32.mrb[160].mxu0 }
 0x581   : > { %v15391_v57 = vpop.f32.mrb[161].mxu0 }
 0x582   : > { %v15392_v45 = vadd.f32 %v15391_v57, %v15390_v25  ;;  %v15393_v48 = vpop.f32.mrb[162].mxu0 }
 0x583   : > { %v15356_v51 = vpop.f32.mrb[180].mxu1  ;;  %v15394_v31 = vpop.f32.mrb[163].mxu0 }
 0x584   : > { %v15357_v49 = vpop.f32.mrb[181].mxu1  ;;  %v3804_v18 = vadd.f32 %v15392_v45, %v15352_v43  ;;  %v15395_v15 = vadd.f32 %v15394_v31, %v15393_v48 }
 0x585   : > { %v15358_v26 = vadd.f32 %v15357_v49, %v15356_v51  ;;  %v15359_v40 = vpop.f32.mrb[182].mxu1 }
 0x586   : > { %v15360_v55 = vpop.f32.mrb[183].mxu1  ;;  %v3807_v59 = vadd.f32 %v15395_v15, %v15355_v0 }
 0x587   : > { %v15361_v47 = vadd.f32 %v15360_v55, %v15359_v40 }
 0x588   : > { %v15396_v10 = vpop.f32.mrb[164].mxu0 }
 0x589   : > { %v15397_v61 = vpop.f32.mrb[165].mxu0 }
 0x58a   : > { %v15398_v9 = vadd.f32 %v15397_v61, %v15396_v10  ;;  %v15399_v11 = vpop.f32.mrb[166].mxu0 }
 0x58b   : > { %v15362_v24 = vpop.f32.mrb[184].mxu1  ;;  %v15400_v27 = vpop.f32.mrb[167].mxu0 }
 0x58c   : > { %v15363_v52 = vpop.f32.mrb[185].mxu1  ;;  %v3812_v46 = vadd.f32 %v15398_v9, %v15358_v26  ;;  %v15401_v54 = vadd.f32 %v15400_v27, %v15399_v11 }
 0x58d   : > { %v15364_v34 = vadd.f32 %v15363_v52, %v15362_v24  ;;  %v15365_v28 = vpop.f32.mrb[186].mxu1 }
 0x58e   : > { %v15366_v19 = vpop.f32.mrb[187].mxu1  ;;  %v3815_v63 = vadd.f32 %v15401_v54, %v15361_v47 }
 0x58f   : > { %v15367_v33 = vadd.f32 %v15366_v19, %v15365_v28 }
 0x590   : > { %v15402_v50 = vpop.f32.mrb[168].mxu0 }
 0x591   : > { %v15403_v62 = vpop.f32.mrb[169].mxu0 }
 0x592   : > { %v15404_v41 = vadd.f32 %v15403_v62, %v15402_v50  ;;  %v15405_v8 = vpop.f32.mrb[170].mxu0 }
 0x593   : > { %v15368_v7 = vpop.f32.mrb[188].mxu1  ;;  %v15406_v20 = vpop.f32.mrb[171].mxu0 }
 0x594   : > { %v15369_v58 = vpop.f32.mrb[189].mxu1  ;;  %v3820_v35 = vadd.f32 %v15404_v41, %v15364_v34  ;;  %v15407_v16 = vadd.f32 %v15406_v20, %v15405_v8 }
 0x595   : > { %v15370_v37 = vadd.f32 %v15369_v58, %v15368_v7  ;;  %v15371_v53 = vpop.f32.mrb[190].mxu1 }
 0x596   : > { %v15372_v56 = vpop.f32.mrb[191].mxu1  ;;  %v3823_v36 = vadd.f32 %v15407_v16, %v15367_v33 }
 0x597   : > { %v15373_v5 = vadd.f32 %v15372_v56, %v15371_v53 }
 0x598   : > { %v15408_v44 = vpop.f32.mrb[172].mxu0 }
 0x599   : > { %v15409_v32 = vpop.f32.mrb[173].mxu0 }
 0x59a   : > { %v15410_v4 = vadd.f32 %v15409_v32, %v15408_v44  ;;  %v15411_v13 = vpop.f32.mrb[174].mxu0 }
 0x59b   : > { %v15430_v6 = vpop.f32.mrb[192].mxu1  ;;  %v15412_v22 = vpop.f32.mrb[175].mxu0 }
 0x59c   : > { %v15431_v30 = vpop.f32.mrb[193].mxu1  ;;  %v3828_v21 = vadd.f32 %v15410_v4, %v15370_v37  ;;  %v15413_v12 = vadd.f32 %v15412_v22, %v15411_v13 }
 0x59d   : > { %v15432_v14 = vadd.f32 %v15431_v30, %v15430_v6  ;;  %v15433_v39 = vpop.f32.mrb[194].mxu1 }
 0x59e   : > { %v15434_v60 = vpop.f32.mrb[195].mxu1  ;;  %v3831_v38 = vadd.f32 %v15413_v12, %v15373_v5 }
 0x59f   : > { %v3869_v29 = vadd.f32 %v15432_v14, %v3804_v18  ;;  %v15435_v3 = vadd.f32 %v15434_v60, %v15433_v39 }
 0x5a0   : > { %v15470_v23 = vpop.f32.mrb[176].mxu0 }
 0x5a1   : > { %v3872_v43 = vadd.f32 %v15435_v3, %v3807_v59  ;;  %v15471_v42 = vpop.f32.mrb[177].mxu0 }
 0x5a2   : > { %v15472_v17 = vadd.f32 %v15471_v42, %v15470_v23  ;;  %v15473_v0 = vpop.f32.mrb[178].mxu0 }
 0x5a3   : > { %v15436_v25 = vpop.f32.mrb[196].mxu1  ;;  %v15474_v57 = vpop.f32.mrb[179].mxu0 }
 0x5a4   : > { %v15437_v45 = vpop.f32.mrb[197].mxu1  ;;  %v15475_v48 = vadd.f32 %v15474_v57, %v15473_v0  ;;  %v3934_v51 = vadd.f32 %v15472_v17, %v3869_v29  ;;  %v4053_v0 = vld [vmem:[#allocation3 + $0x1] sm:$0xff] }
 0x5a5   : > { %v15438_v31 = vadd.f32 %v15437_v45, %v15436_v25  ;;  %v15439_v49 = vpop.f32.mrb[198].mxu1 }
 0x5a6   : > { %v15440_v15 = vpop.f32.mrb[199].mxu1  ;;  %v3937_v26 = vadd.f32 %v15475_v48, %v3872_v43 }
 0x5a7   : > { %v3877_v40 = vadd.f32 %v15438_v31, %v3812_v46  ;;  %v15441_v55 = vadd.f32 %v15440_v15, %v15439_v49 }
 0x5a8   : > { %v15476_v47 = vpop.f32.mrb[180].mxu0 }
 0x5a9   : > { %v3880_v10 = vadd.f32 %v15441_v55, %v3815_v63  ;;  %v15477_v18 = vpop.f32.mrb[181].mxu0 }
 0x5aa   : > { %v15478_v61 = vadd.f32 %v15477_v18, %v15476_v47  ;;  %v15479_v9 = vpop.f32.mrb[182].mxu0 }
 0x5ab   : > { %v15442_v59 = vpop.f32.mrb[200].mxu1  ;;  %v15480_v11 = vpop.f32.mrb[183].mxu0 }
 0x5ac   : > { %v15443_v24 = vpop.f32.mrb[201].mxu1  ;;  %v3942_v27 = vadd.f32 %v15478_v61, %v3877_v40  ;;  %v15481_v52 = vadd.f32 %v15480_v11, %v15479_v9 }
 0x5ad   : > { %v15444_v54 = vadd.f32 %v15443_v24, %v15442_v59  ;;  %v15445_v34 = vpop.f32.mrb[202].mxu1  ;;  %v16433_v24 = vld [vmem:[#allocation10 + $0x100] sm:$0xff]  }
 0x5ae   : > { %v15446_v28 = vpop.f32.mrb[203].mxu1  ;;  %v3945_v19 = vadd.f32 %v15481_v52, %v3880_v10 }
 0x5af   : > { %v3885_v33 = vadd.f32 %v15444_v54, %v3820_v35  ;;  %v15447_v50 = vadd.f32 %v15446_v28, %v15445_v34  ;;  %v16436_v28 = vld [vmem:[#allocation10 + $0x148] sm:$0xff]  }
 0x5b0   : > { %v15482_v62 = vpop.f32.mrb[184].mxu0 }
 0x5b1   : > { %v3888_v41 = vadd.f32 %v15447_v50, %v3823_v36  ;;  %v15483_v46 = vpop.f32.mrb[185].mxu0 }
 0x5b2   : > { %v15484_v8 = vadd.f32 %v15483_v46, %v15482_v62  ;;  %v15485_v7 = vpop.f32.mrb[186].mxu0 }
 0x5b3   : > { %v15448_v63 = vpop.f32.mrb[204].mxu1  ;;  %v15486_v20 = vpop.f32.mrb[187].mxu0 }
 0x5b4   : > { %v15449_v58 = vpop.f32.mrb[205].mxu1  ;;  %v15487_v16 = vadd.f32 %v15486_v20, %v15485_v7  ;;  %v3950_v37 = vadd.f32 %v15484_v8, %v3885_v33  ;;  %v16437_v7 = vld [vmem:[#allocation10 + $0x108] sm:$0xff]  }
 0x5b5   : > { %v15450_v53 = vadd.f32 %v15449_v58, %v15448_v63  ;;  %v15451_v56 = vpop.f32.mrb[206].mxu1  ;;  %v16438_v63 = vld [vmem:[#allocation10 + $0x1c8] sm:$0xff]  }
 0x5b6   : > { %v15452_v5 = vpop.f32.mrb[207].mxu1  ;;  %v3953_v44 = vadd.f32 %v15487_v16, %v3888_v41  ;;  %v16440_v16 = vld [vmem:[#allocation10 + $0x150] sm:$0xff]  }
 0x5b7   : > { %v3893_v32 = vadd.f32 %v15450_v53, %v3828_v21  ;;  %v15453_v4 = vadd.f32 %v15452_v5, %v15451_v56  ;;  %v16439_v53 = vld [vmem:[#allocation10 + $0x188] sm:$0xff]   ;;  %v16441_v56 = vld [vmem:[#allocation10 + $0x110] sm:$0xff]  }
 0x5b8   : > { %v15488_v13 = vpop.f32.mrb[188].mxu0 }
 0x5b9   : > { %v3896_v6 = vadd.f32 %v15453_v4, %v3831_v38  ;;  %v15489_v35 = vpop.f32.mrb[189].mxu0 }
 0x5ba   : > { %v15490_v22 = vadd.f32 %v15489_v35, %v15488_v13  ;;  %v15491_v30 = vpop.f32.mrb[190].mxu0 }
 0x5bb   : > { %v15912_v36 = vpop.f32.mrb[208].mxu1  ;;  %v15492_v12 = vpop.f32.mrb[191].mxu0 }
 0x5bc   : > { %v3998_v14 = vpop.f32.mrb[209].mxu1  ;;  %v4007_v39 = vadd.f32 %v15912_v36, %v3942_v27  ;;  %v3958_v60 = vadd.f32 %v15490_v22, %v3893_v32  ;;  %v15493_v29 = vadd.f32 %v15492_v12, %v15491_v30  ;;  %v16444_v32 = vld [vmem:[#allocation10 + $0x158] sm:$0xff]   ;;  %v16448_v12 = vld [vmem:[#allocation10 + $0x160] sm:$0xff]  }
 0x5bd   : > { %v3999_v3 = vadd.f32 %v3998_v14, %v3934_v51  ;;  %v15913_v23 = vpop.f32.mrb[210].mxu1  ;;  %v16445_v22 = vld [vmem:[#allocation10 + $0x118] sm:$0xff]  }
 0x5be   : > { %v4001_v43 = vpop.f32.mrb[211].mxu1  ;;  %v19015_v42 = vmax.f32 %v4007_v39, 0.0  ;;  %v4010_v17 = vadd.f32 %v15913_v23, %v3945_v19  ;;  %v3961_v21 = vadd.f32 %v15493_v29, %v3896_v6  ;;  %v16443_v6 = vld [vmem:[#allocation10 + $0x190] sm:$0xff]   ;;  %v16446_v30 = vld [vmem:[#allocation10 + $0x1d8] sm:$0xff]   ;;  %v16450_v29 = vld [vmem:[#allocation10 + $0x1e0] sm:$0xff]  }
 0x5bf   : > { %v19017_v25 = vmax.f32 %v3999_v3, 0.0  ;;  %v4002_v38 = vadd.f32 %v4001_v43, %v3937_v26  ;;  %v16447_v39 = vld [vmem:[#allocation10 + $0x198] sm:$0xff]   ;;  %v16452_v43 = vld [vmem:[#allocation10 + $0x168] sm:$0xff]  }
 0x5c0   : > { %4039 = vst [vmem:[#allocation3 + $0x31] sm:$0xff] %v19015_v42  ;;  %v19020_v57 = vmax.f32 %v4010_v17, 0.0 }
 0x5c1   : > { %4037 = vst [vmem:[#allocation3 + $0x11] sm:$0xff] %v19017_v25  ;;  %v19023_v45 = vmax.f32 %v4002_v38, 0.0  ;;  %v4118_v48 = vpack.c.bf16 %v19017_v25, %v4053_v0 }
 0x5c2   : > { %4040 = vst [vmem:[#allocation3 + $0x41] sm:$0xff] %v19020_v57  ;;  %v4130_v51 = vpack.c.bf16 %v19020_v57, %v19015_v42 }
 0x5c3   : > { %4038 = vst [vmem:[#allocation3 + $0x21] sm:$0xff] %v19023_v45  ;;  %v15916_v31 = vpop.f32.mrb[212].mxu1  ;;  %4761 = vmatprep.mubr.bf16.mxu0 %v4118_v48  ;;  %v19032_v49 = vpack.c.bf16 %v19015_v42, %v19023_v45  ;;  %v4121_v15 = vpack.c.bf16 %v19023_v45, %v19017_v25  ;;  %v16453_v48 = vld [vmem:[#allocation10 + $0x128] sm:$0xff]   ;;  %v16468_v25 = vld [vmem:[#allocation10 + $0x220] sm:$0xff]  }
 0x5c4   : > { %v4014_v26 = vpop.f32.mrb[213].mxu1  ;;  %v4023_v40 = vadd.f32 %v15916_v31, %v3958_v60  ;;  %v16449_v60 = vld [vmem:[#allocation10 + $0x120] sm:$0xff]   ;;  %v16454_v31 = vld [vmem:[#allocation10 + $0x1e8] sm:$0xff]  }
 0x5c5   : > { %v4015_v55 = vadd.f32 %v4014_v26, %v3950_v37  ;;  %v15917_v47 = vpop.f32.mrb[214].mxu1 }
 0x5c6   : > { %v4017_v10 = vpop.f32.mrb[215].mxu1  ;;  %v19036_v18 = vmax.f32 %v4023_v40, 0.0  ;;  %v4026_v61 = vadd.f32 %v15917_v47, %v3961_v21  ;;  %v16451_v21 = vld [vmem:[#allocation10 + $0x1a0] sm:$0xff]   ;;  %v16456_v40 = vld [vmem:[#allocation10 + $0x170] sm:$0xff]   ;;  %v16455_v47 = vld [vmem:[#allocation10 + $0x1a8] sm:$0xff]  }
 0x5c7   : > { %v19038_v9 = vmax.f32 %v4015_v55, 0.0  ;;  %v4018_v59 = vadd.f32 %v4017_v10, %v3953_v44  ;;  %v4048_v20 = vld [vmem:[#allocation3 + $0x30] sm:$0xff]  ;;  %v16457_v10 = vld [vmem:[#allocation10 + $0x130] sm:$0xff]  }
 0x5c8   : > { %v4046_v11 = vld [vmem:[#allocation3 + $0x10] sm:$0xff]  ;;  %4043 = vst [vmem:[#allocation3 + $0x71] sm:$0xff] %v19036_v18  ;;  %v19041_v27 = vmax.f32 %v4026_v61, 0.0  ;;  %v16458_v61 = vld [vmem:[#allocation10 + $0x1f0] sm:$0xff]  }
 0x5c9   : > { %4041 = vst [vmem:[#allocation3 + $0x51] sm:$0xff] %v19038_v9  ;;  %v4117_v52 = vpack.c.bf16 %v4046_v11, %v18924_v1  ;;  %v19045_v54 = vmax.f32 %v4018_v59, 0.0  ;;  %v19047_v34 = vld [vmem:[#allocation3 + $0x12] sm:$0xff]  ;;  %v19051_v19 = vpack.c.bf16 %v19038_v9, %v19020_v57  ;;  %v4072_v50 = vld [vmem:[#allocation3 + $0x40] sm:$0xff] }
 0x5ca   : > { %v4070_v33 = vld [vmem:[#allocation3 + $0x20] sm:$0xff]  ;;  %4044 = vst [vmem:[#allocation3 + $0x81] sm:$0xff] %v19041_v27  ;;  %v4148_v62 = vpack.c.bf16 %v19041_v27, %v19036_v18  ;;  %v16435_v1 = vld [vmem:[#allocation10 + $0x180] sm:$0xff]   ;;  %v4119_v8 = vpack.c.bf16 %v19047_v34, %v18933_v2  ;;  %v4129_v37 = vpack.c.bf16 %v4072_v50, %v4048_v20 }
 0x5cb   : > { %4762 = vmatmul.mubr.bf16.vlgmr.msra.gmra.mrb[192].mxu0 %v4117_v52  ;;  %v4120_v41 = vpack.c.bf16 %v4070_v33, %v4046_v11  ;;  %4042 = vst [vmem:[#allocation3 + $0x61] sm:$0xff] %v19045_v54  ;;  %v19059_v46 = vpack.c.bf16 %v19036_v18, %v19045_v54  ;;  %v4139_v58 = vpack.c.bf16 %v19045_v54, %v19038_v9  ;;  %v16442_v2 = vld [vmem:[#allocation10 + $0x1d0] sm:$0xff]   ;;  %v19071_v13 = vld [vmem:[#allocation3 + $0x32] sm:$0xff] }
 0x5cc   : > { %15587 = vmatpush3.bf16.msra.mxu0 %v16433_v24  ;;  %4769 = vmatprep.mubr.bf16.mxu0 %v19032_v49  ;;  %v19066_v5 = vpack.c.bf16 %v4048_v20, %v4070_v33  ;;  %v19068_v44 = vld [vmem:[#allocation3 + $0x22] sm:$0xff]  ;;  %v17757_v9 = vld [vmem:[#allocation2] sm:$0xff] }
 0x5cd   : > { %4826 = vmatprep.mubr.bf16.mxu1 %v4120_v41  ;;  %15588 = vmatprep.subr.bf16.mxu0 %v16436_v28  ;;  %v19075_v35 = vpack.c.bf16 %v19071_v13, %v19068_v44  ;;  %v4065_v0 = vld [vmem:[#allocation3 + $0x42] sm:$0xff]  ;;  %v4122_v33 = vpack.c.bf16 %v19068_v44, %v19047_v34  ;;  %v5062_v18 = vld [vmem:[%s20329_s11] sm:$0xff] }
 0x5ce   : > { %4827 = vmatmul.mubr.bf16.vlgmr.msra.gmra.mrb[216].mxu1 %v4119_v8  ;;  %v16460_v24 = vld [vmem:[#allocation10 + $0x178] sm:$0xff]   ;;  %v16459_v28 = vld [vmem:[#allocation10 + $0x1b0] sm:$0xff]   ;;  %v16464_v8 = vld [vmem:[#allocation10 + $0x200] sm:$0xff]   ;;  %v4131_v20 = vpack.c.bf16 %v4065_v0, %v19071_v13 }
 0x5cf   : > { %15627 = vmatpush3.bf16.msra.mxu1 %v16435_v1  ;;  %4834 = vmatprep.mubr.bf16.mxu1 %v4129_v37  ;;  %v4052_v26 = vld [vmem:[#allocation3 + $0x70] sm:$0xff]  ;;  %v16461_v41 = vld [vmem:[#allocation10 + $0x138] sm:$0xff]   ;;  %v16466_v34 = vld [vmem:[#allocation10 + $0x210] sm:$0xff]  }
 0x5d0   : > { %15589 = vmatpush3.bf16.msra.mxu0 %v16437_v7  ;;  %15628 = vmatprep.subr.bf16.mxu1 %v16438_v63  ;;  %v4050_v36 = vld [vmem:[#allocation3 + $0x50] sm:$0xff]  ;;  %v16462_v1 = vld [vmem:[#allocation10 + $0x1f8] sm:$0xff]   ;;  %v16465_v63 = vld [vmem:[#allocation10 + $0x208] sm:$0xff]  }
 0x5d1   : > { %15590 = vmatprep.subr.bf16.mxu0 %v16440_v16  ;;  %v19079_v3 = vpack.c.bf16 %v4050_v36, %v4072_v50  ;;  %v19081_v23 = vld [vmem:[#allocation3 + $0x52] sm:$0xff]  ;;  %v19083_v17 = vld [vmem:[#allocation3 + $0x80] sm:$0xff]  ;;  %v16463_v7 = vld [vmem:[#allocation10 + $0x1b8] sm:$0xff]  }
 0x5d2   : > { %v4074_v4 = vld [vmem:[#allocation3 + $0x60] sm:$0xff]  ;;  %v19087_v38 = vpack.c.bf16 %v19081_v23, %v4065_v0  ;;  %v4147_v55 = vpack.c.bf16 %v19083_v17, %v4052_v26  ;;  %v4068_v52 = vld [vmem:[#allocation3 + $0x72] sm:$0xff]  ;;  %v4150_v54 = vpack.c.bf16 %v17757_v9, %v19083_v17 }
 0x5d3   : > { %15629 = vmatpush3.bf16.msra.mxu1 %v16439_v53  ;;  %4770 = vmatmul.mubr.bf16.gmra.mrb[196].mxu0 %v19066_v5  ;;  %v4138_v14 = vpack.c.bf16 %v4074_v4, %v4050_v36  ;;  %v4144_v59 = vpack.c.bf16 %v4052_v26, %v4074_v4  ;;  %v4067_v11 = vld [vmem:[#allocation3 + $0x62] sm:$0xff]  ;;  %v4108_v37 = vld [vmem:[#allocation3 + $0x91] sm:$0xff] }
 0x5d4   : > { %15591 = vmatpush3.bf16.msra.mxu0 %v16441_v56  ;;  %15630 = vmatprep.subr.bf16.mxu1 %v16442_v2  ;;  %v4146_v50 = vpack.c.bf16 %v4068_v52, %v4067_v11  ;;  %v4140_v16 = vpack.c.bf16 %v4067_v11, %v19081_v23  ;;  %v4092_v45 = vld [vmem:[#allocation3 + $0x82] sm:$0xff]  ;;  %v4151_v42 = vpack.c.bf16 %v4108_v37, %v19041_v27  ;;  %v16472_v27 = vld [vmem:[#allocation11] ss:$8 sps:$4 sm:$0xff]   ;;  %v16480_v2 = vld [vmem:[#allocation11 + $0x24] ss:$8 sps:$4 sm:$0xff]  }
 0x5d5   : > { %15592 = vmatprep.subr.bf16.mxu0 %v16444_v32  ;;  %4777 = vmatprep.mubr.bf16.mxu0 %v19051_v19  ;;  %v16470_v57 = vld [vmem:[#allocation10 + $0x230] sm:$0xff]   ;;  %v16486_v4 = vld [vmem:[#allocation11 + $0x44] ss:$8 sps:$4 sm:$0xff]   ;;  %v16484_v13 = vld [vmem:[#allocation11 + $0x40] ss:$8 sps:$4 sm:$0xff]  }
 0x5d6   : > { %4835 = vmatmul.mubr.bf16.gmra.mrb[220].mxu1 %v19075_v35  ;;  %v16477_v53 = vld [vmem:[#allocation11 + $0x14] ss:$8 sps:$4 sm:$0xff]   ;;  %v16475_v56 = vld [vmem:[#allocation11 + $0x10] ss:$8 sps:$4 sm:$0xff]   ;;  %v16502_v17 = vld [vmem:[#allocation11 + $0xa0] ss:$8 sps:$4 sm:$0xff]  }
 0x5d7   : > { %15631 = vmatpush3.bf16.msra.mxu1 %v16443_v6  ;;  %4842 = vmatprep.mubr.bf16.mxu1 %v4138_v14  ;;  %v16483_v44 = vld [vmem:[#allocation11 + $0x34] ss:$8 sps:$4 sm:$0xff]   ;;  %v16481_v32 = vld [vmem:[#allocation11 + $0x30] ss:$8 sps:$4 sm:$0xff]   ;;  %v16498_v14 = vld [vmem:[#allocation11 + $0x84] ss:$8 sps:$4 sm:$0xff]  }
 0x5d8   : > { %15593 = vmatpush3.bf16.msra.mxu0 %v16445_v22  ;;  %15632 = vmatprep.subr.bf16.mxu1 %v16446_v30  ;;  %v16489_v6 = vld [vmem:[#allocation11 + $0x54] ss:$8 sps:$4 sm:$0xff]   ;;  %v16492_v22 = vld [vmem:[#allocation11 + $0x64] ss:$8 sps:$4 sm:$0xff]   ;;  %v16490_v30 = vld [vmem:[#allocation11 + $0x60] ss:$8 sps:$4 sm:$0xff]  }
 0x5d9   : > { %15594 = vmatprep.subr.bf16.mxu0 %v16448_v12  ;;  %v16495_v36 = vld [vmem:[#allocation11 + $0x74] ss:$8 sps:$4 sm:$0xff]   ;;  %v16493_v12 = vld [vmem:[#allocation11 + $0x70] ss:$8 sps:$4 sm:$0xff]  }
 0x5db   : > { %15633 = vmatpush3.bf16.msra.mxu1 %v16447_v39  ;;  %4778 = vmatmul.mubr.bf16.gmra.mrb[200].mxu0 %v19079_v3  ;;  %v16496_v39 = vld [vmem:[#allocation11 + $0x80] ss:$8 sps:$4 sm:$0xff]  }
 0x5dc   : > { %15595 = vmatpush3.bf16.msra.mxu0 %v16449_v60  ;;  %15634 = vmatprep.subr.bf16.mxu1 %v16450_v29  ;;  %v16501_v60 = vld [vmem:[#allocation11 + $0x94] ss:$8 sps:$4 sm:$0xff]   ;;  %v16499_v29 = vld [vmem:[#allocation11 + $0x90] ss:$8 sps:$4 sm:$0xff]  }
 0x5dd   : > { %15596 = vmatprep.subr.bf16.mxu0 %v16452_v43  ;;  %4785 = vmatprep.mubr.bf16.mxu0 %v19059_v46 }
 0x5de   : > { %4843 = vmatmul.mubr.bf16.gmra.mrb[224].mxu1 %v19087_v38 }
 0x5df   : > { %15635 = vmatpush3.bf16.msra.mxu1 %v16451_v21  ;;  %4850 = vmatprep.mubr.bf16.mxu1 %v4147_v55 }
 0x5e0   : > { %15597 = vmatpush3.bf16.msra.mxu0 %v16453_v48  ;;  %15636 = vmatprep.subr.bf16.mxu1 %v16454_v31 }
 0x5e1   : > { %15598 = vmatprep.subr.bf16.mxu0 %v16456_v40 }
 0x5e3   : > { %15637 = vmatpush3.bf16.msra.mxu1 %v16455_v47  ;;  %4786 = vmatmul.mubr.bf16.gmra.mrb[204].mxu0 %v4144_v59 }
 0x5e4   : > { %15599 = vmatpush3.bf16.msra.mxu0 %v16457_v10  ;;  %15638 = vmatprep.subr.bf16.mxu1 %v16458_v61  ;;  %v16505_v10 = vld [vmem:[#allocation11 + $0xb0] ss:$8 sps:$4 sm:$0xff]  }
 0x5e5   : > { %15600 = vmatprep.subr.bf16.mxu0 %v16460_v24  ;;  %4891 = vmatprep.mubr.bf16.mxu0 %v4122_v33 }
 0x5e6   : > { %4851 = vmatmul.mubr.bf16.gmra.mrb[228].mxu1 %v4146_v50 }
 0x5e7   : > { %15639 = vmatpush3.bf16.msra.mxu1 %v16459_v28  ;;  %4956 = vmatprep.mubr.bf16.mxu1 %v19032_v49  ;;  %v16467_v49 = vld [vmem:[#allocation10 + $0x218] sm:$0xff]  }
 0x5e8   : > { %15601 = vmatpush3.bf16.msra.mxu0 %v16461_v41  ;;  %15640 = vmatprep.subr.bf16.mxu1 %v16462_v1 }
 0x5e9   : > { %15918 = vmatprep.subr.bf16.mxu0 %v16464_v8 }
 0x5eb   : > { %15641 = vmatpush3.bf16.msra.mxu1 %v16463_v7  ;;  %4892 = vmatmul.mubr.bf16.vlgmr.msra.gmra.mrb[208].mxu0 %v4121_v15  ;;  %v16469_v15 = vld [vmem:[#allocation10 + $0x228] sm:$0xff]  }
 0x5ec   : > { %15919 = vmatpush3.bf16.msra.mxu0 %v16464_v8  ;;  %4899 = vmatprep.mubr.bf16.mxu0 %v4131_v20 }
 0x5ed   : > { %15920 = vmatprep.subr.bf16.mxu0 %v16465_v63 }
 0x5ee   : > { %4957 = vmatmul.mubr.bf16.vlgmr.msra.gmra.mrb[232].mxu1 %v19066_v5  ;;  %v16478_v5 = vld [vmem:[#allocation11 + $0x20] ss:$8 sps:$4 sm:$0xff]  }
 0x5ef   : > { %4964 = vmatprep.mubr.bf16.mxu1 %v19051_v19  ;;  %v4149_v19 = vpack.c.bf16 %v4092_v45, %v4068_v52 }
 0x5f0   : > { %15921 = vmatpush3.bf16.msra.mxu0 %v16465_v63 }
 0x5f1   : > { %15922 = vmatprep.subr.bf16.mxu0 %v16466_v34 }
 0x5f3   : > { %4900 = vmatmul.mubr.bf16.gmra.mrb[212].mxu0 %v4130_v51  ;;  %v16471_v51 = vld [vmem:[#allocation10 + $0x238] sm:$0xff]  }
 0x5f4   : > { %15923 = vmatpush3.bf16.msra.mxu0 %v16466_v34  ;;  %4907 = vmatprep.mubr.bf16.mxu0 %v4140_v16 }
 0x5f5   : > { %15924 = vmatprep.subr.bf16.mxu0 %v16467_v49 }
 0x5f6   : > { %4965 = vmatmul.mubr.bf16.gmra.mrb[236].mxu1 %v19079_v3  ;;  %v16504_v3 = vld [vmem:[#allocation11 + $0xa4] ss:$8 sps:$4 sm:$0xff]  }
 0x5f7   : > { %4972 = vmatprep.mubr.bf16.mxu1 %v19059_v46  ;;  %v4116_v46 = vld [vmem:[#allocation3 + $0x92] sm:$0xff] }
 0x5f8   : > { %15925 = vmatpush3.bf16.msra.mxu0 %v16467_v49 }
 0x5f9   : > { %15926 = vmatprep.subr.bf16.mxu0 %v16468_v25 }
 0x5fb   : > { %4908 = vmatmul.mubr.bf16.gmra.mrb[216].mxu0 %v4139_v58  ;;  %v4152_v58 = vpack.c.bf16 %v4116_v46, %v4092_v45 }
 0x5fc   : > { %15927 = vmatpush3.bf16.msra.mxu0 %v16468_v25  ;;  %4915 = vmatprep.mubr.bf16.mxu0 %v4149_v19 }
 0x5fd   : > { %15928 = vmatprep.subr.bf16.mxu0 %v16469_v15 }
 0x5fe   : > { %4973 = vmatmul.mubr.bf16.gmra.mrb[240].mxu1 %v4144_v59 }
 0x5ff   : > { %4980 = vmatprep.mubr.bf16.mxu1 %v4151_v42 }
 0x600   : > { %15929 = vmatpush3.bf16.msra.mxu0 %v16469_v15 }
 0x601   : > { %15930 = vmatprep.subr.bf16.mxu0 %v16470_v57 }
 0x603   : > { %4916 = vmatmul.mubr.bf16.gmra.mrb[220].mxu0 %v4148_v62  ;;  %v16474_v62 = vld [vmem:[#allocation11 + $0x4] ss:$8 sps:$4 sm:$0xff]  }
 0x604   : > { %15931 = vmatpush3.bf16.msra.mxu0 %v16470_v57  ;;  %15934 = vmatprep.mubr.bf16.mxu0 %v19075_v35  ;;  %v16487_v35 = vld [vmem:[#allocation11 + $0x50] ss:$8 sps:$4 sm:$0xff]  }
 0x605   : > { %15932 = vmatprep.subr.bf16.mxu0 %v16471_v51  ;;  %6139 = vmatprep.subr.bf16.mxu1 %v16474_v62 }
 0x606   : > { %4981 = vmatmul.mubr.bf16.gmra.mrb[244].mxu1 %v4150_v54 }
 0x607   : > { %6140 = vmatpush1.bf16.msra.mxu1 %v16472_v27 }
 0x608   : > { %15933 = vmatpush3.bf16.msra.mxu0 %v16471_v51  ;;  %6141 = vmatprep.subr.bf16.mxu1 %v16477_v53 }
 0x60b   : > { %15935 = vmatmul.mubr.bf16.vlgmr.msra.gmra.mrb[224].mxu0 %v19087_v38  ;;  %6142 = vmatpush1.bf16.msra.mxu1 %v16475_v56  ;;  %v16507_v38 = vld [vmem:[#allocation11 + $0xb4] ss:$8 sps:$4 sm:$0xff]  }
 0x60c   : > { %15938 = vmatprep.mubr.bf16.mxu0 %v4146_v50  ;;  %6143 = vmatprep.subr.bf16.mxu1 %v16480_v2 }
 0x60f   : > { %6144 = vmatpush1.bf16.msra.mxu1 %v16478_v5 }
 0x610   : > { %6145 = vmatprep.subr.bf16.mxu1 %v16483_v44 }
 0x613   : > { %15939 = vmatmul.mubr.bf16.gmra.mrb[228].mxu0 %v4152_v58  ;;  %6146 = vmatpush1.bf16.msra.mxu1 %v16481_v32 }
 0x614   : > { %15958 = vmatprep.mubr.msk.f32.mxu0 %vm5064_vm1, %v5062_v18  ;;  %6147 = vmatprep.subr.bf16.mxu1 %v16486_v4 }
 0x617   : > { %6148 = vmatpush1.bf16.msra.mxu1 %v16484_v13 }
 0x618   : > { %6149 = vmatprep.subr.bf16.mxu1 %v16489_v6 }
 0x61b   : > { %6150 = vmatpush1.bf16.msra.mxu1 %v16487_v35 }
 0x61c   : > { %6151 = vmatprep.subr.bf16.mxu1 %v16492_v22 }
 0x61f   : > { %6152 = vmatpush1.bf16.msra.mxu1 %v16490_v30 }
 0x620   : > { %6153 = vmatprep.subr.bf16.mxu1 %v16495_v36 }
 0x623   : > { %6154 = vmatpush1.bf16.msra.mxu1 %v16493_v12 }
 0x624   : > { %6155 = vmatprep.subr.bf16.mxu1 %v16498_v14 }
 0x627   : > { %6156 = vmatpush1.bf16.msra.mxu1 %v16496_v39 }
 0x628   : > { %6157 = vmatprep.subr.bf16.mxu1 %v16501_v60 }
 0x62b   : > { %6158 = vmatpush1.bf16.msra.mxu1 %v16499_v29 }
 0x62c   : > { %6159 = vmatprep.subr.bf16.mxu1 %v16504_v3 }
 0x62f   : > { %6160 = vmatpush1.bf16.msra.mxu1 %v16502_v17 }
 0x630   : > { %6161 = vmatprep.subr.bf16.mxu1 %v16507_v38 }
 0x633   : > { %6162 = vmatpush1.bf16.msra.mxu1 %v16505_v10 }
 0x69e   : > { %v15522_v23 = vpop.f32.mrb[192].mxu0 }
 0x69f   : > { %v15523_v43 = vpop.f32.mrb[193].mxu0 }
 0x6a0   : > { %v15524_v0 = vadd.f32 %v15523_v43, %v15522_v23  ;;  %v15525_v21 = vpop.f32.mrb[194].mxu0 }
 0x6a1   : > { %v15562_v48 = vpop.f32.mrb[216].mxu1  ;;  %v15526_v31 = vpop.f32.mrb[195].mxu0 }
 0x6a2   : > { %v15527_v26 = vadd.f32 %v15526_v31, %v15525_v21  ;;  %v15563_v40 = vpop.f32.mrb[217].mxu1 }
 0x6a3   : > { %v15564_v55 = vadd.f32 %v15563_v40, %v15562_v48  ;;  %v15565_v47 = vpop.f32.mrb[218].mxu1 }
 0x6a4   : > { %v15566_v61 = vpop.f32.mrb[219].mxu1 }
 0x6a5   : > { %v4829_v59 = vadd.f32 %v15564_v55, %v15524_v0  ;;  %v15567_v11 = vadd.f32 %v15566_v61, %v15565_v47 }
 0x6a6   : > { %v15528_v24 = vpop.f32.mrb[196].mxu0 }
 0x6a7   : > { %v15529_v52 = vpop.f32.mrb[197].mxu0  ;;  %v4832_v28 = vadd.f32 %v15567_v11, %v15527_v26 }
 0x6a8   : > { %v15530_v33 = vadd.f32 %v15529_v52, %v15528_v24  ;;  %v15531_v50 = vpop.f32.mrb[198].mxu0 }
 0x6a9   : > { %v15568_v41 = vpop.f32.mrb[220].mxu1  ;;  %v15532_v1 = vpop.f32.mrb[199].mxu0 }
 0x6aa   : > { %v15533_v8 = vadd.f32 %v15532_v1, %v15531_v50  ;;  %v15569_v7 = vpop.f32.mrb[221].mxu1 }
 0x6ab   : > { %v15570_v63 = vadd.f32 %v15569_v7, %v15568_v41  ;;  %v15571_v20 = vpop.f32.mrb[222].mxu1 }
 0x6ac   : > { %v15572_v34 = vpop.f32.mrb[223].mxu1 }
 0x6ad   : > { %v4837_v49 = vadd.f32 %v15570_v63, %v15530_v33  ;;  %v15573_v16 = vadd.f32 %v15572_v34, %v15571_v20 }
 0x6ae   : > { %v15534_v25 = vpop.f32.mrb[200].mxu0 }
 0x6af   : > { %v15535_v45 = vpop.f32.mrb[201].mxu0  ;;  %v4840_v15 = vadd.f32 %v15573_v16, %v15533_v8 }
 0x6b0   : > { %v15536_v19 = vadd.f32 %v15535_v45, %v15534_v25  ;;  %v15537_v37 = vpop.f32.mrb[202].mxu0 }
 0x6b1   : > { %v15574_v42 = vpop.f32.mrb[224].mxu1  ;;  %v15538_v57 = vpop.f32.mrb[203].mxu0 }
 0x6b2   : > { %v15539_v51 = vadd.f32 %v15538_v57, %v15537_v37  ;;  %v15575_v9 = vpop.f32.mrb[225].mxu1 }
 0x6b3   : > { %v15576_v54 = vadd.f32 %v15575_v9, %v15574_v42  ;;  %v15577_v46 = vpop.f32.mrb[226].mxu1 }
 0x6b4   : > { %v15578_v58 = vpop.f32.mrb[227].mxu1 }
 0x6b5   : > { %v4845_v18 = vadd.f32 %v15576_v54, %v15536_v19  ;;  %v15579_v27 = vadd.f32 %v15578_v58, %v15577_v46 }
 0x6b6   : > { %v15540_v62 = vpop.f32.mrb[204].mxu0 }
 0x6b7   : > { %v15541_v53 = vpop.f32.mrb[205].mxu0  ;;  %v4848_v56 = vadd.f32 %v15579_v27, %v15539_v51 }
 0x6b8   : > { %v15542_v2 = vadd.f32 %v15541_v53, %v15540_v62  ;;  %v15543_v5 = vpop.f32.mrb[206].mxu0 }
 0x6b9   : > { %v15580_v44 = vpop.f32.mrb[228].mxu1  ;;  %v15544_v32 = vpop.f32.mrb[207].mxu0 }
 0x6ba   : > { %v15545_v4 = vadd.f32 %v15544_v32, %v15543_v5  ;;  %v15581_v13 = vpop.f32.mrb[229].mxu1 }
 0x6bb   : > { %v15582_v6 = vadd.f32 %v15581_v13, %v15580_v44  ;;  %v15583_v35 = vpop.f32.mrb[230].mxu1 }
 0x6bc   : > { %v15584_v22 = vpop.f32.mrb[231].mxu1 }
 0x6bd   : > { %v4853_v30 = vadd.f32 %v15582_v6, %v15542_v2  ;;  %v15585_v36 = vadd.f32 %v15584_v22, %v15583_v35 }
 0x6be   : > { %v15602_v12 = vpop.f32.mrb[208].mxu0 }
 0x6bf   : > { %v4856_v14 = vadd.f32 %v15585_v36, %v15545_v4  ;;  %v15603_v39 = vpop.f32.mrb[209].mxu0 }
 0x6c0   : > { %v15604_v60 = vadd.f32 %v15603_v39, %v15602_v12  ;;  %v15605_v29 = vpop.f32.mrb[210].mxu0 }
 0x6c1   : > { %v15642_v3 = vpop.f32.mrb[232].mxu1  ;;  %v15606_v23 = vpop.f32.mrb[211].mxu0 }
 0x6c2   : > { %v4894_v43 = vadd.f32 %v15604_v60, %v4829_v59  ;;  %v15607_v17 = vadd.f32 %v15606_v23, %v15605_v29  ;;  %v15643_v0 = vpop.f32.mrb[233].mxu1 }
 0x6c3   : > { %v15644_v21 = vadd.f32 %v15643_v0, %v15642_v3  ;;  %v15645_v38 = vpop.f32.mrb[234].mxu1 }
 0x6c4   : > { %v4897_v48 = vadd.f32 %v15607_v17, %v4832_v28  ;;  %v15646_v31 = vpop.f32.mrb[235].mxu1 }
 0x6c5   : > { %v15647_v26 = vadd.f32 %v15646_v31, %v15645_v38  ;;  %v4959_v40 = vadd.f32 %v15644_v21, %v4894_v43 }
 0x6c6   : > { %v15608_v55 = vpop.f32.mrb[212].mxu0 }
 0x6c7   : > { %v15609_v47 = vpop.f32.mrb[213].mxu0  ;;  %v4962_v10 = vadd.f32 %v15647_v26, %v4897_v48 }
 0x6c8   : > { %v15610_v61 = vadd.f32 %v15609_v47, %v15608_v55  ;;  %v15611_v11 = vpop.f32.mrb[214].mxu0 }
 0x6c9   : > { %v15648_v24 = vpop.f32.mrb[236].mxu1  ;;  %v15612_v52 = vpop.f32.mrb[215].mxu0 }
 0x6ca   : > { %v4902_v33 = vadd.f32 %v15610_v61, %v4837_v49  ;;  %v15613_v50 = vadd.f32 %v15612_v52, %v15611_v11  ;;  %v15649_v41 = vpop.f32.mrb[237].mxu1 }
 0x6cb   : > { %v15650_v1 = vadd.f32 %v15649_v41, %v15648_v24  ;;  %v15651_v59 = vpop.f32.mrb[238].mxu1 }
 0x6cc   : > { %v4905_v8 = vadd.f32 %v15613_v50, %v4840_v15  ;;  %v15652_v7 = vpop.f32.mrb[239].mxu1 }
 0x6cd   : > { %v15653_v63 = vadd.f32 %v15652_v7, %v15651_v59  ;;  %v4967_v20 = vadd.f32 %v15650_v1, %v4902_v33  ;;  %v5063_v7 = vld [vmem:[%s20329_s11 + $0x8] sm:$0xff] }
 0x6ce   : > { %v15614_v28 = vpop.f32.mrb[216].mxu0 }
 0x6cf   : > { %v15615_v34 = vpop.f32.mrb[217].mxu0  ;;  %v4970_v16 = vadd.f32 %v15653_v63, %v4905_v8  ;;  %v16510_v63 = vld [vmem:[#allocation11 + $0xc4] ss:$8 sps:$4 sm:$0xff]  }
 0x6d0   : > { %v15616_v25 = vadd.f32 %v15615_v34, %v15614_v28  ;;  %v15617_v45 = vpop.f32.mrb[218].mxu0  ;;  %6163 = vmatprep.subr.bf16.mxu1 %v16510_v63  ;;  %v16513_v28 = vld [vmem:[#allocation11 + $0xd4] ss:$8 sps:$4 sm:$0xff]   ;;  %v16511_v34 = vld [vmem:[#allocation11 + $0xd0] ss:$8 sps:$4 sm:$0xff]  }
 0x6d1   : > { %v15654_v19 = vpop.f32.mrb[240].mxu1  ;;  %v15618_v37 = vpop.f32.mrb[219].mxu0  ;;  %v16582_v63 = vld [vmem:[#allocation11 + $0x220] ss:$8 sps:$4 sm:$0xff]  }
 0x6d2   : > { %v4910_v42 = vadd.f32 %v15616_v25, %v4845_v18  ;;  %v15619_v57 = vadd.f32 %v15618_v37, %v15617_v45  ;;  %v15655_v51 = vpop.f32.mrb[241].mxu1  ;;  %v16514_v25 = vld [vmem:[#allocation11 + $0xe0] ss:$8 sps:$4 sm:$0xff]   ;;  %v16519_v45 = vld [vmem:[#allocation11 + $0xf4] ss:$8 sps:$4 sm:$0xff]  }
 0x6d3   : > { %v15656_v9 = vadd.f32 %v15655_v51, %v15654_v19  ;;  %v15657_v49 = vpop.f32.mrb[242].mxu1  ;;  %v16517_v19 = vld [vmem:[#allocation11 + $0xf0] ss:$8 sps:$4 sm:$0xff]   ;;  %v16524_v37 = vld [vmem:[#allocation11 + $0x104] ss:$8 sps:$4 sm:$0xff]  }
 0x6d4   : > { %v4913_v54 = vadd.f32 %v15619_v57, %v4848_v56  ;;  %v15658_v46 = vpop.f32.mrb[243].mxu1 }
 0x6d5   : > { %v15659_v58 = vadd.f32 %v15658_v46, %v15657_v49  ;;  %v4975_v27 = vadd.f32 %v15656_v9, %v4910_v42 }
 0x6d6   : > { %v15620_v15 = vpop.f32.mrb[220].mxu0 }
 0x6d7   : > { %v15621_v62 = vpop.f32.mrb[221].mxu0  ;;  %v4978_v53 = vadd.f32 %v15659_v58, %v4913_v54  ;;  %v16522_v58 = vld [vmem:[#allocation11 + $0x100] ss:$8 sps:$4 sm:$0xff]  }
 0x6d8   : > { %v15622_v2 = vadd.f32 %v15621_v62, %v15620_v15  ;;  %v15623_v5 = vpop.f32.mrb[222].mxu0 }
 0x6d9   : > { %v15660_v44 = vpop.f32.mrb[244].mxu1  ;;  %v15624_v32 = vpop.f32.mrb[223].mxu0 }
 0x6da   : > { %v4918_v4 = vadd.f32 %v15622_v2, %v4853_v30  ;;  %v15625_v13 = vadd.f32 %v15624_v32, %v15623_v5  ;;  %v15661_v6 = vpop.f32.mrb[245].mxu1  ;;  %v16529_v5 = vld [vmem:[#allocation11 + $0x114] ss:$8 sps:$4 sm:$0xff]   ;;  %v16527_v32 = vld [vmem:[#allocation11 + $0x110] ss:$8 sps:$4 sm:$0xff]  }
 0x6db   : > { %v15662_v35 = vadd.f32 %v15661_v6, %v15660_v44  ;;  %v15663_v18 = vpop.f32.mrb[246].mxu1  ;;  %v16535_v6 = vld [vmem:[#allocation11 + $0x134] ss:$8 sps:$4 sm:$0xff]  }
 0x6dc   : > { %v4921_v22 = vadd.f32 %v15625_v13, %v4856_v14  ;;  %v15664_v36 = vpop.f32.mrb[247].mxu1  ;;  %v16530_v13 = vld [vmem:[#allocation11 + $0x120] ss:$8 sps:$4 sm:$0xff]  }
 0x6dd   : > { %v15665_v12 = vadd.f32 %v15664_v36, %v15663_v18  ;;  %v4983_v39 = vadd.f32 %v15662_v35, %v4918_v4  ;;  %v16532_v4 = vld [vmem:[#allocation11 + $0x124] ss:$8 sps:$4 sm:$0xff]   ;;  %v16533_v35 = vld [vmem:[#allocation11 + $0x130] ss:$8 sps:$4 sm:$0xff]   ;;  %v16541_v36 = vld [vmem:[#allocation11 + $0x154] ss:$8 sps:$4 sm:$0xff]  }
 0x6de   : > { %v15936_v56 = vpop.f32.mrb[224].mxu0  ;;  %v16538_v18 = vld [vmem:[#allocation11 + $0x144] ss:$8 sps:$4 sm:$0xff]  }
 0x6df   : > { %v5032_v60 = vadd.f32 %v15936_v56, %v4967_v20  ;;  %v5023_v29 = vpop.f32.mrb[225].mxu0  ;;  %v4986_v3 = vadd.f32 %v15665_v12, %v4921_v22  ;;  %v16508_v20 = vld [vmem:[#allocation11 + $0xc0] ss:$8 sps:$4 sm:$0xff]   ;;  %v16539_v12 = vld [vmem:[#allocation11 + $0x150] ss:$8 sps:$4 sm:$0xff]  }
 0x6e0   : > { %v5024_v23 = vadd.f32 %v5023_v29, %v4959_v40  ;;  %v15937_v43 = vpop.f32.mrb[226].mxu0  ;;  %6164 = vmatpush1.bf16.msra.mxu1 %v16508_v20  ;;  %v16536_v22 = vld [vmem:[#allocation11 + $0x140] ss:$8 sps:$4 sm:$0xff]   ;;  %v16545_v29 = vld [vmem:[#allocation11 + $0x170] ss:$8 sps:$4 sm:$0xff]  }
 0x6e1   : > { %v5035_v17 = vadd.f32 %v15937_v43, %v4970_v16  ;;  %v5026_v0 = vpop.f32.mrb[227].mxu0  ;;  %v5056_v38 = vmax.f32 %v5032_v60, 0.0  ;;  %6165 = vmatprep.subr.bf16.mxu1 %v16513_v28  ;;  %v16516_v16 = vld [vmem:[#allocation11 + $0xe4] ss:$8 sps:$4 sm:$0xff]   ;;  %v16542_v56 = vld [vmem:[#allocation11 + $0x160] ss:$8 sps:$4 sm:$0xff]  }
 0x6e2   : > { %v5027_v21 = vadd.f32 %v5026_v0, %v4962_v10  ;;  %v5054_v30 = vmax.f32 %v5024_v23, 0.0  ;;  %v16547_v60 = vld [vmem:[#allocation11 + $0x174] ss:$8 sps:$4 sm:$0xff]   ;;  %v16548_v23 = vld [vmem:[#allocation11 + $0x180] ss:$8 sps:$4 sm:$0xff]  }
 0x6e3   : > { %v5057_v48 = vmax.f32 %v5035_v17, 0.0  ;;  %v16553_v43 = vld [vmem:[#allocation11 + $0x194] ss:$8 sps:$4 sm:$0xff]   ;;  %v16551_v17 = vld [vmem:[#allocation11 + $0x190] ss:$8 sps:$4 sm:$0xff]  }
 0x6e4   : > { %v5055_v31 = vmax.f32 %v5027_v21, 0.0  ;;  %6166 = vmatpush1.bf16.msra.mxu1 %v16511_v34  ;;  %v16556_v0 = vld [vmem:[#allocation11 + $0x1a4] ss:$8 sps:$4 sm:$0xff]   ;;  %v16554_v21 = vld [vmem:[#allocation11 + $0x1a0] ss:$8 sps:$4 sm:$0xff]  }
 0x6e5   : > { %v16049_v26 = vpack.c.bf16 %v5057_v48, %v5056_v38  ;;  %6167 = vmatprep.subr.bf16.mxu1 %v16516_v16  ;;  %v16559_v38 = vld [vmem:[#allocation11 + $0x1b4] ss:$8 sps:$4 sm:$0xff]   ;;  %v16557_v48 = vld [vmem:[#allocation11 + $0x1b0] ss:$8 sps:$4 sm:$0xff]   ;;  %v16590_v34 = vld [vmem:[#allocation11 + $0x244] ss:$8 sps:$4 sm:$0xff]  }
 0x6e6   : > { %v16045_v55 = vpack.c.bf16 %v5055_v31, %v5054_v30  ;;  %v15940_v47 = vpop.f32.mrb[228].mxu0  ;;  %v16562_v30 = vld [vmem:[#allocation11 + $0x1c4] ss:$8 sps:$4 sm:$0xff]   ;;  %v16560_v31 = vld [vmem:[#allocation11 + $0x1c0] ss:$8 sps:$4 sm:$0xff]  }
 0x6e7   : > { %v5048_v14 = vadd.f32 %v15940_v47, %v4983_v39  ;;  %v5039_v61 = vpop.f32.mrb[229].mxu0  ;;  %v16544_v39 = vld [vmem:[#allocation11 + $0x164] ss:$8 sps:$4 sm:$0xff]   ;;  %v16587_v20 = vld [vmem:[#allocation11 + $0x234] ss:$8 sps:$4 sm:$0xff]  }
 0x6e8   : > { %v5040_v11 = vadd.f32 %v5039_v61, %v4975_v27  ;;  %v15941_v24 = vpop.f32.mrb[230].mxu0  ;;  %16046 = vmatprep.subr.bf16.mxu0 %v16045_v55  ;;  %6168 = vmatpush1.bf16.msra.mxu1 %v16514_v25  ;;  %v16568_v47 = vld [vmem:[#allocation11 + $0x1e4] ss:$8 sps:$4 sm:$0xff]   ;;  %v16571_v61 = vld [vmem:[#allocation11 + $0x1f4] ss:$8 sps:$4 sm:$0xff]  }
 0x6e9   : > { %v5051_v52 = vadd.f32 %v15941_v24, %v4986_v3  ;;  %v5042_v33 = vpop.f32.mrb[231].mxu0  ;;  %16048 = vmatpush3.bf16.msra.mxu0 %v16045_v55  ;;  %v5060_v50 = vmax.f32 %v5048_v14, 0.0  ;;  %6169 = vmatprep.subr.bf16.mxu1 %v16519_v45  ;;  %v16550_v3 = vld [vmem:[#allocation11 + $0x184] ss:$8 sps:$4 sm:$0xff]   ;;  %v16563_v55 = vld [vmem:[#allocation11 + $0x1d0] ss:$8 sps:$4 sm:$0xff]  }
 0x6ea   : > { %v5043_v40 = vadd.f32 %v5042_v33, %v4978_v53  ;;  %16050 = vmatprep.subr.bf16.mxu0 %v16049_v26  ;;  %v5058_v10 = vmax.f32 %v5040_v11, 0.0  ;;  %v16566_v14 = vld [vmem:[#allocation11 + $0x1e0] ss:$8 sps:$4 sm:$0xff]   ;;  %v16569_v11 = vld [vmem:[#allocation11 + $0x1f0] ss:$8 sps:$4 sm:$0xff]  }
 0x6eb   : > { %v5061_v41 = vmax.f32 %v5051_v52, 0.0  ;;  %v16576_v24 = vld [vmem:[#allocation11 + $0x204] ss:$8 sps:$4 sm:$0xff]   ;;  %v16585_v28 = vld [vmem:[#allocation11 + $0x230] ss:$8 sps:$4 sm:$0xff]  }
 0x6ec   : > { %v5059_v1 = vmax.f32 %v5043_v40, 0.0  ;;  %6170 = vmatpush1.bf16.msra.mxu1 %v16517_v19  ;;  %v16588_v16 = vld [vmem:[#allocation11 + $0x240] ss:$8 sps:$4 sm:$0xff]   ;;  %v16593_v25 = vld [vmem:[#allocation11 + $0x254] ss:$8 sps:$4 sm:$0xff]  }
 0x6ed   : > { %v16057_v59 = vpack.c.bf16 %v5061_v41, %v5060_v50  ;;  %16052 = vmatpush3.bf16.msra.mxu0 %v16049_v26  ;;  %6182 = vmatprep.subr.bf16.mxu1 %v16524_v37  ;;  %v16565_v26 = vld [vmem:[#allocation11 + $0x1d4] ss:$8 sps:$4 sm:$0xff]   ;;  %v16574_v41 = vld [vmem:[#allocation11 + $0x200] ss:$8 sps:$4 sm:$0xff]   ;;  %v16591_v45 = vld [vmem:[#allocation11 + $0x250] ss:$8 sps:$4 sm:$0xff]  }
 0x6ee   : > { %v16053_v8 = vpack.c.bf16 %v5059_v1, %v5058_v10  ;;  %v16581_v1 = vld [vmem:[#allocation11 + $0x214] ss:$8 sps:$4 sm:$0xff]   ;;  %v16596_v19 = vld [vmem:[#allocation11 + $0x264] ss:$8 sps:$4 sm:$0xff]   ;;  %v16594_v37 = vld [vmem:[#allocation11 + $0x260] ss:$8 sps:$4 sm:$0xff]  }
 0x6f0   : > { %16054 = vmatprep.subr.bf16.mxu0 %v16053_v8 }
 0x6f1   : > { %16056 = vmatpush3.bf16.msra.mxu0 %v16053_v8  ;;  %v16579_v8 = vld [vmem:[#allocation11 + $0x210] ss:$8 sps:$4 sm:$0xff]  }
 0x6f2   : > { %16058 = vmatprep.subr.bf16.mxu0 %v16057_v59 }
 0x6f5   : > { %16060 = vmatpush3.bf16.msra.mxu0 %v16057_v59 }
 0x6f8   : > { %15959 = vmatmul.mubr.msk.f32.vlgmr.msra.gmra.mrb[232].mxu0 %vm5064_vm1, %v5063_v7  ;;  %v16584_v7 = vld [vmem:[#allocation11 + $0x224] ss:$8 sps:$4 sm:$0xff]  }
 0x7cb   : > { %v15960_v42 = vpop.f32.mrb[232].mxu0 }
 0x7cc   : > { %v5149_v57 = vcombine.high %v15960_v42, %v15960_v42  ;;  %5155 = vst [vmem:[#allocation4 + $0x19] sm:$0xf] %v15960_v42  ;;  %v5137_v51 = vpop.f32.mrb[233].mxu0  ;;  %v16601_v42 = vld [vmem:[#allocation11 + $0x274] ss:$8 sps:$4 sm:$0xff]  }
 0x7cd   : > { %v5148_v9 = vcombine.high %v5137_v51, %v5137_v51  ;;  %5153 = vst [vmem:[#allocation4 + $0x9] sm:$0xf] %v5137_v51  ;;  %v16604_v51 = vld [vmem:[#allocation11 + $0x284] ss:$8 sps:$4 sm:$0xff]  }
 0x7ce   : > { %5156 = vst [vmem:[#allocation4 + $0x21] sm:$0xf] %v5149_v57  ;;  %v16599_v57 = vld [vmem:[#allocation11 + $0x270] ss:$8 sps:$4 sm:$0xff]  }
 0x7cf   : > { %5154 = vst [vmem:[#allocation4 + $0x11] sm:$0xf] %v5148_v9  ;;  %v16602_v9 = vld [vmem:[#allocation11 + $0x280] ss:$8 sps:$4 sm:$0xff]  }
 0x7d4   : > { %v16520_v49 = vld [vmem:[#allocation4 + $0x1] ss:$8 sps:$4 sm:$0xff]  }
 0x7d5   : > { %v16525_v54 = vld [vmem:[#allocation4] ss:$8 sps:$4 sm:$0xff]  }
 0x7d6   : > { %v16521_v46 = vld [vmem:[#allocation4 + $0x11] ss:$8 sps:$4 sm:$0xff]   ;;  %v16577_v50 = vld [vmem:[#allocation4 + $0x2] ss:$8 sps:$4 sm:$0xff]  }
 0x7d7   : > { %v16526_v27 = vld [vmem:[#allocation4 + $0x10] ss:$8 sps:$4 sm:$0xff]   ;;  %v5267_v62 = vpack.c.bf16 %v16521_v46, %v16520_v49  ;;  %v16607_v49 = vld [vmem:[#allocation11 + $0x294] ss:$8 sps:$4 sm:$0xff]   ;;  %v16708_v46 = vld [vmem:[%s20324_s6 + $0x4] ss:$8 sps:$4 sm:$0xff]  }
 0x7d8   : > { %v16572_v15 = vld [vmem:[#allocation4 + $0x8] ss:$8 sps:$4 sm:$0xff]   ;;  %v16573_v53 = vld [vmem:[#allocation4 + $0x18] ss:$8 sps:$4 sm:$0xff]   ;;  %v5266_v2 = vpack.c.bf16 %v16526_v27, %v16525_v54  ;;  %v16711_v27 = vld [vmem:[%s20324_s6 + $0x14] ss:$8 sps:$4 sm:$0xff]   ;;  %8457 = vmatprep.subr.bf16.mxu0 %v16708_v46 }
 0x7d9   : > { %6171 = vmatprep.mubr.bf16.mxu1 %v5267_v62  ;;  %v5269_v44 = vpack.c.bf16 %v16573_v53, %v16572_v15  ;;  %v16578_v52 = vld [vmem:[#allocation4 + $0x12] ss:$8 sps:$4 sm:$0xff]   ;;  %v16709_v62 = vld [vmem:[%s20324_s6 + $0x10] ss:$8 sps:$4 sm:$0xff]  }
 0x7da   : > { %6172 = vmatmul.mubr.bf16.vlgmr.msra.gmra.mrb[248].mxu1 %v5266_v2  ;;  %v16597_v33 = vld [vmem:[#allocation4 + $0xa] ss:$8 sps:$4 sm:$0xff]   ;;  %v16598_v40 = vld [vmem:[#allocation4 + $0x1a] ss:$8 sps:$4 sm:$0xff]   ;;  %v5268_v10 = vpack.c.bf16 %v16578_v52, %v16577_v50 }
 0x7db   : > { %6183 = vmatpush1.bf16.msra.mxu1 %v16522_v58  ;;  %6214 = vmatprep.mubr.bf16.mxu1 %v5269_v44  ;;  %v5271_v59 = vpack.c.bf16 %v16598_v40, %v16597_v33  ;;  %v16706_v54 = vld [vmem:[%s20324_s6] ss:$8 sps:$4 sm:$0xff]   ;;  %v16605_v58 = vld [vmem:[#allocation11 + $0x290] ss:$8 sps:$4 sm:$0xff]   ;;  %v16610_v15 = vld [vmem:[#allocation11 + $0x2a4] ss:$8 sps:$4 sm:$0xff]  }
 0x7dc   : > { %6184 = vmatprep.subr.bf16.mxu1 %v16529_v5  ;;  %8458 = vmatpush1.bf16.msra.mxu0 %v16706_v54  ;;  %v16714_v53 = vld [vmem:[%s20324_s6 + $0x24] ss:$8 sps:$4 sm:$0xff]   ;;  %v16608_v2 = vld [vmem:[#allocation11 + $0x2a0] ss:$8 sps:$4 sm:$0xff]   ;;  %v16613_v5 = vld [vmem:[#allocation11 + $0x2b4] ss:$8 sps:$4 sm:$0xff]  }
 0x7dd   : > { %8459 = vmatprep.subr.bf16.mxu0 %v16711_v27  ;;  %v16712_v44 = vld [vmem:[%s20324_s6 + $0x20] ss:$8 sps:$4 sm:$0xff]   ;;  %v16735_v52 = vld [vmem:[%s20324_s6 + $0x94] ss:$8 sps:$4 sm:$0xff]   ;;  %v16633_v33 = vld [vmem:[#allocation11 + $0x310] ss:$8 sps:$4 sm:$0xff]  }
 0x7de   : > { %v16638_v40 = vld [vmem:[#allocation11 + $0x324] ss:$8 sps:$4 sm:$0xff]   ;;  %v16733_v50 = vld [vmem:[%s20324_s6 + $0x90] ss:$8 sps:$4 sm:$0xff]   ;;  %v16671_v27 = vld [vmem:[#allocation11 + $0x3d4] ss:$8 sps:$4 sm:$0xff]  }
 0x7df   : > { %6185 = vmatpush1.bf16.msra.mxu1 %v16527_v32  ;;  %v16717_v32 = vld [vmem:[%s20324_s6 + $0x34] ss:$8 sps:$4 sm:$0xff]   ;;  %v16663_v54 = vld [vmem:[#allocation11 + $0x3b0] ss:$8 sps:$4 sm:$0xff]   ;;  %v16668_v46 = vld [vmem:[#allocation11 + $0x3c4] ss:$8 sps:$4 sm:$0xff]  }
 0x7e0   : > { %6186 = vmatprep.subr.bf16.mxu1 %v16532_v4  ;;  %8460 = vmatpush1.bf16.msra.mxu0 %v16709_v62  ;;  %v16611_v4 = vld [vmem:[#allocation11 + $0x2b0] ss:$8 sps:$4 sm:$0xff]   ;;  %v16674_v62 = vld [vmem:[#allocation11 + $0x3e4] ss:$8 sps:$4 sm:$0xff]  }
 0x7e1   : > { %8461 = vmatprep.subr.bf16.mxu0 %v16714_v53  ;;  %v16672_v53 = vld [vmem:[#allocation11 + $0x3e0] ss:$8 sps:$4 sm:$0xff]  }
 0x7e3   : > { %6187 = vmatpush1.bf16.msra.mxu1 %v16530_v13  ;;  %v16616_v13 = vld [vmem:[#allocation11 + $0x2c4] ss:$8 sps:$4 sm:$0xff]  }
 0x7e4   : > { %6188 = vmatprep.subr.bf16.mxu1 %v16535_v6  ;;  %8462 = vmatpush1.bf16.msra.mxu0 %v16712_v44  ;;  %v16715_v6 = vld [vmem:[%s20324_s6 + $0x30] ss:$8 sps:$4 sm:$0xff]   ;;  %v16678_v44 = vld [vmem:[#allocation4 + $0x10] ss:$8 sps:$4 sm:$0xff]  }
 0x7e5   : > { %8463 = vmatprep.subr.bf16.mxu0 %v16717_v32  ;;  %v16679_v32 = vld [vmem:[#allocation4 + $0x20] ss:$8 sps:$4 sm:$0xff]  }
 0x7e7   : > { %6189 = vmatpush1.bf16.msra.mxu1 %v16533_v35  ;;  %v16720_v35 = vld [vmem:[%s20324_s6 + $0x44] ss:$8 sps:$4 sm:$0xff]  }
 0x7e8   : > { %6190 = vmatprep.subr.bf16.mxu1 %v16538_v18  ;;  %v16614_v18 = vld [vmem:[#allocation11 + $0x2c0] ss:$8 sps:$4 sm:$0xff]   ;;  %8464 = vmatpush1.bf16.msra.mxu0 %v16715_v6  ;;  %v5272_v6 = vpack.c.bf16 %v16679_v32, %v16678_v44 }
 0x7e9   : > { %8465 = vmatprep.subr.bf16.mxu0 %v16720_v35  ;;  %v16685_v35 = vld [vmem:[#allocation11 + $0x414] ss:$8 sps:$4 sm:$0xff]  }
 0x7eb   : > { %6191 = vmatpush1.bf16.msra.mxu1 %v16536_v22  ;;  %v16619_v22 = vld [vmem:[#allocation11 + $0x2d4] ss:$8 sps:$4 sm:$0xff]  }
 0x7ec   : > { %6192 = vmatprep.subr.bf16.mxu1 %v16541_v36  ;;  %v16718_v36 = vld [vmem:[%s20324_s6 + $0x40] ss:$8 sps:$4 sm:$0xff]  }
 0x7ed   : > { %8466 = vmatpush1.bf16.msra.mxu0 %v16718_v36  ;;  %v16688_v36 = vld [vmem:[#allocation11 + $0x424] ss:$8 sps:$4 sm:$0xff]  }
 0x7ef   : > { %6193 = vmatpush1.bf16.msra.mxu1 %v16539_v12  ;;  %v16723_v12 = vld [vmem:[%s20324_s6 + $0x54] ss:$8 sps:$4 sm:$0xff]  }
 0x7f0   : > { %6194 = vmatprep.subr.bf16.mxu1 %v16544_v39  ;;  %v16617_v39 = vld [vmem:[#allocation11 + $0x2d0] ss:$8 sps:$4 sm:$0xff]   ;;  %8467 = vmatprep.subr.bf16.mxu0 %v16723_v12  ;;  %v16686_v12 = vld [vmem:[#allocation11 + $0x420] ss:$8 sps:$4 sm:$0xff]  }
 0x7f3   : > { %6195 = vmatpush1.bf16.msra.mxu1 %v16542_v56  ;;  %v16622_v56 = vld [vmem:[#allocation11 + $0x2e4] ss:$8 sps:$4 sm:$0xff]  }
 0x7f4   : > { %6196 = vmatprep.subr.bf16.mxu1 %v16547_v60  ;;  %v16721_v60 = vld [vmem:[%s20324_s6 + $0x50] ss:$8 sps:$4 sm:$0xff]  }
 0x7f5   : > { %8468 = vmatpush1.bf16.msra.mxu0 %v16721_v60  ;;  %v16694_v60 = vld [vmem:[#allocation11 + $0x444] ss:$8 sps:$4 sm:$0xff]  }
 0x7f7   : > { %6197 = vmatpush1.bf16.msra.mxu1 %v16545_v29  ;;  %v16726_v29 = vld [vmem:[%s20324_s6 + $0x64] ss:$8 sps:$4 sm:$0xff]  }
 0x7f8   : > { %6198 = vmatprep.subr.bf16.mxu1 %v16550_v3  ;;  %v16620_v3 = vld [vmem:[#allocation11 + $0x2e0] ss:$8 sps:$4 sm:$0xff]   ;;  %8469 = vmatprep.subr.bf16.mxu0 %v16726_v29 }
 0x7f9   : > { %v16692_v29 = vld [vmem:[#allocation11 + $0x440] ss:$8 sps:$4 sm:$0xff]  }
 0x7fb   : > { %6199 = vmatpush1.bf16.msra.mxu1 %v16548_v23  ;;  %v16625_v23 = vld [vmem:[#allocation11 + $0x2f4] ss:$8 sps:$4 sm:$0xff]  }
 0x7fc   : > { %6200 = vmatprep.subr.bf16.mxu1 %v16553_v43  ;;  %v16724_v43 = vld [vmem:[%s20324_s6 + $0x60] ss:$8 sps:$4 sm:$0xff]  }
 0x7fd   : > { %8470 = vmatpush1.bf16.msra.mxu0 %v16724_v43  ;;  %v16700_v43 = vld [vmem:[#allocation11 + $0x464] ss:$8 sps:$4 sm:$0xff]  }
 0x7ff   : > { %6201 = vmatpush1.bf16.msra.mxu1 %v16551_v17  ;;  %v16729_v17 = vld [vmem:[%s20324_s6 + $0x74] ss:$8 sps:$4 sm:$0xff]  }
 0x800   : > { %6202 = vmatprep.subr.bf16.mxu1 %v16556_v0  ;;  %v16623_v0 = vld [vmem:[#allocation11 + $0x2f0] ss:$8 sps:$4 sm:$0xff]   ;;  %8471 = vmatprep.subr.bf16.mxu0 %v16729_v17  ;;  %v16698_v17 = vld [vmem:[#allocation11 + $0x460] ss:$8 sps:$4 sm:$0xff]  }
 0x803   : > { %6203 = vmatpush1.bf16.msra.mxu1 %v16554_v21  ;;  %v16626_v21 = vld [vmem:[#allocation4 + $0x9] ss:$8 sps:$4 sm:$0xff]  }
 0x804   : > { %6204 = vmatprep.subr.bf16.mxu1 %v16559_v38  ;;  %v16627_v38 = vld [vmem:[#allocation4 + $0x19] ss:$8 sps:$4 sm:$0xff]  }
 0x807   : > { %6205 = vmatpush1.bf16.msra.mxu1 %v16557_v48  ;;  %v16630_v48 = vld [vmem:[#allocation11 + $0x304] ss:$8 sps:$4 sm:$0xff]  }
 0x808   : > { %6206 = vmatprep.subr.bf16.mxu1 %v16562_v30  ;;  %v16631_v30 = vld [vmem:[#allocation4 + $0x11] ss:$8 sps:$4 sm:$0xff]  }
 0x80b   : > { %6207 = vmatpush1.bf16.msra.mxu1 %v16560_v31  ;;  %v16632_v31 = vld [vmem:[#allocation4 + $0x21] ss:$8 sps:$4 sm:$0xff]  }
 0x80c   : > { %6208 = vmatprep.subr.bf16.mxu1 %v16565_v26  ;;  %v16727_v26 = vld [vmem:[%s20324_s6 + $0x70] ss:$8 sps:$4 sm:$0xff]  }
 0x80d   : > { %8472 = vmatpush1.bf16.msra.mxu0 %v16727_v26  ;;  %v16741_v26 = vld [vmem:[%s20324_s6 + $0xb4] ss:$8 sps:$4 sm:$0xff]  }
 0x80f   : > { %6209 = vmatpush1.bf16.msra.mxu1 %v16563_v55  ;;  %v16732_v55 = vld [vmem:[%s20324_s6 + $0x84] ss:$8 sps:$4 sm:$0xff]  }
 0x810   : > { %6210 = vmatprep.subr.bf16.mxu1 %v16568_v47  ;;  %v16628_v47 = vld [vmem:[#allocation11 + $0x300] ss:$8 sps:$4 sm:$0xff]   ;;  %8473 = vmatprep.subr.bf16.mxu0 %v16732_v55 }
 0x811   : > { %v16742_v55 = vld [vmem:[%s20324_s6 + $0xc0] ss:$8 sps:$4 sm:$0xff]  }
 0x813   : > { %6211 = vmatpush1.bf16.msra.mxu1 %v16566_v14  ;;  %v5270_v14 = vpack.c.bf16 %v16627_v38, %v16626_v21  ;;  %v16701_v21 = vld [vmem:[#allocation11 + $0x470] ss:$8 sps:$4 sm:$0xff]   ;;  %v16704_v38 = vld [vmem:[#allocation4 + $0x12] ss:$8 sps:$4 sm:$0xff]  }
 0x814   : > { %6212 = vmatprep.subr.bf16.mxu1 %v16571_v61  ;;  %v16635_v61 = vld [vmem:[#allocation11 + $0x314] ss:$8 sps:$4 sm:$0xff]  }
 0x817   : > { %6213 = vmatpush1.bf16.msra.mxu1 %v16569_v11  ;;  %v5273_v11 = vpack.c.bf16 %v16632_v31, %v16631_v30  ;;  %v16739_v31 = vld [vmem:[%s20324_s6 + $0xb0] ss:$8 sps:$4 sm:$0xff]  }
 0x818   : > { %6225 = vmatprep.subr.bf16.mxu1 %v16576_v24  ;;  %v16730_v24 = vld [vmem:[%s20324_s6 + $0x80] ss:$8 sps:$4 sm:$0xff]  }
 0x819   : > { %8474 = vmatpush1.bf16.msra.mxu0 %v16730_v24  ;;  %v16748_v24 = vld [vmem:[%s20324_s6 + $0xe0] ss:$8 sps:$4 sm:$0xff]  }
 0x81a   : > { %6215 = vmatmul.mubr.bf16.vlgmr.msra.gmra.mrb[248].mxu1 %v5268_v10  ;;  %8475 = vmatprep.subr.bf16.mxu0 %v16735_v52  ;;  %v16636_v10 = vld [vmem:[#allocation11 + $0x320] ss:$8 sps:$4 sm:$0xff]   ;;  %v16753_v52 = vld [vmem:[%s20324_s6 + $0xf4] ss:$8 sps:$4 sm:$0xff]  }
 0x81b   : > { %6226 = vmatpush1.bf16.msra.mxu1 %v16574_v41  ;;  %6257 = vmatprep.mubr.bf16.mxu1 %v5271_v59  ;;  %v16738_v41 = vld [vmem:[%s20324_s6 + $0xa4] ss:$8 sps:$4 sm:$0xff]   ;;  %v16736_v59 = vld [vmem:[%s20324_s6 + $0xa0] ss:$8 sps:$4 sm:$0xff]  }
 0x81c   : > { %6227 = vmatprep.subr.bf16.mxu1 %v16581_v1  ;;  %v16641_v1 = vld [vmem:[#allocation11 + $0x334] ss:$8 sps:$4 sm:$0xff]  }
 0x81d   : > { %8476 = vmatpush1.bf16.msra.mxu0 %v16733_v50 }
 0x81e   : > { %8477 = vmatprep.subr.bf16.mxu0 %v16738_v41 }
 0x81f   : > { %6228 = vmatpush1.bf16.msra.mxu1 %v16579_v8  ;;  %v16639_v8 = vld [vmem:[#allocation11 + $0x330] ss:$8 sps:$4 sm:$0xff]  }
 0x820   : > { %6229 = vmatprep.subr.bf16.mxu1 %v16584_v7  ;;  %v16644_v7 = vld [vmem:[#allocation11 + $0x344] ss:$8 sps:$4 sm:$0xff]  }
 0x821   : > { %8478 = vmatpush1.bf16.msra.mxu0 %v16736_v59 }
 0x822   : > { %8479 = vmatprep.subr.bf16.mxu0 %v16741_v26 }
 0x823   : > { %6230 = vmatpush1.bf16.msra.mxu1 %v16582_v63  ;;  %v16642_v63 = vld [vmem:[#allocation11 + $0x340] ss:$8 sps:$4 sm:$0xff]  }
 0x824   : > { %6231 = vmatprep.subr.bf16.mxu1 %v16587_v20  ;;  %v16647_v20 = vld [vmem:[#allocation11 + $0x354] ss:$8 sps:$4 sm:$0xff]  }
 0x825   : > { %8480 = vmatpush1.bf16.msra.mxu0 %v16739_v31 }
 0x827   : > { %6232 = vmatpush1.bf16.msra.mxu1 %v16585_v28  ;;  %v16645_v28 = vld [vmem:[#allocation11 + $0x350] ss:$8 sps:$4 sm:$0xff]  }
 0x828   : > { %6233 = vmatprep.subr.bf16.mxu1 %v16590_v34  ;;  %v16650_v34 = vld [vmem:[#allocation11 + $0x364] ss:$8 sps:$4 sm:$0xff]  }
 0x82b   : > { %6234 = vmatpush1.bf16.msra.mxu1 %v16588_v16  ;;  %v16648_v16 = vld [vmem:[#allocation11 + $0x360] ss:$8 sps:$4 sm:$0xff]  }
 0x82c   : > { %6235 = vmatprep.subr.bf16.mxu1 %v16593_v25  ;;  %v16653_v25 = vld [vmem:[#allocation11 + $0x374] ss:$8 sps:$4 sm:$0xff]  }
 0x82f   : > { %6236 = vmatpush1.bf16.msra.mxu1 %v16591_v45  ;;  %v16651_v45 = vld [vmem:[#allocation11 + $0x370] ss:$8 sps:$4 sm:$0xff]  }
 0x830   : > { %6237 = vmatprep.subr.bf16.mxu1 %v16596_v19  ;;  %v16656_v19 = vld [vmem:[#allocation11 + $0x384] ss:$8 sps:$4 sm:$0xff]  }
 0x833   : > { %6238 = vmatpush1.bf16.msra.mxu1 %v16594_v37  ;;  %v16654_v37 = vld [vmem:[#allocation11 + $0x380] ss:$8 sps:$4 sm:$0xff]  }
 0x834   : > { %6239 = vmatprep.subr.bf16.mxu1 %v16601_v42  ;;  %v16659_v42 = vld [vmem:[#allocation11 + $0x394] ss:$8 sps:$4 sm:$0xff]  }
 0x837   : > { %6240 = vmatpush1.bf16.msra.mxu1 %v16599_v57  ;;  %v16657_v57 = vld [vmem:[#allocation11 + $0x390] ss:$8 sps:$4 sm:$0xff]  }
 0x838   : > { %6241 = vmatprep.subr.bf16.mxu1 %v16604_v51  ;;  %v16662_v51 = vld [vmem:[#allocation11 + $0x3a4] ss:$8 sps:$4 sm:$0xff]  }
 0x83b   : > { %6242 = vmatpush1.bf16.msra.mxu1 %v16602_v9  ;;  %v16660_v9 = vld [vmem:[#allocation11 + $0x3a0] ss:$8 sps:$4 sm:$0xff]  }
 0x83c   : > { %6243 = vmatprep.subr.bf16.mxu1 %v16607_v49  ;;  %v16665_v49 = vld [vmem:[#allocation11 + $0x3b4] ss:$8 sps:$4 sm:$0xff]  }
 0x83f   : > { %6244 = vmatpush1.bf16.msra.mxu1 %v16605_v58  ;;  %v16666_v58 = vld [vmem:[#allocation11 + $0x3c0] ss:$8 sps:$4 sm:$0xff]  }
 0x840   : > { %6245 = vmatprep.subr.bf16.mxu1 %v16610_v15  ;;  %v16669_v15 = vld [vmem:[#allocation11 + $0x3d0] ss:$8 sps:$4 sm:$0xff]  }
 0x843   : > { %6246 = vmatpush1.bf16.msra.mxu1 %v16608_v2  ;;  %v16677_v2 = vld [vmem:[#allocation11 + $0x3f4] ss:$8 sps:$4 sm:$0xff]  }
 0x844   : > { %6247 = vmatprep.subr.bf16.mxu1 %v16613_v5  ;;  %v16675_v5 = vld [vmem:[#allocation11 + $0x3f0] ss:$8 sps:$4 sm:$0xff]  }
 0x847   : > { %6248 = vmatpush1.bf16.msra.mxu1 %v16611_v4  ;;  %v16682_v4 = vld [vmem:[#allocation11 + $0x404] ss:$8 sps:$4 sm:$0xff]  }
 0x848   : > { %6249 = vmatprep.subr.bf16.mxu1 %v16616_v13  ;;  %v16680_v13 = vld [vmem:[#allocation11 + $0x400] ss:$8 sps:$4 sm:$0xff]  }
 0x84b   : > { %6250 = vmatpush1.bf16.msra.mxu1 %v16614_v18  ;;  %v16683_v18 = vld [vmem:[#allocation11 + $0x410] ss:$8 sps:$4 sm:$0xff]  }
 0x84c   : > { %6251 = vmatprep.subr.bf16.mxu1 %v16619_v22  ;;  %v17993_v22 = vmov 0  }
 0x84f   : > { %6252 = vmatpush1.bf16.msra.mxu1 %v16617_v39  ;;  %v16691_v39 = vld [vmem:[#allocation11 + $0x434] ss:$8 sps:$4 sm:$0xff]  }
 0x850   : > { %6253 = vmatprep.subr.bf16.mxu1 %v16622_v56  ;;  %v16689_v56 = vld [vmem:[#allocation11 + $0x430] ss:$8 sps:$4 sm:$0xff]  }
 0x853   : > { %6254 = vmatpush1.bf16.msra.mxu1 %v16620_v3  ;;  %v16697_v3 = vld [vmem:[#allocation11 + $0x454] ss:$8 sps:$4 sm:$0xff]  }
 0x854   : > { %6255 = vmatprep.subr.bf16.mxu1 %v16625_v23  ;;  %v16695_v23 = vld [vmem:[#allocation11 + $0x450] ss:$8 sps:$4 sm:$0xff]  }
 0x857   : > { %6256 = vmatpush1.bf16.msra.mxu1 %v16623_v0  ;;  %v16703_v0 = vld [vmem:[#allocation11 + $0x474] ss:$8 sps:$4 sm:$0xff]  }
 0x858   : > { %6268 = vmatprep.subr.bf16.mxu1 %v16630_v48  ;;  %v16705_v48 = vld [vmem:[#allocation4 + $0x22] ss:$8 sps:$4 sm:$0xff]  }
 0x859   : > { %v5274_v30 = vpack.c.bf16 %v16705_v48, %v16704_v38  ;;  %v16778_v48 = vld [vmem:[%s20324_s6 + $0x124] ss:$8 sps:$4 sm:$0xff]  }
 0x85a   : > { %6258 = vmatmul.mubr.bf16.vlgmr.msra.gmra.mrb[248].mxu1 %v5270_v14  ;;  %v16747_v14 = vld [vmem:[%s20324_s6 + $0xd4] ss:$8 sps:$4 sm:$0xff]  }
 0x85b   : > { %6269 = vmatpush1.bf16.msra.mxu1 %v16628_v47  ;;  %6300 = vmatprep.mubr.bf16.mxu1 %v5273_v11  ;;  %v16744_v47 = vld [vmem:[%s20324_s6 + $0xc4] ss:$8 sps:$4 sm:$0xff]  }
 0x85c   : > { %6270 = vmatprep.subr.bf16.mxu1 %v16635_v61  ;;  %8481 = vmatprep.subr.bf16.mxu0 %v16744_v47  ;;  %v16745_v61 = vld [vmem:[%s20324_s6 + $0xd0] ss:$8 sps:$4 sm:$0xff]   ;;  %v16750_v11 = vld [vmem:[%s20324_s6 + $0xe4] ss:$8 sps:$4 sm:$0xff]  }
 0x85d   : > { %8482 = vmatpush1.bf16.msra.mxu0 %v16742_v55 }
 0x85e   : > { %8483 = vmatprep.subr.bf16.mxu0 %v16747_v14  ;;  %v16776_v14 = vld [vmem:[%s20324_s6 + $0x120] ss:$8 sps:$4 sm:$0xff]  }
 0x85f   : > { %6271 = vmatpush1.bf16.msra.mxu1 %v16633_v33  ;;  %v16751_v33 = vld [vmem:[%s20324_s6 + $0xf0] ss:$8 sps:$4 sm:$0xff]  }
 0x860   : > { %6272 = vmatprep.subr.bf16.mxu1 %v16638_v40  ;;  %v16758_v40 = vld [vmem:[%s20324_s6 + $0x104] ss:$8 sps:$4 sm:$0xff]  }
 0x861   : > { %8484 = vmatpush1.bf16.msra.mxu0 %v16745_v61  ;;  %v16781_v61 = vld [vmem:[%s20324_s6 + $0x134] ss:$8 sps:$4 sm:$0xff]  }
 0x862   : > { %8485 = vmatprep.subr.bf16.mxu0 %v16750_v11 }
 0x863   : > { %6273 = vmatpush1.bf16.msra.mxu1 %v16636_v10 }
 0x864   : > { %6274 = vmatprep.subr.bf16.mxu1 %v16641_v1 }
 0x865   : > { %8486 = vmatpush1.bf16.msra.mxu0 %v16748_v24  ;;  %v16779_v24 = vld [vmem:[%s20324_s6 + $0x130] ss:$8 sps:$4 sm:$0xff]  }
 0x866   : > { %8487 = vmatprep.subr.bf16.mxu0 %v16753_v52  ;;  %v16784_v52 = vld [vmem:[%s20324_s6 + $0x144] ss:$8 sps:$4 sm:$0xff]  }
 0x867   : > { %6275 = vmatpush1.bf16.msra.mxu1 %v16639_v8 }
 0x868   : > { %6276 = vmatprep.subr.bf16.mxu1 %v16644_v7 }
 0x869   : > { %8488 = vmatpush1.bf16.msra.mxu0 %v16751_v33  ;;  %v16782_v33 = vld [vmem:[%s20324_s6 + $0x140] ss:$8 sps:$4 sm:$0xff]  }
 0x86a   : > { %8500 = vmatprep.subr.bf16.mxu0 %v16758_v40  ;;  %v16787_v40 = vld [vmem:[%s20324_s6 + $0x154] ss:$8 sps:$4 sm:$0xff]  }
 0x86b   : > { %6277 = vmatpush1.bf16.msra.mxu1 %v16642_v63 }
 0x86c   : > { %6278 = vmatprep.subr.bf16.mxu1 %v16647_v20 }
 0x86f   : > { %6279 = vmatpush1.bf16.msra.mxu1 %v16645_v28 }
 0x870   : > { %6280 = vmatprep.subr.bf16.mxu1 %v16650_v34 }
 0x873   : > { %6281 = vmatpush1.bf16.msra.mxu1 %v16648_v16 }
 0x874   : > { %6282 = vmatprep.subr.bf16.mxu1 %v16653_v25 }
 0x877   : > { %6283 = vmatpush1.bf16.msra.mxu1 %v16651_v45 }
 0x878   : > { %6284 = vmatprep.subr.bf16.mxu1 %v16656_v19 }
 0x87b   : > { %6285 = vmatpush1.bf16.msra.mxu1 %v16654_v37 }
 0x87c   : > { %6286 = vmatprep.subr.bf16.mxu1 %v16659_v42 }
 0x87f   : > { %6287 = vmatpush1.bf16.msra.mxu1 %v16657_v57 }
 0x880   : > { %6288 = vmatprep.subr.bf16.mxu1 %v16662_v51 }
 0x883   : > { %6289 = vmatpush1.bf16.msra.mxu1 %v16660_v9 }
 0x884   : > { %6290 = vmatprep.subr.bf16.mxu1 %v16665_v49  ;;  %v16764_v49 = vld [vmem:[#allocation5] ss:$8 sps:$4 sm:$0xcc]  }
 0x885   : > { %v13908_v32 = vrot.slane %v16764_v49, 10  ;;  %v16815_v49 = vld [vmem:[%s20324_s6 + $0x1f0] ss:$8 sps:$4 sm:$0xff]  }
 0x887   : > { %6291 = vmatpush1.bf16.msra.mxu1 %v16663_v54  ;;  %v16766_v54 = vld [vmem:[#allocation5 + $0x4] ss:$8 sps:$4 sm:$0x33]  }
 0x888   : > { %6292 = vmatprep.subr.bf16.mxu1 %v16668_v46 }
 0x88b   : > { %6293 = vmatpush1.bf16.msra.mxu1 %v16666_v58 }
 0x88c   : > { %6294 = vmatprep.subr.bf16.mxu1 %v16671_v27 }
 0x88f   : > { %6295 = vmatpush1.bf16.msra.mxu1 %v16669_v15 }
 0x890   : > { %6296 = vmatprep.subr.bf16.mxu1 %v16674_v62  ;;  %v16767_v62 = vld [vmem:[#allocation5 + $0x10] ss:$8 sps:$4 sm:$0xcc]  }
 0x893   : > { %6297 = vmatpush1.bf16.msra.mxu1 %v16672_v53  ;;  %v16769_v53 = vld [vmem:[#allocation5 + $0x14] ss:$8 sps:$4 sm:$0x33]  }
 0x894   : > { %6298 = vmatprep.subr.bf16.mxu1 %v16677_v2  ;;  %v16754_v2 = vld [vmem:[#allocation5 + $0x8] ss:$16 sps:$4 sm:$0xff]  }
 0x897   : > { %6299 = vmatpush1.bf16.msra.mxu1 %v16675_v5  ;;  %v16759_v5 = vld [vmem:[#allocation5] ss:$16 sps:$4 sm:$0xff]  }
 0x898   : > { %6311 = vmatprep.subr.bf16.mxu1 %v16682_v4  ;;  %v6444_v4 = vrot.slane %v16766_v54, 6 }
 0x89a   : > { %6301 = vmatmul.mubr.bf16.vlgmr.msra.gmra.mrb[248].mxu1 %v5272_v6  ;;  %v6448_v6 = vrot.slane %v16769_v53, 6 }
 0x89b   : > { %6312 = vmatpush1.bf16.msra.mxu1 %v16680_v13  ;;  %6343 = vmatprep.mubr.bf16.mxu1 %v17993_v22  ;;  %v13909_v13 = vrot.slane %v16767_v62, 10  ;;  %v16818_v62 = vld [vmem:[%s20324_s6 + $0x200] ss:$8 sps:$4 sm:$0xff]  }
 0x89c   : > { %6313 = vmatprep.subr.bf16.mxu1 %v16685_v35 }
 0x89f   : > { %6314 = vmatpush1.bf16.msra.mxu1 %v16683_v18  ;;  %v16756_v18 = vld [vmem:[%s20324_s6 + $0x100] ss:$8 sps:$4 sm:$0xff]  }
 0x8a0   : > { %6315 = vmatprep.subr.bf16.mxu1 %v16688_v36  ;;  %v16763_v36 = vld [vmem:[%s20324_s6 + $0x114] ss:$8 sps:$4 sm:$0xff]  }
 0x8a3   : > { %6316 = vmatpush1.bf16.msra.mxu1 %v16686_v12 }
 0x8a4   : > { %6317 = vmatprep.subr.bf16.mxu1 %v16691_v39 }
 0x8a7   : > { %6318 = vmatpush1.bf16.msra.mxu1 %v16689_v56 }
 0x8a8   : > { %6319 = vmatprep.subr.bf16.mxu1 %v16694_v60  ;;  %v16761_v60 = vld [vmem:[%s20324_s6 + $0x110] ss:$8 sps:$4 sm:$0xff]  }
 0x8ab   : > { %6320 = vmatpush1.bf16.msra.mxu1 %v16692_v29 }
 0x8ac   : > { %6321 = vmatprep.subr.bf16.mxu1 %v16697_v3 }
 0x8af   : > { %6322 = vmatpush1.bf16.msra.mxu1 %v16695_v23 }
 0x8b0   : > { %6323 = vmatprep.subr.bf16.mxu1 %v16700_v43  ;;  %v19239_v43 = vsel %vm19224_vm4, %v13908_v32, %v6444_v4  ;;  %v16823_v32 = vld [vmem:[%s20324_s6 + $0x210] ss:$8 sps:$4 sm:$0xff]   ;;  %v16828_v4 = vld [vmem:[%s20324_s6 + $0x224] ss:$8 sps:$4 sm:$0xff]  }
 0x8b3   : > { %6324 = vmatpush1.bf16.msra.mxu1 %v16698_v17  ;;  %v19243_v17 = vsel %vm19224_vm4, %v13909_v13, %v6448_v6  ;;  %v16826_v13 = vld [vmem:[%s20324_s6 + $0x220] ss:$8 sps:$4 sm:$0xff]   ;;  %v16831_v6 = vld [vmem:[%s20324_s6 + $0x234] ss:$8 sps:$4 sm:$0xff]  }
 0x8b4   : > { %6325 = vmatprep.subr.bf16.mxu1 %v16703_v0  ;;  %v6648_v26 = vcombine.high %v19239_v43, %v19243_v17  ;;  %v6647_v54 = vcombine.low %v19239_v43, %v19243_v17  ;;  %v16849_v43 = vld [vmem:[%s20324_s6 + $0x294] ss:$8 sps:$4 sm:$0xff]   ;;  %v16847_v17 = vld [vmem:[%s20324_s6 + $0x290] ss:$8 sps:$4 sm:$0xff]  }
 0x8b7   : > { %6326 = vmatpush1.bf16.msra.mxu1 %v16701_v21 }
 0x8ba   : > { %6344 = vmatmul.mubr.bf16.vlgmr.msra.gmra.mrb[248].mxu1 %v5274_v30 }
 0x98d   : > { %v6345_v50 = vpop.f32.mrb[248].mxu1 }
 0x98e   : > { %v6354_v41 = vmax.f32 %v6345_v50, 0.0  ;;  %v6347_v10 = vpop.f32.mrb[249].mxu1  ;;  %v16785_v50 = vld [vmem:[%s20324_s6 + $0x150] ss:$8 sps:$4 sm:$0xff]  }
 0x98f   : > { %v6355_v1 = vmax.f32 %v6347_v10, 0.0  ;;  %v6349_v59 = vpop.f32.mrb[250].mxu1  ;;  %v16788_v10 = vld [vmem:[%s20324_s6 + $0x160] ss:$8 sps:$4 sm:$0xff]  }
 0x990   : > { %v6356_v8 = vmax.f32 %v6349_v59, 0.0  ;;  %v6351_v7 = vpop.f32.mrb[251].mxu1  ;;  %v16791_v59 = vld [vmem:[%s20324_s6 + $0x170] ss:$8 sps:$4 sm:$0xff]  }
 0x991   : > { %v6362_v63 = vcombine.low %v6354_v41, %v6355_v1  ;;  %v6363_v20 = vcombine.high %v6354_v41, %v6355_v1  ;;  %v13904_v28 = vcombine.low %v6355_v1, %v6355_v1  ;;  %v13905_v34 = vcombine.high %v6355_v1, %v6355_v1  ;;  %v16790_v41 = vld [vmem:[%s20324_s6 + $0x164] ss:$8 sps:$4 sm:$0xff]   ;;  %v16793_v1 = vld [vmem:[%s20324_s6 + $0x174] ss:$8 sps:$4 sm:$0xff]  }
 0x992   : > { %v6357_v16 = vmax.f32 %v6351_v7, 0.0  ;;  %v16794_v7 = vld [vmem:[%s20324_s6 + $0x180] ss:$8 sps:$4 sm:$0xff]  }
 0x993   : > { %v6370_v25 = vrot.slane %v6362_v63, 6  ;;  %v6371_v45 = vrot.slane %v13904_v28, 6  ;;  %v6372_v19 = vrot.slane %v6363_v20, 6  ;;  %v6373_v37 = vrot.slane %v13905_v34, 6  ;;  %v16799_v63 = vld [vmem:[%s20324_s6 + $0x194] ss:$8 sps:$4 sm:$0xff]  }
 0x994   : > { %v6364_v42 = vcombine.low %v6356_v8, %v6357_v16  ;;  %v6365_v57 = vcombine.high %v6356_v8, %v6357_v16  ;;  %v13906_v51 = vcombine.low %v6357_v16, %v6357_v16  ;;  %v13907_v9 = vcombine.high %v6357_v16, %v6357_v16  ;;  %v16796_v8 = vld [vmem:[%s20324_s6 + $0x184] ss:$8 sps:$4 sm:$0xff]   ;;  %v16797_v20 = vld [vmem:[%s20324_s6 + $0x190] ss:$8 sps:$4 sm:$0xff]   ;;  %v16800_v34 = vld [vmem:[%s20324_s6 + $0x1a0] ss:$8 sps:$4 sm:$0xff]  }
 0x995   : > { %6387 = vst [vmem:[#allocation5 + $0x20] sm:$0x3c] %v6370_v25  ;;  %6388 = vst [vmem:[#allocation5 + $0x28] sm:$0x3c] %v6371_v45  ;;  %v16802_v28 = vld [vmem:[%s20324_s6 + $0x1a4] ss:$8 sps:$4 sm:$0xff]  }
 0x996   : > { %6389 = vst [vmem:[#allocation5 + $0x30] sm:$0x3c] %v6372_v19  ;;  %6390 = vst [vmem:[#allocation5 + $0x38] sm:$0x3c] %v6373_v37  ;;  %v6374_v46 = vrot.slane %v6364_v42, 6  ;;  %v6375_v58 = vrot.slane %v13906_v51, 6 }
 0x997   : > { %v6376_v27 = vrot.slane %v6365_v57, 6  ;;  %v6377_v15 = vrot.slane %v13907_v9, 6  ;;  %v16805_v16 = vld [vmem:[%s20324_s6 + $0x1b4] ss:$8 sps:$4 sm:$0xff]   ;;  %v16803_v25 = vld [vmem:[%s20324_s6 + $0x1b0] ss:$8 sps:$4 sm:$0xff]  }
 0x998   : > { %6391 = vst [vmem:[#allocation5 + $0x40] sm:$0x3c] %v6374_v46  ;;  %6392 = vst [vmem:[#allocation5 + $0x48] sm:$0x3c] %v6375_v58  ;;  %v16808_v45 = vld [vmem:[%s20324_s6 + $0x1c4] ss:$8 sps:$4 sm:$0xff]  }
 0x999   : > { %6393 = vst [vmem:[#allocation5 + $0x50] sm:$0x3c] %v6376_v27  ;;  %6394 = vst [vmem:[#allocation5 + $0x58] sm:$0x3c] %v6377_v15  ;;  %v16806_v19 = vld [vmem:[%s20324_s6 + $0x1c0] ss:$8 sps:$4 sm:$0xff]  }
 0x99a   : > { %v16811_v37 = vld [vmem:[%s20324_s6 + $0x1d4] ss:$8 sps:$4 sm:$0xff]   ;;  %v16809_v42 = vld [vmem:[%s20324_s6 + $0x1d0] ss:$8 sps:$4 sm:$0xff]   ;;  %v16814_v57 = vld [vmem:[%s20324_s6 + $0x1e4] ss:$8 sps:$4 sm:$0xff]  }
 0x99b   : > { %v16812_v51 = vld [vmem:[%s20324_s6 + $0x1e0] ss:$8 sps:$4 sm:$0xff]   ;;  %v16817_v9 = vld [vmem:[%s20324_s6 + $0x1f4] ss:$8 sps:$4 sm:$0xff]   ;;  %v16820_v58 = vld [vmem:[%s20324_s6 + $0x204] ss:$8 sps:$4 sm:$0xff]  }
 0x99c   : > { %v16770_v56 = vld [vmem:[#allocation5 + $0x20] ss:$8 sps:$4 sm:$0xcc]   ;;  %v16772_v29 = vld [vmem:[#allocation5 + $0x24] ss:$8 sps:$4 sm:$0x33]  }
 0x99d   : > { %v16755_v35 = vld [vmem:[#allocation5 + $0x28] ss:$16 sps:$4 sm:$0xff]   ;;  %v16760_v22 = vld [vmem:[#allocation5 + $0x20] ss:$16 sps:$4 sm:$0xff]   ;;  %v13910_v0 = vrot.slane %v16770_v56, 10  ;;  %v6452_v21 = vrot.slane %v16772_v29, 6 }
 0x99e   : > { %v6712_v12 = vpack.c.bf16 %v16755_v35, %v16754_v2  ;;  %v6711_v39 = vpack.c.bf16 %v16760_v22, %v16759_v5  ;;  %v16773_v3 = vld [vmem:[#allocation5 + $0x30] ss:$8 sps:$4 sm:$0xcc]   ;;  %v16775_v23 = vld [vmem:[#allocation5 + $0x34] ss:$8 sps:$4 sm:$0x33]  }
 0x99f   : > { %v13911_v38 = vrot.slane %v16773_v3, 10  ;;  %v6456_v30 = vrot.slane %v16775_v23, 6  ;;  %v19250_v31 = vsel %vm19224_vm4, %v13910_v0, %v6452_v21  ;;  %v16821_v27 = vld [vmem:[#allocation5 + $0xc] ss:$16 sps:$4 sm:$0xff]   ;;  %v16829_v35 = vld [vmem:[%s20324_s6 + $0x230] ss:$8 sps:$4 sm:$0xff]  }
 0x9a0   : > { %8489 = vmatprep.mubr.bf16.mxu0 %v6712_v12  ;;  %v16822_v15 = vld [vmem:[#allocation5 + $0x2c] ss:$16 sps:$4 sm:$0xff]   ;;  %v16832_v22 = vld [vmem:[%s20324_s6 + $0x240] ss:$8 sps:$4 sm:$0xff]   ;;  %v16835_v12 = vld [vmem:[%s20324_s6 + $0x250] ss:$8 sps:$4 sm:$0xff]  }
 0x9a1   : > { %8490 = vmatmul.mubr.bf16.vlgmr.msra.gmra.mrb[236].mxu0 %v6711_v39  ;;  %v19256_v55 = vsel %vm19224_vm4, %v13911_v38, %v6456_v30  ;;  %v16825_v2 = vld [vmem:[%s20324_s6 + $0x214] ss:$8 sps:$4 sm:$0xff]   ;;  %v6716_v5 = vpack.c.bf16 %v16822_v15, %v16821_v27  ;;  %v16840_v39 = vld [vmem:[%s20324_s6 + $0x264] ss:$8 sps:$4 sm:$0xff]   ;;  %v16838_v56 = vld [vmem:[%s20324_s6 + $0x260] ss:$8 sps:$4 sm:$0xff]  }
 0x9a2   : > { %8501 = vmatpush1.bf16.msra.mxu0 %v16756_v18  ;;  %v6650_v47 = vcombine.high %v19250_v31, %v19256_v55  ;;  %v6649_v46 = vcombine.low %v19250_v31, %v19256_v55  ;;  %v16834_v18 = vld [vmem:[%s20324_s6 + $0x244] ss:$8 sps:$4 sm:$0xff]   ;;  %v16841_v29 = vld [vmem:[%s20324_s6 + $0x270] ss:$8 sps:$4 sm:$0xff]   ;;  %v16844_v23 = vld [vmem:[%s20324_s6 + $0x280] ss:$8 sps:$4 sm:$0xff]  }
 0x9a3   : > { %8502 = vmatprep.subr.bf16.mxu0 %v16763_v36  ;;  %v16837_v36 = vld [vmem:[%s20324_s6 + $0x254] ss:$8 sps:$4 sm:$0xff]   ;;  %v16846_v3 = vld [vmem:[%s20324_s6 + $0x284] ss:$8 sps:$4 sm:$0xff]   ;;  %v16850_v21 = vld [vmem:[%s20324_s6 + $0x2a0] ss:$8 sps:$4 sm:$0xff]  }
 0x9a4   : > { %v6714_v11 = vpack.c.bf16 %v6650_v47, %v6648_v26  ;;  %v6713_v53 = vpack.c.bf16 %v6649_v46, %v6647_v54  ;;  %v16852_v0 = vld [vmem:[%s20324_s6 + $0x2a4] ss:$8 sps:$4 sm:$0xff]   ;;  %v16855_v38 = vld [vmem:[%s20324_s6 + $0x2b4] ss:$8 sps:$4 sm:$0xff]   ;;  %v16856_v31 = vld [vmem:[%s20324_s6 + $0x2c0] ss:$8 sps:$4 sm:$0xff]  }
 0x9a5   : > { %v16858_v30 = vld [vmem:[%s20324_s6 + $0x2c4] ss:$8 sps:$4 sm:$0xff]   ;;  %v16861_v26 = vld [vmem:[%s20324_s6 + $0x2d4] ss:$8 sps:$4 sm:$0xff]   ;;  %v16859_v55 = vld [vmem:[%s20324_s6 + $0x2d0] ss:$8 sps:$4 sm:$0xff]  }
 0x9a6   : > { %8503 = vmatpush1.bf16.msra.mxu0 %v16761_v60  ;;  %8532 = vmatprep.mubr.bf16.mxu0 %v6714_v11  ;;  %v16843_v60 = vld [vmem:[%s20324_s6 + $0x274] ss:$8 sps:$4 sm:$0xff]   ;;  %v16864_v47 = vld [vmem:[%s20324_s6 + $0x2e4] ss:$8 sps:$4 sm:$0xff]   ;;  %v16865_v11 = vld [vmem:[%s20324_s6 + $0x2f0] ss:$8 sps:$4 sm:$0xff]  }
 0x9a7   : > { %8504 = vmatprep.subr.bf16.mxu0 %v16778_v48  ;;  %v16853_v48 = vld [vmem:[%s20324_s6 + $0x2b0] ss:$8 sps:$4 sm:$0xff]   ;;  %v16904_v46 = vld [vmem:[%s20324_s6 + $0x3a4] ss:$8 sps:$4 sm:$0xff]   ;;  %v16907_v27 = vld [vmem:[%s20324_s6 + $0x3b4] ss:$8 sps:$4 sm:$0xff]  }
 0x9a8   : > { %v16899_v54 = vld [vmem:[%s20324_s6 + $0x390] ss:$8 sps:$4 sm:$0xff]  }
 0x9a9   : > { %v16905_v15 = vld [vmem:[%s20324_s6 + $0x3b0] ss:$8 sps:$4 sm:$0xff]  }
 0x9aa   : > { %8505 = vmatpush1.bf16.msra.mxu0 %v16776_v14  ;;  %v16862_v14 = vld [vmem:[%s20324_s6 + $0x2e0] ss:$8 sps:$4 sm:$0xff]  }
 0x9ab   : > { %8506 = vmatprep.subr.bf16.mxu0 %v16781_v61  ;;  %v16867_v61 = vld [vmem:[%s20324_s6 + $0x2f4] ss:$8 sps:$4 sm:$0xff]  }
 0x9ae   : > { %8507 = vmatpush1.bf16.msra.mxu0 %v16779_v24  ;;  %v16868_v24 = vld [vmem:[#allocation5 + $0x4] ss:$16 sps:$4 sm:$0xff]  }
 0x9af   : > { %8508 = vmatprep.subr.bf16.mxu0 %v16784_v52  ;;  %v16869_v52 = vld [vmem:[#allocation5 + $0x24] ss:$16 sps:$4 sm:$0xff]  }
 0x9b2   : > { %8509 = vmatpush1.bf16.msra.mxu0 %v16782_v33  ;;  %v16872_v33 = vld [vmem:[%s20324_s6 + $0x304] ss:$8 sps:$4 sm:$0xff]  }
 0x9b3   : > { %8510 = vmatprep.subr.bf16.mxu0 %v16787_v40  ;;  %v16874_v40 = vld [vmem:[#allocation5 + $0x48] ss:$16 sps:$4 sm:$0xff]  }
 0x9b6   : > { %8511 = vmatpush1.bf16.msra.mxu0 %v16785_v50  ;;  %v16870_v50 = vld [vmem:[%s20324_s6 + $0x300] ss:$8 sps:$4 sm:$0xff]  }
 0x9b7   : > { %8512 = vmatprep.subr.bf16.mxu0 %v16790_v41  ;;  %v16873_v41 = vld [vmem:[#allocation5 + $0x28] ss:$16 sps:$4 sm:$0xff]  }
 0x9ba   : > { %8513 = vmatpush1.bf16.msra.mxu0 %v16788_v10  ;;  %v6715_v10 = vpack.c.bf16 %v16869_v52, %v16868_v24 }
 0x9bb   : > { %8514 = vmatprep.subr.bf16.mxu0 %v16793_v1  ;;  %v16877_v1 = vld [vmem:[%s20324_s6 + $0x314] ss:$8 sps:$4 sm:$0xff]  }
 0x9be   : > { %8515 = vmatpush1.bf16.msra.mxu0 %v16791_v59  ;;  %v6718_v59 = vpack.c.bf16 %v16874_v40, %v16873_v41  ;;  %v16942_v41 = vld [vmem:[%s20324_s6 + $0x424] ss:$8 sps:$4 sm:$0xff]  }
 0x9bf   : > { %8516 = vmatprep.subr.bf16.mxu0 %v16796_v8  ;;  %v16875_v8 = vld [vmem:[%s20324_s6 + $0x310] ss:$8 sps:$4 sm:$0xff]  }
 0x9c2   : > { %8517 = vmatpush1.bf16.msra.mxu0 %v16794_v7  ;;  %v16880_v7 = vld [vmem:[%s20324_s6 + $0x324] ss:$8 sps:$4 sm:$0xff]  }
 0x9c3   : > { %8518 = vmatprep.subr.bf16.mxu0 %v16799_v63  ;;  %v16878_v63 = vld [vmem:[%s20324_s6 + $0x320] ss:$8 sps:$4 sm:$0xff]  }
 0x9c6   : > { %8519 = vmatpush1.bf16.msra.mxu0 %v16797_v20  ;;  %v16883_v20 = vld [vmem:[%s20324_s6 + $0x334] ss:$8 sps:$4 sm:$0xff]  }
 0x9c7   : > { %8520 = vmatprep.subr.bf16.mxu0 %v16802_v28  ;;  %v16881_v28 = vld [vmem:[%s20324_s6 + $0x330] ss:$8 sps:$4 sm:$0xff]  }
 0x9ca   : > { %8521 = vmatpush1.bf16.msra.mxu0 %v16800_v34  ;;  %v16886_v34 = vld [vmem:[%s20324_s6 + $0x344] ss:$8 sps:$4 sm:$0xff]  }
 0x9cb   : > { %8522 = vmatprep.subr.bf16.mxu0 %v16805_v16  ;;  %v16884_v16 = vld [vmem:[%s20324_s6 + $0x340] ss:$8 sps:$4 sm:$0xff]  }
 0x9ce   : > { %8523 = vmatpush1.bf16.msra.mxu0 %v16803_v25  ;;  %v16889_v25 = vld [vmem:[%s20324_s6 + $0x354] ss:$8 sps:$4 sm:$0xff]  }
 0x9cf   : > { %8524 = vmatprep.subr.bf16.mxu0 %v16808_v45  ;;  %v16887_v45 = vld [vmem:[%s20324_s6 + $0x350] ss:$8 sps:$4 sm:$0xff]  }
 0x9d2   : > { %8525 = vmatpush1.bf16.msra.mxu0 %v16806_v19  ;;  %v16892_v19 = vld [vmem:[%s20324_s6 + $0x364] ss:$8 sps:$4 sm:$0xff]  }
 0x9d3   : > { %8526 = vmatprep.subr.bf16.mxu0 %v16811_v37  ;;  %v16890_v37 = vld [vmem:[%s20324_s6 + $0x360] ss:$8 sps:$4 sm:$0xff]  }
 0x9d6   : > { %8527 = vmatpush1.bf16.msra.mxu0 %v16809_v42  ;;  %v16895_v42 = vld [vmem:[%s20324_s6 + $0x374] ss:$8 sps:$4 sm:$0xff]  }
 0x9d7   : > { %8528 = vmatprep.subr.bf16.mxu0 %v16814_v57  ;;  %v16893_v57 = vld [vmem:[%s20324_s6 + $0x370] ss:$8 sps:$4 sm:$0xff]  }
 0x9da   : > { %8529 = vmatpush1.bf16.msra.mxu0 %v16812_v51  ;;  %v16898_v51 = vld [vmem:[%s20324_s6 + $0x384] ss:$8 sps:$4 sm:$0xff]  }
 0x9db   : > { %8530 = vmatprep.subr.bf16.mxu0 %v16817_v9  ;;  %v16896_v9 = vld [vmem:[%s20324_s6 + $0x380] ss:$8 sps:$4 sm:$0xff]  }
 0x9de   : > { %8531 = vmatpush1.bf16.msra.mxu0 %v16815_v49  ;;  %v16901_v49 = vld [vmem:[%s20324_s6 + $0x394] ss:$8 sps:$4 sm:$0xff]  }
 0x9df   : > { %8543 = vmatprep.subr.bf16.mxu0 %v16820_v58  ;;  %v16902_v58 = vld [vmem:[%s20324_s6 + $0x3a0] ss:$8 sps:$4 sm:$0xff]  }
 0x9e1   : > { %8533 = vmatmul.mubr.bf16.vlgmr.msra.gmra.mrb[236].mxu0 %v6713_v53  ;;  %v16908_v53 = vld [vmem:[%s20324_s6 + $0x3c0] ss:$8 sps:$4 sm:$0xff]  }
 0x9e2   : > { %8544 = vmatpush1.bf16.msra.mxu0 %v16818_v62  ;;  %8575 = vmatprep.mubr.bf16.mxu0 %v6716_v5  ;;  %v16910_v62 = vld [vmem:[%s20324_s6 + $0x3c4] ss:$8 sps:$4 sm:$0xff]   ;;  %v16931_v5 = vld [vmem:[#allocation5 + $0x40] ss:$8 sps:$4 sm:$0xcc]  }
 0x9e3   : > { %8545 = vmatprep.subr.bf16.mxu0 %v16825_v2  ;;  %v16913_v2 = vld [vmem:[%s20324_s6 + $0x3d4] ss:$8 sps:$4 sm:$0xff]  }
 0x9e6   : > { %8546 = vmatpush1.bf16.msra.mxu0 %v16823_v32  ;;  %v16933_v32 = vld [vmem:[#allocation5 + $0x44] ss:$8 sps:$4 sm:$0x33]  }
 0x9e7   : > { %8547 = vmatprep.subr.bf16.mxu0 %v16828_v4  ;;  %v16925_v4 = vld [vmem:[#allocation5 + $0x20] ss:$8 sps:$4 sm:$0xcc]  }
 0x9ea   : > { %8548 = vmatpush1.bf16.msra.mxu0 %v16826_v13  ;;  %v16927_v13 = vld [vmem:[#allocation5 + $0x24] ss:$8 sps:$4 sm:$0x33]  }
 0x9eb   : > { %8549 = vmatprep.subr.bf16.mxu0 %v16831_v6  ;;  %v16934_v6 = vld [vmem:[#allocation5 + $0x50] ss:$8 sps:$4 sm:$0xcc]  }
 0x9ee   : > { %8550 = vmatpush1.bf16.msra.mxu0 %v16829_v35  ;;  %v16936_v35 = vld [vmem:[#allocation5 + $0x54] ss:$8 sps:$4 sm:$0x33]  }
 0x9ef   : > { %8551 = vmatprep.subr.bf16.mxu0 %v16834_v18  ;;  %v16911_v18 = vld [vmem:[%s20324_s6 + $0x3d0] ss:$8 sps:$4 sm:$0xff]  }
 0x9f2   : > { %8552 = vmatpush1.bf16.msra.mxu0 %v16832_v22  ;;  %v16928_v22 = vld [vmem:[#allocation5 + $0x30] ss:$8 sps:$4 sm:$0xcc]  }
 0x9f3   : > { %8553 = vmatprep.subr.bf16.mxu0 %v16837_v36  ;;  %v16916_v36 = vld [vmem:[%s20324_s6 + $0x3e4] ss:$8 sps:$4 sm:$0xff]  }
 0x9f6   : > { %8554 = vmatpush1.bf16.msra.mxu0 %v16835_v12  ;;  %v16930_v12 = vld [vmem:[#allocation5 + $0x34] ss:$8 sps:$4 sm:$0x33]  }
 0x9f7   : > { %8555 = vmatprep.subr.bf16.mxu0 %v16840_v39  ;;  %v13914_v39 = vrot.slane %v16931_v5, 10 }
 0x9fa   : > { %8556 = vmatpush1.bf16.msra.mxu0 %v16838_v56  ;;  %v6532_v56 = vrot.slane %v16933_v32, 6  ;;  %v16984_v32 = vld [vmem:[%s20324_s6 + $0x504] ss:$8 sps:$4 sm:$0xff]  }
 0x9fb   : > { %8557 = vmatprep.subr.bf16.mxu0 %v16843_v60  ;;  %v13915_v60 = vrot.slane %v16934_v6, 10  ;;  %v16982_v6 = vld [vmem:[%s20324_s6 + $0x500] ss:$8 sps:$4 sm:$0xff]  }
 0x9fe   : > { %8558 = vmatpush1.bf16.msra.mxu0 %v16841_v29  ;;  %v6536_v29 = vrot.slane %v16936_v35, 6  ;;  %v16985_v35 = vld [vmem:[#allocation5 + $0x2c] ss:$16 sps:$4 sm:$0xff]  }
 0x9ff   : > { %8559 = vmatprep.subr.bf16.mxu0 %v16846_v3  ;;  %v16914_v3 = vld [vmem:[%s20324_s6 + $0x3e0] ss:$8 sps:$4 sm:$0xff]  }
 0xa02   : > { %8560 = vmatpush1.bf16.msra.mxu0 %v16844_v23  ;;  %v16919_v23 = vld [vmem:[%s20324_s6 + $0x3f4] ss:$8 sps:$4 sm:$0xff]  }
 0xa03   : > { %8561 = vmatprep.subr.bf16.mxu0 %v16849_v43  ;;  %v13912_v43 = vrot.slane %v16925_v4, 10  ;;  %v16986_v4 = vld [vmem:[#allocation5 + $0x4c] ss:$16 sps:$4 sm:$0xff]  }
 0xa06   : > { %8562 = vmatpush1.bf16.msra.mxu0 %v16847_v17  ;;  %v6524_v17 = vrot.slane %v16927_v13, 6 }
 0xa07   : > { %8563 = vmatprep.subr.bf16.mxu0 %v16852_v0  ;;  %v13913_v0 = vrot.slane %v16928_v22, 10  ;;  %v16989_v22 = vld [vmem:[%s20324_s6 + $0x514] ss:$8 sps:$4 sm:$0xff]  }
 0xa0a   : > { %8564 = vmatpush1.bf16.msra.mxu0 %v16850_v21  ;;  %v6528_v21 = vrot.slane %v16930_v12, 6  ;;  %v16987_v12 = vld [vmem:[%s20324_s6 + $0x510] ss:$8 sps:$4 sm:$0xff]  }
 0xa0b   : > { %8565 = vmatprep.subr.bf16.mxu0 %v16855_v38  ;;  %v19536_v38 = vsel %vm19224_vm4, %v13914_v39, %v6532_v56  ;;  %v16992_v39 = vld [vmem:[%s20324_s6 + $0x524] ss:$8 sps:$4 sm:$0xff]   ;;  %v16990_v56 = vld [vmem:[%s20324_s6 + $0x520] ss:$8 sps:$4 sm:$0xff]  }
 0xa0e   : > { %8566 = vmatpush1.bf16.msra.mxu0 %v16853_v48  ;;  %v19540_v48 = vsel %vm19224_vm4, %v13915_v60, %v6536_v29  ;;  %v16995_v60 = vld [vmem:[%s20324_s6 + $0x534] ss:$8 sps:$4 sm:$0xff]   ;;  %v16993_v29 = vld [vmem:[%s20324_s6 + $0x530] ss:$8 sps:$4 sm:$0xff]  }
 0xa0f   : > { %8567 = vmatprep.subr.bf16.mxu0 %v16858_v30  ;;  %v16917_v30 = vld [vmem:[%s20324_s6 + $0x3f0] ss:$8 sps:$4 sm:$0xff]   ;;  %v6673_v5 = vcombine.low %v19536_v38, %v19540_v48 }
 0xa12   : > { %8568 = vmatpush1.bf16.msra.mxu0 %v16856_v31  ;;  %v16921_v31 = vld [vmem:[#allocation5 + $0x40] ss:$16 sps:$4 sm:$0xff]  }
 0xa13   : > { %8569 = vmatprep.subr.bf16.mxu0 %v16861_v26  ;;  %v16924_v26 = vld [vmem:[%s20324_s6 + $0x404] ss:$8 sps:$4 sm:$0xff]  }
 0xa16   : > { %8570 = vmatpush1.bf16.msra.mxu0 %v16859_v55  ;;  %v19550_v55 = vsel %vm19224_vm4, %v13912_v43, %v6524_v17  ;;  %v17001_v43 = vld [vmem:[%s20324_s6 + $0x554] ss:$8 sps:$4 sm:$0xff]   ;;  %v16999_v17 = vld [vmem:[%s20324_s6 + $0x550] ss:$8 sps:$4 sm:$0xff]  }
 0xa17   : > { %8571 = vmatprep.subr.bf16.mxu0 %v16864_v47  ;;  %v19554_v47 = vsel %vm19224_vm4, %v13913_v0, %v6528_v21  ;;  %v17004_v0 = vld [vmem:[%s20324_s6 + $0x564] ss:$8 sps:$4 sm:$0xff]   ;;  %v17002_v21 = vld [vmem:[%s20324_s6 + $0x560] ss:$8 sps:$4 sm:$0xff]  }
 0xa18   : > { %v6672_v24 = vcombine.high %v19550_v55, %v19554_v47  ;;  %v6671_v13 = vcombine.low %v19550_v55, %v19554_v47  ;;  %v17011_v55 = vld [vmem:[%s20324_s6 + $0x590] ss:$8 sps:$4 sm:$0xff]   ;;  %v17016_v47 = vld [vmem:[%s20324_s6 + $0x5a4] ss:$8 sps:$4 sm:$0xff]  }
 0xa1a   : > { %8572 = vmatpush1.bf16.msra.mxu0 %v16862_v14  ;;  %v6674_v14 = vcombine.high %v19536_v38, %v19540_v48  ;;  %v17007_v38 = vld [vmem:[%s20324_s6 + $0x574] ss:$8 sps:$4 sm:$0xff]   ;;  %v17005_v48 = vld [vmem:[%s20324_s6 + $0x570] ss:$8 sps:$4 sm:$0xff]  }
 0xa1b   : > { %8573 = vmatprep.subr.bf16.mxu0 %v16867_v61  ;;  %v16920_v61 = vld [vmem:[#allocation5 + $0x20] ss:$16 sps:$4 sm:$0xff]  }
 0xa1c   : > { %v6717_v52 = vpack.c.bf16 %v16921_v31, %v16920_v61  ;;  %v6720_v40 = vpack.c.bf16 %v6674_v14, %v6672_v24  ;;  %v17008_v31 = vld [vmem:[%s20324_s6 + $0x580] ss:$8 sps:$4 sm:$0xff]   ;;  %v17019_v61 = vld [vmem:[%s20324_s6 + $0x5b4] ss:$8 sps:$4 sm:$0xff]   ;;  %v17022_v24 = vld [vmem:[%s20324_s6 + $0x5c4] ss:$8 sps:$4 sm:$0xff]  }
 0xa1d   : > { %v17014_v14 = vld [vmem:[%s20324_s6 + $0x5a0] ss:$8 sps:$4 sm:$0xff]  }
 0xa1e   : > { %8574 = vmatpush1.bf16.msra.mxu0 %v16865_v11  ;;  %v16922_v11 = vld [vmem:[%s20324_s6 + $0x400] ss:$8 sps:$4 sm:$0xff]  }
 0xa1f   : > { %8586 = vmatprep.subr.bf16.mxu0 %v16872_v33  ;;  %v16939_v33 = vld [vmem:[%s20324_s6 + $0x414] ss:$8 sps:$4 sm:$0xff]  }
 0xa21   : > { %8576 = vmatmul.mubr.bf16.vlgmr.msra.gmra.mrb[236].mxu0 %v6715_v10  ;;  %v16940_v10 = vld [vmem:[%s20324_s6 + $0x420] ss:$8 sps:$4 sm:$0xff]  }
 0xa22   : > { %8587 = vmatpush1.bf16.msra.mxu0 %v16870_v50  ;;  %8618 = vmatprep.mubr.bf16.mxu0 %v6718_v59  ;;  %v16937_v50 = vld [vmem:[%s20324_s6 + $0x410] ss:$8 sps:$4 sm:$0xff]  }
 0xa23   : > { %8588 = vmatprep.subr.bf16.mxu0 %v16877_v1  ;;  %v16945_v1 = vld [vmem:[%s20324_s6 + $0x434] ss:$8 sps:$4 sm:$0xff]   ;;  %v16943_v59 = vld [vmem:[%s20324_s6 + $0x430] ss:$8 sps:$4 sm:$0xff]  }
 0xa26   : > { %8589 = vmatpush1.bf16.msra.mxu0 %v16875_v8  ;;  %v16948_v8 = vld [vmem:[%s20324_s6 + $0x444] ss:$8 sps:$4 sm:$0xff]  }
 0xa27   : > { %8590 = vmatprep.subr.bf16.mxu0 %v16880_v7  ;;  %v16946_v7 = vld [vmem:[%s20324_s6 + $0x440] ss:$8 sps:$4 sm:$0xff]  }
 0xa2a   : > { %8591 = vmatpush1.bf16.msra.mxu0 %v16878_v63  ;;  %v16951_v63 = vld [vmem:[%s20324_s6 + $0x454] ss:$8 sps:$4 sm:$0xff]  }
 0xa2b   : > { %8592 = vmatprep.subr.bf16.mxu0 %v16883_v20  ;;  %v16949_v20 = vld [vmem:[%s20324_s6 + $0x450] ss:$8 sps:$4 sm:$0xff]  }
 0xa2e   : > { %8593 = vmatpush1.bf16.msra.mxu0 %v16881_v28  ;;  %v16954_v28 = vld [vmem:[%s20324_s6 + $0x464] ss:$8 sps:$4 sm:$0xff]  }
 0xa2f   : > { %8594 = vmatprep.subr.bf16.mxu0 %v16886_v34  ;;  %v16952_v34 = vld [vmem:[%s20324_s6 + $0x460] ss:$8 sps:$4 sm:$0xff]  }
 0xa32   : > { %8595 = vmatpush1.bf16.msra.mxu0 %v16884_v16  ;;  %v16957_v16 = vld [vmem:[%s20324_s6 + $0x474] ss:$8 sps:$4 sm:$0xff]  }
 0xa33   : > { %8596 = vmatprep.subr.bf16.mxu0 %v16889_v25  ;;  %v16955_v25 = vld [vmem:[%s20324_s6 + $0x470] ss:$8 sps:$4 sm:$0xff]  }
 0xa36   : > { %8597 = vmatpush1.bf16.msra.mxu0 %v16887_v45  ;;  %v16960_v45 = vld [vmem:[%s20324_s6 + $0x484] ss:$8 sps:$4 sm:$0xff]  }
 0xa37   : > { %8598 = vmatprep.subr.bf16.mxu0 %v16892_v19  ;;  %v16958_v19 = vld [vmem:[%s20324_s6 + $0x480] ss:$8 sps:$4 sm:$0xff]  }
 0xa3a   : > { %8599 = vmatpush1.bf16.msra.mxu0 %v16890_v37  ;;  %v16963_v37 = vld [vmem:[%s20324_s6 + $0x494] ss:$8 sps:$4 sm:$0xff]  }
 0xa3b   : > { %8600 = vmatprep.subr.bf16.mxu0 %v16895_v42  ;;  %v16961_v42 = vld [vmem:[%s20324_s6 + $0x490] ss:$8 sps:$4 sm:$0xff]  }
 0xa3e   : > { %8601 = vmatpush1.bf16.msra.mxu0 %v16893_v57  ;;  %v16966_v57 = vld [vmem:[%s20324_s6 + $0x4a4] ss:$8 sps:$4 sm:$0xff]  }
 0xa3f   : > { %8602 = vmatprep.subr.bf16.mxu0 %v16898_v51  ;;  %v16964_v51 = vld [vmem:[%s20324_s6 + $0x4a0] ss:$8 sps:$4 sm:$0xff]  }
 0xa42   : > { %8603 = vmatpush1.bf16.msra.mxu0 %v16896_v9  ;;  %v16969_v9 = vld [vmem:[%s20324_s6 + $0x4b4] ss:$8 sps:$4 sm:$0xff]  }
 0xa43   : > { %8604 = vmatprep.subr.bf16.mxu0 %v16901_v49  ;;  %v16967_v49 = vld [vmem:[%s20324_s6 + $0x4b0] ss:$8 sps:$4 sm:$0xff]  }
 0xa46   : > { %8605 = vmatpush1.bf16.msra.mxu0 %v16899_v54  ;;  %v16972_v54 = vld [vmem:[%s20324_s6 + $0x4c4] ss:$8 sps:$4 sm:$0xff]  }
 0xa47   : > { %8606 = vmatprep.subr.bf16.mxu0 %v16904_v46  ;;  %v16970_v46 = vld [vmem:[%s20324_s6 + $0x4c0] ss:$8 sps:$4 sm:$0xff]  }
 0xa4a   : > { %8607 = vmatpush1.bf16.msra.mxu0 %v16902_v58  ;;  %v16975_v58 = vld [vmem:[%s20324_s6 + $0x4d4] ss:$8 sps:$4 sm:$0xff]  }
 0xa4b   : > { %8608 = vmatprep.subr.bf16.mxu0 %v16907_v27  ;;  %v16973_v27 = vld [vmem:[%s20324_s6 + $0x4d0] ss:$8 sps:$4 sm:$0xff]  }
 0xa4e   : > { %8609 = vmatpush1.bf16.msra.mxu0 %v16905_v15  ;;  %v16978_v15 = vld [vmem:[%s20324_s6 + $0x4e4] ss:$8 sps:$4 sm:$0xff]  }
 0xa4f   : > { %8610 = vmatprep.subr.bf16.mxu0 %v16910_v62  ;;  %v16976_v62 = vld [vmem:[%s20324_s6 + $0x4e0] ss:$8 sps:$4 sm:$0xff]  }
 0xa52   : > { %8611 = vmatpush1.bf16.msra.mxu0 %v16908_v53  ;;  %v16981_v53 = vld [vmem:[%s20324_s6 + $0x4f4] ss:$8 sps:$4 sm:$0xff]  }
 0xa53   : > { %8612 = vmatprep.subr.bf16.mxu0 %v16913_v2  ;;  %v16979_v2 = vld [vmem:[%s20324_s6 + $0x4f0] ss:$8 sps:$4 sm:$0xff]  }
 0xa56   : > { %8613 = vmatpush1.bf16.msra.mxu0 %v16911_v18  ;;  %v6719_v18 = vpack.c.bf16 %v6673_v5, %v6671_v13  ;;  %v17063_v5 = vld [vmem:[%s20324_s6 + $0x690] ss:$8 sps:$4 sm:$0xff]   ;;  %v17071_v13 = vld [vmem:[%s20324_s6 + $0x6b4] ss:$8 sps:$4 sm:$0xff]  }
 0xa57   : > { %8614 = vmatprep.subr.bf16.mxu0 %v16916_v36  ;;  %v6722_v36 = vpack.c.bf16 %v16986_v4, %v16985_v35  ;;  %v17066_v4 = vld [vmem:[%s20324_s6 + $0x6a0] ss:$8 sps:$4 sm:$0xff]   ;;  %v17074_v35 = vld [vmem:[%s20324_s6 + $0x6c4] ss:$8 sps:$4 sm:$0xff]  }
 0xa5a   : > { %8615 = vmatpush1.bf16.msra.mxu0 %v16914_v3  ;;  %v16998_v3 = vld [vmem:[%s20324_s6 + $0x544] ss:$8 sps:$4 sm:$0xff]  }
 0xa5b   : > { %8616 = vmatprep.subr.bf16.mxu0 %v16919_v23  ;;  %v16996_v23 = vld [vmem:[%s20324_s6 + $0x540] ss:$8 sps:$4 sm:$0xff]  }
 0xa5e   : > { %8617 = vmatpush1.bf16.msra.mxu0 %v16917_v30  ;;  %v17010_v30 = vld [vmem:[%s20324_s6 + $0x584] ss:$8 sps:$4 sm:$0xff]  }
 0xa5f   : > { %8629 = vmatprep.subr.bf16.mxu0 %v16924_v26  ;;  %v17013_v26 = vld [vmem:[%s20324_s6 + $0x594] ss:$8 sps:$4 sm:$0xff]  }
 0xa61   : > { %8619 = vmatmul.mubr.bf16.vlgmr.msra.gmra.mrb[236].mxu0 %v6717_v52  ;;  %v17020_v52 = vld [vmem:[%s20324_s6 + $0x5c0] ss:$8 sps:$4 sm:$0xff]  }
 0xa62   : > { %8630 = vmatpush1.bf16.msra.mxu0 %v16922_v11  ;;  %8661 = vmatprep.mubr.bf16.mxu0 %v6720_v40  ;;  %v17017_v11 = vld [vmem:[%s20324_s6 + $0x5b0] ss:$8 sps:$4 sm:$0xff]  }
 0xa63   : > { %8631 = vmatprep.subr.bf16.mxu0 %v16939_v33  ;;  %v17025_v33 = vld [vmem:[%s20324_s6 + $0x5d4] ss:$8 sps:$4 sm:$0xff]   ;;  %v17023_v40 = vld [vmem:[%s20324_s6 + $0x5d0] ss:$8 sps:$4 sm:$0xff]  }
 0xa66   : > { %8632 = vmatpush1.bf16.msra.mxu0 %v16937_v50  ;;  %v17028_v50 = vld [vmem:[%s20324_s6 + $0x5e4] ss:$8 sps:$4 sm:$0xff]  }
 0xa67   : > { %8633 = vmatprep.subr.bf16.mxu0 %v16942_v41  ;;  %v17026_v41 = vld [vmem:[%s20324_s6 + $0x5e0] ss:$8 sps:$4 sm:$0xff]  }
 0xa6a   : > { %8634 = vmatpush1.bf16.msra.mxu0 %v16940_v10  ;;  %v17031_v10 = vld [vmem:[%s20324_s6 + $0x5f4] ss:$8 sps:$4 sm:$0xff]  }
 0xa6b   : > { %8635 = vmatprep.subr.bf16.mxu0 %v16945_v1  ;;  %v17029_v1 = vld [vmem:[%s20324_s6 + $0x5f0] ss:$8 sps:$4 sm:$0xff]  }
 0xa6e   : > { %8636 = vmatpush1.bf16.msra.mxu0 %v16943_v59  ;;  %v17033_v59 = vld [vmem:[#allocation5 + $0x44] ss:$16 sps:$4 sm:$0xff]  }
 0xa6f   : > { %8637 = vmatprep.subr.bf16.mxu0 %v16948_v8  ;;  %v17036_v8 = vld [vmem:[%s20324_s6 + $0x604] ss:$8 sps:$4 sm:$0xff]  }
 0xa72   : > { %8638 = vmatpush1.bf16.msra.mxu0 %v16946_v7  ;;  %v17037_v7 = vld [vmem:[#allocation5 + $0x48] ss:$16 sps:$4 sm:$0xff]  }
 0xa73   : > { %8639 = vmatprep.subr.bf16.mxu0 %v16951_v63  ;;  %v17038_v63 = vld [vmem:[#allocation5 + $0x68] ss:$16 sps:$4 sm:$0xff]  }
 0xa76   : > { %8640 = vmatpush1.bf16.msra.mxu0 %v16949_v20  ;;  %v17032_v20 = vld [vmem:[#allocation5 + $0x24] ss:$16 sps:$4 sm:$0xff]  }
 0xa77   : > { %8641 = vmatprep.subr.bf16.mxu0 %v16954_v28  ;;  %v17034_v28 = vld [vmem:[%s20324_s6 + $0x600] ss:$8 sps:$4 sm:$0xff]  }
 0xa7a   : > { %8642 = vmatpush1.bf16.msra.mxu0 %v16952_v34  ;;  %v6721_v34 = vpack.c.bf16 %v17033_v59, %v17032_v20  ;;  %v17086_v59 = vld [vmem:[%s20324_s6 + $0x700] ss:$8 sps:$4 sm:$0xff]  }
 0xa7b   : > { %8643 = vmatprep.subr.bf16.mxu0 %v16957_v16  ;;  %v17041_v16 = vld [vmem:[%s20324_s6 + $0x614] ss:$8 sps:$4 sm:$0xff]   ;;  %v17198_v20 = vld [vmem:[#allocation13] ss:$8 sps:$4 sm:$0xff]  }
 0xa7e   : > { %8644 = vmatpush1.bf16.msra.mxu0 %v16955_v25  ;;  %v6724_v25 = vpack.c.bf16 %v17038_v63, %v17037_v7  ;;  %v17103_v7 = vld [vmem:[%s20324_s6 + $0x714] ss:$8 sps:$4 sm:$0xff]  }
 0xa7f   : > { %8645 = vmatprep.subr.bf16.mxu0 %v16960_v45  ;;  %v17039_v45 = vld [vmem:[%s20324_s6 + $0x610] ss:$8 sps:$4 sm:$0xff]  }
 0xa82   : > { %8646 = vmatpush1.bf16.msra.mxu0 %v16958_v19  ;;  %v17044_v19 = vld [vmem:[%s20324_s6 + $0x624] ss:$8 sps:$4 sm:$0xff]  }
 0xa83   : > { %8647 = vmatprep.subr.bf16.mxu0 %v16963_v37  ;;  %v17042_v37 = vld [vmem:[%s20324_s6 + $0x620] ss:$8 sps:$4 sm:$0xff]  }
 0xa86   : > { %8648 = vmatpush1.bf16.msra.mxu0 %v16961_v42  ;;  %v17047_v42 = vld [vmem:[%s20324_s6 + $0x634] ss:$8 sps:$4 sm:$0xff]  }
 0xa87   : > { %8649 = vmatprep.subr.bf16.mxu0 %v16966_v57  ;;  %v17045_v57 = vld [vmem:[%s20324_s6 + $0x630] ss:$8 sps:$4 sm:$0xff]  }
 0xa8a   : > { %8650 = vmatpush1.bf16.msra.mxu0 %v16964_v51  ;;  %v17050_v51 = vld [vmem:[%s20324_s6 + $0x644] ss:$8 sps:$4 sm:$0xff]  }
 0xa8b   : > { %8651 = vmatprep.subr.bf16.mxu0 %v16969_v9  ;;  %v17048_v9 = vld [vmem:[%s20324_s6 + $0x640] ss:$8 sps:$4 sm:$0xff]  }
 0xa8e   : > { %8652 = vmatpush1.bf16.msra.mxu0 %v16967_v49  ;;  %v17053_v49 = vld [vmem:[%s20324_s6 + $0x654] ss:$8 sps:$4 sm:$0xff]  }
 0xa8f   : > { %8653 = vmatprep.subr.bf16.mxu0 %v16972_v54  ;;  %v17051_v54 = vld [vmem:[%s20324_s6 + $0x650] ss:$8 sps:$4 sm:$0xff]  }
 0xa92   : > { %8654 = vmatpush1.bf16.msra.mxu0 %v16970_v46  ;;  %v17056_v46 = vld [vmem:[%s20324_s6 + $0x664] ss:$8 sps:$4 sm:$0xff]  }
 0xa93   : > { %8655 = vmatprep.subr.bf16.mxu0 %v16975_v58  ;;  %v17054_v58 = vld [vmem:[%s20324_s6 + $0x660] ss:$8 sps:$4 sm:$0xff]  }
 0xa96   : > { %8656 = vmatpush1.bf16.msra.mxu0 %v16973_v27  ;;  %v17059_v27 = vld [vmem:[%s20324_s6 + $0x674] ss:$8 sps:$4 sm:$0xff]  }
 0xa97   : > { %8657 = vmatprep.subr.bf16.mxu0 %v16978_v15  ;;  %v17057_v15 = vld [vmem:[%s20324_s6 + $0x670] ss:$8 sps:$4 sm:$0xff]  }
 0xa9a   : > { %8658 = vmatpush1.bf16.msra.mxu0 %v16976_v62  ;;  %v17062_v62 = vld [vmem:[%s20324_s6 + $0x684] ss:$8 sps:$4 sm:$0xff]  }
 0xa9b   : > { %8659 = vmatprep.subr.bf16.mxu0 %v16981_v53  ;;  %v17060_v53 = vld [vmem:[%s20324_s6 + $0x680] ss:$8 sps:$4 sm:$0xff]  }
 0xa9e   : > { %8660 = vmatpush1.bf16.msra.mxu0 %v16979_v2  ;;  %v17065_v2 = vld [vmem:[%s20324_s6 + $0x694] ss:$8 sps:$4 sm:$0xff]  }
 0xa9f   : > { %8672 = vmatprep.subr.bf16.mxu0 %v16984_v32  ;;  %v17068_v32 = vld [vmem:[%s20324_s6 + $0x6a4] ss:$8 sps:$4 sm:$0xff]  }
 0xaa1   : > { %8662 = vmatmul.mubr.bf16.vlgmr.msra.gmra.mrb[236].mxu0 %v6719_v18  ;;  %v17072_v18 = vld [vmem:[%s20324_s6 + $0x6c0] ss:$8 sps:$4 sm:$0xff]  }
 0xaa2   : > { %8673 = vmatpush1.bf16.msra.mxu0 %v16982_v6  ;;  %8704 = vmatprep.mubr.bf16.mxu0 %v6722_v36  ;;  %v17069_v6 = vld [vmem:[%s20324_s6 + $0x6b0] ss:$8 sps:$4 sm:$0xff]   ;;  %v17097_v36 = vld [vmem:[#allocation5 + $0x64] ss:$8 sps:$4 sm:$0x33]  }
 0xaa3   : > { %8674 = vmatprep.subr.bf16.mxu0 %v16989_v22  ;;  %v17095_v22 = vld [vmem:[#allocation5 + $0x60] ss:$8 sps:$4 sm:$0xcc]  }
 0xaa6   : > { %8675 = vmatpush1.bf16.msra.mxu0 %v16987_v12  ;;  %v17098_v12 = vld [vmem:[#allocation5 + $0x70] ss:$8 sps:$4 sm:$0xcc]  }
 0xaa7   : > { %8676 = vmatprep.subr.bf16.mxu0 %v16992_v39  ;;  %v17077_v39 = vld [vmem:[%s20324_s6 + $0x6d4] ss:$8 sps:$4 sm:$0xff]  }
 0xaaa   : > { %8677 = vmatpush1.bf16.msra.mxu0 %v16990_v56  ;;  %v17100_v56 = vld [vmem:[#allocation5 + $0x74] ss:$8 sps:$4 sm:$0x33]  }
 0xaab   : > { %8678 = vmatprep.subr.bf16.mxu0 %v16995_v60  ;;  %v17089_v60 = vld [vmem:[#allocation5 + $0x40] ss:$8 sps:$4 sm:$0xcc]  }
 0xaae   : > { %8679 = vmatpush1.bf16.msra.mxu0 %v16993_v29  ;;  %v17091_v29 = vld [vmem:[#allocation5 + $0x44] ss:$8 sps:$4 sm:$0x33]  }
 0xaaf   : > { %8680 = vmatprep.subr.bf16.mxu0 %v16998_v3  ;;  %v17092_v3 = vld [vmem:[#allocation5 + $0x50] ss:$8 sps:$4 sm:$0xcc]  }
 0xab2   : > { %8681 = vmatpush1.bf16.msra.mxu0 %v16996_v23  ;;  %v17094_v23 = vld [vmem:[#allocation5 + $0x54] ss:$8 sps:$4 sm:$0x33]  }
 0xab3   : > { %8682 = vmatprep.subr.bf16.mxu0 %v17001_v43  ;;  %v17075_v43 = vld [vmem:[%s20324_s6 + $0x6d0] ss:$8 sps:$4 sm:$0xff]  }
 0xab6   : > { %8683 = vmatpush1.bf16.msra.mxu0 %v16999_v17  ;;  %v17080_v17 = vld [vmem:[%s20324_s6 + $0x6e4] ss:$8 sps:$4 sm:$0xff]  }
 0xab7   : > { %8684 = vmatprep.subr.bf16.mxu0 %v17004_v0  ;;  %v13918_v0 = vrot.slane %v17095_v22, 10  ;;  %v17124_v22 = vld [vmem:[%s20324_s6 + $0x784] ss:$8 sps:$4 sm:$0xff]  }
 0xaba   : > { %8685 = vmatpush1.bf16.msra.mxu0 %v17002_v21  ;;  %v6613_v21 = vrot.slane %v17097_v36, 6  ;;  %v17219_v36 = vld [vmem:[#allocation13 + $0x70] ss:$8 sps:$4 sm:$0xff]  }
 0xabb   : > { %8686 = vmatprep.subr.bf16.mxu0 %v17007_v38  ;;  %v13919_v38 = vrot.slane %v17098_v12, 10  ;;  %v17224_v12 = vld [vmem:[#allocation13 + $0x84] ss:$8 sps:$4 sm:$0xff]  }
 0xabe   : > { %8687 = vmatpush1.bf16.msra.mxu0 %v17005_v48  ;;  %v6617_v48 = vrot.slane %v17100_v56, 6  ;;  %v17127_v56 = vld [vmem:[%s20324_s6 + $0x794] ss:$8 sps:$4 sm:$0xff]  }
 0xabf   : > { %8688 = vmatprep.subr.bf16.mxu0 %v17010_v30  ;;  %v13916_v30 = vrot.slane %v17089_v60, 10  ;;  %v17222_v60 = vld [vmem:[#allocation13 + $0x80] ss:$8 sps:$4 sm:$0xff]  }
 0xac2   : > { %8689 = vmatpush1.bf16.msra.mxu0 %v17008_v31  ;;  %v6605_v31 = vrot.slane %v17091_v29, 6  ;;  %v17227_v29 = vld [vmem:[#allocation13 + $0x94] ss:$8 sps:$4 sm:$0xff]  }
 0xac3   : > { %8690 = vmatprep.subr.bf16.mxu0 %v17013_v26  ;;  %v13917_v26 = vrot.slane %v17092_v3, 10  ;;  %v17125_v3 = vld [vmem:[%s20324_s6 + $0x790] ss:$8 sps:$4 sm:$0xff]  }
 0xac6   : > { %8691 = vmatpush1.bf16.msra.mxu0 %v17011_v55  ;;  %v6609_v55 = vrot.slane %v17094_v23, 6  ;;  %v17130_v23 = vld [vmem:[%s20324_s6 + $0x7a4] ss:$8 sps:$4 sm:$0xff]  }
 0xac7   : > { %8692 = vmatprep.subr.bf16.mxu0 %v17016_v47  ;;  %v17078_v47 = vld [vmem:[%s20324_s6 + $0x6e0] ss:$8 sps:$4 sm:$0xff]  }
 0xaca   : > { %8693 = vmatpush1.bf16.msra.mxu0 %v17014_v14  ;;  %v17083_v14 = vld [vmem:[%s20324_s6 + $0x6f4] ss:$8 sps:$4 sm:$0xff]  }
 0xacb   : > { %8694 = vmatprep.subr.bf16.mxu0 %v17019_v61  ;;  %v19848_v61 = vsel %vm19224_vm4, %v13916_v30, %v6605_v31  ;;  %v17136_v30 = vld [vmem:[%s20324_s6 + $0x7c4] ss:$8 sps:$4 sm:$0xff]   ;;  %v17134_v31 = vld [vmem:[%s20324_s6 + $0x7c0] ss:$8 sps:$4 sm:$0xff]  }
 0xace   : > { %8695 = vmatpush1.bf16.msra.mxu0 %v17017_v11  ;;  %v19852_v11 = vsel %vm19224_vm4, %v13917_v26, %v6609_v55  ;;  %v17139_v26 = vld [vmem:[%s20324_s6 + $0x7d4] ss:$8 sps:$4 sm:$0xff]   ;;  %v17137_v55 = vld [vmem:[%s20324_s6 + $0x7d0] ss:$8 sps:$4 sm:$0xff]  }
 0xacf   : > { %8696 = vmatprep.subr.bf16.mxu0 %v17022_v24  ;;  %v19856_v24 = vsel %vm19224_vm4, %v13918_v0, %v6613_v21  ;;  %v17128_v0 = vld [vmem:[%s20324_s6 + $0x7a0] ss:$8 sps:$4 sm:$0xff]   ;;  %v17133_v21 = vld [vmem:[%s20324_s6 + $0x7b4] ss:$8 sps:$4 sm:$0xff]  }
 0xad2   : > { %8697 = vmatpush1.bf16.msra.mxu0 %v17020_v52  ;;  %v19860_v52 = vsel %vm19224_vm4, %v13919_v38, %v6617_v48  ;;  %v17228_v38 = vld [vmem:[#allocation13 + $0xa0] ss:$8 sps:$4 sm:$0xff]   ;;  %v17131_v48 = vld [vmem:[%s20324_s6 + $0x7b0] ss:$8 sps:$4 sm:$0xff]  }
 0xad3   : > { %8698 = vmatprep.subr.bf16.mxu0 %v17025_v33  ;;  %v17081_v33 = vld [vmem:[%s20324_s6 + $0x6f0] ss:$8 sps:$4 sm:$0xff]  }
 0xad6   : > { %8699 = vmatpush1.bf16.msra.mxu0 %v17023_v40  ;;  %v17084_v40 = vld [vmem:[#allocation5 + $0x40] ss:$16 sps:$4 sm:$0xff]  }
 0xad7   : > { %8700 = vmatprep.subr.bf16.mxu0 %v17028_v50  ;;  %v17085_v50 = vld [vmem:[#allocation5 + $0x60] ss:$16 sps:$4 sm:$0xff]  }
 0xada   : > { %8701 = vmatpush1.bf16.msra.mxu0 %v17026_v41  ;;  %v17088_v41 = vld [vmem:[%s20324_s6 + $0x704] ss:$8 sps:$4 sm:$0xff]  }
 0xadb   : > { %8702 = vmatprep.subr.bf16.mxu0 %v17031_v10  ;;  %v6696_v10 = vcombine.high %v19848_v61, %v19852_v11 }
 0xade   : > { %8703 = vmatpush1.bf16.msra.mxu0 %v17029_v1  ;;  %v6698_v1 = vcombine.high %v19856_v24, %v19860_v52 }
 0xadf   : > { %8715 = vmatprep.subr.bf16.mxu0 %v17036_v8  ;;  %v6723_v8 = vpack.c.bf16 %v17085_v50, %v17084_v40  ;;  %v17143_v40 = vld [vmem:[%s20324_s6 + $0x7f0] ss:$8 sps:$4 sm:$0xff]   ;;  %v6695_v50 = vcombine.low %v19848_v61, %v19852_v11  ;;  %v17153_v61 = vld [vmem:[%s20324_s6 + $0x814] ss:$8 sps:$4 sm:$0xff]  }
 0xae0   : > { %v6726_v63 = vpack.c.bf16 %v6698_v1, %v6696_v10  ;;  %v17148_v10 = vld [vmem:[%s20324_s6 + $0x804] ss:$8 sps:$4 sm:$0xff]  }
 0xae1   : > { %8705 = vmatmul.mubr.bf16.vlgmr.msra.gmra.mrb[236].mxu0 %v6721_v34  ;;  %v17101_v34 = vld [vmem:[%s20324_s6 + $0x710] ss:$8 sps:$4 sm:$0xff]   ;;  %v17149_v1 = vld [vmem:[#allocation5 + $0x4c] ss:$16 sps:$4 sm:$0xff]  }
 0xae2   : > { %8716 = vmatpush1.bf16.msra.mxu0 %v17034_v28  ;;  %8747 = vmatprep.mubr.bf16.mxu0 %v6724_v25  ;;  %v17200_v28 = vld [vmem:[#allocation13 + $0x4] ss:$8 sps:$4 sm:$0xff]  }
 0xae3   : > { %8717 = vmatprep.subr.bf16.mxu0 %v17041_v16  ;;  %v17203_v16 = vld [vmem:[#allocation13 + $0x14] ss:$8 sps:$4 sm:$0xff]   ;;  %v17106_v25 = vld [vmem:[%s20324_s6 + $0x724] ss:$8 sps:$4 sm:$0xff]   ;;  %10942 = vmatprep.subr.bf16.mxu1 %v17200_v28  ;;  %v17157_v28 = vld [vmem:[%s20324_s6 + $0x830] ss:$8 sps:$4 sm:$0xff]  }
 0xae4   : > { %10943 = vmatpush1.bf16.msra.mxu1 %v17198_v20  ;;  %v17159_v20 = vld [vmem:[%s20324_s6 + $0x834] ss:$8 sps:$4 sm:$0xff]  }
 0xae5   : > { %10944 = vmatprep.subr.bf16.mxu1 %v17203_v16  ;;  %v17160_v16 = vld [vmem:[%s20324_s6 + $0x840] ss:$8 sps:$4 sm:$0xff]  }
 0xae6   : > { %8718 = vmatpush1.bf16.msra.mxu0 %v17039_v45  ;;  %v17201_v45 = vld [vmem:[#allocation13 + $0x10] ss:$8 sps:$4 sm:$0xff]  }
 0xae7   : > { %8719 = vmatprep.subr.bf16.mxu0 %v17044_v19  ;;  %v17206_v19 = vld [vmem:[#allocation13 + $0x24] ss:$8 sps:$4 sm:$0xff]  }
 0xae8   : > { %10945 = vmatpush1.bf16.msra.mxu1 %v17201_v45  ;;  %v17163_v45 = vld [vmem:[%s20324_s6 + $0x850] ss:$8 sps:$4 sm:$0xff]  }
 0xae9   : > { %10946 = vmatprep.subr.bf16.mxu1 %v17206_v19  ;;  %v17168_v19 = vld [vmem:[%s20324_s6 + $0x864] ss:$8 sps:$4 sm:$0xff]  }
 0xaea   : > { %8720 = vmatpush1.bf16.msra.mxu0 %v17042_v37  ;;  %v17104_v37 = vld [vmem:[%s20324_s6 + $0x720] ss:$8 sps:$4 sm:$0xff]  }
 0xaeb   : > { %8721 = vmatprep.subr.bf16.mxu0 %v17047_v42  ;;  %v17109_v42 = vld [vmem:[%s20324_s6 + $0x734] ss:$8 sps:$4 sm:$0xff]  }
 0xaee   : > { %8722 = vmatpush1.bf16.msra.mxu0 %v17045_v57  ;;  %v17204_v57 = vld [vmem:[#allocation13 + $0x20] ss:$8 sps:$4 sm:$0xff]  }
 0xaef   : > { %8723 = vmatprep.subr.bf16.mxu0 %v17050_v51  ;;  %v17209_v51 = vld [vmem:[#allocation13 + $0x34] ss:$8 sps:$4 sm:$0xff]   ;;  %10947 = vmatpush1.bf16.msra.mxu1 %v17204_v57  ;;  %v17169_v57 = vld [vmem:[%s20324_s6 + $0x870] ss:$8 sps:$4 sm:$0xff]  }
 0xaf0   : > { %10948 = vmatprep.subr.bf16.mxu1 %v17209_v51  ;;  %v17174_v51 = vld [vmem:[%s20324_s6 + $0x884] ss:$8 sps:$4 sm:$0xff]  }
 0xaf2   : > { %8724 = vmatpush1.bf16.msra.mxu0 %v17048_v9  ;;  %v17107_v9 = vld [vmem:[%s20324_s6 + $0x730] ss:$8 sps:$4 sm:$0xff]  }
 0xaf3   : > { %8725 = vmatprep.subr.bf16.mxu0 %v17053_v49  ;;  %v17112_v49 = vld [vmem:[%s20324_s6 + $0x744] ss:$8 sps:$4 sm:$0xff]  }
 0xaf6   : > { %8726 = vmatpush1.bf16.msra.mxu0 %v17051_v54  ;;  %v17207_v54 = vld [vmem:[#allocation13 + $0x30] ss:$8 sps:$4 sm:$0xff]  }
 0xaf7   : > { %8727 = vmatprep.subr.bf16.mxu0 %v17056_v46  ;;  %v17212_v46 = vld [vmem:[#allocation13 + $0x44] ss:$8 sps:$4 sm:$0xff]   ;;  %10949 = vmatpush1.bf16.msra.mxu1 %v17207_v54  ;;  %v17175_v54 = vld [vmem:[%s20324_s6 + $0x890] ss:$8 sps:$4 sm:$0xff]  }
 0xaf8   : > { %10950 = vmatprep.subr.bf16.mxu1 %v17212_v46  ;;  %v17180_v46 = vld [vmem:[%s20324_s6 + $0x8a4] ss:$8 sps:$4 sm:$0xff]  }
 0xafa   : > { %8728 = vmatpush1.bf16.msra.mxu0 %v17054_v58  ;;  %v17110_v58 = vld [vmem:[%s20324_s6 + $0x740] ss:$8 sps:$4 sm:$0xff]  }
 0xafb   : > { %8729 = vmatprep.subr.bf16.mxu0 %v17059_v27  ;;  %v17115_v27 = vld [vmem:[%s20324_s6 + $0x754] ss:$8 sps:$4 sm:$0xff]  }
 0xafe   : > { %8730 = vmatpush1.bf16.msra.mxu0 %v17057_v15  ;;  %v17210_v15 = vld [vmem:[#allocation13 + $0x40] ss:$8 sps:$4 sm:$0xff]  }
 0xaff   : > { %8731 = vmatprep.subr.bf16.mxu0 %v17062_v62  ;;  %v17215_v62 = vld [vmem:[#allocation13 + $0x54] ss:$8 sps:$4 sm:$0xff]   ;;  %10951 = vmatpush1.bf16.msra.mxu1 %v17210_v15  ;;  %v17181_v15 = vld [vmem:[%s20324_s6 + $0x8b0] ss:$8 sps:$4 sm:$0xff]  }
 0xb00   : > { %10952 = vmatprep.subr.bf16.mxu1 %v17215_v62  ;;  %v17186_v62 = vld [vmem:[%s20324_s6 + $0x8c4] ss:$8 sps:$4 sm:$0xff]  }
 0xb02   : > { %8732 = vmatpush1.bf16.msra.mxu0 %v17060_v53  ;;  %v17113_v53 = vld [vmem:[%s20324_s6 + $0x750] ss:$8 sps:$4 sm:$0xff]  }
 0xb03   : > { %8733 = vmatprep.subr.bf16.mxu0 %v17065_v2  ;;  %v17118_v2 = vld [vmem:[%s20324_s6 + $0x764] ss:$8 sps:$4 sm:$0xff]  }
 0xb06   : > { %8734 = vmatpush1.bf16.msra.mxu0 %v17063_v5  ;;  %v17213_v5 = vld [vmem:[#allocation13 + $0x50] ss:$8 sps:$4 sm:$0xff]  }
 0xb07   : > { %8735 = vmatprep.subr.bf16.mxu0 %v17068_v32  ;;  %v17218_v32 = vld [vmem:[#allocation13 + $0x64] ss:$8 sps:$4 sm:$0xff]   ;;  %10953 = vmatpush1.bf16.msra.mxu1 %v17213_v5  ;;  %v17187_v5 = vld [vmem:[%s20324_s6 + $0x8d0] ss:$8 sps:$4 sm:$0xff]  }
 0xb08   : > { %10954 = vmatprep.subr.bf16.mxu1 %v17218_v32  ;;  %v17192_v32 = vld [vmem:[%s20324_s6 + $0x8e4] ss:$8 sps:$4 sm:$0xff]  }
 0xb0a   : > { %8736 = vmatpush1.bf16.msra.mxu0 %v17066_v4  ;;  %v17116_v4 = vld [vmem:[%s20324_s6 + $0x760] ss:$8 sps:$4 sm:$0xff]  }
 0xb0b   : > { %8737 = vmatprep.subr.bf16.mxu0 %v17071_v13  ;;  %v17121_v13 = vld [vmem:[%s20324_s6 + $0x774] ss:$8 sps:$4 sm:$0xff]  }
 0xb0e   : > { %8738 = vmatpush1.bf16.msra.mxu0 %v17069_v6  ;;  %v17216_v6 = vld [vmem:[#allocation13 + $0x60] ss:$8 sps:$4 sm:$0xff]  }
 0xb0f   : > { %8739 = vmatprep.subr.bf16.mxu0 %v17074_v35  ;;  %v17221_v35 = vld [vmem:[#allocation13 + $0x74] ss:$8 sps:$4 sm:$0xff]   ;;  %10955 = vmatpush1.bf16.msra.mxu1 %v17216_v6  ;;  %v17193_v6 = vld [vmem:[%s20324_s6 + $0x8f0] ss:$8 sps:$4 sm:$0xff]  }
 0xb10   : > { %10956 = vmatprep.subr.bf16.mxu1 %v17221_v35  ;;  %v17196_v35 = vld [vmem:[#allocation5 + $0x44] ss:$16 sps:$4 sm:$0xff]  }
 0xb12   : > { %8740 = vmatpush1.bf16.msra.mxu0 %v17072_v18  ;;  %v17119_v18 = vld [vmem:[%s20324_s6 + $0x770] ss:$8 sps:$4 sm:$0xff]  }
 0xb13   : > { %8741 = vmatprep.subr.bf16.mxu0 %v17077_v39  ;;  %v17122_v39 = vld [vmem:[%s20324_s6 + $0x780] ss:$8 sps:$4 sm:$0xff]   ;;  %10957 = vmatpush1.bf16.msra.mxu1 %v17219_v36  ;;  %v17231_v36 = vld [vmem:[#allocation13 + $0xb0] ss:$8 sps:$4 sm:$0xff]  }
 0xb14   : > { %10958 = vmatprep.subr.bf16.mxu1 %v17224_v12  ;;  %v17233_v12 = vld [vmem:[#allocation13 + $0xb4] ss:$8 sps:$4 sm:$0xff]  }
 0xb16   : > { %8742 = vmatpush1.bf16.msra.mxu0 %v17075_v43  ;;  %v17225_v43 = vld [vmem:[#allocation13 + $0x90] ss:$8 sps:$4 sm:$0xff]  }
 0xb17   : > { %8743 = vmatprep.subr.bf16.mxu0 %v17080_v17  ;;  %10959 = vmatpush1.bf16.msra.mxu1 %v17222_v60  ;;  %v17230_v17 = vld [vmem:[#allocation13 + $0xa4] ss:$8 sps:$4 sm:$0xff]   ;;  %v17239_v60 = vld [vmem:[#allocation13 + $0xd4] ss:$8 sps:$4 sm:$0xff]  }
 0xb18   : > { %10960 = vmatprep.subr.bf16.mxu1 %v17227_v29  ;;  %v17237_v29 = vld [vmem:[#allocation13 + $0xd0] ss:$8 sps:$4 sm:$0xff]  }
 0xb1a   : > { %8744 = vmatpush1.bf16.msra.mxu0 %v17078_v47  ;;  %v17142_v47 = vld [vmem:[%s20324_s6 + $0x7e4] ss:$8 sps:$4 sm:$0xff]  }
 0xb1b   : > { %8745 = vmatprep.subr.bf16.mxu0 %v17083_v14  ;;  %10961 = vmatpush1.bf16.msra.mxu1 %v17225_v43  ;;  %v17140_v14 = vld [vmem:[%s20324_s6 + $0x7e0] ss:$8 sps:$4 sm:$0xff]   ;;  %v17245_v43 = vld [vmem:[#allocation13 + $0xf4] ss:$8 sps:$4 sm:$0xff]  }
 0xb1c   : > { %10962 = vmatprep.subr.bf16.mxu1 %v17230_v17  ;;  %v17243_v17 = vld [vmem:[#allocation13 + $0xf0] ss:$8 sps:$4 sm:$0xff]  }
 0xb1e   : > { %8746 = vmatpush1.bf16.msra.mxu0 %v17081_v33  ;;  %v17145_v33 = vld [vmem:[%s20324_s6 + $0x7f4] ss:$8 sps:$4 sm:$0xff]  }
 0xb1f   : > { %8758 = vmatprep.subr.bf16.mxu0 %v17088_v41  ;;  %10963 = vmatpush1.bf16.msra.mxu1 %v17228_v38  ;;  %v6697_v41 = vcombine.low %v19856_v24, %v19860_v52  ;;  %v17151_v24 = vld [vmem:[%s20324_s6 + $0x810] ss:$8 sps:$4 sm:$0xff]   ;;  %v17156_v52 = vld [vmem:[%s20324_s6 + $0x824] ss:$8 sps:$4 sm:$0xff]  }
 0xb20   : > { %10964 = vmatprep.subr.bf16.mxu1 %v17233_v12 }
 0xb21   : > { %8748 = vmatmul.mubr.bf16.vlgmr.msra.gmra.mrb[236].mxu0 %v6723_v8  ;;  %v17146_v8 = vld [vmem:[%s20324_s6 + $0x800] ss:$8 sps:$4 sm:$0xff]  }
 0xb22   : > { %8759 = vmatpush1.bf16.msra.mxu0 %v17086_v59  ;;  %8790 = vmatprep.mubr.bf16.mxu0 %v6726_v63  ;;  %v17150_v59 = vld [vmem:[#allocation5 + $0x6c] ss:$16 sps:$4 sm:$0xff]   ;;  %v17154_v63 = vld [vmem:[%s20324_s6 + $0x820] ss:$8 sps:$4 sm:$0xff]  }
 0xb23   : > { %8760 = vmatprep.subr.bf16.mxu0 %v17103_v7  ;;  %v6725_v7 = vpack.c.bf16 %v6697_v41, %v6695_v50  ;;  %v6728_v11 = vpack.c.bf16 %v17150_v59, %v17149_v1  ;;  %10965 = vmatpush1.bf16.msra.mxu1 %v17231_v36 }
 0xb26   : > { %8761 = vmatpush1.bf16.msra.mxu0 %v17101_v34  ;;  %v17162_v34 = vld [vmem:[%s20324_s6 + $0x844] ss:$8 sps:$4 sm:$0xff]  }
 0xb27   : > { %8762 = vmatprep.subr.bf16.mxu0 %v17106_v25  ;;  %v17165_v25 = vld [vmem:[%s20324_s6 + $0x854] ss:$8 sps:$4 sm:$0xff]  }
 0xb2a   : > { %8763 = vmatpush1.bf16.msra.mxu0 %v17104_v37  ;;  %v17166_v37 = vld [vmem:[%s20324_s6 + $0x860] ss:$8 sps:$4 sm:$0xff]  }
 0xb2b   : > { %8764 = vmatprep.subr.bf16.mxu0 %v17109_v42  ;;  %v17171_v42 = vld [vmem:[%s20324_s6 + $0x874] ss:$8 sps:$4 sm:$0xff]  }
 0xb2e   : > { %8765 = vmatpush1.bf16.msra.mxu0 %v17107_v9  ;;  %v17172_v9 = vld [vmem:[%s20324_s6 + $0x880] ss:$8 sps:$4 sm:$0xff]  }
 0xb2f   : > { %8766 = vmatprep.subr.bf16.mxu0 %v17112_v49  ;;  %v17177_v49 = vld [vmem:[%s20324_s6 + $0x894] ss:$8 sps:$4 sm:$0xff]  }
 0xb32   : > { %8767 = vmatpush1.bf16.msra.mxu0 %v17110_v58  ;;  %v17178_v58 = vld [vmem:[%s20324_s6 + $0x8a0] ss:$8 sps:$4 sm:$0xff]  }
 0xb33   : > { %8768 = vmatprep.subr.bf16.mxu0 %v17115_v27  ;;  %v17183_v27 = vld [vmem:[%s20324_s6 + $0x8b4] ss:$8 sps:$4 sm:$0xff]  }
 0xb36   : > { %8769 = vmatpush1.bf16.msra.mxu0 %v17113_v53  ;;  %v17184_v53 = vld [vmem:[%s20324_s6 + $0x8c0] ss:$8 sps:$4 sm:$0xff]  }
 0xb37   : > { %8770 = vmatprep.subr.bf16.mxu0 %v17118_v2  ;;  %v17189_v2 = vld [vmem:[%s20324_s6 + $0x8d4] ss:$8 sps:$4 sm:$0xff]  }
 0xb3a   : > { %8771 = vmatpush1.bf16.msra.mxu0 %v17116_v4  ;;  %v17190_v4 = vld [vmem:[%s20324_s6 + $0x8e0] ss:$8 sps:$4 sm:$0xff]  }
 0xb3b   : > { %8772 = vmatprep.subr.bf16.mxu0 %v17121_v13  ;;  %v17195_v13 = vld [vmem:[%s20324_s6 + $0x8f4] ss:$8 sps:$4 sm:$0xff]  }
 0xb3e   : > { %8773 = vmatpush1.bf16.msra.mxu0 %v17119_v18  ;;  %v17197_v18 = vld [vmem:[#allocation5 + $0x64] ss:$16 sps:$4 sm:$0xff]  }
 0xb3f   : > { %8774 = vmatprep.subr.bf16.mxu0 %v17124_v22  ;;  %v6727_v22 = vpack.c.bf16 %v17197_v18, %v17196_v35  ;;  %v17270_v18 = vld [vmem:[#allocation13 + $0x124] ss:$8 sps:$4 sm:$0xff]  }
 0xb42   : > { %8775 = vmatpush1.bf16.msra.mxu0 %v17122_v39  ;;  %v17234_v39 = vld [vmem:[#allocation13 + $0xc0] ss:$8 sps:$4 sm:$0xff]  }
 0xb43   : > { %8776 = vmatprep.subr.bf16.mxu0 %v17127_v56  ;;  %v17236_v56 = vld [vmem:[#allocation13 + $0xc4] ss:$8 sps:$4 sm:$0xff]  }
 0xb44   : > { %10966 = vmatprep.subr.bf16.mxu1 %v17236_v56 }
 0xb45   : > { %10967 = vmatpush1.bf16.msra.mxu1 %v17234_v39 }
 0xb46   : > { %8777 = vmatpush1.bf16.msra.mxu0 %v17125_v3  ;;  %10968 = vmatprep.subr.bf16.mxu1 %v17239_v60  ;;  %v17242_v3 = vld [vmem:[#allocation13 + $0xe4] ss:$8 sps:$4 sm:$0xff]   ;;  %v17268_v60 = vld [vmem:[#allocation13 + $0x120] ss:$8 sps:$4 sm:$0xff]  }
 0xb47   : > { %8778 = vmatprep.subr.bf16.mxu0 %v17130_v23  ;;  %v17240_v23 = vld [vmem:[#allocation13 + $0xe0] ss:$8 sps:$4 sm:$0xff]  }
 0xb49   : > { %10969 = vmatpush1.bf16.msra.mxu1 %v17237_v29  ;;  %v17273_v29 = vld [vmem:[#allocation13 + $0x134] ss:$8 sps:$4 sm:$0xff]  }
 0xb4a   : > { %8779 = vmatpush1.bf16.msra.mxu0 %v17128_v0  ;;  %10970 = vmatprep.subr.bf16.mxu1 %v17242_v3  ;;  %v17250_v0 = vld [vmem:[#allocation13 + $0x104] ss:$8 sps:$4 sm:$0xff]  }
 0xb4b   : > { %8780 = vmatprep.subr.bf16.mxu0 %v17133_v21 }
 0xb4d   : > { %10971 = vmatpush1.bf16.msra.mxu1 %v17240_v23  ;;  %v17271_v23 = vld [vmem:[#allocation13 + $0x130] ss:$8 sps:$4 sm:$0xff]  }
 0xb4e   : > { %8781 = vmatpush1.bf16.msra.mxu0 %v17131_v48  ;;  %10972 = vmatprep.subr.bf16.mxu1 %v17245_v43  ;;  %v17276_v43 = vld [vmem:[#allocation13 + $0x144] ss:$8 sps:$4 sm:$0xff]  }
 0xb4f   : > { %8782 = vmatprep.subr.bf16.mxu0 %v17136_v30 }
 0xb51   : > { %10973 = vmatpush1.bf16.msra.mxu1 %v17243_v17  ;;  %v17274_v17 = vld [vmem:[#allocation13 + $0x140] ss:$8 sps:$4 sm:$0xff]  }
 0xb52   : > { %8783 = vmatpush1.bf16.msra.mxu0 %v17134_v31  ;;  %10985 = vmatprep.subr.bf16.mxu1 %v17250_v0  ;;  %v17279_v0 = vld [vmem:[#allocation13 + $0x154] ss:$8 sps:$4 sm:$0xff]  }
 0xb53   : > { %8784 = vmatprep.subr.bf16.mxu0 %v17139_v26 }
 0xb56   : > { %8785 = vmatpush1.bf16.msra.mxu0 %v17137_v55 }
 0xb57   : > { %8786 = vmatprep.subr.bf16.mxu0 %v17142_v47 }
 0xb5a   : > { %8787 = vmatpush1.bf16.msra.mxu0 %v17140_v14 }
 0xb5b   : > { %8788 = vmatprep.subr.bf16.mxu0 %v17145_v33 }
 0xb5e   : > { %8789 = vmatpush1.bf16.msra.mxu0 %v17143_v40 }
 0xb5f   : > { %8801 = vmatprep.subr.bf16.mxu0 %v17148_v10 }
 0xb61   : > { %8791 = vmatmul.mubr.bf16.vlgmr.msra.gmra.mrb[236].mxu0 %v6725_v7 }
 0xb62   : > { %8802 = vmatpush1.bf16.msra.mxu0 %v17146_v8  ;;  %8833 = vmatprep.mubr.bf16.mxu0 %v6728_v11 }
 0xb63   : > { %8803 = vmatprep.subr.bf16.mxu0 %v17153_v61 }
 0xb66   : > { %8804 = vmatpush1.bf16.msra.mxu0 %v17151_v24  ;;  %v17256_v24 = vld [vmem:[#allocation5] ss:$8 sps:$4 sm:$0xcc]  }
 0xb67   : > { %8805 = vmatprep.subr.bf16.mxu0 %v17156_v52  ;;  %v17258_v52 = vld [vmem:[#allocation5 + $0x4] ss:$8 sps:$4 sm:$0x33]  }
 0xb6a   : > { %8806 = vmatpush1.bf16.msra.mxu0 %v17154_v63 }
 0xb6b   : > { %8807 = vmatprep.subr.bf16.mxu0 %v17159_v20 }
 0xb6e   : > { %8808 = vmatpush1.bf16.msra.mxu0 %v17157_v28 }
 0xb6f   : > { %8809 = vmatprep.subr.bf16.mxu0 %v17162_v34 }
 0xb72   : > { %8810 = vmatpush1.bf16.msra.mxu0 %v17160_v16  ;;  %v17259_v16 = vld [vmem:[#allocation5 + $0x10] ss:$8 sps:$4 sm:$0xcc]  }
 0xb73   : > { %8811 = vmatprep.subr.bf16.mxu0 %v17165_v25  ;;  %v17261_v25 = vld [vmem:[#allocation5 + $0x14] ss:$8 sps:$4 sm:$0x33]  }
 0xb76   : > { %8812 = vmatpush1.bf16.msra.mxu0 %v17163_v45  ;;  %v17246_v45 = vld [vmem:[#allocation5 + $0x8] ss:$16 sps:$4 sm:$0xff]  }
 0xb77   : > { %8813 = vmatprep.subr.bf16.mxu0 %v17168_v19  ;;  %v17251_v19 = vld [vmem:[#allocation5] ss:$16 sps:$4 sm:$0xff]  }
 0xb7a   : > { %8814 = vmatpush1.bf16.msra.mxu0 %v17166_v37  ;;  %v14236_v37 = vrot.slane %v17256_v24, 10  ;;  %v17307_v24 = vld [vmem:[#allocation13 + $0x1f0] ss:$8 sps:$4 sm:$0xff]  }
 0xb7b   : > { %8815 = vmatprep.subr.bf16.mxu0 %v17171_v42  ;;  %v8930_v42 = vrot.slane %v17258_v52, 6 }
 0xb7e   : > { %8816 = vmatpush1.bf16.msra.mxu0 %v17169_v57  ;;  %v14237_v57 = vrot.slane %v17259_v16, 10  ;;  %v17310_v16 = vld [vmem:[#allocation13 + $0x200] ss:$8 sps:$4 sm:$0xff]  }
 0xb7f   : > { %8817 = vmatprep.subr.bf16.mxu0 %v17174_v51  ;;  %v8934_v51 = vrot.slane %v17261_v25, 6 }
 0xb82   : > { %8818 = vmatpush1.bf16.msra.mxu0 %v17172_v9 }
 0xb83   : > { %8819 = vmatprep.subr.bf16.mxu0 %v17177_v49  ;;  %v17248_v49 = vld [vmem:[#allocation13 + $0x100] ss:$8 sps:$4 sm:$0xff]  }
 0xb86   : > { %8820 = vmatpush1.bf16.msra.mxu0 %v17175_v54 }
 0xb87   : > { %8821 = vmatprep.subr.bf16.mxu0 %v17180_v46  ;;  %v17255_v46 = vld [vmem:[#allocation13 + $0x114] ss:$8 sps:$4 sm:$0xff]  }
 0xb8a   : > { %8822 = vmatpush1.bf16.msra.mxu0 %v17178_v58 }
 0xb8b   : > { %8823 = vmatprep.subr.bf16.mxu0 %v17183_v27 }
 0xb8e   : > { %8824 = vmatpush1.bf16.msra.mxu0 %v17181_v15 }
 0xb8f   : > { %8825 = vmatprep.subr.bf16.mxu0 %v17186_v62  ;;  %v17253_v62 = vld [vmem:[#allocation13 + $0x110] ss:$8 sps:$4 sm:$0xff]  }
 0xb92   : > { %8826 = vmatpush1.bf16.msra.mxu0 %v17184_v53 }
 0xb93   : > { %8827 = vmatprep.subr.bf16.mxu0 %v17189_v2 }
 0xb96   : > { %8828 = vmatpush1.bf16.msra.mxu0 %v17187_v5 }
 0xb97   : > { %8829 = vmatprep.subr.bf16.mxu0 %v17192_v32  ;;  %v20067_v32 = vsel %vm19224_vm4, %v14236_v37, %v8930_v42  ;;  %v17315_v37 = vld [vmem:[#allocation13 + $0x210] ss:$8 sps:$4 sm:$0xff]   ;;  %v17320_v42 = vld [vmem:[#allocation13 + $0x224] ss:$8 sps:$4 sm:$0xff]  }
 0xb9a   : > { %8830 = vmatpush1.bf16.msra.mxu0 %v17190_v4  ;;  %v20071_v4 = vsel %vm19224_vm4, %v14237_v57, %v8934_v51  ;;  %v17318_v57 = vld [vmem:[#allocation13 + $0x220] ss:$8 sps:$4 sm:$0xff]   ;;  %v17323_v51 = vld [vmem:[#allocation13 + $0x234] ss:$8 sps:$4 sm:$0xff]  }
 0xb9b   : > { %8831 = vmatprep.subr.bf16.mxu0 %v17195_v13  ;;  %v9133_v12 = vcombine.high %v20067_v32, %v20071_v4  ;;  %v9132_v52 = vcombine.low %v20067_v32, %v20071_v4  ;;  %v17341_v32 = vld [vmem:[#allocation13 + $0x294] ss:$8 sps:$4 sm:$0xff]   ;;  %v17339_v4 = vld [vmem:[#allocation13 + $0x290] ss:$8 sps:$4 sm:$0xff]  }
 0xb9e   : > { %8832 = vmatpush1.bf16.msra.mxu0 %v17193_v6 }
 0xba1   : > { %8834 = vmatmul.mubr.bf16.vlgmr.msra.gmra.mrb[236].mxu0 %v6727_v22 }
 0xc74   : > { %v8835_v21 = vpop.f32.mrb[236].mxu0 }
 0xc75   : > { %v8844_v38 = vmax.f32 %v8835_v21, 0.0  ;;  %v8837_v48 = vpop.f32.mrb[237].mxu0  ;;  %v17277_v21 = vld [vmem:[#allocation13 + $0x150] ss:$8 sps:$4 sm:$0xff]  }
 0xc76   : > { %v8845_v30 = vmax.f32 %v8837_v48, 0.0  ;;  %v8839_v31 = vpop.f32.mrb[238].mxu0  ;;  %v17280_v48 = vld [vmem:[#allocation13 + $0x160] ss:$8 sps:$4 sm:$0xff]  }
 0xc77   : > { %v8846_v26 = vmax.f32 %v8839_v31, 0.0  ;;  %v8841_v55 = vpop.f32.mrb[239].mxu0  ;;  %v17283_v31 = vld [vmem:[#allocation13 + $0x170] ss:$8 sps:$4 sm:$0xff]  }
 0xc78   : > { %v8852_v47 = vcombine.low %v8844_v38, %v8845_v30  ;;  %v8853_v14 = vcombine.high %v8844_v38, %v8845_v30  ;;  %v14232_v33 = vcombine.low %v8845_v30, %v8845_v30  ;;  %v14233_v40 = vcombine.high %v8845_v30, %v8845_v30  ;;  %v17282_v38 = vld [vmem:[#allocation13 + $0x164] ss:$8 sps:$4 sm:$0xff]   ;;  %v17285_v30 = vld [vmem:[#allocation13 + $0x174] ss:$8 sps:$4 sm:$0xff]  }
 0xc79   : > { %v8847_v50 = vmax.f32 %v8841_v55, 0.0  ;;  %v17286_v55 = vld [vmem:[#allocation13 + $0x180] ss:$8 sps:$4 sm:$0xff]  }
 0xc7a   : > { %v8860_v41 = vrot.slane %v8852_v47, 6  ;;  %v8861_v10 = vrot.slane %v14232_v33, 6  ;;  %v8862_v1 = vrot.slane %v8853_v14, 6  ;;  %v8863_v59 = vrot.slane %v14233_v40, 6  ;;  %v17291_v47 = vld [vmem:[#allocation13 + $0x194] ss:$8 sps:$4 sm:$0xff]  }
 0xc7b   : > { %v8854_v8 = vcombine.low %v8846_v26, %v8847_v50  ;;  %v8855_v7 = vcombine.high %v8846_v26, %v8847_v50  ;;  %v14234_v61 = vcombine.low %v8847_v50, %v8847_v50  ;;  %v14235_v11 = vcombine.high %v8847_v50, %v8847_v50  ;;  %v17288_v26 = vld [vmem:[#allocation13 + $0x184] ss:$8 sps:$4 sm:$0xff]   ;;  %v17289_v14 = vld [vmem:[#allocation13 + $0x190] ss:$8 sps:$4 sm:$0xff]   ;;  %v17292_v40 = vld [vmem:[#allocation13 + $0x1a0] ss:$8 sps:$4 sm:$0xff]  }
 0xc7c   : > { %8876 = vst [vmem:[#allocation5 + $0x20] sm:$0x3c] %v8860_v41  ;;  %8877 = vst [vmem:[#allocation5 + $0x28] sm:$0x3c] %v8861_v10  ;;  %v17294_v33 = vld [vmem:[#allocation13 + $0x1a4] ss:$8 sps:$4 sm:$0xff]  }
 0xc7d   : > { %8878 = vst [vmem:[#allocation5 + $0x30] sm:$0x3c] %v8862_v1  ;;  %8879 = vst [vmem:[#allocation5 + $0x38] sm:$0x3c] %v8863_v59  ;;  %v8864_v63 = vrot.slane %v8854_v8, 6  ;;  %v8865_v20 = vrot.slane %v14234_v61, 6 }
 0xc7e   : > { %v8866_v28 = vrot.slane %v8855_v7, 6  ;;  %v8867_v34 = vrot.slane %v14235_v11, 6  ;;  %v17297_v50 = vld [vmem:[#allocation13 + $0x1b4] ss:$8 sps:$4 sm:$0xff]   ;;  %v17295_v41 = vld [vmem:[#allocation13 + $0x1b0] ss:$8 sps:$4 sm:$0xff]  }
 0xc7f   : > { %8880 = vst [vmem:[#allocation5 + $0x40] sm:$0x3c] %v8864_v63  ;;  %8881 = vst [vmem:[#allocation5 + $0x48] sm:$0x3c] %v8865_v20  ;;  %v17300_v10 = vld [vmem:[#allocation13 + $0x1c4] ss:$8 sps:$4 sm:$0xff]  }
 0xc80   : > { %8882 = vst [vmem:[#allocation5 + $0x50] sm:$0x3c] %v8866_v28  ;;  %8883 = vst [vmem:[#allocation5 + $0x58] sm:$0x3c] %v8867_v34  ;;  %v17298_v1 = vld [vmem:[#allocation13 + $0x1c0] ss:$8 sps:$4 sm:$0xff]  }
 0xc81   : > { %v17303_v59 = vld [vmem:[#allocation13 + $0x1d4] ss:$8 sps:$4 sm:$0xff]   ;;  %v17301_v8 = vld [vmem:[#allocation13 + $0x1d0] ss:$8 sps:$4 sm:$0xff]   ;;  %v17306_v7 = vld [vmem:[#allocation13 + $0x1e4] ss:$8 sps:$4 sm:$0xff]  }
 0xc82   : > { %v17304_v61 = vld [vmem:[#allocation13 + $0x1e0] ss:$8 sps:$4 sm:$0xff]   ;;  %v17309_v11 = vld [vmem:[#allocation13 + $0x1f4] ss:$8 sps:$4 sm:$0xff]   ;;  %v17312_v20 = vld [vmem:[#allocation13 + $0x204] ss:$8 sps:$4 sm:$0xff]  }
 0xc83   : > { %v17262_v15 = vld [vmem:[#allocation5 + $0x20] ss:$8 sps:$4 sm:$0xcc]   ;;  %v17264_v53 = vld [vmem:[#allocation5 + $0x24] ss:$8 sps:$4 sm:$0x33]  }
 0xc84   : > { %v17247_v9 = vld [vmem:[#allocation5 + $0x28] ss:$16 sps:$4 sm:$0xff]   ;;  %v17252_v54 = vld [vmem:[#allocation5 + $0x20] ss:$16 sps:$4 sm:$0xff]   ;;  %v14238_v13 = vrot.slane %v17262_v15, 10  ;;  %v8938_v6 = vrot.slane %v17264_v53, 6 }
 0xc85   : > { %v9197_v58 = vpack.c.bf16 %v17247_v9, %v17246_v45  ;;  %v9196_v27 = vpack.c.bf16 %v17252_v54, %v17251_v19  ;;  %v17265_v2 = vld [vmem:[#allocation5 + $0x30] ss:$8 sps:$4 sm:$0xcc]   ;;  %v17267_v5 = vld [vmem:[#allocation5 + $0x34] ss:$8 sps:$4 sm:$0x33]  }
 0xc86   : > { %v14239_v35 = vrot.slane %v17265_v2, 10  ;;  %v8942_v22 = vrot.slane %v17267_v5, 6  ;;  %v20075_v36 = vsel %vm19224_vm4, %v14238_v13, %v8938_v6  ;;  %v17313_v28 = vld [vmem:[#allocation5 + $0xc] ss:$16 sps:$4 sm:$0xff]   ;;  %v17321_v9 = vld [vmem:[#allocation13 + $0x230] ss:$8 sps:$4 sm:$0xff]  }
 0xc87   : > { %10974 = vmatprep.mubr.bf16.mxu1 %v9197_v58  ;;  %v17314_v34 = vld [vmem:[#allocation5 + $0x2c] ss:$16 sps:$4 sm:$0xff]   ;;  %v17324_v54 = vld [vmem:[#allocation13 + $0x240] ss:$8 sps:$4 sm:$0xff]   ;;  %v17327_v58 = vld [vmem:[#allocation13 + $0x250] ss:$8 sps:$4 sm:$0xff]  }
 0xc88   : > { %10975 = vmatmul.mubr.bf16.vlgmr.msra.gmra.mrb[252].mxu1 %v9196_v27  ;;  %v20081_v39 = vsel %vm19224_vm4, %v14239_v35, %v8942_v22  ;;  %v17317_v45 = vld [vmem:[#allocation13 + $0x214] ss:$8 sps:$4 sm:$0xff]   ;;  %v9201_v19 = vpack.c.bf16 %v17314_v34, %v17313_v28  ;;  %v17332_v27 = vld [vmem:[#allocation13 + $0x264] ss:$8 sps:$4 sm:$0xff]   ;;  %v17330_v15 = vld [vmem:[#allocation13 + $0x260] ss:$8 sps:$4 sm:$0xff]  }
 0xc89   : > { %10986 = vmatpush1.bf16.msra.mxu1 %v17248_v49  ;;  %v9135_v56 = vcombine.high %v20075_v36, %v20081_v39  ;;  %v9134_v63 = vcombine.low %v20075_v36, %v20081_v39  ;;  %v17326_v49 = vld [vmem:[#allocation13 + $0x244] ss:$8 sps:$4 sm:$0xff]   ;;  %v17333_v53 = vld [vmem:[#allocation13 + $0x270] ss:$8 sps:$4 sm:$0xff]   ;;  %v17336_v5 = vld [vmem:[#allocation13 + $0x280] ss:$8 sps:$4 sm:$0xff]  }
 0xc8a   : > { %10987 = vmatprep.subr.bf16.mxu1 %v17255_v46  ;;  %v17329_v46 = vld [vmem:[#allocation13 + $0x254] ss:$8 sps:$4 sm:$0xff]   ;;  %v17338_v2 = vld [vmem:[#allocation13 + $0x284] ss:$8 sps:$4 sm:$0xff]   ;;  %v17342_v6 = vld [vmem:[#allocation13 + $0x2a0] ss:$8 sps:$4 sm:$0xff]  }
 0xc8b   : > { %v9199_v3 = vpack.c.bf16 %v9135_v56, %v9133_v12  ;;  %v9198_v25 = vpack.c.bf16 %v9134_v63, %v9132_v52  ;;  %v17344_v13 = vld [vmem:[#allocation13 + $0x2a4] ss:$8 sps:$4 sm:$0xff]   ;;  %v17347_v35 = vld [vmem:[#allocation13 + $0x2b4] ss:$8 sps:$4 sm:$0xff]   ;;  %v17348_v36 = vld [vmem:[#allocation13 + $0x2c0] ss:$8 sps:$4 sm:$0xff]  }
 0xc8c   : > { %v17350_v22 = vld [vmem:[#allocation13 + $0x2c4] ss:$8 sps:$4 sm:$0xff]   ;;  %v17353_v12 = vld [vmem:[#allocation13 + $0x2d4] ss:$8 sps:$4 sm:$0xff]   ;;  %v17351_v39 = vld [vmem:[#allocation13 + $0x2d0] ss:$8 sps:$4 sm:$0xff]  }
 0xc8d   : > { %10988 = vmatpush1.bf16.msra.mxu1 %v17253_v62  ;;  %11017 = vmatprep.mubr.bf16.mxu1 %v9199_v3  ;;  %v17335_v62 = vld [vmem:[#allocation13 + $0x274] ss:$8 sps:$4 sm:$0xff]   ;;  %v17356_v56 = vld [vmem:[#allocation13 + $0x2e4] ss:$8 sps:$4 sm:$0xff]   ;;  %v17357_v3 = vld [vmem:[#allocation13 + $0x2f0] ss:$8 sps:$4 sm:$0xff]  }
 0xc8e   : > { %10989 = vmatprep.subr.bf16.mxu1 %v17270_v18  ;;  %v17345_v18 = vld [vmem:[#allocation13 + $0x2b0] ss:$8 sps:$4 sm:$0xff]   ;;  %v17396_v63 = vld [vmem:[#allocation13 + $0x3a4] ss:$8 sps:$4 sm:$0xff]   ;;  %v17399_v28 = vld [vmem:[#allocation13 + $0x3b4] ss:$8 sps:$4 sm:$0xff]  }
 0xc8f   : > { %v17391_v52 = vld [vmem:[#allocation13 + $0x390] ss:$8 sps:$4 sm:$0xff]  }
 0xc90   : > { %v17397_v34 = vld [vmem:[#allocation13 + $0x3b0] ss:$8 sps:$4 sm:$0xff]  }
 0xc91   : > { %10990 = vmatpush1.bf16.msra.mxu1 %v17268_v60  ;;  %v17354_v60 = vld [vmem:[#allocation13 + $0x2e0] ss:$8 sps:$4 sm:$0xff]  }
 0xc92   : > { %10991 = vmatprep.subr.bf16.mxu1 %v17273_v29  ;;  %v17359_v29 = vld [vmem:[#allocation13 + $0x2f4] ss:$8 sps:$4 sm:$0xff]  }
 0xc95   : > { %10992 = vmatpush1.bf16.msra.mxu1 %v17271_v23  ;;  %v17360_v23 = vld [vmem:[#allocation5 + $0x4] ss:$16 sps:$4 sm:$0xff]  }
 0xc96   : > { %10993 = vmatprep.subr.bf16.mxu1 %v17276_v43  ;;  %v17361_v43 = vld [vmem:[#allocation5 + $0x24] ss:$16 sps:$4 sm:$0xff]  }
 0xc99   : > { %10994 = vmatpush1.bf16.msra.mxu1 %v17274_v17  ;;  %v17364_v17 = vld [vmem:[#allocation13 + $0x304] ss:$8 sps:$4 sm:$0xff]  }
 0xc9a   : > { %10995 = vmatprep.subr.bf16.mxu1 %v17279_v0  ;;  %v17366_v0 = vld [vmem:[#allocation5 + $0x48] ss:$16 sps:$4 sm:$0xff]  }
 0xc9d   : > { %10996 = vmatpush1.bf16.msra.mxu1 %v17277_v21  ;;  %v17362_v21 = vld [vmem:[#allocation13 + $0x300] ss:$8 sps:$4 sm:$0xff]  }
 0xc9e   : > { %10997 = vmatprep.subr.bf16.mxu1 %v17282_v38  ;;  %v17365_v38 = vld [vmem:[#allocation5 + $0x28] ss:$16 sps:$4 sm:$0xff]  }
 0xca1   : > { %10998 = vmatpush1.bf16.msra.mxu1 %v17280_v48  ;;  %v9200_v48 = vpack.c.bf16 %v17361_v43, %v17360_v23 }
 0xca2   : > { %10999 = vmatprep.subr.bf16.mxu1 %v17285_v30  ;;  %v17369_v30 = vld [vmem:[#allocation13 + $0x314] ss:$8 sps:$4 sm:$0xff]  }
 0xca5   : > { %11000 = vmatpush1.bf16.msra.mxu1 %v17283_v31  ;;  %v9203_v31 = vpack.c.bf16 %v17366_v0, %v17365_v38  ;;  %v17434_v38 = vld [vmem:[#allocation13 + $0x424] ss:$8 sps:$4 sm:$0xff]  }
 0xca6   : > { %11001 = vmatprep.subr.bf16.mxu1 %v17288_v26  ;;  %v17367_v26 = vld [vmem:[#allocation13 + $0x310] ss:$8 sps:$4 sm:$0xff]  }
 0xca9   : > { %11002 = vmatpush1.bf16.msra.mxu1 %v17286_v55  ;;  %v17372_v55 = vld [vmem:[#allocation13 + $0x324] ss:$8 sps:$4 sm:$0xff]  }
 0xcaa   : > { %11003 = vmatprep.subr.bf16.mxu1 %v17291_v47  ;;  %v17370_v47 = vld [vmem:[#allocation13 + $0x320] ss:$8 sps:$4 sm:$0xff]  }
 0xcad   : > { %11004 = vmatpush1.bf16.msra.mxu1 %v17289_v14  ;;  %v17375_v14 = vld [vmem:[#allocation13 + $0x334] ss:$8 sps:$4 sm:$0xff]  }
 0xcae   : > { %11005 = vmatprep.subr.bf16.mxu1 %v17294_v33  ;;  %v17373_v33 = vld [vmem:[#allocation13 + $0x330] ss:$8 sps:$4 sm:$0xff]  }
 0xcb1   : > { %11006 = vmatpush1.bf16.msra.mxu1 %v17292_v40  ;;  %v17378_v40 = vld [vmem:[#allocation13 + $0x344] ss:$8 sps:$4 sm:$0xff]  }
 0xcb2   : > { %11007 = vmatprep.subr.bf16.mxu1 %v17297_v50  ;;  %v17376_v50 = vld [vmem:[#allocation13 + $0x340] ss:$8 sps:$4 sm:$0xff]  }
 0xcb5   : > { %11008 = vmatpush1.bf16.msra.mxu1 %v17295_v41  ;;  %v17381_v41 = vld [vmem:[#allocation13 + $0x354] ss:$8 sps:$4 sm:$0xff]  }
 0xcb6   : > { %11009 = vmatprep.subr.bf16.mxu1 %v17300_v10  ;;  %v17379_v10 = vld [vmem:[#allocation13 + $0x350] ss:$8 sps:$4 sm:$0xff]  }
 0xcb9   : > { %11010 = vmatpush1.bf16.msra.mxu1 %v17298_v1  ;;  %v17384_v1 = vld [vmem:[#allocation13 + $0x364] ss:$8 sps:$4 sm:$0xff]  }
 0xcba   : > { %11011 = vmatprep.subr.bf16.mxu1 %v17303_v59  ;;  %v17382_v59 = vld [vmem:[#allocation13 + $0x360] ss:$8 sps:$4 sm:$0xff]  }
 0xcbd   : > { %11012 = vmatpush1.bf16.msra.mxu1 %v17301_v8  ;;  %v17387_v8 = vld [vmem:[#allocation13 + $0x374] ss:$8 sps:$4 sm:$0xff]  }
 0xcbe   : > { %11013 = vmatprep.subr.bf16.mxu1 %v17306_v7  ;;  %v17385_v7 = vld [vmem:[#allocation13 + $0x370] ss:$8 sps:$4 sm:$0xff]  }
 0xcc1   : > { %11014 = vmatpush1.bf16.msra.mxu1 %v17304_v61  ;;  %v17390_v61 = vld [vmem:[#allocation13 + $0x384] ss:$8 sps:$4 sm:$0xff]  }
 0xcc2   : > { %11015 = vmatprep.subr.bf16.mxu1 %v17309_v11  ;;  %v17388_v11 = vld [vmem:[#allocation13 + $0x380] ss:$8 sps:$4 sm:$0xff]  }
 0xcc5   : > { %11016 = vmatpush1.bf16.msra.mxu1 %v17307_v24  ;;  %v17393_v24 = vld [vmem:[#allocation13 + $0x394] ss:$8 sps:$4 sm:$0xff]  }
 0xcc6   : > { %11028 = vmatprep.subr.bf16.mxu1 %v17312_v20  ;;  %v17394_v20 = vld [vmem:[#allocation13 + $0x3a0] ss:$8 sps:$4 sm:$0xff]  }
 0xcc8   : > { %11018 = vmatmul.mubr.bf16.vlgmr.msra.gmra.mrb[252].mxu1 %v9198_v25  ;;  %v17400_v25 = vld [vmem:[#allocation13 + $0x3c0] ss:$8 sps:$4 sm:$0xff]  }
 0xcc9   : > { %11029 = vmatpush1.bf16.msra.mxu1 %v17310_v16  ;;  %11060 = vmatprep.mubr.bf16.mxu1 %v9201_v19  ;;  %v17402_v16 = vld [vmem:[#allocation13 + $0x3c4] ss:$8 sps:$4 sm:$0xff]   ;;  %v17423_v19 = vld [vmem:[#allocation5 + $0x40] ss:$8 sps:$4 sm:$0xcc]  }
 0xcca   : > { %11030 = vmatprep.subr.bf16.mxu1 %v17317_v45  ;;  %v17405_v45 = vld [vmem:[#allocation13 + $0x3d4] ss:$8 sps:$4 sm:$0xff]  }
 0xccd   : > { %11031 = vmatpush1.bf16.msra.mxu1 %v17315_v37  ;;  %v17425_v37 = vld [vmem:[#allocation5 + $0x44] ss:$8 sps:$4 sm:$0x33]  }
 0xcce   : > { %11032 = vmatprep.subr.bf16.mxu1 %v17320_v42  ;;  %v17417_v42 = vld [vmem:[#allocation5 + $0x20] ss:$8 sps:$4 sm:$0xcc]  }
 0xcd1   : > { %11033 = vmatpush1.bf16.msra.mxu1 %v17318_v57  ;;  %v17419_v57 = vld [vmem:[#allocation5 + $0x24] ss:$8 sps:$4 sm:$0x33]  }
 0xcd2   : > { %11034 = vmatprep.subr.bf16.mxu1 %v17323_v51  ;;  %v17426_v51 = vld [vmem:[#allocation5 + $0x50] ss:$8 sps:$4 sm:$0xcc]  }
 0xcd5   : > { %11035 = vmatpush1.bf16.msra.mxu1 %v17321_v9  ;;  %v17428_v9 = vld [vmem:[#allocation5 + $0x54] ss:$8 sps:$4 sm:$0x33]  }
 0xcd6   : > { %11036 = vmatprep.subr.bf16.mxu1 %v17326_v49  ;;  %v17403_v49 = vld [vmem:[#allocation13 + $0x3d0] ss:$8 sps:$4 sm:$0xff]  }
 0xcd9   : > { %11037 = vmatpush1.bf16.msra.mxu1 %v17324_v54  ;;  %v17420_v54 = vld [vmem:[#allocation5 + $0x30] ss:$8 sps:$4 sm:$0xcc]  }
 0xcda   : > { %11038 = vmatprep.subr.bf16.mxu1 %v17329_v46  ;;  %v17408_v46 = vld [vmem:[#allocation13 + $0x3e4] ss:$8 sps:$4 sm:$0xff]  }
 0xcdd   : > { %11039 = vmatpush1.bf16.msra.mxu1 %v17327_v58  ;;  %v17422_v58 = vld [vmem:[#allocation5 + $0x34] ss:$8 sps:$4 sm:$0x33]  }
 0xcde   : > { %11040 = vmatprep.subr.bf16.mxu1 %v17332_v27  ;;  %v14242_v27 = vrot.slane %v17423_v19, 10 }
 0xce1   : > { %11041 = vmatpush1.bf16.msra.mxu1 %v17330_v15  ;;  %v9018_v15 = vrot.slane %v17425_v37, 6  ;;  %v17476_v37 = vld [vmem:[#allocation13 + $0x504] ss:$8 sps:$4 sm:$0xff]  }
 0xce2   : > { %11042 = vmatprep.subr.bf16.mxu1 %v17335_v62  ;;  %v14243_v62 = vrot.slane %v17426_v51, 10  ;;  %v17474_v51 = vld [vmem:[#allocation13 + $0x500] ss:$8 sps:$4 sm:$0xff]  }
 0xce5   : > { %11043 = vmatpush1.bf16.msra.mxu1 %v17333_v53  ;;  %v9022_v53 = vrot.slane %v17428_v9, 6  ;;  %v17477_v9 = vld [vmem:[#allocation5 + $0x2c] ss:$16 sps:$4 sm:$0xff]  }
 0xce6   : > { %11044 = vmatprep.subr.bf16.mxu1 %v17338_v2  ;;  %v17406_v2 = vld [vmem:[#allocation13 + $0x3e0] ss:$8 sps:$4 sm:$0xff]  }
 0xce9   : > { %11045 = vmatpush1.bf16.msra.mxu1 %v17336_v5  ;;  %v17411_v5 = vld [vmem:[#allocation13 + $0x3f4] ss:$8 sps:$4 sm:$0xff]  }
 0xcea   : > { %11046 = vmatprep.subr.bf16.mxu1 %v17341_v32  ;;  %v14240_v32 = vrot.slane %v17417_v42, 10  ;;  %v17478_v42 = vld [vmem:[#allocation5 + $0x4c] ss:$16 sps:$4 sm:$0xff]  }
 0xced   : > { %11047 = vmatpush1.bf16.msra.mxu1 %v17339_v4  ;;  %v9010_v4 = vrot.slane %v17419_v57, 6 }
 0xcee   : > { %11048 = vmatprep.subr.bf16.mxu1 %v17344_v13  ;;  %v14241_v13 = vrot.slane %v17420_v54, 10  ;;  %v17481_v54 = vld [vmem:[#allocation13 + $0x514] ss:$8 sps:$4 sm:$0xff]  }
 0xcf1   : > { %11049 = vmatpush1.bf16.msra.mxu1 %v17342_v6  ;;  %v9014_v6 = vrot.slane %v17422_v58, 6  ;;  %v17479_v58 = vld [vmem:[#allocation13 + $0x510] ss:$8 sps:$4 sm:$0xff]  }
 0xcf2   : > { %11050 = vmatprep.subr.bf16.mxu1 %v17347_v35  ;;  %v20091_v35 = vsel %vm19224_vm4, %v14242_v27, %v9018_v15  ;;  %v17484_v27 = vld [vmem:[#allocation13 + $0x524] ss:$8 sps:$4 sm:$0xff]   ;;  %v17482_v15 = vld [vmem:[#allocation13 + $0x520] ss:$8 sps:$4 sm:$0xff]  }
 0xcf5   : > { %11051 = vmatpush1.bf16.msra.mxu1 %v17345_v18  ;;  %v20095_v18 = vsel %vm19224_vm4, %v14243_v62, %v9022_v53  ;;  %v17487_v62 = vld [vmem:[#allocation13 + $0x534] ss:$8 sps:$4 sm:$0xff]   ;;  %v17485_v53 = vld [vmem:[#allocation13 + $0x530] ss:$8 sps:$4 sm:$0xff]  }
 0xcf6   : > { %11052 = vmatprep.subr.bf16.mxu1 %v17350_v22  ;;  %v17409_v22 = vld [vmem:[#allocation13 + $0x3f0] ss:$8 sps:$4 sm:$0xff]   ;;  %v9158_v19 = vcombine.low %v20091_v35, %v20095_v18 }
 0xcf9   : > { %11053 = vmatpush1.bf16.msra.mxu1 %v17348_v36  ;;  %v17413_v36 = vld [vmem:[#allocation5 + $0x40] ss:$16 sps:$4 sm:$0xff]  }
 0xcfa   : > { %11054 = vmatprep.subr.bf16.mxu1 %v17353_v12  ;;  %v17416_v12 = vld [vmem:[#allocation13 + $0x404] ss:$8 sps:$4 sm:$0xff]  }
 0xcfd   : > { %11055 = vmatpush1.bf16.msra.mxu1 %v17351_v39  ;;  %v20099_v39 = vsel %vm19224_vm4, %v14240_v32, %v9010_v4  ;;  %v17493_v32 = vld [vmem:[#allocation13 + $0x554] ss:$8 sps:$4 sm:$0xff]   ;;  %v17491_v4 = vld [vmem:[#allocation13 + $0x550] ss:$8 sps:$4 sm:$0xff]  }
 0xcfe   : > { %11056 = vmatprep.subr.bf16.mxu1 %v17356_v56  ;;  %v20103_v56 = vsel %vm19224_vm4, %v14241_v13, %v9014_v6  ;;  %v17496_v13 = vld [vmem:[#allocation13 + $0x564] ss:$8 sps:$4 sm:$0xff]   ;;  %v17494_v6 = vld [vmem:[#allocation13 + $0x560] ss:$8 sps:$4 sm:$0xff]  }
 0xcff   : > { %v9157_v23 = vcombine.high %v20099_v39, %v20103_v56  ;;  %v9156_v57 = vcombine.low %v20099_v39, %v20103_v56  ;;  %v17503_v39 = vld [vmem:[#allocation13 + $0x590] ss:$8 sps:$4 sm:$0xff]   ;;  %v17508_v56 = vld [vmem:[#allocation13 + $0x5a4] ss:$8 sps:$4 sm:$0xff]  }
 0xd01   : > { %11057 = vmatpush1.bf16.msra.mxu1 %v17354_v60  ;;  %v9159_v60 = vcombine.high %v20091_v35, %v20095_v18  ;;  %v17499_v35 = vld [vmem:[#allocation13 + $0x574] ss:$8 sps:$4 sm:$0xff]   ;;  %v17497_v18 = vld [vmem:[#allocation13 + $0x570] ss:$8 sps:$4 sm:$0xff]  }
 0xd02   : > { %11058 = vmatprep.subr.bf16.mxu1 %v17359_v29  ;;  %v17412_v29 = vld [vmem:[#allocation5 + $0x20] ss:$16 sps:$4 sm:$0xff]  }
 0xd03   : > { %v9202_v43 = vpack.c.bf16 %v17413_v36, %v17412_v29  ;;  %v9205_v0 = vpack.c.bf16 %v9159_v60, %v9157_v23  ;;  %v17500_v36 = vld [vmem:[#allocation13 + $0x580] ss:$8 sps:$4 sm:$0xff]   ;;  %v17511_v29 = vld [vmem:[#allocation13 + $0x5b4] ss:$8 sps:$4 sm:$0xff]   ;;  %v17514_v23 = vld [vmem:[#allocation13 + $0x5c4] ss:$8 sps:$4 sm:$0xff]  }
 0xd04   : > { %v17506_v60 = vld [vmem:[#allocation13 + $0x5a0] ss:$8 sps:$4 sm:$0xff]  }
 0xd05   : > { %11059 = vmatpush1.bf16.msra.mxu1 %v17357_v3  ;;  %v17414_v3 = vld [vmem:[#allocation13 + $0x400] ss:$8 sps:$4 sm:$0xff]  }
 0xd06   : > { %11071 = vmatprep.subr.bf16.mxu1 %v17364_v17  ;;  %v17431_v17 = vld [vmem:[#allocation13 + $0x414] ss:$8 sps:$4 sm:$0xff]  }
 0xd08   : > { %11061 = vmatmul.mubr.bf16.vlgmr.msra.gmra.mrb[252].mxu1 %v9200_v48  ;;  %v17432_v48 = vld [vmem:[#allocation13 + $0x420] ss:$8 sps:$4 sm:$0xff]  }
 0xd09   : > { %11072 = vmatpush1.bf16.msra.mxu1 %v17362_v21  ;;  %11103 = vmatprep.mubr.bf16.mxu1 %v9203_v31  ;;  %v17429_v21 = vld [vmem:[#allocation13 + $0x410] ss:$8 sps:$4 sm:$0xff]  }
 0xd0a   : > { %11073 = vmatprep.subr.bf16.mxu1 %v17369_v30  ;;  %v17437_v30 = vld [vmem:[#allocation13 + $0x434] ss:$8 sps:$4 sm:$0xff]   ;;  %v17435_v31 = vld [vmem:[#allocation13 + $0x430] ss:$8 sps:$4 sm:$0xff]  }
 0xd0d   : > { %11074 = vmatpush1.bf16.msra.mxu1 %v17367_v26  ;;  %v17440_v26 = vld [vmem:[#allocation13 + $0x444] ss:$8 sps:$4 sm:$0xff]  }
 0xd0e   : > { %11075 = vmatprep.subr.bf16.mxu1 %v17372_v55  ;;  %v17438_v55 = vld [vmem:[#allocation13 + $0x440] ss:$8 sps:$4 sm:$0xff]  }
 0xd11   : > { %11076 = vmatpush1.bf16.msra.mxu1 %v17370_v47  ;;  %v17443_v47 = vld [vmem:[#allocation13 + $0x454] ss:$8 sps:$4 sm:$0xff]  }
 0xd12   : > { %11077 = vmatprep.subr.bf16.mxu1 %v17375_v14  ;;  %v17441_v14 = vld [vmem:[#allocation13 + $0x450] ss:$8 sps:$4 sm:$0xff]  }
 0xd15   : > { %11078 = vmatpush1.bf16.msra.mxu1 %v17373_v33  ;;  %v17446_v33 = vld [vmem:[#allocation13 + $0x464] ss:$8 sps:$4 sm:$0xff]  }
 0xd16   : > { %11079 = vmatprep.subr.bf16.mxu1 %v17378_v40  ;;  %v17444_v40 = vld [vmem:[#allocation13 + $0x460] ss:$8 sps:$4 sm:$0xff]  }
 0xd19   : > { %11080 = vmatpush1.bf16.msra.mxu1 %v17376_v50  ;;  %v17449_v50 = vld [vmem:[#allocation13 + $0x474] ss:$8 sps:$4 sm:$0xff]  }
 0xd1a   : > { %11081 = vmatprep.subr.bf16.mxu1 %v17381_v41  ;;  %v17447_v41 = vld [vmem:[#allocation13 + $0x470] ss:$8 sps:$4 sm:$0xff]  }
 0xd1d   : > { %11082 = vmatpush1.bf16.msra.mxu1 %v17379_v10  ;;  %v17452_v10 = vld [vmem:[#allocation13 + $0x484] ss:$8 sps:$4 sm:$0xff]  }
 0xd1e   : > { %11083 = vmatprep.subr.bf16.mxu1 %v17384_v1  ;;  %v17450_v1 = vld [vmem:[#allocation13 + $0x480] ss:$8 sps:$4 sm:$0xff]  }
 0xd21   : > { %11084 = vmatpush1.bf16.msra.mxu1 %v17382_v59  ;;  %v17455_v59 = vld [vmem:[#allocation13 + $0x494] ss:$8 sps:$4 sm:$0xff]  }
 0xd22   : > { %11085 = vmatprep.subr.bf16.mxu1 %v17387_v8  ;;  %v17453_v8 = vld [vmem:[#allocation13 + $0x490] ss:$8 sps:$4 sm:$0xff]  }
 0xd25   : > { %11086 = vmatpush1.bf16.msra.mxu1 %v17385_v7  ;;  %v17458_v7 = vld [vmem:[#allocation13 + $0x4a4] ss:$8 sps:$4 sm:$0xff]  }
 0xd26   : > { %11087 = vmatprep.subr.bf16.mxu1 %v17390_v61  ;;  %v17456_v61 = vld [vmem:[#allocation13 + $0x4a0] ss:$8 sps:$4 sm:$0xff]  }
 0xd29   : > { %11088 = vmatpush1.bf16.msra.mxu1 %v17388_v11  ;;  %v17461_v11 = vld [vmem:[#allocation13 + $0x4b4] ss:$8 sps:$4 sm:$0xff]  }
 0xd2a   : > { %11089 = vmatprep.subr.bf16.mxu1 %v17393_v24  ;;  %v17459_v24 = vld [vmem:[#allocation13 + $0x4b0] ss:$8 sps:$4 sm:$0xff]  }
 0xd2d   : > { %11090 = vmatpush1.bf16.msra.mxu1 %v17391_v52  ;;  %v17464_v52 = vld [vmem:[#allocation13 + $0x4c4] ss:$8 sps:$4 sm:$0xff]  }
 0xd2e   : > { %11091 = vmatprep.subr.bf16.mxu1 %v17396_v63  ;;  %v17462_v63 = vld [vmem:[#allocation13 + $0x4c0] ss:$8 sps:$4 sm:$0xff]  }
 0xd31   : > { %11092 = vmatpush1.bf16.msra.mxu1 %v17394_v20  ;;  %v17467_v20 = vld [vmem:[#allocation13 + $0x4d4] ss:$8 sps:$4 sm:$0xff]  }
 0xd32   : > { %11093 = vmatprep.subr.bf16.mxu1 %v17399_v28  ;;  %v17465_v28 = vld [vmem:[#allocation13 + $0x4d0] ss:$8 sps:$4 sm:$0xff]  }
 0xd35   : > { %11094 = vmatpush1.bf16.msra.mxu1 %v17397_v34  ;;  %v17470_v34 = vld [vmem:[#allocation13 + $0x4e4] ss:$8 sps:$4 sm:$0xff]  }
 0xd36   : > { %11095 = vmatprep.subr.bf16.mxu1 %v17402_v16  ;;  %v17468_v16 = vld [vmem:[#allocation13 + $0x4e0] ss:$8 sps:$4 sm:$0xff]  }
 0xd39   : > { %11096 = vmatpush1.bf16.msra.mxu1 %v17400_v25  ;;  %v17473_v25 = vld [vmem:[#allocation13 + $0x4f4] ss:$8 sps:$4 sm:$0xff]  }
 0xd3a   : > { %11097 = vmatprep.subr.bf16.mxu1 %v17405_v45  ;;  %v17471_v45 = vld [vmem:[#allocation13 + $0x4f0] ss:$8 sps:$4 sm:$0xff]  }
 0xd3d   : > { %11098 = vmatpush1.bf16.msra.mxu1 %v17403_v49  ;;  %v9204_v49 = vpack.c.bf16 %v9158_v19, %v9156_v57  ;;  %v17555_v19 = vld [vmem:[#allocation13 + $0x690] ss:$8 sps:$4 sm:$0xff]   ;;  %v17563_v57 = vld [vmem:[#allocation13 + $0x6b4] ss:$8 sps:$4 sm:$0xff]  }
 0xd3e   : > { %11099 = vmatprep.subr.bf16.mxu1 %v17408_v46  ;;  %v9207_v46 = vpack.c.bf16 %v17478_v42, %v17477_v9  ;;  %v17558_v42 = vld [vmem:[#allocation13 + $0x6a0] ss:$8 sps:$4 sm:$0xff]   ;;  %v17566_v9 = vld [vmem:[#allocation13 + $0x6c4] ss:$8 sps:$4 sm:$0xff]  }
 0xd41   : > { %11100 = vmatpush1.bf16.msra.mxu1 %v17406_v2  ;;  %v17490_v2 = vld [vmem:[#allocation13 + $0x544] ss:$8 sps:$4 sm:$0xff]  }
 0xd42   : > { %11101 = vmatprep.subr.bf16.mxu1 %v17411_v5  ;;  %v17488_v5 = vld [vmem:[#allocation13 + $0x540] ss:$8 sps:$4 sm:$0xff]  }
 0xd45   : > { %11102 = vmatpush1.bf16.msra.mxu1 %v17409_v22  ;;  %v17502_v22 = vld [vmem:[#allocation13 + $0x584] ss:$8 sps:$4 sm:$0xff]  }
 0xd46   : > { %11114 = vmatprep.subr.bf16.mxu1 %v17416_v12  ;;  %v17505_v12 = vld [vmem:[#allocation13 + $0x594] ss:$8 sps:$4 sm:$0xff]  }
 0xd48   : > { %11104 = vmatmul.mubr.bf16.vlgmr.msra.gmra.mrb[252].mxu1 %v9202_v43  ;;  %v17512_v43 = vld [vmem:[#allocation13 + $0x5c0] ss:$8 sps:$4 sm:$0xff]  }
 0xd49   : > { %11115 = vmatpush1.bf16.msra.mxu1 %v17414_v3  ;;  %11146 = vmatprep.mubr.bf16.mxu1 %v9205_v0  ;;  %v17509_v3 = vld [vmem:[#allocation13 + $0x5b0] ss:$8 sps:$4 sm:$0xff]  }
 0xd4a   : > { %11116 = vmatprep.subr.bf16.mxu1 %v17431_v17  ;;  %v17517_v17 = vld [vmem:[#allocation13 + $0x5d4] ss:$8 sps:$4 sm:$0xff]   ;;  %v17515_v0 = vld [vmem:[#allocation13 + $0x5d0] ss:$8 sps:$4 sm:$0xff]  }
 0xd4d   : > { %11117 = vmatpush1.bf16.msra.mxu1 %v17429_v21  ;;  %v17520_v21 = vld [vmem:[#allocation13 + $0x5e4] ss:$8 sps:$4 sm:$0xff]  }
 0xd4e   : > { %11118 = vmatprep.subr.bf16.mxu1 %v17434_v38  ;;  %v17518_v38 = vld [vmem:[#allocation13 + $0x5e0] ss:$8 sps:$4 sm:$0xff]  }
 0xd51   : > { %11119 = vmatpush1.bf16.msra.mxu1 %v17432_v48  ;;  %v17523_v48 = vld [vmem:[#allocation13 + $0x5f4] ss:$8 sps:$4 sm:$0xff]  }
 0xd52   : > { %11120 = vmatprep.subr.bf16.mxu1 %v17437_v30  ;;  %v17521_v30 = vld [vmem:[#allocation13 + $0x5f0] ss:$8 sps:$4 sm:$0xff]  }
 0xd55   : > { %11121 = vmatpush1.bf16.msra.mxu1 %v17435_v31  ;;  %v17525_v31 = vld [vmem:[#allocation5 + $0x44] ss:$16 sps:$4 sm:$0xff]  }
 0xd56   : > { %11122 = vmatprep.subr.bf16.mxu1 %v17440_v26  ;;  %v17528_v26 = vld [vmem:[#allocation13 + $0x604] ss:$8 sps:$4 sm:$0xff]  }
 0xd59   : > { %11123 = vmatpush1.bf16.msra.mxu1 %v17438_v55  ;;  %v17529_v55 = vld [vmem:[#allocation5 + $0x48] ss:$16 sps:$4 sm:$0xff]  }
 0xd5a   : > { %11124 = vmatprep.subr.bf16.mxu1 %v17443_v47  ;;  %v17530_v47 = vld [vmem:[#allocation5 + $0x68] ss:$16 sps:$4 sm:$0xff]  }
 0xd5d   : > { %11125 = vmatpush1.bf16.msra.mxu1 %v17441_v14  ;;  %v17524_v14 = vld [vmem:[#allocation5 + $0x24] ss:$16 sps:$4 sm:$0xff]  }
 0xd5e   : > { %11126 = vmatprep.subr.bf16.mxu1 %v17446_v33  ;;  %v17526_v33 = vld [vmem:[#allocation13 + $0x600] ss:$8 sps:$4 sm:$0xff]  }
 0xd61   : > { %11127 = vmatpush1.bf16.msra.mxu1 %v17444_v40  ;;  %v9206_v40 = vpack.c.bf16 %v17525_v31, %v17524_v14  ;;  %v17578_v31 = vld [vmem:[#allocation13 + $0x700] ss:$8 sps:$4 sm:$0xff]  }
 0xd62   : > { %11128 = vmatprep.subr.bf16.mxu1 %v17449_v50  ;;  %v17533_v50 = vld [vmem:[#allocation13 + $0x614] ss:$8 sps:$4 sm:$0xff]   ;;  %v11339_v14 = vld [vmem:[#allocation14 + $0x20] sm:$0xff] }
 0xd65   : > { %11129 = vmatpush1.bf16.msra.mxu1 %v17447_v41  ;;  %v9209_v41 = vpack.c.bf16 %v17530_v47, %v17529_v55  ;;  %v17595_v55 = vld [vmem:[#allocation13 + $0x714] ss:$8 sps:$4 sm:$0xff]   ;;  %v11335_v47 = vld [vmem:[#allocation14] sm:$0xff] }
 0xd66   : > { %11130 = vmatprep.subr.bf16.mxu1 %v17452_v10  ;;  %v17531_v10 = vld [vmem:[#allocation13 + $0x610] ss:$8 sps:$4 sm:$0xff]  }
 0xd69   : > { %11131 = vmatpush1.bf16.msra.mxu1 %v17450_v1  ;;  %v17536_v1 = vld [vmem:[#allocation13 + $0x624] ss:$8 sps:$4 sm:$0xff]  }
 0xd6a   : > { %11132 = vmatprep.subr.bf16.mxu1 %v17455_v59  ;;  %v17534_v59 = vld [vmem:[#allocation13 + $0x620] ss:$8 sps:$4 sm:$0xff]  }
 0xd6d   : > { %11133 = vmatpush1.bf16.msra.mxu1 %v17453_v8  ;;  %v17539_v8 = vld [vmem:[#allocation13 + $0x634] ss:$8 sps:$4 sm:$0xff]  }
 0xd6e   : > { %11134 = vmatprep.subr.bf16.mxu1 %v17458_v7  ;;  %v17537_v7 = vld [vmem:[#allocation13 + $0x630] ss:$8 sps:$4 sm:$0xff]  }
 0xd71   : > { %11135 = vmatpush1.bf16.msra.mxu1 %v17456_v61  ;;  %v17542_v61 = vld [vmem:[#allocation13 + $0x644] ss:$8 sps:$4 sm:$0xff]  }
 0xd72   : > { %11136 = vmatprep.subr.bf16.mxu1 %v17461_v11  ;;  %v17540_v11 = vld [vmem:[#allocation13 + $0x640] ss:$8 sps:$4 sm:$0xff]  }
 0xd75   : > { %11137 = vmatpush1.bf16.msra.mxu1 %v17459_v24  ;;  %v17545_v24 = vld [vmem:[#allocation13 + $0x654] ss:$8 sps:$4 sm:$0xff]  }
 0xd76   : > { %11138 = vmatprep.subr.bf16.mxu1 %v17464_v52  ;;  %v17543_v52 = vld [vmem:[#allocation13 + $0x650] ss:$8 sps:$4 sm:$0xff]  }
 0xd79   : > { %11139 = vmatpush1.bf16.msra.mxu1 %v17462_v63  ;;  %v17548_v63 = vld [vmem:[#allocation13 + $0x664] ss:$8 sps:$4 sm:$0xff]  }
 0xd7a   : > { %11140 = vmatprep.subr.bf16.mxu1 %v17467_v20  ;;  %v17546_v20 = vld [vmem:[#allocation13 + $0x660] ss:$8 sps:$4 sm:$0xff]  }
 0xd7d   : > { %11141 = vmatpush1.bf16.msra.mxu1 %v17465_v28  ;;  %v17551_v28 = vld [vmem:[#allocation13 + $0x674] ss:$8 sps:$4 sm:$0xff]  }
 0xd7e   : > { %11142 = vmatprep.subr.bf16.mxu1 %v17470_v34  ;;  %v17549_v34 = vld [vmem:[#allocation13 + $0x670] ss:$8 sps:$4 sm:$0xff]  }
 0xd81   : > { %11143 = vmatpush1.bf16.msra.mxu1 %v17468_v16  ;;  %v17554_v16 = vld [vmem:[#allocation13 + $0x684] ss:$8 sps:$4 sm:$0xff]  }
 0xd82   : > { %11144 = vmatprep.subr.bf16.mxu1 %v17473_v25  ;;  %v17552_v25 = vld [vmem:[#allocation13 + $0x680] ss:$8 sps:$4 sm:$0xff]  }
 0xd85   : > { %11145 = vmatpush1.bf16.msra.mxu1 %v17471_v45  ;;  %v17557_v45 = vld [vmem:[#allocation13 + $0x694] ss:$8 sps:$4 sm:$0xff]  }
 0xd86   : > { %11157 = vmatprep.subr.bf16.mxu1 %v17476_v37  ;;  %v17560_v37 = vld [vmem:[#allocation13 + $0x6a4] ss:$8 sps:$4 sm:$0xff]  }
 0xd88   : > { %11147 = vmatmul.mubr.bf16.vlgmr.msra.gmra.mrb[252].mxu1 %v9204_v49  ;;  %v17564_v49 = vld [vmem:[#allocation13 + $0x6c0] ss:$8 sps:$4 sm:$0xff]  }
 0xd89   : > { %11158 = vmatpush1.bf16.msra.mxu1 %v17474_v51  ;;  %11189 = vmatprep.mubr.bf16.mxu1 %v9207_v46  ;;  %v17561_v51 = vld [vmem:[#allocation13 + $0x6b0] ss:$8 sps:$4 sm:$0xff]   ;;  %v17589_v46 = vld [vmem:[#allocation5 + $0x64] ss:$8 sps:$4 sm:$0x33]  }
 0xd8a   : > { %11159 = vmatprep.subr.bf16.mxu1 %v17481_v54  ;;  %v17587_v54 = vld [vmem:[#allocation5 + $0x60] ss:$8 sps:$4 sm:$0xcc]  }
 0xd8d   : > { %11160 = vmatpush1.bf16.msra.mxu1 %v17479_v58  ;;  %v17590_v58 = vld [vmem:[#allocation5 + $0x70] ss:$8 sps:$4 sm:$0xcc]  }
 0xd8e   : > { %11161 = vmatprep.subr.bf16.mxu1 %v17484_v27  ;;  %v17569_v27 = vld [vmem:[#allocation13 + $0x6d4] ss:$8 sps:$4 sm:$0xff]  }
 0xd91   : > { %11162 = vmatpush1.bf16.msra.mxu1 %v17482_v15  ;;  %v17592_v15 = vld [vmem:[#allocation5 + $0x74] ss:$8 sps:$4 sm:$0x33]  }
 0xd92   : > { %11163 = vmatprep.subr.bf16.mxu1 %v17487_v62  ;;  %v17581_v62 = vld [vmem:[#allocation5 + $0x40] ss:$8 sps:$4 sm:$0xcc]  }
 0xd95   : > { %11164 = vmatpush1.bf16.msra.mxu1 %v17485_v53  ;;  %v17583_v53 = vld [vmem:[#allocation5 + $0x44] ss:$8 sps:$4 sm:$0x33]  }
 0xd96   : > { %11165 = vmatprep.subr.bf16.mxu1 %v17490_v2  ;;  %v17584_v2 = vld [vmem:[#allocation5 + $0x50] ss:$8 sps:$4 sm:$0xcc]  }
 0xd99   : > { %11166 = vmatpush1.bf16.msra.mxu1 %v17488_v5  ;;  %v17586_v5 = vld [vmem:[#allocation5 + $0x54] ss:$8 sps:$4 sm:$0x33]  }
 0xd9a   : > { %11167 = vmatprep.subr.bf16.mxu1 %v17493_v32  ;;  %v17567_v32 = vld [vmem:[#allocation13 + $0x6d0] ss:$8 sps:$4 sm:$0xff]  }
 0xd9d   : > { %11168 = vmatpush1.bf16.msra.mxu1 %v17491_v4  ;;  %v17572_v4 = vld [vmem:[#allocation13 + $0x6e4] ss:$8 sps:$4 sm:$0xff]  }
 0xd9e   : > { %11169 = vmatprep.subr.bf16.mxu1 %v17496_v13  ;;  %v14246_v13 = vrot.slane %v17587_v54, 10 }
 0xda1   : > { %11170 = vmatpush1.bf16.msra.mxu1 %v17494_v6  ;;  %v9098_v6 = vrot.slane %v17589_v46, 6  ;;  %v17605_v46 = vld [vmem:[#allocation13 + $0x750] ss:$8 sps:$4 sm:$0xff]  }
 0xda2   : > { %11171 = vmatprep.subr.bf16.mxu1 %v17499_v35  ;;  %v14247_v35 = vrot.slane %v17590_v58, 10 }
 0xda5   : > { %11172 = vmatpush1.bf16.msra.mxu1 %v17497_v18  ;;  %v9102_v18 = vrot.slane %v17592_v15, 6  ;;  %v11383_v15 = vld [vmem:[#allocation14 + $0x180] sm:$0xff] }
 0xda6   : > { %11173 = vmatprep.subr.bf16.mxu1 %v17502_v22  ;;  %v14244_v22 = vrot.slane %v17581_v62, 10  ;;  %v11387_v62 = vld [vmem:[#allocation14 + $0x1a0] sm:$0xff] }
 0xda9   : > { %11174 = vmatpush1.bf16.msra.mxu1 %v17500_v36  ;;  %v9090_v36 = vrot.slane %v17583_v53, 6 }
 0xdaa   : > { %11175 = vmatprep.subr.bf16.mxu1 %v17505_v12  ;;  %v14245_v12 = vrot.slane %v17584_v2, 10  ;;  %v17608_v2 = vld [vmem:[#allocation13 + $0x760] ss:$8 sps:$4 sm:$0xff]  }
 0xdad   : > { %11176 = vmatpush1.bf16.msra.mxu1 %v17503_v39  ;;  %v9094_v39 = vrot.slane %v17586_v5, 6  ;;  %v14609_v5 = vcombine.high %v11383_v15, %v11387_v62 }
 0xdae   : > { %11177 = vmatprep.subr.bf16.mxu1 %v17508_v56  ;;  %v17570_v56 = vld [vmem:[#allocation13 + $0x6e0] ss:$8 sps:$4 sm:$0xff]  }
 0xdb1   : > { %11178 = vmatpush1.bf16.msra.mxu1 %v17506_v60  ;;  %v17575_v60 = vld [vmem:[#allocation13 + $0x6f4] ss:$8 sps:$4 sm:$0xff]  }
 0xdb2   : > { %11179 = vmatprep.subr.bf16.mxu1 %v17511_v29  ;;  %v20115_v29 = vsel %vm19224_vm4, %v14244_v22, %v9090_v36  ;;  %v17616_v22 = vld [vmem:[#allocation13 + $0x784] ss:$8 sps:$4 sm:$0xff]  }
 0xdb3   : > { %v11399_v36 = vld [vmem:[#allocation14 + $0x200] sm:$0xff] }
 0xdb5   : > { %11180 = vmatpush1.bf16.msra.mxu1 %v17509_v3  ;;  %v20119_v3 = vsel %vm19224_vm4, %v14245_v12, %v9094_v39  ;;  %v11403_v12 = vld [vmem:[#allocation14 + $0x220] sm:$0xff] }
 0xdb6   : > { %11181 = vmatprep.subr.bf16.mxu1 %v17514_v23  ;;  %v20123_v23 = vsel %vm19224_vm4, %v14246_v13, %v9098_v6  ;;  %v11395_v13 = vld [vmem:[#allocation14 + $0x1e0] sm:$0xff]  ;;  %v14608_v6 = vcombine.low %v11383_v15, %v11387_v62  ;;  %v17643_v62 = vld [vmem:[#allocation13 + $0x810] ss:$8 sps:$4 sm:$0xff]  }
 0xdb9   : > { %11182 = vmatpush1.bf16.msra.mxu1 %v17512_v43  ;;  %v20127_v43 = vsel %vm19224_vm4, %v14247_v35, %v9102_v18  ;;  %v17611_v35 = vld [vmem:[#allocation13 + $0x770] ss:$8 sps:$4 sm:$0xff]  }
 0xdba   : > { %11183 = vmatprep.subr.bf16.mxu1 %v17517_v17  ;;  %v17573_v17 = vld [vmem:[#allocation13 + $0x6f0] ss:$8 sps:$4 sm:$0xff]  }
 0xdbd   : > { %11184 = vmatpush1.bf16.msra.mxu1 %v17515_v0  ;;  %v17576_v0 = vld [vmem:[#allocation5 + $0x40] ss:$16 sps:$4 sm:$0xff]  }
 0xdbe   : > { %11185 = vmatprep.subr.bf16.mxu1 %v17520_v21  ;;  %v17577_v21 = vld [vmem:[#allocation5 + $0x60] ss:$16 sps:$4 sm:$0xff]  }
 0xdc1   : > { %11186 = vmatpush1.bf16.msra.mxu1 %v17518_v38  ;;  %v17580_v38 = vld [vmem:[#allocation13 + $0x704] ss:$8 sps:$4 sm:$0xff]  }
 0xdc2   : > { %11187 = vmatprep.subr.bf16.mxu1 %v17523_v48  ;;  %v9181_v48 = vcombine.high %v20115_v29, %v20119_v3 }
 0xdc5   : > { %11188 = vmatpush1.bf16.msra.mxu1 %v17521_v30  ;;  %v9183_v30 = vcombine.high %v20123_v23, %v20127_v43 }
 0xdc6   : > { %11200 = vmatprep.subr.bf16.mxu1 %v17528_v26  ;;  %v9208_v26 = vpack.c.bf16 %v17577_v21, %v17576_v0  ;;  %v11407_v0 = vld [vmem:[#allocation14 + $0x240] sm:$0xff] }
 0xdc7   : > { %v9211_v44 = vpack.c.bf16 %v9183_v30, %v9181_v48  ;;  %v11411_v21 = vld [vmem:[#allocation14 + $0x260] sm:$0xff]  ;;  %v17617_v48 = vld [vmem:[#allocation13 + $0x790] ss:$8 sps:$4 sm:$0xff]  }
 0xdc8   : > { %11190 = vmatmul.mubr.bf16.vlgmr.msra.gmra.mrb[252].mxu1 %v9206_v40  ;;  %v17593_v40 = vld [vmem:[#allocation13 + $0x710] ss:$8 sps:$4 sm:$0xff]   ;;  %v14633_v30 = vcombine.high %v11407_v0, %v11411_v21 }
 0xdc9   : > { %11201 = vmatpush1.bf16.msra.mxu1 %v17526_v33  ;;  %11232 = vmatprep.mubr.bf16.mxu1 %v9209_v41  ;;  %v11343_v33 = vld [vmem:[#allocation14 + $0x40] sm:$0xff]  ;;  %v14561_v41 = vcombine.high %v11335_v47, %v11339_v14 }
 0xdca   : > { %11202 = vmatprep.subr.bf16.mxu1 %v17533_v50  ;;  %v14560_v50 = vcombine.low %v11335_v47, %v11339_v14  ;;  %v17620_v47 = vld [vmem:[#allocation13 + $0x7a0] ss:$8 sps:$4 sm:$0xff]  }
 0xdcb   : > { %12103 = vmatprep.subr.bf16.mxu0 %v14561_v41 }
 0xdcc   : > { %12104 = vmatpush1.bf16.msra.mxu0 %v14560_v50  ;;  %v11427_v50 = vld [vmem:[#allocation14 + $0x2e0] sm:$0xff] }
 0xdcd   : > { %11203 = vmatpush1.bf16.msra.mxu1 %v17531_v10  ;;  %v11347_v10 = vld [vmem:[#allocation14 + $0x60] sm:$0xff] }
 0xdce   : > { %11204 = vmatprep.subr.bf16.mxu1 %v17536_v1  ;;  %v17598_v1 = vld [vmem:[#allocation13 + $0x724] ss:$8 sps:$4 sm:$0xff]  }
 0xdd1   : > { %11205 = vmatpush1.bf16.msra.mxu1 %v17534_v59  ;;  %v14569_v59 = vcombine.high %v11343_v33, %v11347_v10 }
 0xdd2   : > { %11206 = vmatprep.subr.bf16.mxu1 %v17539_v8  ;;  %v11351_v8 = vld [vmem:[#allocation14 + $0x80] sm:$0xff] }
 0xdd3   : > { %12105 = vmatprep.subr.bf16.mxu0 %v14569_v59  ;;  %v17628_v59 = vld [vmem:[#allocation13 + $0x7c4] ss:$8 sps:$4 sm:$0xff]  }
 0xdd5   : > { %11207 = vmatpush1.bf16.msra.mxu1 %v17537_v7  ;;  %v11355_v7 = vld [vmem:[#allocation14 + $0xa0] sm:$0xff] }
 0xdd6   : > { %11208 = vmatprep.subr.bf16.mxu1 %v17542_v61  ;;  %v14568_v61 = vcombine.low %v11343_v33, %v11347_v10  ;;  %v17625_v33 = vld [vmem:[#allocation13 + $0x7b4] ss:$8 sps:$4 sm:$0xff]   ;;  %v17623_v10 = vld [vmem:[#allocation13 + $0x7b0] ss:$8 sps:$4 sm:$0xff]  }
 0xdd8   : > { %12106 = vmatpush1.bf16.msra.mxu0 %v14568_v61 }
 0xdd9   : > { %11209 = vmatpush1.bf16.msra.mxu1 %v17540_v11  ;;  %v17596_v11 = vld [vmem:[#allocation13 + $0x720] ss:$8 sps:$4 sm:$0xff]  }
 0xdda   : > { %11210 = vmatprep.subr.bf16.mxu1 %v17545_v24  ;;  %v14577_v24 = vcombine.high %v11351_v8, %v11355_v7 }
 0xddc   : > { %12107 = vmatprep.subr.bf16.mxu0 %v14577_v24 }
 0xddd   : > { %11211 = vmatpush1.bf16.msra.mxu1 %v17543_v52  ;;  %v17601_v52 = vld [vmem:[#allocation13 + $0x734] ss:$8 sps:$4 sm:$0xff]  }
 0xdde   : > { %11212 = vmatprep.subr.bf16.mxu1 %v17548_v63  ;;  %v11359_v63 = vld [vmem:[#allocation14 + $0xc0] sm:$0xff] }
 0xde1   : > { %11213 = vmatpush1.bf16.msra.mxu1 %v17546_v20  ;;  %v11363_v20 = vld [vmem:[#allocation14 + $0xe0] sm:$0xff] }
 0xde2   : > { %11214 = vmatprep.subr.bf16.mxu1 %v17551_v28  ;;  %v14576_v28 = vcombine.low %v11351_v8, %v11355_v7  ;;  %v11431_v8 = vld [vmem:[#allocation14 + $0x300] sm:$0xff] }
 0xde3   : > { %v11435_v7 = vld [vmem:[#allocation14 + $0x320] sm:$0xff] }
 0xde4   : > { %12108 = vmatpush1.bf16.msra.mxu0 %v14576_v28  ;;  %v14657_v24 = vcombine.high %v11431_v8, %v11435_v7  ;;  %v14656_v28 = vcombine.low %v11431_v8, %v11435_v7  ;;  %v11336_v7 = vld [vmem:[#allocation14 + $0x8] sm:$0xff] }
 0xde5   : > { %11215 = vmatpush1.bf16.msra.mxu1 %v17549_v34  ;;  %v17599_v34 = vld [vmem:[#allocation13 + $0x730] ss:$8 sps:$4 sm:$0xff]  }
 0xde6   : > { %11216 = vmatprep.subr.bf16.mxu1 %v17554_v16  ;;  %v14585_v16 = vcombine.high %v11359_v63, %v11363_v20 }
 0xde8   : > { %12109 = vmatprep.subr.bf16.mxu0 %v14585_v16 }
 0xde9   : > { %11217 = vmatpush1.bf16.msra.mxu1 %v17552_v25  ;;  %v17604_v25 = vld [vmem:[#allocation13 + $0x744] ss:$8 sps:$4 sm:$0xff]  }
 0xdea   : > { %11218 = vmatprep.subr.bf16.mxu1 %v17557_v45  ;;  %v11367_v45 = vld [vmem:[#allocation14 + $0x100] sm:$0xff] }
 0xded   : > { %11219 = vmatpush1.bf16.msra.mxu1 %v17555_v19  ;;  %v11371_v19 = vld [vmem:[#allocation14 + $0x120] sm:$0xff] }
 0xdee   : > { %11220 = vmatprep.subr.bf16.mxu1 %v17560_v37  ;;  %v14584_v37 = vcombine.low %v11359_v63, %v11363_v20  ;;  %v14592_v54 = vcombine.low %v11367_v45, %v11371_v19  ;;  %v11439_v63 = vld [vmem:[#allocation14 + $0x340] sm:$0xff] }
 0xdef   : > { %v11443_v20 = vld [vmem:[#allocation14 + $0x360] sm:$0xff] }
 0xdf0   : > { %12110 = vmatpush1.bf16.msra.mxu0 %v14584_v37  ;;  %v14665_v16 = vcombine.high %v11439_v63, %v11443_v20  ;;  %v17637_v37 = vld [vmem:[#allocation13 + $0x7f4] ss:$8 sps:$4 sm:$0xff]  }
 0xdf1   : > { %11221 = vmatpush1.bf16.msra.mxu1 %v17558_v42  ;;  %v17602_v42 = vld [vmem:[#allocation13 + $0x740] ss:$8 sps:$4 sm:$0xff]  }
 0xdf2   : > { %11222 = vmatprep.subr.bf16.mxu1 %v17563_v57  ;;  %v14593_v57 = vcombine.high %v11367_v45, %v11371_v19  ;;  %v14664_v45 = vcombine.low %v11439_v63, %v11443_v20  ;;  %v17632_v19 = vld [vmem:[#allocation13 + $0x7e0] ss:$8 sps:$4 sm:$0xff]  }
 0xdf4   : > { %12111 = vmatprep.subr.bf16.mxu0 %v14593_v57  ;;  %v9180_v57 = vcombine.low %v20115_v29, %v20119_v3  ;;  %v17646_v29 = vld [vmem:[#allocation13 + $0x820] ss:$8 sps:$4 sm:$0xff]   ;;  %v17651_v3 = vld [vmem:[#allocation13 + $0x834] ss:$8 sps:$4 sm:$0xff]  }
 0xdf5   : > { %11223 = vmatpush1.bf16.msra.mxu1 %v17561_v51  ;;  %v17607_v51 = vld [vmem:[#allocation13 + $0x754] ss:$8 sps:$4 sm:$0xff]   ;;  %12112 = vmatpush1.bf16.msra.mxu0 %v14592_v54 }
 0xdf6   : > { %11224 = vmatprep.subr.bf16.mxu1 %v17566_v9  ;;  %v11375_v9 = vld [vmem:[#allocation14 + $0x140] sm:$0xff]  ;;  %v17642_v54 = vld [vmem:[#allocation5 + $0x6c] ss:$16 sps:$4 sm:$0xff]  }
 0xdf9   : > { %11225 = vmatpush1.bf16.msra.mxu1 %v17564_v49  ;;  %v11379_v49 = vld [vmem:[#allocation14 + $0x160] sm:$0xff] }
 0xdfa   : > { %11226 = vmatprep.subr.bf16.mxu1 %v17569_v27  ;;  %v14601_v58 = vcombine.high %v11375_v9, %v11379_v49  ;;  %v17610_v27 = vld [vmem:[#allocation13 + $0x764] ss:$8 sps:$4 sm:$0xff]   ;;  %v14600_v53 = vcombine.low %v11375_v9, %v11379_v49 }
 0xdfb   : > { %v17640_v9 = vld [vmem:[#allocation13 + $0x804] ss:$8 sps:$4 sm:$0xff]  }
 0xdfc   : > { %12113 = vmatprep.subr.bf16.mxu0 %v14601_v58  ;;  %v17641_v49 = vld [vmem:[#allocation5 + $0x4c] ss:$16 sps:$4 sm:$0xff]  }
 0xdfd   : > { %11227 = vmatpush1.bf16.msra.mxu1 %v17567_v32  ;;  %v17613_v32 = vld [vmem:[#allocation13 + $0x774] ss:$8 sps:$4 sm:$0xff]   ;;  %12114 = vmatpush1.bf16.msra.mxu0 %v14600_v53  ;;  %v9213_v15 = vpack.c.bf16 %v17642_v54, %v17641_v49  ;;  %v17648_v53 = vld [vmem:[#allocation13 + $0x824] ss:$8 sps:$4 sm:$0xff]  }
 0xdfe   : > { %11228 = vmatprep.subr.bf16.mxu1 %v17572_v4  ;;  %v11391_v4 = vld [vmem:[#allocation14 + $0x1c0] sm:$0xff]  ;;  %12115 = vmatprep.subr.bf16.mxu0 %v14609_v5  ;;  %v17657_v5 = vld [vmem:[#allocation13 + $0x854] ss:$8 sps:$4 sm:$0xff]   ;;  %v11356_v49 = vld [vmem:[#allocation14 + $0xa8] sm:$0xff] }
 0xdff   : > { %v14617_v18 = vcombine.high %v11391_v4, %v11395_v13  ;;  %v14616_v39 = vcombine.low %v11391_v4, %v11395_v13  ;;  %v17660_v4 = vld [vmem:[#allocation13 + $0x864] ss:$8 sps:$4 sm:$0xff]   ;;  %v17658_v13 = vld [vmem:[#allocation13 + $0x860] ss:$8 sps:$4 sm:$0xff]  }
 0xe01   : > { %11229 = vmatpush1.bf16.msra.mxu1 %v17570_v56  ;;  %12116 = vmatpush1.bf16.msra.mxu0 %v14608_v6  ;;  %v17614_v56 = vld [vmem:[#allocation13 + $0x780] ss:$8 sps:$4 sm:$0xff]   ;;  %v17663_v6 = vld [vmem:[#allocation13 + $0x874] ss:$8 sps:$4 sm:$0xff]  }
 0xe02   : > { %11230 = vmatprep.subr.bf16.mxu1 %v17575_v60  ;;  %12117 = vmatprep.subr.bf16.mxu0 %v14617_v18  ;;  %v14625_v60 = vcombine.high %v11399_v36, %v11403_v12  ;;  %v17666_v18 = vld [vmem:[#allocation13 + $0x884] ss:$8 sps:$4 sm:$0xff]  }
 0xe05   : > { %11231 = vmatpush1.bf16.msra.mxu1 %v17573_v17  ;;  %v17619_v17 = vld [vmem:[#allocation13 + $0x794] ss:$8 sps:$4 sm:$0xff]   ;;  %12118 = vmatpush1.bf16.msra.mxu0 %v14616_v39  ;;  %v17672_v39 = vld [vmem:[#allocation13 + $0x8a4] ss:$8 sps:$4 sm:$0xff]  }
 0xe06   : > { %11243 = vmatprep.subr.bf16.mxu1 %v17580_v38  ;;  %v14624_v38 = vcombine.low %v11399_v36, %v11403_v12  ;;  %12119 = vmatprep.subr.bf16.mxu0 %v14625_v60  ;;  %v17669_v36 = vld [vmem:[#allocation13 + $0x894] ss:$8 sps:$4 sm:$0xff]   ;;  %v17667_v12 = vld [vmem:[#allocation13 + $0x890] ss:$8 sps:$4 sm:$0xff]  }
 0xe07   : > { %v17675_v60 = vld [vmem:[#allocation13 + $0x8b4] ss:$8 sps:$4 sm:$0xff]  }
 0xe08   : > { %11233 = vmatmul.mubr.bf16.vlgmr.msra.gmra.mrb[252].mxu1 %v9208_v26  ;;  %v11415_v26 = vld [vmem:[#allocation14 + $0x280] sm:$0xff] }
 0xe09   : > { %11244 = vmatpush1.bf16.msra.mxu1 %v17578_v31  ;;  %11275 = vmatprep.mubr.bf16.mxu1 %v9211_v44  ;;  %v17622_v31 = vld [vmem:[#allocation13 + $0x7a4] ss:$8 sps:$4 sm:$0xff]   ;;  %v14632_v44 = vcombine.low %v11407_v0, %v11411_v21  ;;  %v17676_v21 = vld [vmem:[#allocation13 + $0x8c0] ss:$8 sps:$4 sm:$0xff]  }
 0xe0a   : > { %11245 = vmatprep.subr.bf16.mxu1 %v17595_v55  ;;  %v11419_v55 = vld [vmem:[#allocation14 + $0x2a0] sm:$0xff]  ;;  %12120 = vmatpush1.bf16.msra.mxu0 %v14624_v38  ;;  %v17681_v38 = vld [vmem:[#allocation13 + $0x8d4] ss:$8 sps:$4 sm:$0xff]  }
 0xe0b   : > { %12121 = vmatprep.subr.bf16.mxu0 %v14633_v30  ;;  %v14641_v14 = vcombine.high %v11415_v26, %v11419_v55  ;;  %v14640_v41 = vcombine.low %v11415_v26, %v11419_v55  ;;  %v17678_v0 = vld [vmem:[#allocation13 + $0x8c4] ss:$8 sps:$4 sm:$0xff]   ;;  %v17687_v26 = vld [vmem:[#allocation13 + $0x8f4] ss:$8 sps:$4 sm:$0xff]   ;;  %v17685_v55 = vld [vmem:[#allocation13 + $0x8f0] ss:$8 sps:$4 sm:$0xff]  }
 0xe0c   : > { %v17684_v30 = vld [vmem:[#allocation13 + $0x8e4] ss:$8 sps:$4 sm:$0xff]  }
 0xe0d   : > { %11246 = vmatpush1.bf16.msra.mxu1 %v17593_v40  ;;  %v11423_v40 = vld [vmem:[#allocation14 + $0x2c0] sm:$0xff] }
 0xe0e   : > { %11247 = vmatprep.subr.bf16.mxu1 %v17598_v1  ;;  %12122 = vmatpush1.bf16.msra.mxu0 %v14632_v44  ;;  %v14649_v1 = vcombine.high %v11423_v40, %v11427_v50  ;;  %v14648_v61 = vcombine.low %v11423_v40, %v11427_v50  ;;  %v17688_v44 = vld [vmem:[#allocation5 + $0x44] ss:$16 sps:$4 sm:$0xff]  }
 0xe0f   : > { %12123 = vmatprep.subr.bf16.mxu0 %v14641_v14  ;;  %v11451_v40 = vld [vmem:[#allocation14 + $0x3a0] sm:$0xff] }
 0xe11   : > { %11248 = vmatpush1.bf16.msra.mxu1 %v17596_v11  ;;  %v17626_v11 = vld [vmem:[#allocation13 + $0x7c0] ss:$8 sps:$4 sm:$0xff]  }
 0xe12   : > { %11249 = vmatprep.subr.bf16.mxu1 %v17601_v52  ;;  %12124 = vmatpush1.bf16.msra.mxu0 %v14640_v41  ;;  %v17631_v52 = vld [vmem:[#allocation13 + $0x7d4] ss:$8 sps:$4 sm:$0xff]  }
 0xe13   : > { %12125 = vmatprep.subr.bf16.mxu0 %v14649_v1  ;;  %v11459_v1 = vld [vmem:[#allocation14 + $0x3e0] sm:$0xff] }
 0xe15   : > { %11250 = vmatpush1.bf16.msra.mxu1 %v17599_v34  ;;  %v17629_v34 = vld [vmem:[#allocation13 + $0x7d0] ss:$8 sps:$4 sm:$0xff]  }
 0xe16   : > { %11251 = vmatprep.subr.bf16.mxu1 %v17604_v25  ;;  %12126 = vmatpush1.bf16.msra.mxu0 %v14648_v61  ;;  %v17634_v25 = vld [vmem:[#allocation13 + $0x7e4] ss:$8 sps:$4 sm:$0xff]  }
 0xe17   : > { %12127 = vmatprep.subr.bf16.mxu0 %v14657_v24  ;;  %v11340_v61 = vld [vmem:[#allocation14 + $0x28] sm:$0xff] }
 0xe18   : > { %v14563_v24 = vcombine.high %v11336_v7, %v11340_v61 }
 0xe19   : > { %11252 = vmatpush1.bf16.msra.mxu1 %v17602_v42  ;;  %v17635_v42 = vld [vmem:[#allocation13 + $0x7f0] ss:$8 sps:$4 sm:$0xff]  }
 0xe1a   : > { %11253 = vmatprep.subr.bf16.mxu1 %v17607_v51  ;;  %12128 = vmatpush1.bf16.msra.mxu0 %v14656_v28  ;;  %v9182_v51 = vcombine.low %v20123_v23, %v20127_v43  ;;  %v17649_v23 = vld [vmem:[#allocation13 + $0x830] ss:$8 sps:$4 sm:$0xff]   ;;  %v17654_v43 = vld [vmem:[#allocation13 + $0x844] ss:$8 sps:$4 sm:$0xff]  }
 0xe1b   : > { %12129 = vmatprep.subr.bf16.mxu0 %v14665_v16 }
 0xe1c   : > { %v9210_v58 = vpack.c.bf16 %v9182_v51, %v9180_v57 }
 0xe1d   : > { %11254 = vmatpush1.bf16.msra.mxu1 %v17605_v46  ;;  %v17638_v46 = vld [vmem:[#allocation13 + $0x800] ss:$8 sps:$4 sm:$0xff]  }
 0xe1e   : > { %11255 = vmatprep.subr.bf16.mxu1 %v17610_v27  ;;  %12130 = vmatpush1.bf16.msra.mxu0 %v14664_v45  ;;  %v17645_v27 = vld [vmem:[#allocation13 + $0x814] ss:$8 sps:$4 sm:$0xff]  }
 0xe21   : > { %11256 = vmatpush1.bf16.msra.mxu1 %v17608_v2  ;;  %v17652_v2 = vld [vmem:[#allocation13 + $0x840] ss:$8 sps:$4 sm:$0xff]  }
 0xe22   : > { %11257 = vmatprep.subr.bf16.mxu1 %v17613_v32  ;;  %v17655_v32 = vld [vmem:[#allocation13 + $0x850] ss:$8 sps:$4 sm:$0xff]  }
 0xe25   : > { %11258 = vmatpush1.bf16.msra.mxu1 %v17611_v35  ;;  %v17661_v35 = vld [vmem:[#allocation13 + $0x870] ss:$8 sps:$4 sm:$0xff]  }
 0xe26   : > { %11259 = vmatprep.subr.bf16.mxu1 %v17616_v22  ;;  %v17664_v22 = vld [vmem:[#allocation13 + $0x880] ss:$8 sps:$4 sm:$0xff]  }
 0xe29   : > { %11260 = vmatpush1.bf16.msra.mxu1 %v17614_v56  ;;  %v17670_v56 = vld [vmem:[#allocation13 + $0x8a0] ss:$8 sps:$4 sm:$0xff]  }
 0xe2a   : > { %11261 = vmatprep.subr.bf16.mxu1 %v17619_v17  ;;  %v17673_v17 = vld [vmem:[#allocation13 + $0x8b0] ss:$8 sps:$4 sm:$0xff]  }
 0xe2d   : > { %11262 = vmatpush1.bf16.msra.mxu1 %v17617_v48  ;;  %v17679_v48 = vld [vmem:[#allocation13 + $0x8d0] ss:$8 sps:$4 sm:$0xff]  }
 0xe2e   : > { %11263 = vmatprep.subr.bf16.mxu1 %v17622_v31  ;;  %v17682_v31 = vld [vmem:[#allocation13 + $0x8e0] ss:$8 sps:$4 sm:$0xff]  }
 0xe31   : > { %11264 = vmatpush1.bf16.msra.mxu1 %v17620_v47  ;;  %v17689_v47 = vld [vmem:[#allocation5 + $0x64] ss:$16 sps:$4 sm:$0xff]  }
 0xe32   : > { %11265 = vmatprep.subr.bf16.mxu1 %v17625_v33  ;;  %v9212_v14 = vpack.c.bf16 %v17689_v47, %v17688_v44  ;;  %v11447_v33 = vld [vmem:[#allocation14 + $0x380] sm:$0xff]  ;;  %v11424_v44 = vld [vmem:[#allocation14 + $0x2c8] sm:$0xff] }
 0xe33   : > { %v14672_v50 = vcombine.low %v11447_v33, %v11451_v40  ;;  %v14673_v41 = vcombine.high %v11447_v33, %v11451_v40  ;;  %v11428_v47 = vld [vmem:[#allocation14 + $0x2e8] sm:$0xff] }
 0xe34   : > { %v14651_v33 = vcombine.high %v11424_v44, %v11428_v47  ;;  %v11432_v40 = vld [vmem:[#allocation14 + $0x308] sm:$0xff] }
 0xe35   : > { %11266 = vmatpush1.bf16.msra.mxu1 %v17623_v10  ;;  %12131 = vmatprep.subr.bf16.mxu0 %v14673_v41  ;;  %v11455_v10 = vld [vmem:[#allocation14 + $0x3c0] sm:$0xff]  ;;  %v14650_v41 = vcombine.low %v11424_v44, %v11428_v47 }
 0xe36   : > { %11267 = vmatprep.subr.bf16.mxu1 %v17628_v59  ;;  %12132 = vmatpush1.bf16.msra.mxu0 %v14672_v50  ;;  %v14680_v59 = vcombine.low %v11455_v10, %v11459_v1  ;;  %v14681_v8 = vcombine.high %v11455_v10, %v11459_v1  ;;  %v11436_v50 = vld [vmem:[#allocation14 + $0x328] sm:$0xff]  ;;  %v17706_v44 = vld [vmem:[#allocation16 + $0xc0] sm:$0xff]  }
 0xe37   : > { %v14659_v10 = vcombine.high %v11432_v40, %v11436_v50  ;;  %v11440_v1 = vld [vmem:[#allocation14 + $0x348] sm:$0xff]  ;;  %v17707_v47 = vld [vmem:[#allocation16 + $0x80] sm:$0xff]  }
 0xe38   : > { %12133 = vmatprep.subr.bf16.mxu0 %v14681_v8  ;;  %v14658_v8 = vcombine.low %v11432_v40, %v11436_v50  ;;  %v11425_v50 = vld [vmem:[#allocation14 + $0x2d0] sm:$0xff] }
 0xe39   : > { %11268 = vmatpush1.bf16.msra.mxu1 %v17626_v11  ;;  %v14562_v11 = vcombine.low %v11336_v7, %v11340_v61  ;;  %v11448_v61 = vld [vmem:[#allocation14 + $0x388] sm:$0xff] }
 0xe3a   : > { %11269 = vmatprep.subr.bf16.mxu1 %v17631_v52  ;;  %12134 = vmatpush1.bf16.msra.mxu0 %v14680_v59  ;;  %v11444_v59 = vld [vmem:[#allocation14 + $0x368] sm:$0xff] }
 0xe3b   : > { %12146 = vmatprep.subr.bf16.mxu0 %v14563_v24  ;;  %v14667_v7 = vcombine.high %v11440_v1, %v11444_v59  ;;  %v14666_v24 = vcombine.low %v11440_v1, %v11444_v59  ;;  %v17710_v1 = vld [vmem:[#allocation16 + $0xd0] sm:$0xff]  }
 0xe3d   : > { %11270 = vmatpush1.bf16.msra.mxu1 %v17629_v34 }
 0xe3e   : > { %11271 = vmatprep.subr.bf16.mxu1 %v17634_v25 }
 0xe41   : > { %11272 = vmatpush1.bf16.msra.mxu1 %v17632_v19  ;;  %v11344_v19 = vld [vmem:[#allocation14 + $0x48] sm:$0xff] }
 0xe42   : > { %11273 = vmatprep.subr.bf16.mxu1 %v17637_v37  ;;  %v11348_v37 = vld [vmem:[#allocation14 + $0x68] sm:$0xff] }
 0xe43   : > { %v14571_v51 = vcombine.high %v11344_v19, %v11348_v37  ;;  %v14570_v54 = vcombine.low %v11344_v19, %v11348_v37  ;;  %v11345_v37 = vld [vmem:[#allocation14 + $0x50] sm:$0xff] }
 0xe45   : > { %11274 = vmatpush1.bf16.msra.mxu1 %v17635_v42 }
 0xe46   : > { %11286 = vmatprep.subr.bf16.mxu1 %v17640_v9  ;;  %v11352_v9 = vld [vmem:[#allocation14 + $0x88] sm:$0xff] }
 0xe48   : > { %11276 = vmatmul.mubr.bf16.vlgmr.msra.gmra.mrb[252].mxu1 %v9210_v58  ;;  %v11360_v58 = vld [vmem:[#allocation14 + $0xc8] sm:$0xff] }
 0xe49   : > { %11287 = vmatpush1.bf16.msra.mxu1 %v17638_v46  ;;  %11318 = vmatprep.mubr.bf16.mxu1 %v9213_v15  ;;  %v14579_v46 = vcombine.high %v11352_v9, %v11356_v49  ;;  %v14578_v15 = vcombine.low %v11352_v9, %v11356_v49 }
 0xe4a   : > { %11288 = vmatprep.subr.bf16.mxu1 %v17645_v27  ;;  %v11364_v27 = vld [vmem:[#allocation14 + $0xe8] sm:$0xff] }
 0xe4d   : > { %11289 = vmatpush1.bf16.msra.mxu1 %v17643_v62  ;;  %v14587_v62 = vcombine.high %v11360_v58, %v11364_v27 }
 0xe4e   : > { %11290 = vmatprep.subr.bf16.mxu1 %v17648_v53  ;;  %v11368_v53 = vld [vmem:[#allocation14 + $0x108] sm:$0xff] }
 0xe51   : > { %11291 = vmatpush1.bf16.msra.mxu1 %v17646_v29  ;;  %v11372_v29 = vld [vmem:[#allocation14 + $0x128] sm:$0xff] }
 0xe52   : > { %11292 = vmatprep.subr.bf16.mxu1 %v17651_v3  ;;  %v14586_v3 = vcombine.low %v11360_v58, %v11364_v27 }
 0xe55   : > { %11293 = vmatpush1.bf16.msra.mxu1 %v17649_v23  ;;  %v14595_v23 = vcombine.high %v11368_v53, %v11372_v29 }
 0xe56   : > { %11294 = vmatprep.subr.bf16.mxu1 %v17654_v43  ;;  %v11376_v43 = vld [vmem:[#allocation14 + $0x148] sm:$0xff] }
 0xe59   : > { %11295 = vmatpush1.bf16.msra.mxu1 %v17652_v2  ;;  %v11380_v2 = vld [vmem:[#allocation14 + $0x168] sm:$0xff] }
 0xe5a   : > { %11296 = vmatprep.subr.bf16.mxu1 %v17657_v5  ;;  %v14594_v5 = vcombine.low %v11368_v53, %v11372_v29 }
 0xe5d   : > { %11297 = vmatpush1.bf16.msra.mxu1 %v17655_v32  ;;  %v14603_v32 = vcombine.high %v11376_v43, %v11380_v2 }
 0xe5e   : > { %11298 = vmatprep.subr.bf16.mxu1 %v17660_v4  ;;  %v11384_v4 = vld [vmem:[#allocation14 + $0x188] sm:$0xff] }
 0xe61   : > { %11299 = vmatpush1.bf16.msra.mxu1 %v17658_v13  ;;  %v11388_v13 = vld [vmem:[#allocation14 + $0x1a8] sm:$0xff] }
 0xe62   : > { %11300 = vmatprep.subr.bf16.mxu1 %v17663_v6  ;;  %v14602_v6 = vcombine.low %v11376_v43, %v11380_v2 }
 0xe65   : > { %11301 = vmatpush1.bf16.msra.mxu1 %v17661_v35  ;;  %v14611_v35 = vcombine.high %v11384_v4, %v11388_v13 }
 0xe66   : > { %11302 = vmatprep.subr.bf16.mxu1 %v17666_v18  ;;  %v11392_v18 = vld [vmem:[#allocation14 + $0x1c8] sm:$0xff] }
 0xe69   : > { %11303 = vmatpush1.bf16.msra.mxu1 %v17664_v22  ;;  %v11396_v22 = vld [vmem:[#allocation14 + $0x1e8] sm:$0xff] }
 0xe6a   : > { %11304 = vmatprep.subr.bf16.mxu1 %v17669_v36  ;;  %v14610_v36 = vcombine.low %v11384_v4, %v11388_v13 }
 0xe6d   : > { %11305 = vmatpush1.bf16.msra.mxu1 %v17667_v12  ;;  %v14619_v12 = vcombine.high %v11392_v18, %v11396_v22 }
 0xe6e   : > { %11306 = vmatprep.subr.bf16.mxu1 %v17672_v39  ;;  %v11400_v39 = vld [vmem:[#allocation14 + $0x208] sm:$0xff] }
 0xe71   : > { %11307 = vmatpush1.bf16.msra.mxu1 %v17670_v56  ;;  %v11404_v56 = vld [vmem:[#allocation14 + $0x228] sm:$0xff] }
 0xe72   : > { %11308 = vmatprep.subr.bf16.mxu1 %v17675_v60  ;;  %v14618_v60 = vcombine.low %v11392_v18, %v11396_v22 }
 0xe75   : > { %11309 = vmatpush1.bf16.msra.mxu1 %v17673_v17  ;;  %v14627_v17 = vcombine.high %v11400_v39, %v11404_v56 }
 0xe76   : > { %11310 = vmatprep.subr.bf16.mxu1 %v17678_v0  ;;  %v11408_v0 = vld [vmem:[#allocation14 + $0x248] sm:$0xff] }
 0xe79   : > { %11311 = vmatpush1.bf16.msra.mxu1 %v17676_v21  ;;  %v11412_v21 = vld [vmem:[#allocation14 + $0x268] sm:$0xff] }
 0xe7a   : > { %11312 = vmatprep.subr.bf16.mxu1 %v17681_v38  ;;  %v14626_v38 = vcombine.low %v11400_v39, %v11404_v56 }
 0xe7d   : > { %11313 = vmatpush1.bf16.msra.mxu1 %v17679_v48  ;;  %v14635_v48 = vcombine.high %v11408_v0, %v11412_v21 }
 0xe7e   : > { %11314 = vmatprep.subr.bf16.mxu1 %v17684_v30  ;;  %v11416_v30 = vld [vmem:[#allocation14 + $0x288] sm:$0xff] }
 0xe81   : > { %11315 = vmatpush1.bf16.msra.mxu1 %v17682_v31  ;;  %v11420_v31 = vld [vmem:[#allocation14 + $0x2a8] sm:$0xff] }
 0xe82   : > { %11316 = vmatprep.subr.bf16.mxu1 %v17687_v26  ;;  %v14634_v26 = vcombine.low %v11408_v0, %v11412_v21 }
 0xe85   : > { %11317 = vmatpush1.bf16.msra.mxu1 %v17685_v55  ;;  %v14643_v55 = vcombine.high %v11416_v30, %v11420_v31 }
 0xe86   : > { %15710 = vmatprep.subr.bf16.mxu1 %v17706_v44  ;;  %v11398_v44 = vld [vmem:[#allocation14 + $0x1f8] sm:$0xff] }
 0xe88   : > { %11319 = vmatmul.mubr.bf16.vlgmr.msra.gmra.mrb[252].mxu1 %v9212_v14  ;;  %v14642_v14 = vcombine.low %v11416_v30, %v11420_v31 }
 0xe89   : > { %15711 = vmatpush3.bf16.msra.mxu1 %v17707_v47 }
 0xf5b   : > { %v11320_v52 = vpop.f32.mrb[252].mxu1 }
 0xf5c   : > { %v11322_v63 = vpop.f32.mrb[253].mxu1  ;;  %v11329_v28 = vmax.f32 %v11320_v52, 0.0 }
 0xf5d   : > { %v11324_v20 = vpop.f32.mrb[254].mxu1  ;;  %v11330_v25 = vmax.f32 %v11322_v63, 0.0  ;;  %v11456_v63 = vld [vmem:[#allocation14 + $0x3c8] sm:$0xff] }
 0xf5e   : > { %v11331_v34 = vmax.f32 %v11324_v20, 0.0  ;;  %v11326_v16 = vpop.f32.mrb[255].mxu1  ;;  %v11460_v20 = vld [vmem:[#allocation14 + $0x3e8] sm:$0xff] }
 0xf5f   : > { %v11332_v45 = vmax.f32 %v11326_v16, 0.0  ;;  %v11337_v16 = vld [vmem:[#allocation14 + $0x10] sm:$0xff] }
 0xf60   : > { %v20137_v42 = vpack.c.bf16 %v11331_v34, %v11329_v28  ;;  %v14683_v34 = vcombine.high %v11456_v63, %v11460_v20 }
 0xf61   : > { %v20139_v57 = vpack.c.bf16 %v11332_v45, %v11330_v25  ;;  %v11341_v25 = vld [vmem:[#allocation14 + $0x30] sm:$0xff]  ;;  %v14682_v45 = vcombine.low %v11456_v63, %v11460_v20 }
 0xf62   : > { %v14565_v19 = vcombine.high %v11337_v16, %v11341_v25  ;;  %v14564_v9 = vcombine.low %v11337_v16, %v11341_v25  ;;  %v11441_v20 = vld [vmem:[#allocation14 + $0x350] sm:$0xff]  ;;  %v17714_v16 = vld [vmem:[#allocation16 + $0xe0] sm:$0xff]  }
 0xf63   : > { %12135 = vmatprep.mubr.bf16.mxu0 %v20139_v57 }
 0xf64   : > { %12136 = vmatmul.mubr.bf16.vlgmr.msra.gmra.mrb[240].mxu0 %v20137_v42 }
 0xf65   : > { %12147 = vmatpush1.bf16.msra.mxu0 %v14562_v11  ;;  %12178 = vmatprep.mubr.bf16.mxu0 %v20139_v57  ;;  %v11452_v11 = vld [vmem:[#allocation14 + $0x3a8] sm:$0xff] }
 0xf66   : > { %12148 = vmatprep.subr.bf16.mxu0 %v14571_v51  ;;  %v14675_v52 = vcombine.high %v11448_v61, %v11452_v11  ;;  %v14674_v28 = vcombine.low %v11448_v61, %v11452_v11  ;;  %v11349_v51 = vld [vmem:[#allocation14 + $0x70] sm:$0xff] }
 0xf67   : > { %v14573_v49 = vcombine.high %v11345_v37, %v11349_v51  ;;  %v14572_v58 = vcombine.low %v11345_v37, %v11349_v51  ;;  %v11437_v61 = vld [vmem:[#allocation14 + $0x330] sm:$0xff]  ;;  %v17715_v51 = vld [vmem:[#allocation16 + $0xa0] sm:$0xff]  }
 0xf68   : > { %v17711_v11 = vld [vmem:[#allocation16 + $0x90] sm:$0xff]  }
 0xf69   : > { %12149 = vmatpush1.bf16.msra.mxu0 %v14570_v54  ;;  %v11353_v54 = vld [vmem:[#allocation14 + $0x90] sm:$0xff] }
 0xf6a   : > { %12150 = vmatprep.subr.bf16.mxu0 %v14579_v46  ;;  %v11357_v46 = vld [vmem:[#allocation14 + $0xb0] sm:$0xff] }
 0xf6b   : > { %v14581_v27 = vcombine.high %v11353_v54, %v11357_v46  ;;  %v14580_v53 = vcombine.low %v11353_v54, %v11357_v46  ;;  %v11453_v37 = vld [vmem:[#allocation14 + $0x3b0] sm:$0xff] }
 0xf6c   : > { %v11457_v46 = vld [vmem:[#allocation14 + $0x3d0] sm:$0xff] }
 0xf6d   : > { %12151 = vmatpush1.bf16.msra.mxu0 %v14578_v15  ;;  %v11361_v15 = vld [vmem:[#allocation14 + $0xd0] sm:$0xff] }
 0xf6e   : > { %12152 = vmatprep.subr.bf16.mxu0 %v14587_v62  ;;  %v11365_v62 = vld [vmem:[#allocation14 + $0xf0] sm:$0xff] }
 0xf6f   : > { %v14589_v29 = vcombine.high %v11361_v15, %v11365_v62  ;;  %v14588_v43 = vcombine.low %v11361_v15, %v11365_v62 }
 0xf71   : > { %12153 = vmatpush1.bf16.msra.mxu0 %v14586_v3  ;;  %v11369_v3 = vld [vmem:[#allocation14 + $0x110] sm:$0xff] }
 0xf72   : > { %12154 = vmatprep.subr.bf16.mxu0 %v14595_v23  ;;  %v11373_v23 = vld [vmem:[#allocation14 + $0x130] sm:$0xff] }
 0xf73   : > { %v14597_v2 = vcombine.high %v11369_v3, %v11373_v23  ;;  %v14596_v4 = vcombine.low %v11369_v3, %v11373_v23 }
 0xf75   : > { %12155 = vmatpush1.bf16.msra.mxu0 %v14594_v5  ;;  %v11377_v5 = vld [vmem:[#allocation14 + $0x150] sm:$0xff] }
 0xf76   : > { %12156 = vmatprep.subr.bf16.mxu0 %v14603_v32  ;;  %v11381_v32 = vld [vmem:[#allocation14 + $0x170] sm:$0xff] }
 0xf77   : > { %v14605_v13 = vcombine.high %v11377_v5, %v11381_v32  ;;  %v14604_v18 = vcombine.low %v11377_v5, %v11381_v32 }
 0xf79   : > { %12157 = vmatpush1.bf16.msra.mxu0 %v14602_v6  ;;  %v11385_v6 = vld [vmem:[#allocation14 + $0x190] sm:$0xff] }
 0xf7a   : > { %12158 = vmatprep.subr.bf16.mxu0 %v14611_v35  ;;  %v11389_v35 = vld [vmem:[#allocation14 + $0x1b0] sm:$0xff] }
 0xf7b   : > { %v14613_v22 = vcombine.high %v11385_v6, %v11389_v35  ;;  %v14612_v39 = vcombine.low %v11385_v6, %v11389_v35 }
 0xf7d   : > { %12159 = vmatpush1.bf16.msra.mxu0 %v14610_v36  ;;  %v11393_v36 = vld [vmem:[#allocation14 + $0x1d0] sm:$0xff] }
 0xf7e   : > { %12160 = vmatprep.subr.bf16.mxu0 %v14619_v12  ;;  %v11397_v12 = vld [vmem:[#allocation14 + $0x1f0] sm:$0xff] }
 0xf7f   : > { %v14621_v56 = vcombine.high %v11393_v36, %v11397_v12  ;;  %v14620_v0 = vcombine.low %v11393_v36, %v11397_v12 }
 0xf81   : > { %12161 = vmatpush1.bf16.msra.mxu0 %v14618_v60  ;;  %v11401_v60 = vld [vmem:[#allocation14 + $0x210] sm:$0xff] }
 0xf82   : > { %12162 = vmatprep.subr.bf16.mxu0 %v14627_v17  ;;  %v11405_v17 = vld [vmem:[#allocation14 + $0x230] sm:$0xff] }
 0xf83   : > { %v14629_v21 = vcombine.high %v11401_v60, %v11405_v17  ;;  %v14628_v30 = vcombine.low %v11401_v60, %v11405_v17 }
 0xf85   : > { %12163 = vmatpush1.bf16.msra.mxu0 %v14626_v38  ;;  %v11409_v38 = vld [vmem:[#allocation14 + $0x250] sm:$0xff] }
 0xf86   : > { %12164 = vmatprep.subr.bf16.mxu0 %v14635_v48  ;;  %v11413_v48 = vld [vmem:[#allocation14 + $0x270] sm:$0xff] }
 0xf87   : > { %v14637_v31 = vcombine.high %v11409_v38, %v11413_v48 }
 0xf89   : > { %12165 = vmatpush1.bf16.msra.mxu0 %v14634_v26  ;;  %v11417_v26 = vld [vmem:[#allocation14 + $0x290] sm:$0xff] }
 0xf8a   : > { %12166 = vmatprep.subr.bf16.mxu0 %v14643_v55  ;;  %v11421_v55 = vld [vmem:[#allocation14 + $0x2b0] sm:$0xff] }
 0xf8b   : > { %v14645_v40 = vcombine.high %v11417_v26, %v11421_v55  ;;  %v14644_v59 = vcombine.low %v11417_v26, %v11421_v55  ;;  %v11394_v55 = vld [vmem:[#allocation14 + $0x1d8] sm:$0xff] }
 0xf8d   : > { %12167 = vmatpush1.bf16.msra.mxu0 %v14642_v14  ;;  %v17708_v14 = vld [vmem:[#allocation16 + $0xc8] sm:$0xff]  }
 0xf8e   : > { %12168 = vmatprep.subr.bf16.mxu0 %v14651_v33  ;;  %v14636_v33 = vcombine.low %v11409_v38, %v11413_v48  ;;  %15712 = vmatprep.subr.bf16.mxu1 %v17708_v14  ;;  %v11386_v48 = vld [vmem:[#allocation14 + $0x198] sm:$0xff]  ;;  %v17718_v14 = vld [vmem:[#allocation16 + $0xf0] sm:$0xff]  }
 0xf91   : > { %12169 = vmatpush1.bf16.msra.mxu0 %v14650_v41  ;;  %v11429_v41 = vld [vmem:[#allocation14 + $0x2f0] sm:$0xff] }
 0xf92   : > { %12170 = vmatprep.subr.bf16.mxu0 %v14659_v10  ;;  %v17709_v10 = vld [vmem:[#allocation16 + $0x88] sm:$0xff]  }
 0xf93   : > { %15713 = vmatpush3.bf16.msra.mxu1 %v17709_v10  ;;  %v14622_v10 = vcombine.low %v11394_v55, %v11398_v44 }
 0xf94   : > { %15714 = vmatprep.subr.bf16.mxu1 %v17710_v1  ;;  %v17720_v1 = vld [vmem:[#allocation16 + $0xf8] sm:$0xff]  }
 0xf95   : > { %12171 = vmatpush1.bf16.msra.mxu0 %v14658_v8  ;;  %v14653_v8 = vcombine.high %v11425_v50, %v11429_v41 }
 0xf96   : > { %12172 = vmatprep.subr.bf16.mxu0 %v14667_v7  ;;  %v11433_v7 = vld [vmem:[#allocation14 + $0x310] sm:$0xff] }
 0xf97   : > { %v14661_v63 = vcombine.high %v11433_v7, %v11437_v61  ;;  %15715 = vmatpush3.bf16.msra.mxu1 %v17711_v11  ;;  %v14660_v25 = vcombine.low %v11433_v7, %v11437_v61  ;;  %v11410_v7 = vld [vmem:[#allocation14 + $0x258] sm:$0xff] }
 0xf98   : > { %v11414_v61 = vld [vmem:[#allocation14 + $0x278] sm:$0xff] }
 0xf99   : > { %12173 = vmatpush1.bf16.msra.mxu0 %v14666_v24  ;;  %v17712_v24 = vld [vmem:[#allocation16 + $0xd8] sm:$0xff]  }
 0xf9a   : > { %12174 = vmatprep.subr.bf16.mxu0 %v14675_v52  ;;  %v14652_v52 = vcombine.low %v11425_v50, %v11429_v41  ;;  %15716 = vmatprep.subr.bf16.mxu1 %v17712_v24  ;;  %v11406_v50 = vld [vmem:[#allocation14 + $0x238] sm:$0xff]  ;;  %v17719_v41 = vld [vmem:[#allocation16 + $0xb0] sm:$0xff]   ;;  %v14639_v24 = vcombine.high %v11410_v7, %v11414_v61 }
 0xf9d   : > { %12175 = vmatpush1.bf16.msra.mxu0 %v14674_v28  ;;  %v11445_v28 = vld [vmem:[#allocation14 + $0x370] sm:$0xff] }
 0xf9e   : > { %12176 = vmatprep.subr.bf16.mxu0 %v14683_v34  ;;  %v17713_v34 = vld [vmem:[#allocation16 + $0x98] sm:$0xff]  }
 0xf9f   : > { %15717 = vmatpush3.bf16.msra.mxu1 %v17713_v34  ;;  %v11426_v34 = vld [vmem:[#allocation14 + $0x2d8] sm:$0xff] }
 0xfa0   : > { %15718 = vmatprep.subr.bf16.mxu1 %v17714_v16  ;;  %v11430_v16 = vld [vmem:[#allocation14 + $0x2f8] sm:$0xff] }
 0xfa1   : > { %12177 = vmatpush1.bf16.msra.mxu0 %v14682_v45  ;;  %v14669_v45 = vcombine.high %v11441_v20, %v11445_v28 }
 0xfa2   : > { %12189 = vmatprep.subr.bf16.mxu0 %v14565_v19  ;;  %v11449_v19 = vld [vmem:[#allocation14 + $0x390] sm:$0xff] }
 0xfa3   : > { %v14677_v54 = vcombine.high %v11449_v19, %v11453_v37  ;;  %15719 = vmatpush3.bf16.msra.mxu1 %v17715_v51  ;;  %v14676_v15 = vcombine.low %v11449_v19, %v11453_v37  ;;  %v11434_v19 = vld [vmem:[#allocation14 + $0x318] sm:$0xff]  ;;  %v14654_v51 = vcombine.low %v11426_v34, %v11430_v16 }
 0xfa4   : > { %12179 = vmatmul.mubr.bf16.vlgmr.msra.gmra.mrb[244].mxu0 %v20137_v42  ;;  %v11438_v37 = vld [vmem:[#allocation14 + $0x338] sm:$0xff] }
 0xfa5   : > { %12190 = vmatpush1.bf16.msra.mxu0 %v14564_v9  ;;  %12221 = vmatprep.mubr.bf16.mxu0 %v20139_v57  ;;  %v17716_v9 = vld [vmem:[#allocation16 + $0xe8] sm:$0xff]  }
 0xfa6   : > { %12191 = vmatprep.subr.bf16.mxu0 %v14573_v49  ;;  %v14668_v49 = vcombine.low %v11441_v20, %v11445_v28  ;;  %15720 = vmatprep.subr.bf16.mxu1 %v17716_v9  ;;  %v14638_v20 = vcombine.low %v11410_v7, %v11414_v61  ;;  %v14663_v9 = vcombine.high %v11434_v19, %v11438_v37  ;;  %v17730_v7 = vld [vmem:[#allocation16 + $0x160] sm:$0xff]  }
 0xfa7   : > { %v17731_v61 = vld [vmem:[#allocation16 + $0x120] sm:$0xff]  }
 0xfa9   : > { %12192 = vmatpush1.bf16.msra.mxu0 %v14572_v58  ;;  %v11461_v58 = vld [vmem:[#allocation14 + $0x3f0] sm:$0xff] }
 0xfaa   : > { %12193 = vmatprep.subr.bf16.mxu0 %v14581_v27  ;;  %v17717_v27 = vld [vmem:[#allocation16 + $0xa8] sm:$0xff]   ;;  %v14685_v62 = vcombine.high %v11457_v46, %v11461_v58  ;;  %v14684_v3 = vcombine.low %v11457_v46, %v11461_v58  ;;  %v14662_v46 = vcombine.low %v11434_v19, %v11438_v37 }
 0xfab   : > { %15721 = vmatpush3.bf16.msra.mxu1 %v17717_v27  ;;  %v11450_v27 = vld [vmem:[#allocation14 + $0x398] sm:$0xff] }
 0xfac   : > { %15722 = vmatprep.subr.bf16.mxu1 %v17718_v14  ;;  %v17722_v14 = vld [vmem:[#allocation16 + $0x140] sm:$0xff]  }
 0xfad   : > { %12194 = vmatpush1.bf16.msra.mxu0 %v14580_v53  ;;  %v11338_v53 = vld [vmem:[#allocation14 + $0x18] sm:$0xff] }
 0xfae   : > { %12195 = vmatprep.subr.bf16.mxu0 %v14589_v29  ;;  %v11342_v29 = vld [vmem:[#allocation14 + $0x38] sm:$0xff] }
 0xfaf   : > { %v14567_v23 = vcombine.high %v11338_v53, %v11342_v29  ;;  %v14566_v5 = vcombine.low %v11338_v53, %v11342_v29  ;;  %15723 = vmatpush3.bf16.msra.mxu1 %v17719_v41  ;;  %v11458_v29 = vld [vmem:[#allocation14 + $0x3d8] sm:$0xff]  ;;  %v17725_v41 = vld [vmem:[#allocation16 + $0x108] sm:$0xff]  }
 0xfb0   : > { %15724 = vmatprep.subr.bf16.mxu1 %v17720_v1  ;;  %v17727_v1 = vld [vmem:[#allocation16 + $0x110] sm:$0xff]  }
 0xfb1   : > { %12196 = vmatpush1.bf16.msra.mxu0 %v14588_v43  ;;  %v11346_v43 = vld [vmem:[#allocation14 + $0x58] sm:$0xff] }
 0xfb2   : > { %12197 = vmatprep.subr.bf16.mxu0 %v14597_v2  ;;  %v11350_v2 = vld [vmem:[#allocation14 + $0x78] sm:$0xff] }
 0xfb3   : > { %v14575_v32 = vcombine.high %v11346_v43, %v11350_v2  ;;  %v14574_v6 = vcombine.low %v11346_v43, %v11350_v2 }
 0xfb5   : > { %12198 = vmatpush1.bf16.msra.mxu0 %v14596_v4  ;;  %v11354_v4 = vld [vmem:[#allocation14 + $0x98] sm:$0xff] }
 0xfb6   : > { %12199 = vmatprep.subr.bf16.mxu0 %v14605_v13  ;;  %v11358_v13 = vld [vmem:[#allocation14 + $0xb8] sm:$0xff] }
 0xfb7   : > { %v14583_v35 = vcombine.high %v11354_v4, %v11358_v13  ;;  %v14582_v36 = vcombine.low %v11354_v4, %v11358_v13  ;;  %v17692_v4 = vld [vmem:[#allocation16 + $0x48] sm:$0xff]  }
 0xfb8   : > { %v17693_v13 = vld [vmem:[#allocation16 + $0x8] sm:$0xff]  }
 0xfb9   : > { %12200 = vmatpush1.bf16.msra.mxu0 %v14604_v18  ;;  %v11362_v18 = vld [vmem:[#allocation14 + $0xd8] sm:$0xff] }
 0xfba   : > { %12201 = vmatprep.subr.bf16.mxu0 %v14613_v22  ;;  %v11366_v22 = vld [vmem:[#allocation14 + $0xf8] sm:$0xff] }
 0xfbb   : > { %v14591_v12 = vcombine.high %v11362_v18, %v11366_v22  ;;  %v14590_v60 = vcombine.low %v11362_v18, %v11366_v22  ;;  %v17696_v18 = vld [vmem:[#allocation16 + $0x58] sm:$0xff]  }
 0xfbc   : > { %v17697_v22 = vld [vmem:[#allocation16 + $0x18] sm:$0xff]  }
 0xfbd   : > { %12202 = vmatpush1.bf16.msra.mxu0 %v14612_v39  ;;  %v11370_v39 = vld [vmem:[#allocation14 + $0x118] sm:$0xff] }
 0xfbe   : > { %12203 = vmatprep.subr.bf16.mxu0 %v14621_v56  ;;  %v11374_v56 = vld [vmem:[#allocation14 + $0x138] sm:$0xff] }
 0xfbf   : > { %v14599_v17 = vcombine.high %v11370_v39, %v11374_v56  ;;  %v14598_v38 = vcombine.low %v11370_v39, %v11374_v56  ;;  %v17700_v39 = vld [vmem:[#allocation16 + $0x68] sm:$0xff]  }
 0xfc0   : > { %v17701_v56 = vld [vmem:[#allocation16 + $0x28] sm:$0xff]  }
 0xfc1   : > { %12204 = vmatpush1.bf16.msra.mxu0 %v14620_v0  ;;  %v11378_v0 = vld [vmem:[#allocation14 + $0x158] sm:$0xff] }
 0xfc2   : > { %12205 = vmatprep.subr.bf16.mxu0 %v14629_v21  ;;  %v11382_v21 = vld [vmem:[#allocation14 + $0x178] sm:$0xff] }
 0xfc5   : > { %12206 = vmatpush1.bf16.msra.mxu0 %v14628_v30  ;;  %v11390_v30 = vld [vmem:[#allocation14 + $0x1b8] sm:$0xff] }
 0xfc6   : > { %12207 = vmatprep.subr.bf16.mxu0 %v14637_v31  ;;  %v14606_v31 = vcombine.low %v11378_v0, %v11382_v21  ;;  %v14615_v26 = vcombine.high %v11386_v48, %v11390_v30  ;;  %v14614_v47 = vcombine.low %v11386_v48, %v11390_v30  ;;  %v17704_v30 = vld [vmem:[#allocation16 + $0x78] sm:$0xff]  }
 0xfc9   : > { %12208 = vmatpush1.bf16.msra.mxu0 %v14636_v33  ;;  %v14623_v33 = vcombine.high %v11394_v55, %v11398_v44 }
 0xfca   : > { %12209 = vmatprep.subr.bf16.mxu0 %v14645_v40  ;;  %v11402_v40 = vld [vmem:[#allocation14 + $0x218] sm:$0xff] }
 0xfcb   : > { %v14630_v11 = vcombine.low %v11402_v40, %v11406_v50 }
 0xfcd   : > { %12210 = vmatpush1.bf16.msra.mxu0 %v14644_v59  ;;  %v14631_v59 = vcombine.high %v11402_v40, %v11406_v50  ;;  %v17723_v40 = vld [vmem:[#allocation16 + $0x100] sm:$0xff]   ;;  %v17724_v50 = vld [vmem:[#allocation16 + $0x148] sm:$0xff]  }
 0xfce   : > { %12211 = vmatprep.subr.bf16.mxu0 %v14653_v8  ;;  %v17721_v8 = vld [vmem:[#allocation16 + $0xb8] sm:$0xff]  }
 0xfcf   : > { %15725 = vmatpush3.bf16.msra.mxu1 %v17721_v8  ;;  %v17729_v8 = vld [vmem:[#allocation16 + $0x118] sm:$0xff]  }
 0xfd1   : > { %12212 = vmatpush1.bf16.msra.mxu0 %v14652_v52  ;;  %v11418_v52 = vld [vmem:[#allocation14 + $0x298] sm:$0xff] }
 0xfd2   : > { %12213 = vmatprep.subr.bf16.mxu0 %v14661_v63  ;;  %v11422_v63 = vld [vmem:[#allocation14 + $0x2b8] sm:$0xff] }
 0xfd3   : > { %v14647_v28 = vcombine.high %v11418_v52, %v11422_v63 }
 0xfd5   : > { %12214 = vmatpush1.bf16.msra.mxu0 %v14660_v25  ;;  %v14646_v25 = vcombine.low %v11418_v52, %v11422_v63  ;;  %v17734_v52 = vld [vmem:[#allocation16 + $0x170] sm:$0xff]  }
 0xfd6   : > { %12215 = vmatprep.subr.bf16.mxu0 %v14669_v45  ;;  %v14655_v45 = vcombine.high %v11426_v34, %v11430_v16  ;;  %v17735_v63 = vld [vmem:[#allocation16 + $0x130] sm:$0xff]  }
 0xfd9   : > { %12216 = vmatpush1.bf16.msra.mxu0 %v14668_v49  ;;  %v11442_v49 = vld [vmem:[#allocation14 + $0x358] sm:$0xff] }
 0xfda   : > { %12217 = vmatprep.subr.bf16.mxu0 %v14677_v54  ;;  %v11446_v54 = vld [vmem:[#allocation14 + $0x378] sm:$0xff] }
 0xfdb   : > { %v14671_v58 = vcombine.high %v11442_v49, %v11446_v54 }
 0xfdd   : > { %12218 = vmatpush1.bf16.msra.mxu0 %v14676_v15  ;;  %v11454_v15 = vld [vmem:[#allocation14 + $0x3b8] sm:$0xff] }
 0xfde   : > { %12219 = vmatprep.subr.bf16.mxu0 %v14685_v62  ;;  %v14670_v62 = vcombine.low %v11442_v49, %v11446_v54  ;;  %v14679_v53 = vcombine.high %v11450_v27, %v11454_v15 }
 0xfe1   : > { %12220 = vmatpush1.bf16.msra.mxu0 %v14684_v3  ;;  %v11462_v3 = vld [vmem:[#allocation14 + $0x3f8] sm:$0xff] }
 0xfe2   : > { %12232 = vmatprep.subr.bf16.mxu0 %v14567_v23  ;;  %v14678_v23 = vcombine.low %v11450_v27, %v11454_v15  ;;  %v14687_v43 = vcombine.high %v11458_v29, %v11462_v3  ;;  %v14686_v2 = vcombine.low %v11458_v29, %v11462_v3  ;;  %v17741_v27 = vld [vmem:[#allocation16 + $0x188] sm:$0xff]   ;;  %v17742_v15 = vld [vmem:[#allocation16 + $0x1d0] sm:$0xff]   ;;  %v17745_v29 = vld [vmem:[#allocation16 + $0x198] sm:$0xff]  }
 0xfe3   : > { %v17746_v3 = vld [vmem:[#allocation16 + $0x1e0] sm:$0xff]  }
 0xfe4   : > { %12222 = vmatmul.mubr.bf16.vlgmr.msra.gmra.mrb[248].mxu0 %v20137_v42 }
 0xfe5   : > { %12233 = vmatpush1.bf16.msra.mxu0 %v14566_v5  ;;  %12264 = vmatprep.mubr.bf16.mxu0 %v20139_v57  ;;  %v14607_v57 = vcombine.high %v11378_v0, %v11382_v21  ;;  %v17690_v5 = vld [vmem:[#allocation16 + $0x40] sm:$0xff]   ;;  %v17703_v21 = vld [vmem:[#allocation16 + $0x30] sm:$0xff]  }
 0xfe6   : > { %12234 = vmatprep.subr.bf16.mxu0 %v14575_v32  ;;  %v17691_v32 = vld [vmem:[#allocation16] sm:$0xff]  }
 0xfe9   : > { %12235 = vmatpush1.bf16.msra.mxu0 %v14574_v6  ;;  %v17694_v6 = vld [vmem:[#allocation16 + $0x50] sm:$0xff]  }
 0xfea   : > { %12236 = vmatprep.subr.bf16.mxu0 %v14583_v35  ;;  %v17695_v35 = vld [vmem:[#allocation16 + $0x10] sm:$0xff]  }
 0xfed   : > { %12237 = vmatpush1.bf16.msra.mxu0 %v14582_v36  ;;  %v17698_v36 = vld [vmem:[#allocation16 + $0x60] sm:$0xff]  }
 0xfee   : > { %12238 = vmatprep.subr.bf16.mxu0 %v14591_v12  ;;  %v17699_v12 = vld [vmem:[#allocation16 + $0x20] sm:$0xff]  }
 0xff1   : > { %12239 = vmatpush1.bf16.msra.mxu0 %v14590_v60 }
 0xff2   : > { %12240 = vmatprep.subr.bf16.mxu0 %v14599_v17 }
 0xff5   : > { %12241 = vmatpush1.bf16.msra.mxu0 %v14598_v38 }
 0xff6   : > { %12242 = vmatprep.subr.bf16.mxu0 %v14607_v57 }
 0xff9   : > { %12243 = vmatpush1.bf16.msra.mxu0 %v14606_v31 }
 0xffa   : > { %12244 = vmatprep.subr.bf16.mxu0 %v14615_v26 }
 0xffd   : > { %12245 = vmatpush1.bf16.msra.mxu0 %v14614_v47  ;;  %v17705_v47 = vld [vmem:[#allocation16 + $0x38] sm:$0xff]  }
 0xffe   : > { %12246 = vmatprep.subr.bf16.mxu0 %v14623_v33  ;;  %v17738_v33 = vld [vmem:[#allocation16 + $0x1c0] sm:$0xff]  }
 0xfff   : > { %15754 = vmatprep.subr.bf16.mxu1 %v17738_v33 }
0x1001   : > { %12247 = vmatpush1.bf16.msra.mxu0 %v14622_v10  ;;  %v17726_v10 = vld [vmem:[#allocation16 + $0x150] sm:$0xff]  }
0x1002   : > { %12248 = vmatprep.subr.bf16.mxu0 %v14631_v59  ;;  %v17728_v59 = vld [vmem:[#allocation16 + $0x158] sm:$0xff]  }
0x1005   : > { %12249 = vmatpush1.bf16.msra.mxu0 %v14630_v11  ;;  %v17732_v11 = vld [vmem:[#allocation16 + $0x168] sm:$0xff]  }
0x1006   : > { %12250 = vmatprep.subr.bf16.mxu0 %v14639_v24  ;;  %v17733_v24 = vld [vmem:[#allocation16 + $0x128] sm:$0xff]  }
0x1009   : > { %12251 = vmatpush1.bf16.msra.mxu0 %v14638_v20  ;;  %v17736_v20 = vld [vmem:[#allocation16 + $0x178] sm:$0xff]  }
0x100a   : > { %12252 = vmatprep.subr.bf16.mxu0 %v14647_v28  ;;  %v17737_v28 = vld [vmem:[#allocation16 + $0x138] sm:$0xff]  }
0x100d   : > { %12253 = vmatpush1.bf16.msra.mxu0 %v14646_v25 }
0x100e   : > { %12254 = vmatprep.subr.bf16.mxu0 %v14655_v45 }
0x1011   : > { %12255 = vmatpush1.bf16.msra.mxu0 %v14654_v51 }
0x1012   : > { %12256 = vmatprep.subr.bf16.mxu0 %v14663_v9 }
0x1015   : > { %12257 = vmatpush1.bf16.msra.mxu0 %v14662_v46  ;;  %v17739_v46 = vld [vmem:[#allocation16 + $0x180] sm:$0xff]  }
0x1016   : > { %12258 = vmatprep.subr.bf16.mxu0 %v14671_v58  ;;  %v17740_v58 = vld [vmem:[#allocation16 + $0x1c8] sm:$0xff]  }
0x1019   : > { %12259 = vmatpush1.bf16.msra.mxu0 %v14670_v62  ;;  %v17743_v62 = vld [vmem:[#allocation16 + $0x190] sm:$0xff]  }
0x101a   : > { %12260 = vmatprep.subr.bf16.mxu0 %v14679_v53  ;;  %v17744_v53 = vld [vmem:[#allocation16 + $0x1d8] sm:$0xff]  }
0x101d   : > { %12261 = vmatpush1.bf16.msra.mxu0 %v14678_v23  ;;  %v17747_v23 = vld [vmem:[#allocation16 + $0x1a0] sm:$0xff]  }
0x101e   : > { %12262 = vmatprep.subr.bf16.mxu0 %v14687_v43  ;;  %v17748_v43 = vld [vmem:[#allocation16 + $0x1e8] sm:$0xff]  }
0x1021   : > { %12263 = vmatpush1.bf16.msra.mxu0 %v14686_v2  ;;  %v17749_v2 = vld [vmem:[#allocation16 + $0x1a8] sm:$0xff]  }
0x1022   : > { %15688 = vmatprep.subr.bf16.mxu0 %v17690_v5  ;;  %v17750_v5 = vld [vmem:[#allocation16 + $0x1f0] sm:$0xff]  }
0x1024   : > { %12265 = vmatmul.mubr.bf16.vlgmr.msra.gmra.mrb[252].mxu0 %v20137_v42  ;;  %v17702_v42 = vld [vmem:[#allocation16 + $0x70] sm:$0xff]  }
0x1025   : > { %15689 = vmatpush3.bf16.msra.mxu0 %v17691_v32  ;;  %v17751_v32 = vld [vmem:[#allocation16 + $0x1b0] sm:$0xff]  }
0x1026   : > { %15690 = vmatprep.subr.bf16.mxu0 %v17692_v4  ;;  %v17752_v4 = vld [vmem:[#allocation16 + $0x1f8] sm:$0xff]  }
0x1029   : > { %15691 = vmatpush3.bf16.msra.mxu0 %v17693_v13  ;;  %v17753_v13 = vld [vmem:[#allocation16 + $0x1b8] sm:$0xff]  }
0x102a   : > { %15692 = vmatprep.subr.bf16.mxu0 %v17694_v6 }
0x102d   : > { %15693 = vmatpush3.bf16.msra.mxu0 %v17695_v35 }
0x102e   : > { %15694 = vmatprep.subr.bf16.mxu0 %v17696_v18 }
0x1031   : > { %15695 = vmatpush3.bf16.msra.mxu0 %v17697_v22 }
0x1032   : > { %15696 = vmatprep.subr.bf16.mxu0 %v17698_v36 }
0x1035   : > { %15697 = vmatpush3.bf16.msra.mxu0 %v17699_v12 }
0x1036   : > { %15698 = vmatprep.subr.bf16.mxu0 %v17700_v39 }
0x1037   : > { %v12137_v60 = vpop.f32.mrb[240].mxu0 }
0x1038   : > { %v12139_v17 = vpop.f32.mrb[241].mxu0  ;;  %v12275_v38 = vmax.f32 %v12137_v60, 0.0 }
0x1039   : > { %15699 = vmatpush3.bf16.msra.mxu0 %v17701_v56  ;;  %v12141_v0 = vpop.f32.mrb[242].mxu0  ;;  %v12276_v31 = vmax.f32 %v12139_v17, 0.0 }
0x103a   : > { %v12283_v57 = vmax.f32 %v12141_v0, 0.0  ;;  %v12143_v48 = vpop.f32.mrb[243].mxu0  ;;  %15700 = vmatprep.subr.bf16.mxu0 %v17702_v42 }
0x103b   : > { %v12284_v26 = vmax.f32 %v12143_v48, 0.0 }
0x103c   : > { %v12291_v55 = vpack.c.bf16 %v12283_v57, %v12275_v38 }
0x103d   : > { %v12292_v44 = vpack.c.bf16 %v12284_v26, %v12276_v31  ;;  %15701 = vmatpush3.bf16.msra.mxu0 %v17703_v21 }
0x103e   : > { %15702 = vmatprep.subr.bf16.mxu0 %v17704_v30 }
0x103f   : > { %12843 = vmatprep.mubr.bf16.mxu0 %v12292_v44 }
0x1041   : > { %15703 = vmatpush3.bf16.msra.mxu0 %v17705_v47 }
0x1042   : > { %15732 = vmatprep.subr.bf16.mxu0 %v17722_v14 }
0x1044   : > { %12844 = vmatmul.mubr.bf16.vlgmr.msra.gmra.mrb[0].mxu0 %v12291_v55 }
0x1045   : > { %15733 = vmatpush3.bf16.msra.mxu0 %v17723_v40 }
0x1046   : > { %15734 = vmatprep.subr.bf16.mxu0 %v17724_v50 }
0x1049   : > { %15735 = vmatpush3.bf16.msra.mxu0 %v17725_v41 }
0x104a   : > { %15736 = vmatprep.subr.bf16.mxu0 %v17726_v10 }
0x104d   : > { %15737 = vmatpush3.bf16.msra.mxu0 %v17727_v1 }
0x104e   : > { %15738 = vmatprep.subr.bf16.mxu0 %v17728_v59 }
0x1051   : > { %15739 = vmatpush3.bf16.msra.mxu0 %v17729_v8 }
0x1052   : > { %15740 = vmatprep.subr.bf16.mxu0 %v17730_v7 }
0x1055   : > { %15741 = vmatpush3.bf16.msra.mxu0 %v17731_v61 }
0x1056   : > { %15742 = vmatprep.subr.bf16.mxu0 %v17732_v11 }
0x1059   : > { %15743 = vmatpush3.bf16.msra.mxu0 %v17733_v24  ;;  %v12975_v24 = vld [vmem:[%s20330_s12] sm:$0xff] }
0x105a   : > { %15744 = vmatprep.subr.bf16.mxu0 %v17734_v52  ;;  %v13003_v52 = vld [vmem:[%s20330_s12 + $0xe0] sm:$0xff] }
0x105d   : > { %15745 = vmatpush3.bf16.msra.mxu0 %v17735_v63 }
0x105e   : > { %15746 = vmatprep.subr.bf16.mxu0 %v17736_v20 }
0x1061   : > { %15747 = vmatpush3.bf16.msra.mxu0 %v17737_v28 }
0x1077   : > { %v12180_v34 = vpop.f32.mrb[244].mxu0 }
0x1078   : > { %v12182_v16 = vpop.f32.mrb[245].mxu0  ;;  %v12277_v45 = vmax.f32 %v12180_v34, 0.0 }
0x1079   : > { %v12184_v25 = vpop.f32.mrb[246].mxu0  ;;  %v12278_v51 = vmax.f32 %v12182_v16, 0.0 }
0x107a   : > { %v12285_v19 = vmax.f32 %v12184_v25, 0.0  ;;  %v12186_v37 = vpop.f32.mrb[247].mxu0 }
0x107b   : > { %v12286_v9 = vmax.f32 %v12186_v37, 0.0 }
0x107c   : > { %v12293_v49 = vpack.c.bf16 %v12285_v19, %v12277_v45 }
0x107d   : > { %v12294_v54 = vpack.c.bf16 %v12286_v9, %v12278_v51 }
0x107f   : > { %12884 = vmatprep.mubr.bf16.mxu1 %v12294_v54 }
0x1080   : > { %12885 = vmatmul.mubr.bf16.vlgmr.msra.gmra.mrb[0].mxu1 %v12293_v49 }
0x1081   : > { %15755 = vmatpush3.bf16.msra.mxu1 %v17739_v46 }
0x1082   : > { %15756 = vmatprep.subr.bf16.mxu1 %v17740_v58 }
0x1085   : > { %15757 = vmatpush3.bf16.msra.mxu1 %v17741_v27 }
0x1086   : > { %15758 = vmatprep.subr.bf16.mxu1 %v17742_v15 }
0x1089   : > { %15759 = vmatpush3.bf16.msra.mxu1 %v17743_v62  ;;  %v12976_v62 = vld [vmem:[%s20330_s12 + $0x8] sm:$0xff] }
0x108a   : > { %15760 = vmatprep.subr.bf16.mxu1 %v17744_v53  ;;  %v13004_v53 = vld [vmem:[%s20330_s12 + $0xe8] sm:$0xff] }
0x108d   : > { %15761 = vmatpush3.bf16.msra.mxu1 %v17745_v29  ;;  %v12977_v29 = vld [vmem:[%s20330_s12 + $0x10] sm:$0xff] }
0x108e   : > { %15762 = vmatprep.subr.bf16.mxu1 %v17746_v3  ;;  %v13005_v3 = vld [vmem:[%s20330_s12 + $0xf0] sm:$0xff] }
0x1091   : > { %15763 = vmatpush3.bf16.msra.mxu1 %v17747_v23  ;;  %v12978_v23 = vld [vmem:[%s20330_s12 + $0x18] sm:$0xff] }
0x1092   : > { %15764 = vmatprep.subr.bf16.mxu1 %v17748_v43  ;;  %v13006_v43 = vld [vmem:[%s20330_s12 + $0xf8] sm:$0xff] }
0x1095   : > { %15765 = vmatpush3.bf16.msra.mxu1 %v17749_v2  ;;  %v12979_v2 = vld [vmem:[%s20330_s12 + $0x20] sm:$0xff] }
0x1096   : > { %15766 = vmatprep.subr.bf16.mxu1 %v17750_v5  ;;  %v12980_v5 = vld [vmem:[%s20330_s12 + $0x28] sm:$0xff] }
0x1099   : > { %15767 = vmatpush3.bf16.msra.mxu1 %v17751_v32  ;;  %v12981_v32 = vld [vmem:[%s20330_s12 + $0x30] sm:$0xff] }
0x109a   : > { %15768 = vmatprep.subr.bf16.mxu1 %v17752_v4  ;;  %v12982_v4 = vld [vmem:[%s20330_s12 + $0x38] sm:$0xff] }
0x109d   : > { %15769 = vmatpush3.bf16.msra.mxu1 %v17753_v13  ;;  %v12983_v13 = vld [vmem:[%s20330_s12 + $0x40] sm:$0xff] }
0x10b7   : > { %v12223_v6 = vpop.f32.mrb[248].mxu0 }
0x10b8   : > { %v12225_v35 = vpop.f32.mrb[249].mxu0  ;;  %v12279_v22 = vmax.f32 %v12223_v6, 0.0  ;;  %v12984_v6 = vld [vmem:[%s20330_s12 + $0x48] sm:$0xff] }
0x10b9   : > { %v12227_v18 = vpop.f32.mrb[250].mxu0  ;;  %v12280_v39 = vmax.f32 %v12225_v35, 0.0  ;;  %v12985_v35 = vld [vmem:[%s20330_s12 + $0x50] sm:$0xff] }
0x10ba   : > { %v12287_v36 = vmax.f32 %v12227_v18, 0.0  ;;  %v12229_v12 = vpop.f32.mrb[251].mxu0  ;;  %v12986_v18 = vld [vmem:[%s20330_s12 + $0x58] sm:$0xff] }
0x10bb   : > { %v12288_v56 = vmax.f32 %v12229_v12, 0.0  ;;  %v12989_v12 = vld [vmem:[%s20330_s12 + $0x70] sm:$0xff] }
0x10bc   : > { %v12295_v42 = vpack.c.bf16 %v12287_v36, %v12279_v22  ;;  %v12987_v22 = vld [vmem:[%s20330_s12 + $0x60] sm:$0xff]  ;;  %v12988_v36 = vld [vmem:[%s20330_s12 + $0x68] sm:$0xff] }
0x10bd   : > { %v12296_v60 = vpack.c.bf16 %v12288_v56, %v12280_v39  ;;  %v12990_v39 = vld [vmem:[%s20330_s12 + $0x78] sm:$0xff]  ;;  %v12991_v56 = vld [vmem:[%s20330_s12 + $0x80] sm:$0xff] }
0x10bf   : > { %12925 = vmatprep.mubr.bf16.mxu0 %v12296_v60  ;;  %v12993_v60 = vld [vmem:[%s20330_s12 + $0x90] sm:$0xff] }
0x10c0   : > { %12926 = vmatmul.mubr.bf16.vlgmr.msra.gmra.mrb[4].mxu0 %v12295_v42  ;;  %v12992_v42 = vld [vmem:[%s20330_s12 + $0x88] sm:$0xff] }
0x10c1   : > { %15965 = vmatprep.mubr.msk.f32.mxu0 %vm13007_vm5, %v12975_v24 }
0x10f7   : > { %v12266_v17 = vpop.f32.mrb[252].mxu0 }
0x10f8   : > { %v12268_v0 = vpop.f32.mrb[253].mxu0  ;;  %v12281_v38 = vmax.f32 %v12266_v17, 0.0  ;;  %v12994_v17 = vld [vmem:[%s20330_s12 + $0x98] sm:$0xff] }
0x10f9   : > { %v12270_v21 = vpop.f32.mrb[254].mxu0  ;;  %v12282_v30 = vmax.f32 %v12268_v0, 0.0  ;;  %v12995_v0 = vld [vmem:[%s20330_s12 + $0xa0] sm:$0xff] }
0x10fa   : > { %v12289_v57 = vmax.f32 %v12270_v21, 0.0  ;;  %v12272_v48 = vpop.f32.mrb[255].mxu0  ;;  %v12996_v21 = vld [vmem:[%s20330_s12 + $0xa8] sm:$0xff] }
0x10fb   : > { %v12290_v31 = vmax.f32 %v12272_v48, 0.0  ;;  %v12999_v48 = vld [vmem:[%s20330_s12 + $0xc0] sm:$0xff] }
0x10fc   : > { %v12297_v26 = vpack.c.bf16 %v12289_v57, %v12281_v38  ;;  %v12997_v38 = vld [vmem:[%s20330_s12 + $0xb0] sm:$0xff]  ;;  %v12998_v57 = vld [vmem:[%s20330_s12 + $0xb8] sm:$0xff] }
0x10fd   : > { %v12298_v55 = vpack.c.bf16 %v12290_v31, %v12282_v30  ;;  %v13000_v30 = vld [vmem:[%s20330_s12 + $0xc8] sm:$0xff]  ;;  %v13001_v31 = vld [vmem:[%s20330_s12 + $0xd0] sm:$0xff] }
0x10ff   : > { %12966 = vmatprep.mubr.bf16.mxu1 %v12298_v55 }
0x1100   : > { %12967 = vmatmul.mubr.bf16.vlgmr.msra.gmra.mrb[4].mxu1 %v12297_v26  ;;  %v13002_v26 = vld [vmem:[%s20330_s12 + $0xd8] sm:$0xff] }
0x1101   : > { %16007 = vmatprep.mubr.msk.f32.mxu1 %vm13007_vm5, %v13003_v52 }
0x1117   : > { %v15704_v44 = vpop.f32.mrb[0].mxu0 }
0x1118   : > { %v15705_v47 = vpop.f32.mrb[1].mxu0 }
0x1119   : > { %v15706_v14 = vadd.f32 %v15705_v47, %v15704_v44  ;;  %v15707_v33 = vpop.f32.mrb[2].mxu0 }
0x111a   : > { %v15708_v40 = vpop.f32.mrb[3].mxu0 }
0x111b   : > { %v15709_v50 = vadd.f32 %v15708_v40, %v15707_v33 }
0x1153   : > { %v15726_v41 = vpop.f32.mrb[0].mxu1 }
0x1154   : > { %v15727_v10 = vpop.f32.mrb[1].mxu1 }
0x1155   : > { %v15728_v1 = vadd.f32 %v15727_v10, %v15726_v41  ;;  %v15729_v59 = vpop.f32.mrb[2].mxu1 }
0x1156   : > { %v15730_v8 = vpop.f32.mrb[3].mxu1 }
0x1157   : > { %v12887_v7 = vadd.f32 %v15728_v1, %v15706_v14  ;;  %v15731_v61 = vadd.f32 %v15730_v8, %v15729_v59 }
0x1159   : > { %v12890_v11 = vadd.f32 %v15731_v61, %v15709_v50 }
0x1193   : > { %v15748_v63 = vpop.f32.mrb[4].mxu0 }
0x1194   : > { %v15749_v20 = vpop.f32.mrb[5].mxu0 }
0x1195   : > { %v15750_v28 = vadd.f32 %v15749_v20, %v15748_v63  ;;  %v15751_v34 = vpop.f32.mrb[6].mxu0 }
0x1196   : > { %v15752_v16 = vpop.f32.mrb[7].mxu0 }
0x1197   : > { %v12928_v25 = vadd.f32 %v15750_v28, %v12887_v7  ;;  %v15753_v45 = vadd.f32 %v15752_v16, %v15751_v34 }
0x1199   : > { %v12931_v19 = vadd.f32 %v15753_v45, %v12890_v11 }
0x11d3   : > { %v15770_v37 = vpop.f32.mrb[4].mxu1 }
0x11d4   : > { %v15771_v51 = vpop.f32.mrb[5].mxu1 }
0x11d5   : > { %v15772_v9 = vadd.f32 %v15771_v51, %v15770_v37  ;;  %v15773_v49 = vpop.f32.mrb[6].mxu1 }
0x11d6   : > { %v15774_v54 = vpop.f32.mrb[7].mxu1 }
0x11d7   : > { %v12969_v46 = vadd.f32 %v15772_v9, %v12928_v25  ;;  %v15775_v58 = vadd.f32 %v15774_v54, %v15773_v49 }
0x11d9   : > { %v12972_v27 = vadd.f32 %v15775_v58, %v12931_v19 }
0x11db   : > { %v16061_v15 = vpack.c.bf16 %v12972_v27, %v12969_v46 }
0x11dd   : > { %16062 = vmatprep.subr.bf16.mxu0 %v16061_v15  ;;  %16069 = vmatprep.subr.bf16.mxu1 %v16061_v15 }
0x11de   : > { %16064 = vmatpush3.bf16.msra.mxu0 %v16061_v15  ;;  %16070 = vmatpush3.bf16.msra.mxu1 %v16061_v15 }
0x11e1   : > { %15966 = vmatmul.mubr.msk.f32.vlgmr.msra.gmra.mrb[234].mxu0 %vm13007_vm5, %v12976_v62  ;;  %16008 = vmatmul.mubr.msk.f32.vlgmr.msra.gmra.mrb[8].mxu1 %vm13007_vm5, %v13004_v53 }
0x11e2   : > { %15968 = vmatprep.mubr.msk.f32.mxu0 %vm13007_vm5, %v12977_v29  ;;  %16010 = vmatprep.mubr.msk.f32.mxu1 %vm13007_vm5, %v13005_v3 }
0x11e5   : > { %15969 = vmatmul.mubr.msk.f32.gmra.mrb[8].mxu0 %vm13007_vm5, %v12978_v23  ;;  %16011 = vmatmul.mubr.msk.f32.gmra.mrb[10].mxu1 %vm13007_vm5, %v13006_v43 }
0x11e6   : > { %15971 = vmatprep.mubr.msk.f32.mxu0 %vm13007_vm5, %v12979_v2 }
0x11e9   : > { %15972 = vmatmul.mubr.msk.f32.gmra.mrb[10].mxu0 %vm13007_vm5, %v12980_v5 }
0x11ea   : > { %15974 = vmatprep.mubr.msk.f32.mxu0 %vm13007_vm5, %v12981_v32 }
0x11ed   : > { %15975 = vmatmul.mubr.msk.f32.gmra.mrb[12].mxu0 %vm13007_vm5, %v12982_v4 }
0x11ee   : > { %15977 = vmatprep.mubr.msk.f32.mxu0 %vm13007_vm5, %v12983_v13 }
0x11f1   : > { %15978 = vmatmul.mubr.msk.f32.gmra.mrb[14].mxu0 %vm13007_vm5, %v12984_v6 }
0x11f2   : > { %15980 = vmatprep.mubr.msk.f32.mxu0 %vm13007_vm5, %v12985_v35 }
0x11f5   : > { %15981 = vmatmul.mubr.msk.f32.gmra.mrb[16].mxu0 %vm13007_vm5, %v12986_v18 }
0x11f6   : > { %15983 = vmatprep.mubr.msk.f32.mxu0 %vm13007_vm5, %v12987_v22 }
0x11f9   : > { %15984 = vmatmul.mubr.msk.f32.gmra.mrb[18].mxu0 %vm13007_vm5, %v12988_v36 }
0x11fa   : > { %15986 = vmatprep.mubr.msk.f32.mxu0 %vm13007_vm5, %v12989_v12 }
0x11fd   : > { %15987 = vmatmul.mubr.msk.f32.gmra.mrb[20].mxu0 %vm13007_vm5, %v12990_v39 }
0x11fe   : > { %15989 = vmatprep.mubr.msk.f32.mxu0 %vm13007_vm5, %v12991_v56 }
0x1201   : > { %15990 = vmatmul.mubr.msk.f32.gmra.mrb[22].mxu0 %vm13007_vm5, %v12992_v42 }
0x1202   : > { %15992 = vmatprep.mubr.msk.f32.mxu0 %vm13007_vm5, %v12993_v60 }
0x1205   : > { %15993 = vmatmul.mubr.msk.f32.gmra.mrb[24].mxu0 %vm13007_vm5, %v12994_v17 }
0x1206   : > { %15995 = vmatprep.mubr.msk.f32.mxu0 %vm13007_vm5, %v12995_v0 }
0x1209   : > { %15996 = vmatmul.mubr.msk.f32.gmra.mrb[26].mxu0 %vm13007_vm5, %v12996_v21 }
0x120a   : > { %15998 = vmatprep.mubr.msk.f32.mxu0 %vm13007_vm5, %v12997_v38 }
0x120d   : > { %15999 = vmatmul.mubr.msk.f32.gmra.mrb[28].mxu0 %vm13007_vm5, %v12998_v57 }
0x120e   : > { %16001 = vmatprep.mubr.msk.f32.mxu0 %vm13007_vm5, %v12999_v48 }
0x1211   : > { %16002 = vmatmul.mubr.msk.f32.gmra.mrb[30].mxu0 %vm13007_vm5, %v13000_v30 }
0x1212   : > { %16004 = vmatprep.mubr.msk.f32.mxu0 %vm13007_vm5, %v13001_v31 }
0x1215   : > { %16005 = vmatmul.mubr.msk.f32.gmra.mrb[32].mxu0 %vm13007_vm5, %v13002_v26 }
0x12b4   : > { %v15967_v55 = vpop.f32.mrb[234].mxu0  ;;  %v16009_v44 = vpop.f32.mrb[8].mxu1 }
0x12b5   : > { %13330 = vst [vmem:[%s20281_s13 + $0x8] sm:$0xff] %v15967_v55  ;;  %v13170_v47 = vpop.f32.mrb[235].mxu0  ;;  %13358 = vst [vmem:[%s20281_s13 + $0xe8] sm:$0xff] %v16009_v44  ;;  %v13310_v14 = vpop.f32.mrb[9].mxu1 }
0x12b6   : > { %13329 = vst [vmem:[%s20281_s13] sm:$0xff] %v13170_v47  ;;  %13357 = vst [vmem:[%s20281_s13 + $0xe0] sm:$0xff] %v13310_v14 }
0x12b8   : > { %v15970_v33 = vpop.f32.mrb[8].mxu0  ;;  %v16012_v40 = vpop.f32.mrb[10].mxu1 }
0x12b9   : > { %13332 = vst [vmem:[%s20281_s13 + $0x18] sm:$0xff] %v15970_v33  ;;  %v13180_v50 = vpop.f32.mrb[9].mxu0  ;;  %13360 = vst [vmem:[%s20281_s13 + $0xf8] sm:$0xff] %v16012_v40  ;;  %v13320_v41 = vpop.f32.mrb[11].mxu1 }
0x12ba   : > { %13331 = vst [vmem:[%s20281_s13 + $0x10] sm:$0xff] %v13180_v50  ;;  %13359 = vst [vmem:[%s20281_s13 + $0xf0] sm:$0xff] %v13320_v41 }
0x12bc   : > { %v15973_v10 = vpop.f32.mrb[10].mxu0 }
0x12bd   : > { %13334 = vst [vmem:[%s20281_s13 + $0x28] sm:$0xff] %v15973_v10  ;;  %v13190_v1 = vpop.f32.mrb[11].mxu0 }
0x12be   : > { %13333 = vst [vmem:[%s20281_s13 + $0x20] sm:$0xff] %v13190_v1 }
0x12c0   : > { %v15976_v59 = vpop.f32.mrb[12].mxu0 }
0x12c1   : > { %13336 = vst [vmem:[%s20281_s13 + $0x38] sm:$0xff] %v15976_v59  ;;  %v13200_v8 = vpop.f32.mrb[13].mxu0 }
0x12c2   : > { %13335 = vst [vmem:[%s20281_s13 + $0x30] sm:$0xff] %v13200_v8 }
0x12c4   : > { %v15979_v7 = vpop.f32.mrb[14].mxu0 }
0x12c5   : > { %13338 = vst [vmem:[%s20281_s13 + $0x48] sm:$0xff] %v15979_v7  ;;  %v13210_v61 = vpop.f32.mrb[15].mxu0 }
0x12c6   : > { %13337 = vst [vmem:[%s20281_s13 + $0x40] sm:$0xff] %v13210_v61 }
0x12c8   : > { %v15982_v11 = vpop.f32.mrb[16].mxu0 }
0x12c9   : > { %13340 = vst [vmem:[%s20281_s13 + $0x58] sm:$0xff] %v15982_v11  ;;  %v13220_v24 = vpop.f32.mrb[17].mxu0 }
0x12ca   : > { %13339 = vst [vmem:[%s20281_s13 + $0x50] sm:$0xff] %v13220_v24 }
0x12cc   : > { %v15985_v52 = vpop.f32.mrb[18].mxu0 }
0x12cd   : > { %13342 = vst [vmem:[%s20281_s13 + $0x68] sm:$0xff] %v15985_v52  ;;  %v13230_v63 = vpop.f32.mrb[19].mxu0 }
0x12ce   : > { %13341 = vst [vmem:[%s20281_s13 + $0x60] sm:$0xff] %v13230_v63 }
0x12d0   : > { %v15988_v20 = vpop.f32.mrb[20].mxu0 }
0x12d1   : > { %13344 = vst [vmem:[%s20281_s13 + $0x78] sm:$0xff] %v15988_v20  ;;  %v13240_v28 = vpop.f32.mrb[21].mxu0 }
0x12d2   : > { %13343 = vst [vmem:[%s20281_s13 + $0x70] sm:$0xff] %v13240_v28 }
0x12d4   : > { %v15991_v34 = vpop.f32.mrb[22].mxu0 }
0x12d5   : > { %13346 = vst [vmem:[%s20281_s13 + $0x88] sm:$0xff] %v15991_v34  ;;  %v13250_v16 = vpop.f32.mrb[23].mxu0 }
0x12d6   : > { %13345 = vst [vmem:[%s20281_s13 + $0x80] sm:$0xff] %v13250_v16 }
0x12d8   : > { %v15994_v25 = vpop.f32.mrb[24].mxu0 }
0x12d9   : > { %13348 = vst [vmem:[%s20281_s13 + $0x98] sm:$0xff] %v15994_v25  ;;  %v13260_v45 = vpop.f32.mrb[25].mxu0 }
0x12da   : > { %13347 = vst [vmem:[%s20281_s13 + $0x90] sm:$0xff] %v13260_v45 }
0x12dc   : > { %v15997_v19 = vpop.f32.mrb[26].mxu0 }
0x12dd   : > { %13350 = vst [vmem:[%s20281_s13 + $0xa8] sm:$0xff] %v15997_v19  ;;  %v13270_v37 = vpop.f32.mrb[27].mxu0 }
0x12de   : > { %13349 = vst [vmem:[%s20281_s13 + $0xa0] sm:$0xff] %v13270_v37 }
0x12e0   : > { %v16000_v51 = vpop.f32.mrb[28].mxu0 }
0x12e1   : > { %13352 = vst [vmem:[%s20281_s13 + $0xb8] sm:$0xff] %v16000_v51  ;;  %v13280_v9 = vpop.f32.mrb[29].mxu0 }
0x12e2   : > { %13351 = vst [vmem:[%s20281_s13 + $0xb0] sm:$0xff] %v13280_v9 }
0x12e4   : > { %v16003_v49 = vpop.f32.mrb[30].mxu0 }
0x12e5   : > { %13354 = vst [vmem:[%s20281_s13 + $0xc8] sm:$0xff] %v16003_v49  ;;  %v13290_v54 = vpop.f32.mrb[31].mxu0 }
0x12e6   : > { %13353 = vst [vmem:[%s20281_s13 + $0xc0] sm:$0xff] %v13290_v54 }
0x12e8   : > { %v16006_v46 = vpop.f32.mrb[32].mxu0 }
0x12e9   : > { %13356 = vst [vmem:[%s20281_s13 + $0xd8] sm:$0xff] %v16006_v46  ;;  %v13300_v58 = vpop.f32.mrb[33].mxu0 }
0x12ea   : > { %13355 = vst [vmem:[%s20281_s13 + $0xd0] sm:$0xff] %v13300_v58 }
0x12eb PF: > { %s20364_s26 = sld [smem:[#allocation21_spill]] }
0x12f1   : > { %s27_s25 = sadd.s32 1, %s20364_s26  }
0x12f2   : > { %p24_p6 = scmp.ge.s32.totalorder %s27_s25, 4  }
0x12f4   :  { %26 = sbr.rel (!%p24_p6) target bundleno = 7 (0x7), region = 139 }
0x12fb   :  { %13382 = vsyncpa [#allocation7], 1 }
0x12fc   :  { %13384 = vsyncpa [#allocation7 + $0x1], 1 }
0x12fd   :  { %13385 = vsyncpa [#allocation9], 1 }
0x12fe   :  { %13386 = vsyncpa [#allocation12], 1 }
0x12ff   :  { %13387 = vsyncpa [#allocation15], 1 }

</bundles_post_ra>
